<compile_context>
chip_gen: v7x
topology: tpu7x:2x2x1
jax: 0.10.0
libtpu: 0.0.40
codegen_flags: <defaults>
</compile_context>

<pallas_src>
import numpy as np

import jax
import jax.numpy as jnp
from jax.experimental import pallas as pl
from jax.experimental.pallas import tpu as pltpu


# --------------------------------------------------------------------------
# Kernel
# --------------------------------------------------------------------------
def _fused_cnn_kernel(x_ref, s_ref, w1_ref, b1_ref, w2_ref, b2_ref,
                      w3_ref, b3_ref, o_ref):
    """One image per grid step.

    x_ref : (1, Cin, H*W)   channel-major, lane-dense input
    s_ref : (9, H*W, H*W)   one-hot shift matrices (zero-padding built in)
    wK_ref: (9, Cout, Cin)  per-tap weights, MXU-ready
    bK_ref: (Cout, 1)       bias (broadcast over lanes)
    o_ref : (1, Cout, H*W)  lane-dense output (== flattened NCHW)
    """
    hw = x_ref.shape[-1]

    def conv3x3(a, w_ref, b_ref):
        cout = w_ref.shape[1]
        # Fold the bias into the accumulator init (broadcast over the lane axis).
        acc = b_ref[...] + jnp.zeros((cout, hw), jnp.float32)
        for t in range(9):                       # static unroll: 9 taps
            # Boundary-aware spatial shift done on the MXU (K = H*W = 256),
            # no slicing / reshaping / lane relayout of activations.
            shifted = jnp.dot(a, s_ref[t], preferred_element_type=jnp.float32)
            acc = acc + jnp.dot(w_ref[t], shifted,
                                preferred_element_type=jnp.float32)
        return acc

    a0 = x_ref[0]                                               # (Cin, HW)
    a1 = jnp.maximum(conv3x3(a0, w1_ref, b1_ref), 0.0)          # (16,  HW)
    a2 = jnp.maximum(conv3x3(a1, w2_ref, b2_ref), 0.0)          # (64,  HW)
    logits = conv3x3(a2, w3_ref, b3_ref)                        # (Cout,HW)
    o_ref[0] = jnp.round(jax.nn.sigmoid(logits))


# --------------------------------------------------------------------------
# Host-side helpers
# --------------------------------------------------------------------------
def _shift_matrices(H, W):
    """S[t, q, p] = 1  iff  input pixel q feeds output pixel p under tap t.

    Tap t = (dh+1)*3 + (dw+1), dh/dw in {-1,0,1}; out-of-bounds sources are
    simply absent (row of zeros) -> exact 'same' zero padding.
    """
    S = np.zeros((9, H * W, H * W), dtype=np.float32)
    taps = [(dh, dw) for dh in (-1, 0, 1) for dw in (-1, 0, 1)]
    for t, (dh, dw) in enumerate(taps):
        for h in range(H):
            hh = h + dh
            if not (0 <= hh < H):
                continue
            for w in range(W):
                ww = w + dw
                if 0 <= ww < W:
                    S[t, hh * W + ww, h * W + w] = 1.0
    return S


def init_params(key, in_channels, out_channel):
    """Deterministic PyTorch-style (kaiming-uniform-ish) init for the 3 convs."""
    chans = [(in_channels, 16), (16, 64), (64, out_channel)]
    params = []
    for i, (cin, cout) in enumerate(chans):
        kw_key, kb_key = jax.random.split(jax.random.fold_in(key, i))
        bound = 1.0 / jnp.sqrt(cin * 9.0)
        w = jax.random.uniform(kw_key, (3, 3, cin, cout), jnp.float32,
                               minval=-bound, maxval=bound)
        b = jax.random.uniform(kb_key, (cout,), jnp.float32,
                               minval=-bound, maxval=bound)
        params.append((w, b))
    return params


@jax.jit
def cnn_forward(x_nchw, params):
    """Matches PyTorch CNN.forward. Input/output NCHW; single fused kernel."""
    N, Cin, H, W = x_nchw.shape
    HW = H * W
    (w1, b1), (w2, b2), (w3, b3) = params
    c1, c2, c3 = w1.shape[-1], w2.shape[-1], w3.shape[-1]

    # jit-time constant; hoisted to a device buffer, DMA'd into VMEM once per call.
    S = jnp.asarray(_shift_matrices(H, W))

    def pack_w(w):        # (3,3,cin,cout) -> (9, cout, cin), MXU-ready
        return jnp.transpose(w, (0, 1, 3, 2)).reshape(9, w.shape[3], w.shape[2])

    x_flat = x_nchw.reshape(N, Cin, HW)          # channel-major, lane-dense (free reshape)

    out = pl.pallas_call(
        _fused_cnn_kernel,
        out_shape=jax.ShapeDtypeStruct((N, c3, HW), jnp.float32),
        grid=(N,),
        in_specs=[
            pl.BlockSpec((1, Cin, HW), lambda n: (n, 0, 0)),     # per-image input
            pl.BlockSpec((9, HW, HW), lambda n: (0, 0, 0)),      # shift matrices (resident)
            pl.BlockSpec((9, c1, Cin), lambda n: (0, 0, 0)),
            pl.BlockSpec((c1, 1), lambda n: (0, 0)),
            pl.BlockSpec((9, c2, c1), lambda n: (0, 0, 0)),
            pl.BlockSpec((c2, 1), lambda n: (0, 0)),
            pl.BlockSpec((9, c3, c2), lambda n: (0, 0, 0)),
            pl.BlockSpec((c3, 1), lambda n: (0, 0)),
        ],
        out_specs=pl.BlockSpec((1, c3, HW), lambda n: (n, 0, 0)),  # lane-dense output
        compiler_params=pltpu.CompilerParams(
            dimension_semantics=("parallel",)),   # v7x: one image per TensorCore
    )(x_flat, S,
      pack_w(w1), b1.reshape(c1, 1),
      pack_w(w2), b2.reshape(c2, 1),
      pack_w(w3), b3.reshape(c3, 1))

    return out.reshape(N, c3, H, W)               # free reshape, already NCHW order


def _reference_forward(x_nchw, params):
    """Pure-JAX reference (lax.conv) for a correctness sanity check."""
    x = x_nchw
    for i, (w, b) in enumerate(params):
        w_oihw = jnp.transpose(w, (3, 2, 0, 1))   # (kh,kw,ci,co) -> OIHW
        x = jax.lax.conv_general_dilated(
            x, w_oihw, window_strides=(1, 1), padding="SAME",
            dimension_numbers=("NCHW", "OIHW", "NCHW"))
        x = x + b.reshape(1, -1, 1, 1)
        if i < 2:
            x = jnp.maximum(x, 0.0)
        else:
            x = jnp.round(jax.nn.sigmoid(x))
    return x


if __name__ == "__main__":
    key = jax.random.PRNGKey(0)
    in_channels, out_channel = 4, 4
    N, H, W = 2, 16, 16

    x = jax.random.normal(jax.random.fold_in(key, 100), (N, in_channels, H, W),
                          jnp.float32)
    params = init_params(key, in_channels, out_channel)

    out = cnn_forward(x, params)
    out = jax.block_until_ready(out)

    ref = _reference_forward(x, params)
    assert out.shape == (N, out_channel, H, W), out.shape
    assert jnp.allclose(out, ref, atol=1e-5), "mismatch vs JAX reference"

    print("KERNEL_OK")
</pallas_src>

<mosaic_0001>
module attributes {stable_mosaic.version = 11 : i64} {
  func.func @_fused_cnn_kernel(%arg0: i32, %arg1: memref<1x4x256xf32, #tpu.memory_space<vmem>>, %arg2: memref<9x256x256xf32, #tpu.memory_space<vmem>>, %arg3: memref<9x16x4xf32, #tpu.memory_space<vmem>>, %arg4: memref<16x1xf32, #tpu.memory_space<vmem>>, %arg5: memref<9x64x16xf32, #tpu.memory_space<vmem>>, %arg6: memref<64x1xf32, #tpu.memory_space<vmem>>, %arg7: memref<9x4x64xf32, #tpu.memory_space<vmem>>, %arg8: memref<4x1xf32, #tpu.memory_space<vmem>>, %arg9: memref<1x4x256xf32, #tpu.memory_space<vmem>>) attributes {dimension_semantics = [#tpu.dimension_semantics<parallel>], iteration_bounds = array<i64: 2>, scalar_prefetch = 0 : i64, scratch_operands = 0 : i64, tpu.core_type = #tpu.core_type<tc>, window_params = [{transform_indices = @transform_0, window_bounds = array<i64: 1, 4, 256>}, {pipeline_mode = #tpu.pipeline_mode<synchronous>, transform_indices = @transform_1, window_bounds = array<i64: 9, 256, 256>}, {pipeline_mode = #tpu.pipeline_mode<synchronous>, transform_indices = @transform_2, window_bounds = array<i64: 9, 16, 4>}, {pipeline_mode = #tpu.pipeline_mode<synchronous>, transform_indices = @transform_3, window_bounds = array<i64: 16, 1>}, {pipeline_mode = #tpu.pipeline_mode<synchronous>, transform_indices = @transform_4, window_bounds = array<i64: 9, 64, 16>}, {pipeline_mode = #tpu.pipeline_mode<synchronous>, transform_indices = @transform_5, window_bounds = array<i64: 64, 1>}, {pipeline_mode = #tpu.pipeline_mode<synchronous>, transform_indices = @transform_6, window_bounds = array<i64: 9, 4, 64>}, {pipeline_mode = #tpu.pipeline_mode<synchronous>, transform_indices = @transform_7, window_bounds = array<i64: 4, 1>}, {transform_indices = @transform_8, window_bounds = array<i64: 1, 4, 256>}]} {
    %c0 = arith.constant 0 : index
    %c0_0 = arith.constant 0 : index
    %c0_1 = arith.constant 0 : index
    %0 = vector.load %arg1[%c0, %c0_0, %c0_1] : memref<1x4x256xf32, #tpu.memory_space<vmem>>, vector<1x4x256xf32>
    %1 = vector.shape_cast %0 : vector<1x4x256xf32> to vector<4x256xf32>
    %c0_2 = arith.constant 0 : index
    %c0_3 = arith.constant 0 : index
    %2 = vector.load %arg4[%c0_2, %c0_3] : memref<16x1xf32, #tpu.memory_space<vmem>>, vector<16x1xf32>
    %cst = arith.constant 0.000000e+00 : f32
    %3 = vector.broadcast %cst : f32 to vector<16x256xf32>
    %4 = vector.broadcast %2 : vector<16x1xf32> to vector<16x256xf32>
    %5 = arith.addf %4, %3 : vector<16x256xf32>
    %c0_4 = arith.constant 0 : index
    %c0_5 = arith.constant 0 : index
    %c0_6 = arith.constant 0 : index
    %6 = vector.load %arg2[%c0_4, %c0_5, %c0_6] : memref<9x256x256xf32, #tpu.memory_space<vmem>>, vector<1x256x256xf32>
    %7 = vector.shape_cast %6 : vector<1x256x256xf32> to vector<256x256xf32>
    %cst_7 = arith.constant dense<0.000000e+00> : vector<4x256xf32>
    %8 = tpu.matmul %1, %7, %cst_7 {dimension_numbers = #tpu.dot_dimension_numbers<[1], [0], [0], [1], [0, 0, 1, 1], [], []>} : vector<4x256xf32>, vector<256x256xf32>, vector<4x256xf32> -> vector<4x256xf32>
    %c0_8 = arith.constant 0 : index
    %c0_9 = arith.constant 0 : index
    %c0_10 = arith.constant 0 : index
    %9 = vector.load %arg3[%c0_8, %c0_9, %c0_10] : memref<9x16x4xf32, #tpu.memory_space<vmem>>, vector<1x16x4xf32>
    %10 = vector.shape_cast %9 : vector<1x16x4xf32> to vector<16x4xf32>
    %cst_11 = arith.constant dense<0.000000e+00> : vector<16x256xf32>
    %11 = tpu.matmul %10, %8, %cst_11 {dimension_numbers = #tpu.dot_dimension_numbers<[1], [0], [0], [1], [0, 0, 1, 1], [], []>} : vector<16x4xf32>, vector<4x256xf32>, vector<16x256xf32> -> vector<16x256xf32>
    %12 = arith.addf %5, %11 : vector<16x256xf32>
    %c1 = arith.constant 1 : index
    %c0_12 = arith.constant 0 : index
    %c0_13 = arith.constant 0 : index
    %13 = vector.load %arg2[%c1, %c0_12, %c0_13] : memref<9x256x256xf32, #tpu.memory_space<vmem>>, vector<1x256x256xf32>
    %14 = vector.shape_cast %13 : vector<1x256x256xf32> to vector<256x256xf32>
    %cst_14 = arith.constant dense<0.000000e+00> : vector<4x256xf32>
    %15 = tpu.matmul %1, %14, %cst_14 {dimension_numbers = #tpu.dot_dimension_numbers<[1], [0], [0], [1], [0, 0, 1, 1], [], []>} : vector<4x256xf32>, vector<256x256xf32>, vector<4x256xf32> -> vector<4x256xf32>
    %c1_15 = arith.constant 1 : index
    %c0_16 = arith.constant 0 : index
    %c0_17 = arith.constant 0 : index
    %16 = vector.load %arg3[%c1_15, %c0_16, %c0_17] : memref<9x16x4xf32, #tpu.memory_space<vmem>>, vector<1x16x4xf32>
    %17 = vector.shape_cast %16 : vector<1x16x4xf32> to vector<16x4xf32>
    %cst_18 = arith.constant dense<0.000000e+00> : vector<16x256xf32>
    %18 = tpu.matmul %17, %15, %cst_18 {dimension_numbers = #tpu.dot_dimension_numbers<[1], [0], [0], [1], [0, 0, 1, 1], [], []>} : vector<16x4xf32>, vector<4x256xf32>, vector<16x256xf32> -> vector<16x256xf32>
    %19 = arith.addf %12, %18 : vector<16x256xf32>
    %c2 = arith.constant 2 : index
    %c0_19 = arith.constant 0 : index
    %c0_20 = arith.constant 0 : index
    %20 = vector.load %arg2[%c2, %c0_19, %c0_20] : memref<9x256x256xf32, #tpu.memory_space<vmem>>, vector<1x256x256xf32>
    %21 = vector.shape_cast %20 : vector<1x256x256xf32> to vector<256x256xf32>
    %cst_21 = arith.constant dense<0.000000e+00> : vector<4x256xf32>
    %22 = tpu.matmul %1, %21, %cst_21 {dimension_numbers = #tpu.dot_dimension_numbers<[1], [0], [0], [1], [0, 0, 1, 1], [], []>} : vector<4x256xf32>, vector<256x256xf32>, vector<4x256xf32> -> vector<4x256xf32>
    %c2_22 = arith.constant 2 : index
    %c0_23 = arith.constant 0 : index
    %c0_24 = arith.constant 0 : index
    %23 = vector.load %arg3[%c2_22, %c0_23, %c0_24] : memref<9x16x4xf32, #tpu.memory_space<vmem>>, vector<1x16x4xf32>
    %24 = vector.shape_cast %23 : vector<1x16x4xf32> to vector<16x4xf32>
    %cst_25 = arith.constant dense<0.000000e+00> : vector<16x256xf32>
    %25 = tpu.matmul %24, %22, %cst_25 {dimension_numbers = #tpu.dot_dimension_numbers<[1], [0], [0], [1], [0, 0, 1, 1], [], []>} : vector<16x4xf32>, vector<4x256xf32>, vector<16x256xf32> -> vector<16x256xf32>
    %26 = arith.addf %19, %25 : vector<16x256xf32>
    %c3 = arith.constant 3 : index
    %c0_26 = arith.constant 0 : index
    %c0_27 = arith.constant 0 : index
    %27 = vector.load %arg2[%c3, %c0_26, %c0_27] : memref<9x256x256xf32, #tpu.memory_space<vmem>>, vector<1x256x256xf32>
    %28 = vector.shape_cast %27 : vector<1x256x256xf32> to vector<256x256xf32>
    %cst_28 = arith.constant dense<0.000000e+00> : vector<4x256xf32>
    %29 = tpu.matmul %1, %28, %cst_28 {dimension_numbers = #tpu.dot_dimension_numbers<[1], [0], [0], [1], [0, 0, 1, 1], [], []>} : vector<4x256xf32>, vector<256x256xf32>, vector<4x256xf32> -> vector<4x256xf32>
    %c3_29 = arith.constant 3 : index
    %c0_30 = arith.constant 0 : index
    %c0_31 = arith.constant 0 : index
    %30 = vector.load %arg3[%c3_29, %c0_30, %c0_31] : memref<9x16x4xf32, #tpu.memory_space<vmem>>, vector<1x16x4xf32>
    %31 = vector.shape_cast %30 : vector<1x16x4xf32> to vector<16x4xf32>
    %cst_32 = arith.constant dense<0.000000e+00> : vector<16x256xf32>
    %32 = tpu.matmul %31, %29, %cst_32 {dimension_numbers = #tpu.dot_dimension_numbers<[1], [0], [0], [1], [0, 0, 1, 1], [], []>} : vector<16x4xf32>, vector<4x256xf32>, vector<16x256xf32> -> vector<16x256xf32>
    %33 = arith.addf %26, %32 : vector<16x256xf32>
    %c4 = arith.constant 4 : index
    %c0_33 = arith.constant 0 : index
    %c0_34 = arith.constant 0 : index
    %34 = vector.load %arg2[%c4, %c0_33, %c0_34] : memref<9x256x256xf32, #tpu.memory_space<vmem>>, vector<1x256x256xf32>
    %35 = vector.shape_cast %34 : vector<1x256x256xf32> to vector<256x256xf32>
    %cst_35 = arith.constant dense<0.000000e+00> : vector<4x256xf32>
    %36 = tpu.matmul %1, %35, %cst_35 {dimension_numbers = #tpu.dot_dimension_numbers<[1], [0], [0], [1], [0, 0, 1, 1], [], []>} : vector<4x256xf32>, vector<256x256xf32>, vector<4x256xf32> -> vector<4x256xf32>
    %c4_36 = arith.constant 4 : index
    %c0_37 = arith.constant 0 : index
    %c0_38 = arith.constant 0 : index
    %37 = vector.load %arg3[%c4_36, %c0_37, %c0_38] : memref<9x16x4xf32, #tpu.memory_space<vmem>>, vector<1x16x4xf32>
    %38 = vector.shape_cast %37 : vector<1x16x4xf32> to vector<16x4xf32>
    %cst_39 = arith.constant dense<0.000000e+00> : vector<16x256xf32>
    %39 = tpu.matmul %38, %36, %cst_39 {dimension_numbers = #tpu.dot_dimension_numbers<[1], [0], [0], [1], [0, 0, 1, 1], [], []>} : vector<16x4xf32>, vector<4x256xf32>, vector<16x256xf32> -> vector<16x256xf32>
    %40 = arith.addf %33, %39 : vector<16x256xf32>
    %c5 = arith.constant 5 : index
    %c0_40 = arith.constant 0 : index
    %c0_41 = arith.constant 0 : index
    %41 = vector.load %arg2[%c5, %c0_40, %c0_41] : memref<9x256x256xf32, #tpu.memory_space<vmem>>, vector<1x256x256xf32>
    %42 = vector.shape_cast %41 : vector<1x256x256xf32> to vector<256x256xf32>
    %cst_42 = arith.constant dense<0.000000e+00> : vector<4x256xf32>
    %43 = tpu.matmul %1, %42, %cst_42 {dimension_numbers = #tpu.dot_dimension_numbers<[1], [0], [0], [1], [0, 0, 1, 1], [], []>} : vector<4x256xf32>, vector<256x256xf32>, vector<4x256xf32> -> vector<4x256xf32>
    %c5_43 = arith.constant 5 : index
    %c0_44 = arith.constant 0 : index
    %c0_45 = arith.constant 0 : index
    %44 = vector.load %arg3[%c5_43, %c0_44, %c0_45] : memref<9x16x4xf32, #tpu.memory_space<vmem>>, vector<1x16x4xf32>
    %45 = vector.shape_cast %44 : vector<1x16x4xf32> to vector<16x4xf32>
    %cst_46 = arith.constant dense<0.000000e+00> : vector<16x256xf32>
    %46 = tpu.matmul %45, %43, %cst_46 {dimension_numbers = #tpu.dot_dimension_numbers<[1], [0], [0], [1], [0, 0, 1, 1], [], []>} : vector<16x4xf32>, vector<4x256xf32>, vector<16x256xf32> -> vector<16x256xf32>
    %47 = arith.addf %40, %46 : vector<16x256xf32>
    %c6 = arith.constant 6 : index
    %c0_47 = arith.constant 0 : index
    %c0_48 = arith.constant 0 : index
    %48 = vector.load %arg2[%c6, %c0_47, %c0_48] : memref<9x256x256xf32, #tpu.memory_space<vmem>>, vector<1x256x256xf32>
    %49 = vector.shape_cast %48 : vector<1x256x256xf32> to vector<256x256xf32>
    %cst_49 = arith.constant dense<0.000000e+00> : vector<4x256xf32>
    %50 = tpu.matmul %1, %49, %cst_49 {dimension_numbers = #tpu.dot_dimension_numbers<[1], [0], [0], [1], [0, 0, 1, 1], [], []>} : vector<4x256xf32>, vector<256x256xf32>, vector<4x256xf32> -> vector<4x256xf32>
    %c6_50 = arith.constant 6 : index
    %c0_51 = arith.constant 0 : index
    %c0_52 = arith.constant 0 : index
    %51 = vector.load %arg3[%c6_50, %c0_51, %c0_52] : memref<9x16x4xf32, #tpu.memory_space<vmem>>, vector<1x16x4xf32>
    %52 = vector.shape_cast %51 : vector<1x16x4xf32> to vector<16x4xf32>
    %cst_53 = arith.constant dense<0.000000e+00> : vector<16x256xf32>
    %53 = tpu.matmul %52, %50, %cst_53 {dimension_numbers = #tpu.dot_dimension_numbers<[1], [0], [0], [1], [0, 0, 1, 1], [], []>} : vector<16x4xf32>, vector<4x256xf32>, vector<16x256xf32> -> vector<16x256xf32>
    %54 = arith.addf %47, %53 : vector<16x256xf32>
    %c7 = arith.constant 7 : index
    %c0_54 = arith.constant 0 : index
    %c0_55 = arith.constant 0 : index
    %55 = vector.load %arg2[%c7, %c0_54, %c0_55] : memref<9x256x256xf32, #tpu.memory_space<vmem>>, vector<1x256x256xf32>
    %56 = vector.shape_cast %55 : vector<1x256x256xf32> to vector<256x256xf32>
    %cst_56 = arith.constant dense<0.000000e+00> : vector<4x256xf32>
    %57 = tpu.matmul %1, %56, %cst_56 {dimension_numbers = #tpu.dot_dimension_numbers<[1], [0], [0], [1], [0, 0, 1, 1], [], []>} : vector<4x256xf32>, vector<256x256xf32>, vector<4x256xf32> -> vector<4x256xf32>
    %c7_57 = arith.constant 7 : index
    %c0_58 = arith.constant 0 : index
    %c0_59 = arith.constant 0 : index
    %58 = vector.load %arg3[%c7_57, %c0_58, %c0_59] : memref<9x16x4xf32, #tpu.memory_space<vmem>>, vector<1x16x4xf32>
    %59 = vector.shape_cast %58 : vector<1x16x4xf32> to vector<16x4xf32>
    %cst_60 = arith.constant dense<0.000000e+00> : vector<16x256xf32>
    %60 = tpu.matmul %59, %57, %cst_60 {dimension_numbers = #tpu.dot_dimension_numbers<[1], [0], [0], [1], [0, 0, 1, 1], [], []>} : vector<16x4xf32>, vector<4x256xf32>, vector<16x256xf32> -> vector<16x256xf32>
    %61 = arith.addf %54, %60 : vector<16x256xf32>
    %c8 = arith.constant 8 : index
    %c0_61 = arith.constant 0 : index
    %c0_62 = arith.constant 0 : index
    %62 = vector.load %arg2[%c8, %c0_61, %c0_62] : memref<9x256x256xf32, #tpu.memory_space<vmem>>, vector<1x256x256xf32>
    %63 = vector.shape_cast %62 : vector<1x256x256xf32> to vector<256x256xf32>
    %cst_63 = arith.constant dense<0.000000e+00> : vector<4x256xf32>
    %64 = tpu.matmul %1, %63, %cst_63 {dimension_numbers = #tpu.dot_dimension_numbers<[1], [0], [0], [1], [0, 0, 1, 1], [], []>} : vector<4x256xf32>, vector<256x256xf32>, vector<4x256xf32> -> vector<4x256xf32>
    %c8_64 = arith.constant 8 : index
    %c0_65 = arith.constant 0 : index
    %c0_66 = arith.constant 0 : index
    %65 = vector.load %arg3[%c8_64, %c0_65, %c0_66] : memref<9x16x4xf32, #tpu.memory_space<vmem>>, vector<1x16x4xf32>
    %66 = vector.shape_cast %65 : vector<1x16x4xf32> to vector<16x4xf32>
    %cst_67 = arith.constant dense<0.000000e+00> : vector<16x256xf32>
    %67 = tpu.matmul %66, %64, %cst_67 {dimension_numbers = #tpu.dot_dimension_numbers<[1], [0], [0], [1], [0, 0, 1, 1], [], []>} : vector<16x4xf32>, vector<4x256xf32>, vector<16x256xf32> -> vector<16x256xf32>
    %68 = arith.addf %61, %67 : vector<16x256xf32>
    %cst_68 = arith.constant 0.000000e+00 : f32
    %69 = vector.broadcast %cst_68 : f32 to vector<16x256xf32>
    %70 = arith.maximumf %68, %69 : vector<16x256xf32>
    %c0_69 = arith.constant 0 : index
    %c0_70 = arith.constant 0 : index
    %71 = vector.load %arg6[%c0_69, %c0_70] : memref<64x1xf32, #tpu.memory_space<vmem>>, vector<64x1xf32>
    %cst_71 = arith.constant 0.000000e+00 : f32
    %72 = vector.broadcast %cst_71 : f32 to vector<64x256xf32>
    %73 = vector.broadcast %71 : vector<64x1xf32> to vector<64x256xf32>
    %74 = arith.addf %73, %72 : vector<64x256xf32>
    %c0_72 = arith.constant 0 : index
    %c0_73 = arith.constant 0 : index
    %c0_74 = arith.constant 0 : index
    %75 = vector.load %arg2[%c0_72, %c0_73, %c0_74] : memref<9x256x256xf32, #tpu.memory_space<vmem>>, vector<1x256x256xf32>
    %76 = vector.shape_cast %75 : vector<1x256x256xf32> to vector<256x256xf32>
    %cst_75 = arith.constant dense<0.000000e+00> : vector<16x256xf32>
    %77 = tpu.matmul %70, %76, %cst_75 {dimension_numbers = #tpu.dot_dimension_numbers<[1], [0], [0], [1], [0, 0, 1, 1], [], []>} : vector<16x256xf32>, vector<256x256xf32>, vector<16x256xf32> -> vector<16x256xf32>
    %c0_76 = arith.constant 0 : index
    %c0_77 = arith.constant 0 : index
    %c0_78 = arith.constant 0 : index
    %78 = vector.load %arg5[%c0_76, %c0_77, %c0_78] : memref<9x64x16xf32, #tpu.memory_space<vmem>>, vector<1x64x16xf32>
    %79 = vector.shape_cast %78 : vector<1x64x16xf32> to vector<64x16xf32>
    %cst_79 = arith.constant dense<0.000000e+00> : vector<64x256xf32>
    %80 = tpu.matmul %79, %77, %cst_79 {dimension_numbers = #tpu.dot_dimension_numbers<[1], [0], [0], [1], [0, 0, 1, 1], [], []>} : vector<64x16xf32>, vector<16x256xf32>, vector<64x256xf32> -> vector<64x256xf32>
    %81 = arith.addf %74, %80 : vector<64x256xf32>
    %c1_80 = arith.constant 1 : index
    %c0_81 = arith.constant 0 : index
    %c0_82 = arith.constant 0 : index
    %82 = vector.load %arg2[%c1_80, %c0_81, %c0_82] : memref<9x256x256xf32, #tpu.memory_space<vmem>>, vector<1x256x256xf32>
    %83 = vector.shape_cast %82 : vector<1x256x256xf32> to vector<256x256xf32>
    %cst_83 = arith.constant dense<0.000000e+00> : vector<16x256xf32>
    %84 = tpu.matmul %70, %83, %cst_83 {dimension_numbers = #tpu.dot_dimension_numbers<[1], [0], [0], [1], [0, 0, 1, 1], [], []>} : vector<16x256xf32>, vector<256x256xf32>, vector<16x256xf32> -> vector<16x256xf32>
    %c1_84 = arith.constant 1 : index
    %c0_85 = arith.constant 0 : index
    %c0_86 = arith.constant 0 : index
    %85 = vector.load %arg5[%c1_84, %c0_85, %c0_86] : memref<9x64x16xf32, #tpu.memory_space<vmem>>, vector<1x64x16xf32>
    %86 = vector.shape_cast %85 : vector<1x64x16xf32> to vector<64x16xf32>
    %cst_87 = arith.constant dense<0.000000e+00> : vector<64x256xf32>
    %87 = tpu.matmul %86, %84, %cst_87 {dimension_numbers = #tpu.dot_dimension_numbers<[1], [0], [0], [1], [0, 0, 1, 1], [], []>} : vector<64x16xf32>, vector<16x256xf32>, vector<64x256xf32> -> vector<64x256xf32>
    %88 = arith.addf %81, %87 : vector<64x256xf32>
    %c2_88 = arith.constant 2 : index
    %c0_89 = arith.constant 0 : index
    %c0_90 = arith.constant 0 : index
    %89 = vector.load %arg2[%c2_88, %c0_89, %c0_90] : memref<9x256x256xf32, #tpu.memory_space<vmem>>, vector<1x256x256xf32>
    %90 = vector.shape_cast %89 : vector<1x256x256xf32> to vector<256x256xf32>
    %cst_91 = arith.constant dense<0.000000e+00> : vector<16x256xf32>
    %91 = tpu.matmul %70, %90, %cst_91 {dimension_numbers = #tpu.dot_dimension_numbers<[1], [0], [0], [1], [0, 0, 1, 1], [], []>} : vector<16x256xf32>, vector<256x256xf32>, vector<16x256xf32> -> vector<16x256xf32>
    %c2_92 = arith.constant 2 : index
    %c0_93 = arith.constant 0 : index
    %c0_94 = arith.constant 0 : index
    %92 = vector.load %arg5[%c2_92, %c0_93, %c0_94] : memref<9x64x16xf32, #tpu.memory_space<vmem>>, vector<1x64x16xf32>
    %93 = vector.shape_cast %92 : vector<1x64x16xf32> to vector<64x16xf32>
    %cst_95 = arith.constant dense<0.000000e+00> : vector<64x256xf32>
    %94 = tpu.matmul %93, %91, %cst_95 {dimension_numbers = #tpu.dot_dimension_numbers<[1], [0], [0], [1], [0, 0, 1, 1], [], []>} : vector<64x16xf32>, vector<16x256xf32>, vector<64x256xf32> -> vector<64x256xf32>
    %95 = arith.addf %88, %94 : vector<64x256xf32>
    %c3_96 = arith.constant 3 : index
    %c0_97 = arith.constant 0 : index
    %c0_98 = arith.constant 0 : index
    %96 = vector.load %arg2[%c3_96, %c0_97, %c0_98] : memref<9x256x256xf32, #tpu.memory_space<vmem>>, vector<1x256x256xf32>
    %97 = vector.shape_cast %96 : vector<1x256x256xf32> to vector<256x256xf32>
    %cst_99 = arith.constant dense<0.000000e+00> : vector<16x256xf32>
    %98 = tpu.matmul %70, %97, %cst_99 {dimension_numbers = #tpu.dot_dimension_numbers<[1], [0], [0], [1], [0, 0, 1, 1], [], []>} : vector<16x256xf32>, vector<256x256xf32>, vector<16x256xf32> -> vector<16x256xf32>
    %c3_100 = arith.constant 3 : index
    %c0_101 = arith.constant 0 : index
    %c0_102 = arith.constant 0 : index
    %99 = vector.load %arg5[%c3_100, %c0_101, %c0_102] : memref<9x64x16xf32, #tpu.memory_space<vmem>>, vector<1x64x16xf32>
    %100 = vector.shape_cast %99 : vector<1x64x16xf32> to vector<64x16xf32>
    %cst_103 = arith.constant dense<0.000000e+00> : vector<64x256xf32>
    %101 = tpu.matmul %100, %98, %cst_103 {dimension_numbers = #tpu.dot_dimension_numbers<[1], [0], [0], [1], [0, 0, 1, 1], [], []>} : vector<64x16xf32>, vector<16x256xf32>, vector<64x256xf32> -> vector<64x256xf32>
    %102 = arith.addf %95, %101 : vector<64x256xf32>
    %c4_104 = arith.constant 4 : index
    %c0_105 = arith.constant 0 : index
    %c0_106 = arith.constant 0 : index
    %103 = vector.load %arg2[%c4_104, %c0_105, %c0_106] : memref<9x256x256xf32, #tpu.memory_space<vmem>>, vector<1x256x256xf32>
    %104 = vector.shape_cast %103 : vector<1x256x256xf32> to vector<256x256xf32>
    %cst_107 = arith.constant dense<0.000000e+00> : vector<16x256xf32>
    %105 = tpu.matmul %70, %104, %cst_107 {dimension_numbers = #tpu.dot_dimension_numbers<[1], [0], [0], [1], [0, 0, 1, 1], [], []>} : vector<16x256xf32>, vector<256x256xf32>, vector<16x256xf32> -> vector<16x256xf32>
    %c4_108 = arith.constant 4 : index
    %c0_109 = arith.constant 0 : index
    %c0_110 = arith.constant 0 : index
    %106 = vector.load %arg5[%c4_108, %c0_109, %c0_110] : memref<9x64x16xf32, #tpu.memory_space<vmem>>, vector<1x64x16xf32>
    %107 = vector.shape_cast %106 : vector<1x64x16xf32> to vector<64x16xf32>
    %cst_111 = arith.constant dense<0.000000e+00> : vector<64x256xf32>
    %108 = tpu.matmul %107, %105, %cst_111 {dimension_numbers = #tpu.dot_dimension_numbers<[1], [0], [0], [1], [0, 0, 1, 1], [], []>} : vector<64x16xf32>, vector<16x256xf32>, vector<64x256xf32> -> vector<64x256xf32>
    %109 = arith.addf %102, %108 : vector<64x256xf32>
    %c5_112 = arith.constant 5 : index
    %c0_113 = arith.constant 0 : index
    %c0_114 = arith.constant 0 : index
    %110 = vector.load %arg2[%c5_112, %c0_113, %c0_114] : memref<9x256x256xf32, #tpu.memory_space<vmem>>, vector<1x256x256xf32>
    %111 = vector.shape_cast %110 : vector<1x256x256xf32> to vector<256x256xf32>
    %cst_115 = arith.constant dense<0.000000e+00> : vector<16x256xf32>
    %112 = tpu.matmul %70, %111, %cst_115 {dimension_numbers = #tpu.dot_dimension_numbers<[1], [0], [0], [1], [0, 0, 1, 1], [], []>} : vector<16x256xf32>, vector<256x256xf32>, vector<16x256xf32> -> vector<16x256xf32>
    %c5_116 = arith.constant 5 : index
    %c0_117 = arith.constant 0 : index
    %c0_118 = arith.constant 0 : index
    %113 = vector.load %arg5[%c5_116, %c0_117, %c0_118] : memref<9x64x16xf32, #tpu.memory_space<vmem>>, vector<1x64x16xf32>
    %114 = vector.shape_cast %113 : vector<1x64x16xf32> to vector<64x16xf32>
    %cst_119 = arith.constant dense<0.000000e+00> : vector<64x256xf32>
    %115 = tpu.matmul %114, %112, %cst_119 {dimension_numbers = #tpu.dot_dimension_numbers<[1], [0], [0], [1], [0, 0, 1, 1], [], []>} : vector<64x16xf32>, vector<16x256xf32>, vector<64x256xf32> -> vector<64x256xf32>
    %116 = arith.addf %109, %115 : vector<64x256xf32>
    %c6_120 = arith.constant 6 : index
    %c0_121 = arith.constant 0 : index
    %c0_122 = arith.constant 0 : index
    %117 = vector.load %arg2[%c6_120, %c0_121, %c0_122] : memref<9x256x256xf32, #tpu.memory_space<vmem>>, vector<1x256x256xf32>
    %118 = vector.shape_cast %117 : vector<1x256x256xf32> to vector<256x256xf32>
    %cst_123 = arith.constant dense<0.000000e+00> : vector<16x256xf32>
    %119 = tpu.matmul %70, %118, %cst_123 {dimension_numbers = #tpu.dot_dimension_numbers<[1], [0], [0], [1], [0, 0, 1, 1], [], []>} : vector<16x256xf32>, vector<256x256xf32>, vector<16x256xf32> -> vector<16x256xf32>
    %c6_124 = arith.constant 6 : index
    %c0_125 = arith.constant 0 : index
    %c0_126 = arith.constant 0 : index
    %120 = vector.load %arg5[%c6_124, %c0_125, %c0_126] : memref<9x64x16xf32, #tpu.memory_space<vmem>>, vector<1x64x16xf32>
    %121 = vector.shape_cast %120 : vector<1x64x16xf32> to vector<64x16xf32>
    %cst_127 = arith.constant dense<0.000000e+00> : vector<64x256xf32>
    %122 = tpu.matmul %121, %119, %cst_127 {dimension_numbers = #tpu.dot_dimension_numbers<[1], [0], [0], [1], [0, 0, 1, 1], [], []>} : vector<64x16xf32>, vector<16x256xf32>, vector<64x256xf32> -> vector<64x256xf32>
    %123 = arith.addf %116, %122 : vector<64x256xf32>
    %c7_128 = arith.constant 7 : index
    %c0_129 = arith.constant 0 : index
    %c0_130 = arith.constant 0 : index
    %124 = vector.load %arg2[%c7_128, %c0_129, %c0_130] : memref<9x256x256xf32, #tpu.memory_space<vmem>>, vector<1x256x256xf32>
    %125 = vector.shape_cast %124 : vector<1x256x256xf32> to vector<256x256xf32>
    %cst_131 = arith.constant dense<0.000000e+00> : vector<16x256xf32>
    %126 = tpu.matmul %70, %125, %cst_131 {dimension_numbers = #tpu.dot_dimension_numbers<[1], [0], [0], [1], [0, 0, 1, 1], [], []>} : vector<16x256xf32>, vector<256x256xf32>, vector<16x256xf32> -> vector<16x256xf32>
    %c7_132 = arith.constant 7 : index
    %c0_133 = arith.constant 0 : index
    %c0_134 = arith.constant 0 : index
    %127 = vector.load %arg5[%c7_132, %c0_133, %c0_134] : memref<9x64x16xf32, #tpu.memory_space<vmem>>, vector<1x64x16xf32>
    %128 = vector.shape_cast %127 : vector<1x64x16xf32> to vector<64x16xf32>
    %cst_135 = arith.constant dense<0.000000e+00> : vector<64x256xf32>
    %129 = tpu.matmul %128, %126, %cst_135 {dimension_numbers = #tpu.dot_dimension_numbers<[1], [0], [0], [1], [0, 0, 1, 1], [], []>} : vector<64x16xf32>, vector<16x256xf32>, vector<64x256xf32> -> vector<64x256xf32>
    %130 = arith.addf %123, %129 : vector<64x256xf32>
    %c8_136 = arith.constant 8 : index
    %c0_137 = arith.constant 0 : index
    %c0_138 = arith.constant 0 : index
    %131 = vector.load %arg2[%c8_136, %c0_137, %c0_138] : memref<9x256x256xf32, #tpu.memory_space<vmem>>, vector<1x256x256xf32>
    %132 = vector.shape_cast %131 : vector<1x256x256xf32> to vector<256x256xf32>
    %cst_139 = arith.constant dense<0.000000e+00> : vector<16x256xf32>
    %133 = tpu.matmul %70, %132, %cst_139 {dimension_numbers = #tpu.dot_dimension_numbers<[1], [0], [0], [1], [0, 0, 1, 1], [], []>} : vector<16x256xf32>, vector<256x256xf32>, vector<16x256xf32> -> vector<16x256xf32>
    %c8_140 = arith.constant 8 : index
    %c0_141 = arith.constant 0 : index
    %c0_142 = arith.constant 0 : index
    %134 = vector.load %arg5[%c8_140, %c0_141, %c0_142] : memref<9x64x16xf32, #tpu.memory_space<vmem>>, vector<1x64x16xf32>
    %135 = vector.shape_cast %134 : vector<1x64x16xf32> to vector<64x16xf32>
    %cst_143 = arith.constant dense<0.000000e+00> : vector<64x256xf32>
    %136 = tpu.matmul %135, %133, %cst_143 {dimension_numbers = #tpu.dot_dimension_numbers<[1], [0], [0], [1], [0, 0, 1, 1], [], []>} : vector<64x16xf32>, vector<16x256xf32>, vector<64x256xf32> -> vector<64x256xf32>
    %137 = arith.addf %130, %136 : vector<64x256xf32>
    %cst_144 = arith.constant 0.000000e+00 : f32
    %138 = vector.broadcast %cst_144 : f32 to vector<64x256xf32>
    %139 = arith.maximumf %137, %138 : vector<64x256xf32>
    %c0_145 = arith.constant 0 : index
    %c0_146 = arith.constant 0 : index
    %140 = vector.load %arg8[%c0_145, %c0_146] : memref<4x1xf32, #tpu.memory_space<vmem>>, vector<4x1xf32>
    %cst_147 = arith.constant 0.000000e+00 : f32
    %141 = vector.broadcast %cst_147 : f32 to vector<4x256xf32>
    %142 = vector.broadcast %140 : vector<4x1xf32> to vector<4x256xf32>
    %143 = arith.addf %142, %141 : vector<4x256xf32>
    %c0_148 = arith.constant 0 : index
    %c0_149 = arith.constant 0 : index
    %c0_150 = arith.constant 0 : index
    %144 = vector.load %arg2[%c0_148, %c0_149, %c0_150] : memref<9x256x256xf32, #tpu.memory_space<vmem>>, vector<1x256x256xf32>
    %145 = vector.shape_cast %144 : vector<1x256x256xf32> to vector<256x256xf32>
    %cst_151 = arith.constant dense<0.000000e+00> : vector<64x256xf32>
    %146 = tpu.matmul %139, %145, %cst_151 {dimension_numbers = #tpu.dot_dimension_numbers<[1], [0], [0], [1], [0, 0, 1, 1], [], []>} : vector<64x256xf32>, vector<256x256xf32>, vector<64x256xf32> -> vector<64x256xf32>
    %c0_152 = arith.constant 0 : index
    %c0_153 = arith.constant 0 : index
    %c0_154 = arith.constant 0 : index
    %147 = vector.load %arg7[%c0_152, %c0_153, %c0_154] : memref<9x4x64xf32, #tpu.memory_space<vmem>>, vector<1x4x64xf32>
    %148 = vector.shape_cast %147 : vector<1x4x64xf32> to vector<4x64xf32>
    %cst_155 = arith.constant dense<0.000000e+00> : vector<4x256xf32>
    %149 = tpu.matmul %148, %146, %cst_155 {dimension_numbers = #tpu.dot_dimension_numbers<[1], [0], [0], [1], [0, 0, 1, 1], [], []>} : vector<4x64xf32>, vector<64x256xf32>, vector<4x256xf32> -> vector<4x256xf32>
    %150 = arith.addf %143, %149 : vector<4x256xf32>
    %c1_156 = arith.constant 1 : index
    %c0_157 = arith.constant 0 : index
    %c0_158 = arith.constant 0 : index
    %151 = vector.load %arg2[%c1_156, %c0_157, %c0_158] : memref<9x256x256xf32, #tpu.memory_space<vmem>>, vector<1x256x256xf32>
    %152 = vector.shape_cast %151 : vector<1x256x256xf32> to vector<256x256xf32>
    %cst_159 = arith.constant dense<0.000000e+00> : vector<64x256xf32>
    %153 = tpu.matmul %139, %152, %cst_159 {dimension_numbers = #tpu.dot_dimension_numbers<[1], [0], [0], [1], [0, 0, 1, 1], [], []>} : vector<64x256xf32>, vector<256x256xf32>, vector<64x256xf32> -> vector<64x256xf32>
    %c1_160 = arith.constant 1 : index
    %c0_161 = arith.constant 0 : index
    %c0_162 = arith.constant 0 : index
    %154 = vector.load %arg7[%c1_160, %c0_161, %c0_162] : memref<9x4x64xf32, #tpu.memory_space<vmem>>, vector<1x4x64xf32>
    %155 = vector.shape_cast %154 : vector<1x4x64xf32> to vector<4x64xf32>
    %cst_163 = arith.constant dense<0.000000e+00> : vector<4x256xf32>
    %156 = tpu.matmul %155, %153, %cst_163 {dimension_numbers = #tpu.dot_dimension_numbers<[1], [0], [0], [1], [0, 0, 1, 1], [], []>} : vector<4x64xf32>, vector<64x256xf32>, vector<4x256xf32> -> vector<4x256xf32>
    %157 = arith.addf %150, %156 : vector<4x256xf32>
    %c2_164 = arith.constant 2 : index
    %c0_165 = arith.constant 0 : index
    %c0_166 = arith.constant 0 : index
    %158 = vector.load %arg2[%c2_164, %c0_165, %c0_166] : memref<9x256x256xf32, #tpu.memory_space<vmem>>, vector<1x256x256xf32>
    %159 = vector.shape_cast %158 : vector<1x256x256xf32> to vector<256x256xf32>
    %cst_167 = arith.constant dense<0.000000e+00> : vector<64x256xf32>
    %160 = tpu.matmul %139, %159, %cst_167 {dimension_numbers = #tpu.dot_dimension_numbers<[1], [0], [0], [1], [0, 0, 1, 1], [], []>} : vector<64x256xf32>, vector<256x256xf32>, vector<64x256xf32> -> vector<64x256xf32>
    %c2_168 = arith.constant 2 : index
    %c0_169 = arith.constant 0 : index
    %c0_170 = arith.constant 0 : index
    %161 = vector.load %arg7[%c2_168, %c0_169, %c0_170] : memref<9x4x64xf32, #tpu.memory_space<vmem>>, vector<1x4x64xf32>
    %162 = vector.shape_cast %161 : vector<1x4x64xf32> to vector<4x64xf32>
    %cst_171 = arith.constant dense<0.000000e+00> : vector<4x256xf32>
    %163 = tpu.matmul %162, %160, %cst_171 {dimension_numbers = #tpu.dot_dimension_numbers<[1], [0], [0], [1], [0, 0, 1, 1], [], []>} : vector<4x64xf32>, vector<64x256xf32>, vector<4x256xf32> -> vector<4x256xf32>
    %164 = arith.addf %157, %163 : vector<4x256xf32>
    %c3_172 = arith.constant 3 : index
    %c0_173 = arith.constant 0 : index
    %c0_174 = arith.constant 0 : index
    %165 = vector.load %arg2[%c3_172, %c0_173, %c0_174] : memref<9x256x256xf32, #tpu.memory_space<vmem>>, vector<1x256x256xf32>
    %166 = vector.shape_cast %165 : vector<1x256x256xf32> to vector<256x256xf32>
    %cst_175 = arith.constant dense<0.000000e+00> : vector<64x256xf32>
    %167 = tpu.matmul %139, %166, %cst_175 {dimension_numbers = #tpu.dot_dimension_numbers<[1], [0], [0], [1], [0, 0, 1, 1], [], []>} : vector<64x256xf32>, vector<256x256xf32>, vector<64x256xf32> -> vector<64x256xf32>
    %c3_176 = arith.constant 3 : index
    %c0_177 = arith.constant 0 : index
    %c0_178 = arith.constant 0 : index
    %168 = vector.load %arg7[%c3_176, %c0_177, %c0_178] : memref<9x4x64xf32, #tpu.memory_space<vmem>>, vector<1x4x64xf32>
    %169 = vector.shape_cast %168 : vector<1x4x64xf32> to vector<4x64xf32>
    %cst_179 = arith.constant dense<0.000000e+00> : vector<4x256xf32>
    %170 = tpu.matmul %169, %167, %cst_179 {dimension_numbers = #tpu.dot_dimension_numbers<[1], [0], [0], [1], [0, 0, 1, 1], [], []>} : vector<4x64xf32>, vector<64x256xf32>, vector<4x256xf32> -> vector<4x256xf32>
    %171 = arith.addf %164, %170 : vector<4x256xf32>
    %c4_180 = arith.constant 4 : index
    %c0_181 = arith.constant 0 : index
    %c0_182 = arith.constant 0 : index
    %172 = vector.load %arg2[%c4_180, %c0_181, %c0_182] : memref<9x256x256xf32, #tpu.memory_space<vmem>>, vector<1x256x256xf32>
    %173 = vector.shape_cast %172 : vector<1x256x256xf32> to vector<256x256xf32>
    %cst_183 = arith.constant dense<0.000000e+00> : vector<64x256xf32>
    %174 = tpu.matmul %139, %173, %cst_183 {dimension_numbers = #tpu.dot_dimension_numbers<[1], [0], [0], [1], [0, 0, 1, 1], [], []>} : vector<64x256xf32>, vector<256x256xf32>, vector<64x256xf32> -> vector<64x256xf32>
    %c4_184 = arith.constant 4 : index
    %c0_185 = arith.constant 0 : index
    %c0_186 = arith.constant 0 : index
    %175 = vector.load %arg7[%c4_184, %c0_185, %c0_186] : memref<9x4x64xf32, #tpu.memory_space<vmem>>, vector<1x4x64xf32>
    %176 = vector.shape_cast %175 : vector<1x4x64xf32> to vector<4x64xf32>
    %cst_187 = arith.constant dense<0.000000e+00> : vector<4x256xf32>
    %177 = tpu.matmul %176, %174, %cst_187 {dimension_numbers = #tpu.dot_dimension_numbers<[1], [0], [0], [1], [0, 0, 1, 1], [], []>} : vector<4x64xf32>, vector<64x256xf32>, vector<4x256xf32> -> vector<4x256xf32>
    %178 = arith.addf %171, %177 : vector<4x256xf32>
    %c5_188 = arith.constant 5 : index
    %c0_189 = arith.constant 0 : index
    %c0_190 = arith.constant 0 : index
    %179 = vector.load %arg2[%c5_188, %c0_189, %c0_190] : memref<9x256x256xf32, #tpu.memory_space<vmem>>, vector<1x256x256xf32>
    %180 = vector.shape_cast %179 : vector<1x256x256xf32> to vector<256x256xf32>
    %cst_191 = arith.constant dense<0.000000e+00> : vector<64x256xf32>
    %181 = tpu.matmul %139, %180, %cst_191 {dimension_numbers = #tpu.dot_dimension_numbers<[1], [0], [0], [1], [0, 0, 1, 1], [], []>} : vector<64x256xf32>, vector<256x256xf32>, vector<64x256xf32> -> vector<64x256xf32>
    %c5_192 = arith.constant 5 : index
    %c0_193 = arith.constant 0 : index
    %c0_194 = arith.constant 0 : index
    %182 = vector.load %arg7[%c5_192, %c0_193, %c0_194] : memref<9x4x64xf32, #tpu.memory_space<vmem>>, vector<1x4x64xf32>
    %183 = vector.shape_cast %182 : vector<1x4x64xf32> to vector<4x64xf32>
    %cst_195 = arith.constant dense<0.000000e+00> : vector<4x256xf32>
    %184 = tpu.matmul %183, %181, %cst_195 {dimension_numbers = #tpu.dot_dimension_numbers<[1], [0], [0], [1], [0, 0, 1, 1], [], []>} : vector<4x64xf32>, vector<64x256xf32>, vector<4x256xf32> -> vector<4x256xf32>
    %185 = arith.addf %178, %184 : vector<4x256xf32>
    %c6_196 = arith.constant 6 : index
    %c0_197 = arith.constant 0 : index
    %c0_198 = arith.constant 0 : index
    %186 = vector.load %arg2[%c6_196, %c0_197, %c0_198] : memref<9x256x256xf32, #tpu.memory_space<vmem>>, vector<1x256x256xf32>
    %187 = vector.shape_cast %186 : vector<1x256x256xf32> to vector<256x256xf32>
    %cst_199 = arith.constant dense<0.000000e+00> : vector<64x256xf32>
    %188 = tpu.matmul %139, %187, %cst_199 {dimension_numbers = #tpu.dot_dimension_numbers<[1], [0], [0], [1], [0, 0, 1, 1], [], []>} : vector<64x256xf32>, vector<256x256xf32>, vector<64x256xf32> -> vector<64x256xf32>
    %c6_200 = arith.constant 6 : index
    %c0_201 = arith.constant 0 : index
    %c0_202 = arith.constant 0 : index
    %189 = vector.load %arg7[%c6_200, %c0_201, %c0_202] : memref<9x4x64xf32, #tpu.memory_space<vmem>>, vector<1x4x64xf32>
    %190 = vector.shape_cast %189 : vector<1x4x64xf32> to vector<4x64xf32>
    %cst_203 = arith.constant dense<0.000000e+00> : vector<4x256xf32>
    %191 = tpu.matmul %190, %188, %cst_203 {dimension_numbers = #tpu.dot_dimension_numbers<[1], [0], [0], [1], [0, 0, 1, 1], [], []>} : vector<4x64xf32>, vector<64x256xf32>, vector<4x256xf32> -> vector<4x256xf32>
    %192 = arith.addf %185, %191 : vector<4x256xf32>
    %c7_204 = arith.constant 7 : index
    %c0_205 = arith.constant 0 : index
    %c0_206 = arith.constant 0 : index
    %193 = vector.load %arg2[%c7_204, %c0_205, %c0_206] : memref<9x256x256xf32, #tpu.memory_space<vmem>>, vector<1x256x256xf32>
    %194 = vector.shape_cast %193 : vector<1x256x256xf32> to vector<256x256xf32>
    %cst_207 = arith.constant dense<0.000000e+00> : vector<64x256xf32>
    %195 = tpu.matmul %139, %194, %cst_207 {dimension_numbers = #tpu.dot_dimension_numbers<[1], [0], [0], [1], [0, 0, 1, 1], [], []>} : vector<64x256xf32>, vector<256x256xf32>, vector<64x256xf32> -> vector<64x256xf32>
    %c7_208 = arith.constant 7 : index
    %c0_209 = arith.constant 0 : index
    %c0_210 = arith.constant 0 : index
    %196 = vector.load %arg7[%c7_208, %c0_209, %c0_210] : memref<9x4x64xf32, #tpu.memory_space<vmem>>, vector<1x4x64xf32>
    %197 = vector.shape_cast %196 : vector<1x4x64xf32> to vector<4x64xf32>
    %cst_211 = arith.constant dense<0.000000e+00> : vector<4x256xf32>
    %198 = tpu.matmul %197, %195, %cst_211 {dimension_numbers = #tpu.dot_dimension_numbers<[1], [0], [0], [1], [0, 0, 1, 1], [], []>} : vector<4x64xf32>, vector<64x256xf32>, vector<4x256xf32> -> vector<4x256xf32>
    %199 = arith.addf %192, %198 : vector<4x256xf32>
    %c8_212 = arith.constant 8 : index
    %c0_213 = arith.constant 0 : index
    %c0_214 = arith.constant 0 : index
    %200 = vector.load %arg2[%c8_212, %c0_213, %c0_214] : memref<9x256x256xf32, #tpu.memory_space<vmem>>, vector<1x256x256xf32>
    %201 = vector.shape_cast %200 : vector<1x256x256xf32> to vector<256x256xf32>
    %cst_215 = arith.constant dense<0.000000e+00> : vector<64x256xf32>
    %202 = tpu.matmul %139, %201, %cst_215 {dimension_numbers = #tpu.dot_dimension_numbers<[1], [0], [0], [1], [0, 0, 1, 1], [], []>} : vector<64x256xf32>, vector<256x256xf32>, vector<64x256xf32> -> vector<64x256xf32>
    %c8_216 = arith.constant 8 : index
    %c0_217 = arith.constant 0 : index
    %c0_218 = arith.constant 0 : index
    %203 = vector.load %arg7[%c8_216, %c0_217, %c0_218] : memref<9x4x64xf32, #tpu.memory_space<vmem>>, vector<1x4x64xf32>
    %204 = vector.shape_cast %203 : vector<1x4x64xf32> to vector<4x64xf32>
    %cst_219 = arith.constant dense<0.000000e+00> : vector<4x256xf32>
    %205 = tpu.matmul %204, %202, %cst_219 {dimension_numbers = #tpu.dot_dimension_numbers<[1], [0], [0], [1], [0, 0, 1, 1], [], []>} : vector<4x64xf32>, vector<64x256xf32>, vector<4x256xf32> -> vector<4x256xf32>
    %206 = arith.addf %199, %205 : vector<4x256xf32>
    %207 = arith.negf %206 : vector<4x256xf32>
    %208 = math.exp %207 : vector<4x256xf32>
    %cst_220 = arith.constant 1.000000e+00 : f32
    %209 = vector.broadcast %cst_220 : f32 to vector<4x256xf32>
    %210 = arith.addf %209, %208 : vector<4x256xf32>
    %211 = arith.divf %209, %210 : vector<4x256xf32>
    %212 = math.roundeven %211 : vector<4x256xf32>
    %c0_221 = arith.constant 0 : index
    %c0_222 = arith.constant 0 : index
    %c0_223 = arith.constant 0 : index
    %213 = vector.load %arg9[%c0_221, %c0_222, %c0_223] : memref<1x4x256xf32, #tpu.memory_space<vmem>>, vector<1x4x256xf32>
    %214 = vector.shape_cast %213 : vector<1x4x256xf32> to vector<4x256xf32>
    %215 = vector.shape_cast %212 : vector<4x256xf32> to vector<1x4x256xf32>
    tpu.vector_store %arg9[%c0_221, %c0_222, %c0_223], %215 {strides = array<i32>} : memref<1x4x256xf32, #tpu.memory_space<vmem>>, vector<1x4x256xf32>,
    return
  }
  func.func @transform_0(%arg0: i32) -> (i32, i32, i32) {
    %c0_i32 = arith.constant 0 : i32
    %c0_i32_0 = arith.constant 0 : i32
    %c0_i32_1 = arith.constant 0 : i32
    return %arg0, %c0_i32, %c0_i32_0 : i32, i32, i32
  }
  func.func @transform_1(%arg0: i32) -> (i32, i32, i32) {
    %c0_i32 = arith.constant 0 : i32
    %c0_i32_0 = arith.constant 0 : i32
    %c0_i32_1 = arith.constant 0 : i32
    %c0_i32_2 = arith.constant 0 : i32
    return %c0_i32, %c0_i32_0, %c0_i32_1 : i32, i32, i32
  }
  func.func @transform_2(%arg0: i32) -> (i32, i32, i32) {
    %c0_i32 = arith.constant 0 : i32
    %c0_i32_0 = arith.constant 0 : i32
    %c0_i32_1 = arith.constant 0 : i32
    %c0_i32_2 = arith.constant 0 : i32
    return %c0_i32, %c0_i32_0, %c0_i32_1 : i32, i32, i32
  }
  func.func @transform_3(%arg0: i32) -> (i32, i32) {
    %c0_i32 = arith.constant 0 : i32
    %c0_i32_0 = arith.constant 0 : i32
    %c0_i32_1 = arith.constant 0 : i32
    return %c0_i32, %c0_i32_0 : i32, i32
  }
  func.func @transform_4(%arg0: i32) -> (i32, i32, i32) {
    %c0_i32 = arith.constant 0 : i32
    %c0_i32_0 = arith.constant 0 : i32
    %c0_i32_1 = arith.constant 0 : i32
    %c0_i32_2 = arith.constant 0 : i32
    return %c0_i32, %c0_i32_0, %c0_i32_1 : i32, i32, i32
  }
  func.func @transform_5(%arg0: i32) -> (i32, i32) {
    %c0_i32 = arith.constant 0 : i32
    %c0_i32_0 = arith.constant 0 : i32
    %c0_i32_1 = arith.constant 0 : i32
    return %c0_i32, %c0_i32_0 : i32, i32
  }
  func.func @transform_6(%arg0: i32) -> (i32, i32, i32) {
    %c0_i32 = arith.constant 0 : i32
    %c0_i32_0 = arith.constant 0 : i32
    %c0_i32_1 = arith.constant 0 : i32
    %c0_i32_2 = arith.constant 0 : i32
    return %c0_i32, %c0_i32_0, %c0_i32_1 : i32, i32, i32
  }
  func.func @transform_7(%arg0: i32) -> (i32, i32) {
    %c0_i32 = arith.constant 0 : i32
    %c0_i32_0 = arith.constant 0 : i32
    %c0_i32_1 = arith.constant 0 : i32
    return %c0_i32, %c0_i32_0 : i32, i32
  }
  func.func @transform_8(%arg0: i32) -> (i32, i32, i32) {
    %c0_i32 = arith.constant 0 : i32
    %c0_i32_0 = arith.constant 0 : i32
    %c0_i32_1 = arith.constant 0 : i32
    return %arg0, %c0_i32, %c0_i32_0 : i32, i32, i32
  }
}

</mosaic_0001>

<bundles_post_ra>
// kernel: cnn_forward.1
= control target key start
LH: loop header
LB: loop body
LE: loop exit
PB: predicated region body
PF: predicated region fallthrough
CT: control target
= control target key end

     0   :  { %13 = vsyncpa [#allocation3], 0  ;;  %s11765_s0 = inlined_call_operand.vmem [shape: f32[2,4,256], index: 0, kind: input, shape index: {}]   ;;  %s11766_s1 = inlined_call_operand.hbm [shape: f32[9,256,256], index: 1, kind: input, shape index: {}]   ;;  %s11767_s2 = inlined_call_operand.vmem [shape: f32[9,16,4], index: 2, kind: input, shape index: {}]   ;;  %s11768_s3 = inlined_call_operand.vmem [shape: f32[16,1], index: 3, kind: input, shape index: {}]   ;;  %s11769_s4 = inlined_call_operand.vmem [shape: f32[9,64,16], index: 4, kind: input, shape index: {}]   ;;  %s11770_s5 = inlined_call_operand.vmem [shape: f32[64,1], index: 5, kind: input, shape index: {}]   ;;  %s11771_s6 = inlined_call_operand.hbm [shape: f32[9,4,64], index: 6, kind: input, shape index: {}]   ;;  %s11772_s7 = inlined_call_operand.vmem [shape: f32[4,1], index: 7, kind: input, shape index: {}]   ;;  %s11773_s8 = inlined_call_operand.vmem [shape: f32[2,4,256], index: 8, kind: output, shape index: {}]  }
   0x1   :  { %14 = vsyncpa [#allocation5], 0  ;;  %s8988_s27 = smov 0  }
   0x2 LB: > { %s8935_s28 = smov [#allocation2]   ;;  %s8994_s30 = sadd.s32 4294967295, %s8933_s27   ;;  %s8933_s27 = sphi %s8988_s27, %s20_s27  }
   0x3   : > { %s236_s29 = sshll.u32 %s8935_s28, 4  ;;  %p6493_p0 = scmp.ge.s32.totalorder %s8933_s27, 1  ;;  %s237_s29 = int_to_ptr.vmem [resolvable:$true] %s236_s29 }
   0x4   : > { %p224_p1 = scmp.lt.s32.totalorder %s8933_s27, 3  ;;  %p11774_p3 = scmp.eq.s32.totalorder %s8994_s30, 0 }
   0x5   : > { %s8936_s10 = smov [#allocation4]   ;;  %s8863_s15 = scalar_lea.hbm %s11766_s1, 73728 }
   0x6   : > { %p8998_p2 = pnand %p6493_p0, %p224_p1  ;;  %s261_s11 = sshll.u32 %s8936_s10, 4  ;;  %s9011_s11 = int_to_ptr.vmem [resolvable:$true] %s261_s11 }
   0x7   : > { %p8864_p6 = scmp.ne.s32.totalorder %s11766_s1, %s8863_s15  ;;  %p8870_p10 = scmp.lt.u32.totalorder %s8863_s15, %s11766_s1 }
   0x8   : > { %s12306_s9 = scalar_select %p8998_p2, 1, 0 }
   0x9   : > { %p8823_p4 = pneg %p8998_p2 }
   0xb   : > { %p9007_p5 = pnand %p11774_p3, %p8823_p4 }
   0xd   : > { %p8865_p7 = pneg %p9007_p5 }
   0xf   : > { %p8866_p8 = pnand %p8865_p7, %p8864_p6 }
  0x11   : > { %p8867_p9 = pneg %p8866_p8 }
  0x13   : > { %p8872_p11 = pnand %p8870_p10, %p8867_p9 }
  0x15   : > { %8875 = shalt.err (!%p8872_p11)
}
  0x16   : > { %s8876_s20 = scalar_lea.vmem %s237_s29, 73728  ;;  %p8884_p1 = scmp.lt.s32.totalorder %s237_s29, %s237_s29 }
  0x17   : > { %p8877_p12 = scmp.ne.s32.totalorder %s237_s29, %s8876_s20  ;;  %p8885_p4 = scmp.lt.s32.totalorder %s8876_s20, %s8876_s20 }
  0x19   : > { %p8879_p13 = pnand %p8877_p12, %p8865_p7  ;;  %p8886_p3 = por %p8885_p4, %p8884_p1 }
  0x1b   : > { %p8880_p0 = pneg %p8879_p13 }
  0x1d   : > { %p8887_p2 = pnand %p8886_p3, %p8880_p0 }
  0x1f   : > { %8890 = shalt.err (!%p8887_p2)
}
  0x20   : > { %s8937_s21 = smov 256   ;;  %s8938_s22 = smov 16  }
  0x21   : > { %8826 = dma.hbm_to_vmem [thread:$0]  (!%p9007_p5), %s11766_s1, 73728, %s237_s29, [#allocation3], %s8937_s21, %s8937_s21, %s8938_s22  }
  0x22   : > { %s8891_s28 = scalar_lea.hbm %s11771_s6, 576 }
  0x23   : > { %p8892_p6 = scmp.ne.s32.totalorder %s11771_s6, %s8891_s28  ;;  %p8898_p8 = scmp.lt.u32.totalorder %s8891_s28, %s11771_s6 }
  0x25   : > { %p8894_p2 = pnand %p8892_p6, %p8865_p7 }
  0x27   : > { %p8895_p3 = pneg %p8894_p2 }
  0x29   : > { %p8900_p9 = pnand %p8898_p8, %p8895_p3 }
  0x2b   : > { %8903 = shalt.err (!%p8900_p9)
}
  0x2c   : > { %s8904_s29 = scalar_lea.vmem %s9011_s11, 576  ;;  %p8912_p13 = scmp.lt.s32.totalorder %s9011_s11, %s9011_s11 }
  0x2d   : > { %p8905_p10 = scmp.ne.s32.totalorder %s9011_s11, %s8904_s29  ;;  %p8913_p0 = scmp.lt.s32.totalorder %s8904_s29, %s8904_s29 }
  0x2f   : > { %p8907_p11 = pnand %p8905_p10, %p8865_p7  ;;  %p8914_p1 = por %p8913_p0, %p8912_p13 }
  0x31   : > { %p8908_p12 = pneg %p8907_p11 }
  0x33   : > { %p8915_p4 = pnand %p8914_p1, %p8908_p12 }
  0x35   : > { %8918 = shalt.err (!%p8915_p4)
}
  0x36   : > { %s8939_s16 = smov 64   ;;  %s8940_s17 = smov 4  }
  0x37   : > { %8829 = dma.hbm_to_vmem [thread:$0]  (!%p9007_p5), %s11771_s6, 576, %s9011_s11, [#allocation5], %s8939_s16, %s8939_s16, %s8940_s17  }
  0x38   : > { %p12308_p6 = scmp.ne.s32.totalorder %s12306_s9, 0 }
  0x3a   : > { %288 = sbr.rel (%p12308_p6) target bundleno = 4688 (0x1250), region = 52 }
  0x41   : > { %p12309_p7 = scmp.eq.s32.totalorder %s8994_s30, 0 }
  0x43   : > { %8924 = dma.done.wait (%p12309_p7), [#allocation3], 73728   ;;  %p12310_p2 = pmov %p12309_p7 }
  0x45   : > { %8926 = vsyncadd (%p12310_p2), [#allocation3], 4294893568  ;;  %p12311_p3 = pmov %p12310_p2 }
  0x46   : > { %p12312_p8 = pmov %p12310_p2 }
  0x47   : > { %8928 = dma.done.wait (%p12311_p3), [#allocation5], 576  }
  0x48   : > { %8930 = vsyncadd (%p12312_p8), [#allocation5], 4294966720  ;;  %v352_v0 = vld [vmem:[#allocation2 + $0x8] sm:$0xff]  ;;  %v354_v1 = vld [vmem:[#allocation2 + $0x18] sm:$0xff]  ;;  %p326_p5 = scmp.lt.s32.totalorder %s8994_s30, 1  ;;  %vm498_vm0 = vcmask 1043456  }
  0x49   : > { %v351_v2 = vld [vmem:[#allocation2] sm:$0xff]  ;;  %v9070_v3 = vpack.c.bf16 %v354_v1, %v352_v0  ;;  %v353_v4 = vld [vmem:[#allocation2 + $0x10] sm:$0xff]  ;;  %v356_v5 = vld [vmem:[#allocation2 + $0x28] sm:$0xff]  ;;  %vm491_vm1 = vcmask 31744   ;;  %vm2587_vm2 = vcmask 130048   ;;  %vm4790_vm3 = vcmask 523264  }
  0x4a   : > { %v358_v6 = vld [vmem:[#allocation2 + $0x38] sm:$0xff]  ;;  %v9072_v7 = vpack.c.bf16 %v353_v4, %v351_v2  ;;  %v355_v9 = vld [vmem:[#allocation2 + $0x20] sm:$0xff]  ;;  %v357_v10 = vld [vmem:[#allocation2 + $0x30] sm:$0xff]  ;;  %s13149_s30 = smov (!%p326_p5, %s8994_s30), 1 }
  0x4b   : > { %v9074_v8 = vpack.c.bf16 %v358_v6, %v356_v5  ;;  %v360_v11 = vld [vmem:[#allocation2 + $0x48] sm:$0xff]  ;;  %6708 = vmatprep.subr.bf16.mxu0 %v9070_v3  ;;  %v362_v12 = vld [vmem:[#allocation2 + $0x58] sm:$0xff]  ;;  %v9078_v13 = vpack.c.bf16 %v357_v10, %v355_v9  ;;  %v359_v15 = vld [vmem:[#allocation2 + $0x40] sm:$0xff]  ;;  %s6705_s9 = sshll.u32 %s13149_s30, 3 }
  0x4c   : > { %6710 = vmatpush1.bf16.msra.mxu0 %v9072_v7  ;;  %v9081_v14 = vpack.c.bf16 %v362_v12, %v360_v11  ;;  %v361_v16 = vld [vmem:[#allocation2 + $0x50] sm:$0xff]  ;;  %v364_v17 = vld [vmem:[#allocation2 + $0x68] sm:$0xff]  ;;  %v366_v18 = vld [vmem:[#allocation2 + $0x78] sm:$0xff]  ;;  %s9111_s20 = scalar_lea.vmem %s11765_s0, %s6705_s9 }
  0x4d   : > { %6712 = vmatprep.subr.bf16.mxu0 %v9074_v8  ;;  %v9085_v19 = vpack.c.bf16 %v361_v16, %v359_v15  ;;  %v9088_v20 = vpack.c.bf16 %v366_v18, %v364_v17  ;;  %v363_v21 = vld [vmem:[#allocation2 + $0x60] sm:$0xff]  ;;  %v365_v22 = vld [vmem:[#allocation2 + $0x70] sm:$0xff]  ;;  %v368_v23 = vld [vmem:[#allocation2 + $0x88] sm:$0xff] }
  0x4e   : > { %v370_v24 = vld [vmem:[#allocation2 + $0x98] sm:$0xff]  ;;  %v9094_v25 = vpack.c.bf16 %v365_v22, %v363_v21  ;;  %v367_v27 = vld [vmem:[#allocation2 + $0x80] sm:$0xff]  ;;  %v369_v28 = vld [vmem:[#allocation2 + $0x90] sm:$0xff] }
  0x4f   : > { %v9097_v26 = vpack.c.bf16 %v370_v24, %v368_v23  ;;  %v372_v29 = vld [vmem:[#allocation2 + $0xa8] sm:$0xff]  ;;  %v374_v30 = vld [vmem:[#allocation2 + $0xb8] sm:$0xff]  ;;  %v9101_v31 = vpack.c.bf16 %v369_v28, %v367_v27  ;;  %v371_v33 = vld [vmem:[#allocation2 + $0xa0] sm:$0xff] }
  0x50   : > { %6714 = vmatpush1.bf16.msra.mxu0 %v9078_v13  ;;  %v9104_v32 = vpack.c.bf16 %v374_v30, %v372_v29  ;;  %v373_v34 = vld [vmem:[#allocation2 + $0xb0] sm:$0xff]  ;;  %v376_v35 = vld [vmem:[#allocation2 + $0xc8] sm:$0xff]  ;;  %v378_v36 = vld [vmem:[#allocation2 + $0xd8] sm:$0xff] }
  0x51   : > { %6716 = vmatprep.subr.bf16.mxu0 %v9081_v14  ;;  %v9114_v37 = vpack.c.bf16 %v373_v34, %v371_v33  ;;  %v9117_v38 = vpack.c.bf16 %v378_v36, %v376_v35  ;;  %v375_v39 = vld [vmem:[#allocation2 + $0xc0] sm:$0xff]  ;;  %v377_v40 = vld [vmem:[#allocation2 + $0xd0] sm:$0xff]  ;;  %v380_v42 = vld [vmem:[#allocation2 + $0xe8] sm:$0xff] }
  0x52   : > { %v9120_v41 = vld [vmem:[%s9111_s20] sm:$0xff]  ;;  %v382_v43 = vld [vmem:[#allocation2 + $0xf8] sm:$0xff]  ;;  %v9127_v45 = vpack.c.bf16 %v377_v40, %v375_v39  ;;  %v381_v48 = vld [vmem:[#allocation2 + $0xf0] sm:$0xff] }
  0x53   : > { %v9124_v44 = vcombine.high %v9120_v41, %v9120_v41  ;;  %v9131_v46 = vpack.c.bf16 %v382_v43, %v380_v42  ;;  %v379_v47 = vld [vmem:[#allocation2 + $0xe0] sm:$0xff]  ;;  %v384_v49 = vld [vmem:[#allocation2 + $0x108] sm:$0xff]  ;;  %v386_v50 = vld [vmem:[#allocation2 + $0x118] sm:$0xff] }
  0x54   : > { %6718 = vmatpush1.bf16.msra.mxu0 %v9085_v19  ;;  %v9134_v51 = vpack.c.bf16 %v381_v48, %v379_v47  ;;  %v9137_v52 = vpack.c.bf16 %v386_v50, %v384_v49  ;;  %v383_v53 = vld [vmem:[#allocation2 + $0x100] sm:$0xff]  ;;  %v385_v54 = vld [vmem:[#allocation2 + $0x110] sm:$0xff]  ;;  %v388_v55 = vld [vmem:[#allocation2 + $0x128] sm:$0xff] }
  0x55   : > { %6720 = vmatprep.subr.bf16.mxu0 %v9088_v20  ;;  %482 = vmatprep.mubr.f32.mxu0 %v9124_v44  ;;  %v390_v56 = vld [vmem:[#allocation2 + $0x138] sm:$0xff]  ;;  %v9140_v57 = vpack.c.bf16 %v385_v54, %v383_v53  ;;  %v387_v59 = vld [vmem:[#allocation2 + $0x120] sm:$0xff]  ;;  %v389_v60 = vld [vmem:[#allocation2 + $0x130] sm:$0xff]  ;;  %v11776_v53 = vmov 0.0  }
  0x56   : > { %v9143_v58 = vpack.c.bf16 %v390_v56, %v388_v55  ;;  %v392_v61 = vld [vmem:[#allocation2 + $0x148] sm:$0xff]  ;;  %v394_v62 = vld [vmem:[#allocation2 + $0x158] sm:$0xff]  ;;  %v9146_v63 = vpack.c.bf16 %v389_v60, %v387_v59  ;;  %v391_v1 = vld [vmem:[#allocation2 + $0x140] sm:$0xff]  ;;  %569 = vmatprep.mubr.f32.mxu1 %v11776_v53 }
  0x57   : > { %v9149_v0 = vpack.c.bf16 %v394_v62, %v392_v61  ;;  %v393_v2 = vld [vmem:[#allocation2 + $0x150] sm:$0xff]  ;;  %v396_v4 = vld [vmem:[#allocation2 + $0x168] sm:$0xff]  ;;  %v398_v5 = vld [vmem:[#allocation2 + $0x178] sm:$0xff] }
  0x58   : > { %6722 = vmatpush1.bf16.msra.mxu0 %v9094_v25  ;;  %v9152_v6 = vpack.c.bf16 %v393_v2, %v391_v1  ;;  %v9155_v9 = vpack.c.bf16 %v398_v5, %v396_v4  ;;  %v395_v10 = vld [vmem:[#allocation2 + $0x160] sm:$0xff]  ;;  %v397_v11 = vld [vmem:[#allocation2 + $0x170] sm:$0xff]  ;;  %v400_v12 = vld [vmem:[#allocation2 + $0x188] sm:$0xff] }
  0x59   : > { %6724 = vmatprep.subr.bf16.mxu0 %v9097_v26  ;;  %v402_v15 = vld [vmem:[#allocation2 + $0x198] sm:$0xff]  ;;  %v9158_v16 = vpack.c.bf16 %v397_v11, %v395_v10  ;;  %v399_v18 = vld [vmem:[#allocation2 + $0x180] sm:$0xff]  ;;  %v401_v21 = vld [vmem:[#allocation2 + $0x190] sm:$0xff] }
  0x5a   : > { %v9161_v17 = vpack.c.bf16 %v402_v15, %v400_v12  ;;  %v404_v22 = vld [vmem:[#allocation2 + $0x1a8] sm:$0xff]  ;;  %v406_v23 = vld [vmem:[#allocation2 + $0x1b8] sm:$0xff]  ;;  %v9164_v24 = vpack.c.bf16 %v401_v21, %v399_v18  ;;  %v403_v28 = vld [vmem:[#allocation2 + $0x1a0] sm:$0xff] }
  0x5b   : > { %v9167_v27 = vpack.c.bf16 %v406_v23, %v404_v22  ;;  %v405_v29 = vld [vmem:[#allocation2 + $0x1b0] sm:$0xff]  ;;  %v408_v30 = vld [vmem:[#allocation2 + $0x1c8] sm:$0xff]  ;;  %v410_v33 = vld [vmem:[#allocation2 + $0x1d8] sm:$0xff] }
  0x5c   : > { %6726 = vmatpush1.bf16.msra.mxu0 %v9101_v31  ;;  %v9170_v34 = vpack.c.bf16 %v405_v29, %v403_v28  ;;  %v9173_v35 = vpack.c.bf16 %v410_v33, %v408_v30  ;;  %v407_v36 = vld [vmem:[#allocation2 + $0x1c0] sm:$0xff]  ;;  %v409_v39 = vld [vmem:[#allocation2 + $0x1d0] sm:$0xff]  ;;  %v412_v40 = vld [vmem:[#allocation2 + $0x1e8] sm:$0xff] }
  0x5d   : > { %6728 = vmatprep.subr.bf16.mxu0 %v9104_v32  ;;  %v414_v42 = vld [vmem:[#allocation2 + $0x1f8] sm:$0xff]  ;;  %v9176_v43 = vpack.c.bf16 %v409_v39, %v407_v36  ;;  %v411_v48 = vld [vmem:[#allocation2 + $0x1e0] sm:$0xff]  ;;  %v413_v49 = vld [vmem:[#allocation2 + $0x1f0] sm:$0xff] }
  0x5e   : > { %v9179_v47 = vpack.c.bf16 %v414_v42, %v412_v40  ;;  %v9182_v50 = vpack.c.bf16 %v413_v49, %v411_v48  ;;  %v820_v54 = vld [vmem:[#allocation2 + $0x408] sm:$0xff]  ;;  %v822_v55 = vld [vmem:[#allocation2 + $0x418] sm:$0xff]  ;;  %v819_v59 = vld [vmem:[#allocation2 + $0x400] sm:$0xff] }
  0x5f   : > { %v9189_v56 = vpack.c.bf16 %v822_v55, %v820_v54  ;;  %v821_v60 = vld [vmem:[#allocation2 + $0x410] sm:$0xff]  ;;  %v824_v62 = vld [vmem:[#allocation2 + $0x428] sm:$0xff]  ;;  %v826_v1 = vld [vmem:[#allocation2 + $0x438] sm:$0xff] }
  0x60   : > { %6730 = vmatpush1.bf16.msra.mxu0 %v9114_v37  ;;  %v9191_v61 = vpack.c.bf16 %v821_v60, %v819_v59  ;;  %v9195_v2 = vpack.c.bf16 %v826_v1, %v824_v62  ;;  %v823_v4 = vld [vmem:[#allocation2 + $0x420] sm:$0xff]  ;;  %v825_v5 = vld [vmem:[#allocation2 + $0x430] sm:$0xff]  ;;  %v828_v11 = vld [vmem:[#allocation2 + $0x448] sm:$0xff] }
  0x61   : > { %6732 = vmatprep.subr.bf16.mxu0 %v9117_v38  ;;  %v9197_v10 = vpack.c.bf16 %v825_v5, %v823_v4  ;;  %v830_v12 = vld [vmem:[#allocation2 + $0x458] sm:$0xff]  ;;  %v827_v18 = vld [vmem:[#allocation2 + $0x440] sm:$0xff]  ;;  %v829_v21 = vld [vmem:[#allocation2 + $0x450] sm:$0xff] }
  0x62   : > { %v9201_v15 = vpack.c.bf16 %v830_v12, %v828_v11  ;;  %v9203_v22 = vpack.c.bf16 %v829_v21, %v827_v18  ;;  %v832_v23 = vld [vmem:[#allocation2 + $0x468] sm:$0xff]  ;;  %v834_v28 = vld [vmem:[#allocation2 + $0x478] sm:$0xff]  ;;  %v831_v30 = vld [vmem:[#allocation2 + $0x460] sm:$0xff] }
  0x63   : > { %v9207_v29 = vpack.c.bf16 %v834_v28, %v832_v23  ;;  %v833_v33 = vld [vmem:[#allocation2 + $0x470] sm:$0xff]  ;;  %v836_v39 = vld [vmem:[#allocation2 + $0x488] sm:$0xff]  ;;  %v838_v40 = vld [vmem:[#allocation2 + $0x498] sm:$0xff] }
  0x64   : > { %6734 = vmatpush1.bf16.msra.mxu0 %v9127_v45  ;;  %v9209_v36 = vpack.c.bf16 %v833_v33, %v831_v30  ;;  %v9213_v42 = vpack.c.bf16 %v838_v40, %v836_v39  ;;  %v835_v48 = vld [vmem:[#allocation2 + $0x480] sm:$0xff]  ;;  %v837_v49 = vld [vmem:[#allocation2 + $0x490] sm:$0xff]  ;;  %v840_v55 = vld [vmem:[#allocation2 + $0x4a8] sm:$0xff] }
  0x65   : > { %6736 = vmatprep.subr.bf16.mxu0 %v9131_v46  ;;  %v9215_v54 = vpack.c.bf16 %v837_v49, %v835_v48  ;;  %v842_v59 = vld [vmem:[#allocation2 + $0x4b8] sm:$0xff]  ;;  %v839_v62 = vld [vmem:[#allocation2 + $0x4a0] sm:$0xff]  ;;  %v841_v1 = vld [vmem:[#allocation2 + $0x4b0] sm:$0xff] }
  0x66   : > { %v9219_v60 = vpack.c.bf16 %v842_v59, %v840_v55  ;;  %v9221_v4 = vpack.c.bf16 %v841_v1, %v839_v62  ;;  %v844_v5 = vld [vmem:[#allocation2 + $0x4c8] sm:$0xff]  ;;  %v846_v11 = vld [vmem:[#allocation2 + $0x4d8] sm:$0xff]  ;;  %v843_v18 = vld [vmem:[#allocation2 + $0x4c0] sm:$0xff] }
  0x67   : > { %12313 = vst [vmem:[#allocation8_spill] sm:$0xff] %v9215_v54  ;;  %v9225_v12 = vpack.c.bf16 %v846_v11, %v844_v5  ;;  %v845_v21 = vld [vmem:[#allocation2 + $0x4d0] sm:$0xff]  ;;  %v848_v28 = vld [vmem:[#allocation2 + $0x4e8] sm:$0xff]  ;;  %v850_v30 = vld [vmem:[#allocation2 + $0x4f8] sm:$0xff] }
  0x68   : > { %6738 = vmatpush1.bf16.msra.mxu0 %v9134_v51  ;;  %12314 = vst [vmem:[#allocation9_spill] sm:$0xff] %v9219_v60  ;;  %12315 = vst [vmem:[#allocation10_spill] sm:$0xff] %v9221_v4  ;;  %v9227_v23 = vpack.c.bf16 %v845_v21, %v843_v18  ;;  %v9231_v33 = vpack.c.bf16 %v850_v30, %v848_v28  ;;  %v847_v39 = vld [vmem:[#allocation2 + $0x4e0] sm:$0xff]  ;;  %v849_v40 = vld [vmem:[#allocation2 + $0x4f0] sm:$0xff] }
  0x69   : > { %6740 = vmatprep.subr.bf16.mxu0 %v9137_v52  ;;  %12316 = vst [vmem:[#allocation11_spill] sm:$0xff] %v9225_v12  ;;  %v9233_v48 = vpack.c.bf16 %v849_v40, %v847_v39  ;;  %v852_v49 = vld [vmem:[#allocation2 + $0x508] sm:$0xff]  ;;  %v854_v55 = vld [vmem:[#allocation2 + $0x518] sm:$0xff]  ;;  %v851_v62 = vld [vmem:[#allocation2 + $0x500] sm:$0xff] }
  0x6a   : > { %12317 = vst [vmem:[#allocation12_spill] sm:$0xff] %v9227_v23  ;;  %12318 = vst [vmem:[#allocation13_spill] sm:$0xff] %v9231_v33  ;;  %v9237_v59 = vpack.c.bf16 %v854_v55, %v852_v49  ;;  %v853_v1 = vld [vmem:[#allocation2 + $0x510] sm:$0xff]  ;;  %v856_v11 = vld [vmem:[#allocation2 + $0x528] sm:$0xff] }
  0x6b   : > { %12319 = vst [vmem:[#allocation14_spill] sm:$0xff] %v9233_v48  ;;  %v9239_v5 = vpack.c.bf16 %v853_v1, %v851_v62  ;;  %v858_v18 = vld [vmem:[#allocation2 + $0x538] sm:$0xff]  ;;  %v855_v28 = vld [vmem:[#allocation2 + $0x520] sm:$0xff]  ;;  %v857_v30 = vld [vmem:[#allocation2 + $0x530] sm:$0xff] }
  0x6c   : > { %6742 = vmatpush1.bf16.msra.mxu0 %v9140_v57  ;;  %12320 = vst [vmem:[#allocation15_spill] sm:$0xff] %v9237_v59  ;;  %v9243_v21 = vpack.c.bf16 %v858_v18, %v856_v11  ;;  %v9245_v39 = vpack.c.bf16 %v857_v30, %v855_v28  ;;  %v860_v40 = vld [vmem:[#allocation2 + $0x548] sm:$0xff]  ;;  %v862_v49 = vld [vmem:[#allocation2 + $0x558] sm:$0xff]  ;;  %v859_v62 = vld [vmem:[#allocation2 + $0x540] sm:$0xff] }
  0x6d   : > { %6744 = vmatprep.subr.bf16.mxu0 %v9143_v58  ;;  %12321 = vst [vmem:[#allocation16_spill] sm:$0xff] %v9239_v5  ;;  %v9249_v55 = vpack.c.bf16 %v862_v49, %v860_v40  ;;  %v861_v1 = vld [vmem:[#allocation2 + $0x550] sm:$0xff]  ;;  %v864_v11 = vld [vmem:[#allocation2 + $0x568] sm:$0xff]  ;;  %v866_v18 = vld [vmem:[#allocation2 + $0x578] sm:$0xff] }
  0x6e   : > { %12322 = vst [vmem:[#allocation17_spill] sm:$0xff] %v9243_v21  ;;  %12323 = vst [vmem:[#allocation18_spill] sm:$0xff] %v9245_v39  ;;  %v9251_v53 = vpack.c.bf16 %v861_v1, %v859_v62  ;;  %v9255_v28 = vpack.c.bf16 %v866_v18, %v864_v11  ;;  %v863_v30 = vld [vmem:[#allocation2 + $0x560] sm:$0xff]  ;;  %v868_v40 = vld [vmem:[#allocation2 + $0x588] sm:$0xff] }
  0x6f   : > { %12324 = vst [vmem:[#allocation19_spill] sm:$0xff] %v9249_v55  ;;  %v870_v49 = vld [vmem:[#allocation2 + $0x598] sm:$0xff]  ;;  %v867_v1 = vld [vmem:[#allocation2 + $0x580] sm:$0xff]  ;;  %v872_v11 = vld [vmem:[#allocation2 + $0x5a8] sm:$0xff] }
  0x70   : > { %6746 = vmatpush1.bf16.msra.mxu0 %v9146_v63  ;;  %12325 = vst [vmem:[#allocation20_spill] sm:$0xff] %v9251_v53  ;;  %12326 = vst [vmem:[#allocation21_spill] sm:$0xff] %v9255_v28  ;;  %v9261_v62 = vpack.c.bf16 %v870_v49, %v868_v40  ;;  %v874_v18 = vld [vmem:[#allocation2 + $0x5b8] sm:$0xff]  ;;  %v876_v40 = vld [vmem:[#allocation2 + $0x5c8] sm:$0xff] }
  0x71   : > { %6748 = vmatprep.subr.bf16.mxu0 %v9149_v0  ;;  %v878_v49 = vld [vmem:[#allocation2 + $0x5d8] sm:$0xff] }
  0x72   : > { %12328 = vst [vmem:[#allocation23_spill] sm:$0xff] %v9261_v62 }
  0x74   : > { %6750 = vmatpush1.bf16.msra.mxu0 %v9152_v6 }
  0x75   : > { %6752 = vmatprep.subr.bf16.mxu0 %v9155_v9 }
  0x78   : > { %6754 = vmatpush1.bf16.msra.mxu0 %v9158_v16 }
  0x79   : > { %6756 = vmatprep.subr.bf16.mxu0 %v9161_v17 }
  0x7c   : > { %6758 = vmatpush1.bf16.msra.mxu0 %v9164_v24 }
  0x7d   : > { %6760 = vmatprep.subr.bf16.mxu0 %v9167_v27 }
  0x80   : > { %6762 = vmatpush1.bf16.msra.mxu0 %v9170_v34 }
  0x81   : > { %6764 = vmatprep.subr.bf16.mxu0 %v9173_v35 }
  0x84   : > { %6766 = vmatpush1.bf16.msra.mxu0 %v9176_v43 }
  0x85   : > { %6768 = vmatprep.subr.bf16.mxu0 %v9179_v47 }
  0x88   : > { %6770 = vmatpush1.bf16.msra.mxu0 %v9182_v50 }
  0x89   : > { %6836 = vmatprep.subr.bf16.mxu0 %v9189_v56 }
  0x8b   : > { %483 = vmatmul.mubr.f32.vlgmr.msra.gmra.mrb[0].mxu0 %v9120_v41 }
  0x8c   : > { %947 = vmatprep.mubr.f32.mxu0 %v9124_v44  ;;  %6838 = vmatpush1.bf16.msra.mxu0 %v9191_v61 }
  0x8d   : > { %6840 = vmatprep.subr.bf16.mxu0 %v9195_v2 }
  0x90   : > { %6842 = vmatpush1.bf16.msra.mxu0 %v9197_v10 }
  0x91   : > { %6844 = vmatprep.subr.bf16.mxu0 %v9201_v15 }
  0x94   : > { %6846 = vmatpush1.bf16.msra.mxu0 %v9203_v22 }
  0x95   : > { %6848 = vmatprep.subr.bf16.mxu0 %v9207_v29 }
  0x98   : > { %6850 = vmatpush1.bf16.msra.mxu0 %v9209_v36 }
  0x99   : > { %6852 = vmatprep.subr.bf16.mxu0 %v9213_v42 }
  0x9c   : > { %6854 = vmatpush1.bf16.msra.mxu0 %v9215_v54 }
  0x9d   : > { %6856 = vmatprep.subr.bf16.mxu0 %v9219_v60 }
  0xa0   : > { %6858 = vmatpush1.bf16.msra.mxu0 %v9221_v4 }
  0xa1   : > { %6860 = vmatprep.subr.bf16.mxu0 %v9225_v12 }
  0xa4   : > { %6862 = vmatpush1.bf16.msra.mxu0 %v9227_v23 }
  0xa5   : > { %6864 = vmatprep.subr.bf16.mxu0 %v9231_v33  ;;  %v598_v33 = vld [vmem:[#allocation2 + $0x258] sm:$0xff] }
  0xa8   : > { %6866 = vmatpush1.bf16.msra.mxu0 %v9233_v48  ;;  %v596_v48 = vld [vmem:[#allocation2 + $0x248] sm:$0xff] }
  0xa9   : > { %6868 = vmatprep.subr.bf16.mxu0 %v9237_v59  ;;  %v593_v59 = vld [vmem:[#allocation2 + $0x230] sm:$0xff] }
  0xac   : > { %6870 = vmatpush1.bf16.msra.mxu0 %v9239_v5 }
  0xad   : > { %6872 = vmatprep.subr.bf16.mxu0 %v9243_v21  ;;  %v865_v21 = vld [vmem:[#allocation2 + $0x570] sm:$0xff] }
  0xae   : > { %v9257_v5 = vpack.c.bf16 %v865_v21, %v863_v30  ;;  %v9267_v21 = vpack.c.bf16 %v874_v18, %v872_v11  ;;  %v871_v30 = vld [vmem:[#allocation2 + $0x5a0] sm:$0xff]  ;;  %v880_v11 = vld [vmem:[#allocation2 + $0x5e8] sm:$0xff]  ;;  %v882_v18 = vld [vmem:[#allocation2 + $0x5f8] sm:$0xff] }
  0xb0   : > { %6874 = vmatpush1.bf16.msra.mxu0 %v9245_v39  ;;  %12327 = vst [vmem:[#allocation22_spill] sm:$0xff] %v9257_v5  ;;  %12330 = vst [vmem:[#allocation25_spill] sm:$0xff] %v9267_v21 }
  0xb1   : > { %6876 = vmatprep.subr.bf16.mxu0 %v9249_v55  ;;  %v869_v55 = vld [vmem:[#allocation2 + $0x590] sm:$0xff] }
  0xb2   : > { %v9263_v39 = vpack.c.bf16 %v869_v55, %v867_v1  ;;  %v9273_v55 = vpack.c.bf16 %v878_v49, %v876_v40  ;;  %v875_v1 = vld [vmem:[#allocation2 + $0x5c0] sm:$0xff]  ;;  %v590_v40 = vld [vmem:[#allocation2 + $0x218] sm:$0xff] }
  0xb3   : > { %v587_v49 = vld [vmem:[#allocation2 + $0x200] sm:$0xff] }
  0xb4   : > { %6878 = vmatpush1.bf16.msra.mxu0 %v9251_v53  ;;  %12329 = vst [vmem:[#allocation24_spill] sm:$0xff] %v9263_v39  ;;  %12332 = vst [vmem:[#allocation27_spill] sm:$0xff] %v9273_v55 }
  0xb5   : > { %6880 = vmatprep.subr.bf16.mxu0 %v9255_v28  ;;  %v873_v28 = vld [vmem:[#allocation2 + $0x5b0] sm:$0xff] }
  0xb6   : > { %v9269_v53 = vpack.c.bf16 %v873_v28, %v871_v30  ;;  %v9279_v28 = vpack.c.bf16 %v882_v18, %v880_v11  ;;  %v879_v30 = vld [vmem:[#allocation2 + $0x5e0] sm:$0xff]  ;;  %v594_v11 = vld [vmem:[#allocation2 + $0x238] sm:$0xff] }
  0xb8   : > { %6882 = vmatpush1.bf16.msra.mxu0 %v9257_v5  ;;  %12331 = vst [vmem:[#allocation26_spill] sm:$0xff] %v9269_v53  ;;  %12334 = vst [vmem:[#allocation29_spill] sm:$0xff] %v9279_v28 }
  0xb9   : > { %6884 = vmatprep.subr.bf16.mxu0 %v9261_v62  ;;  %v877_v62 = vld [vmem:[#allocation2 + $0x5d0] sm:$0xff] }
  0xba   : > { %v9275_v5 = vpack.c.bf16 %v877_v62, %v875_v1  ;;  %v588_v62 = vld [vmem:[#allocation2 + $0x208] sm:$0xff]  ;;  %v589_v1 = vld [vmem:[#allocation2 + $0x210] sm:$0xff] }
  0xbc   : > { %6886 = vmatpush1.bf16.msra.mxu0 %v9263_v39  ;;  %12333 = vst [vmem:[#allocation28_spill] sm:$0xff] %v9275_v5 }
  0xbd   : > { %6888 = vmatprep.subr.bf16.mxu0 %v9267_v21  ;;  %v881_v21 = vld [vmem:[#allocation2 + $0x5f0] sm:$0xff] }
  0xbe   : > { %v9281_v39 = vpack.c.bf16 %v881_v21, %v879_v30  ;;  %v489_v30 = vld [vmem:[%s11767_s2] sm:$0xff] }
  0xc0   : > { %6890 = vmatpush1.bf16.msra.mxu0 %v9269_v53  ;;  %12335 = vst [vmem:[#allocation30_spill] sm:$0xff] %v9281_v39  ;;  %v591_v53 = vld [vmem:[#allocation2 + $0x220] sm:$0xff] }
  0xc1   : > { %6892 = vmatprep.subr.bf16.mxu0 %v9273_v55  ;;  %v9287_v55 = vpack.c.bf16 %v590_v40, %v588_v62  ;;  %v9301_v62 = vpack.c.bf16 %v593_v59, %v591_v53  ;;  %v12340_v40 = vmov 0.0  }
  0xc3   : > { %12336 = vst [vmem:[#allocation31_spill] sm:$0xff] %v9287_v55  ;;  %12339 = vst [vmem:[#allocation34_spill] sm:$0xff] %v9301_v62 }
  0xc4   : > { %6894 = vmatpush1.bf16.msra.mxu0 %v9275_v5  ;;  %v592_v5 = vld [vmem:[#allocation2 + $0x228] sm:$0xff] }
  0xc5   : > { %6896 = vmatprep.subr.bf16.mxu0 %v9279_v28  ;;  %v9295_v28 = vpack.c.bf16 %v594_v11, %v592_v5  ;;  %v490_v5 = vld [vmem:[%s11767_s2 + $0x8] sm:$0xff]  ;;  %v597_v11 = vld [vmem:[#allocation2 + $0x250] sm:$0xff] }
  0xc7   : > { %12338 = vst [vmem:[#allocation33_spill] sm:$0xff] %v9295_v28 }
  0xc8   : > { %6898 = vmatpush1.bf16.msra.mxu0 %v9281_v39  ;;  %v9292_v39 = vpack.c.bf16 %v589_v1, %v587_v49  ;;  %v9308_v49 = vpack.c.bf16 %v598_v33, %v596_v48  ;;  %v595_v1 = vld [vmem:[#allocation2 + $0x240] sm:$0xff]  ;;  %v604_v33 = vld [vmem:[#allocation2 + $0x288] sm:$0xff]  ;;  %v606_v48 = vld [vmem:[#allocation2 + $0x298] sm:$0xff] }
  0xc9   : > { %v9312_v53 = vpack.c.bf16 %v597_v11, %v595_v1  ;;  %v603_v1 = vld [vmem:[#allocation2 + $0x280] sm:$0xff]  ;;  %v605_v11 = vld [vmem:[#allocation2 + $0x290] sm:$0xff] }
  0xca   : > { %12337 = vst [vmem:[#allocation32_spill] sm:$0xff] %v9292_v39  ;;  %12341 = vst [vmem:[#allocation35_spill] sm:$0xff] %v9308_v49 }
  0xcb   : > { %948 = vmatmul.mubr.f32.vlgmr.msra.gmra.mrb[2].mxu0 %v9120_v41  ;;  %12342 = vst [vmem:[#allocation36_spill] sm:$0xff] %v9312_v53 }
  0xcc   : > { %1411 = vmatprep.mubr.f32.mxu0 %v9124_v44 }
 0x15e   : > { %v484_v18 = vpop.f32.mrb[0].mxu0 }
 0x15f   : > { %v486_v21 = vpop.f32.mrb[1].mxu0 }
 0x160   : > { %6504 = vmatprep.subr.msk.mxu1 %vm498_vm0, %v486_v21  ;;  %v602_v21 = vld [vmem:[#allocation2 + $0x278] sm:$0xff] }
 0x161   : > { %6505 = vmatpush1.msk.msra.mxu1 %vm498_vm0, %v484_v18  ;;  %v600_v18 = vld [vmem:[#allocation2 + $0x268] sm:$0xff] }
 0x162   : > { %6772 = vmatprep.subr.bf16.mxu1 %v9287_v55  ;;  %6506 = vmatmul.mubr.msk.f32.vlgmr.msra.gmra.mrb[0].mxu1 %vm491_vm1, %v489_v30  ;;  %v9316_v59 = vpack.c.bf16 %v602_v21, %v600_v18  ;;  %v599_v30 = vld [vmem:[#allocation2 + $0x260] sm:$0xff]  ;;  %v610_v55 = vld [vmem:[#allocation2 + $0x2b8] sm:$0xff]  ;;  %v9325_v18 = vpack.c.bf16 %v605_v11, %v603_v1  ;;  %v616_v1 = vld [vmem:[#allocation2 + $0x2e8] sm:$0xff] }
 0x163   : > { %6774 = vmatpush1.bf16.msra.mxu1 %v9292_v39  ;;  %575 = vmatprep.mubr.f32.mxu1 %v12340_v40  ;;  %v618_v11 = vld [vmem:[#allocation2 + $0x2f8] sm:$0xff] }
 0x164   : > { %6776 = vmatprep.subr.bf16.mxu1 %v9295_v28  ;;  %12343 = vst [vmem:[#allocation37_spill] sm:$0xff] %v9316_v59  ;;  %v601_v28 = vld [vmem:[#allocation2 + $0x270] sm:$0xff]  ;;  %12346 = vst [vmem:[#allocation40_spill] sm:$0xff] %v9325_v18 }
 0x165   : > { %v9319_v39 = vpack.c.bf16 %v601_v28, %v599_v30  ;;  %v612_v28 = vld [vmem:[#allocation2 + $0x2c8] sm:$0xff]  ;;  %v614_v30 = vld [vmem:[#allocation2 + $0x2d8] sm:$0xff] }
 0x166   : > { %6507 = vmatmul.mubr.msk.f32.gmra.mrb[2].mxu1 %vm491_vm1, %v490_v5  ;;  %v9322_v5 = vpack.c.bf16 %v606_v48, %v604_v33  ;;  %v9334_v48 = vpack.c.bf16 %v614_v30, %v612_v28 }
 0x167   : > { %6778 = vmatpush1.bf16.msra.mxu1 %v9301_v62  ;;  %715 = vmatprep.mubr.f32.mxu1 %v9124_v44  ;;  %12344 = vst [vmem:[#allocation38_spill] sm:$0xff] %v9319_v39  ;;  %v608_v62 = vld [vmem:[#allocation2 + $0x2a8] sm:$0xff] }
 0x168   : > { %6780 = vmatprep.subr.bf16.mxu1 %v9308_v49  ;;  %12345 = vst [vmem:[#allocation39_spill] sm:$0xff] %v9322_v5  ;;  %v9328_v21 = vpack.c.bf16 %v610_v55, %v608_v62  ;;  %v607_v49 = vld [vmem:[#allocation2 + $0x2a0] sm:$0xff]  ;;  %12349 = vst [vmem:[#allocation43_spill] sm:$0xff] %v9334_v48  ;;  %v9340_v62 = vpack.c.bf16 %v618_v11, %v616_v1 }
 0x16a   : > { %12347 = vst [vmem:[#allocation41_spill] sm:$0xff] %v9328_v21  ;;  %12351 = vst [vmem:[#allocation45_spill] sm:$0xff] %v9340_v62 }
 0x16b   : > { %6782 = vmatpush1.bf16.msra.mxu1 %v9312_v53  ;;  %v609_v53 = vld [vmem:[#allocation2 + $0x2b0] sm:$0xff] }
 0x16c   : > { %6784 = vmatprep.subr.bf16.mxu1 %v9316_v59  ;;  %v9331_v33 = vpack.c.bf16 %v609_v53, %v607_v49  ;;  %v611_v59 = vld [vmem:[#allocation2 + $0x2c0] sm:$0xff]  ;;  %v620_v49 = vld [vmem:[#allocation2 + $0x308] sm:$0xff]  ;;  %v622_v53 = vld [vmem:[#allocation2 + $0x318] sm:$0xff] }
 0x16d   : > { %v9346_v30 = vpack.c.bf16 %v622_v53, %v620_v49 }
 0x16e   : > { %12348 = vst [vmem:[#allocation42_spill] sm:$0xff] %v9331_v33 }
 0x16f   : > { %6786 = vmatpush1.bf16.msra.mxu1 %v9319_v39  ;;  %v613_v39 = vld [vmem:[#allocation2 + $0x2d0] sm:$0xff]  ;;  %12353 = vst [vmem:[#allocation47_spill] sm:$0xff] %v9346_v30 }
 0x170   : > { %6788 = vmatprep.subr.bf16.mxu1 %v9322_v5  ;;  %v9337_v55 = vpack.c.bf16 %v613_v39, %v611_v59  ;;  %v615_v5 = vld [vmem:[#allocation2 + $0x2e0] sm:$0xff]  ;;  %v624_v39 = vld [vmem:[#allocation2 + $0x328] sm:$0xff]  ;;  %v626_v59 = vld [vmem:[#allocation2 + $0x338] sm:$0xff] }
 0x171   : > { %v9352_v11 = vpack.c.bf16 %v626_v59, %v624_v39 }
 0x172   : > { %12350 = vst [vmem:[#allocation44_spill] sm:$0xff] %v9337_v55 }
 0x173   : > { %6790 = vmatpush1.bf16.msra.mxu1 %v9325_v18  ;;  %v617_v18 = vld [vmem:[#allocation2 + $0x2f0] sm:$0xff]  ;;  %12355 = vst [vmem:[#allocation49_spill] sm:$0xff] %v9352_v11 }
 0x174   : > { %6792 = vmatprep.subr.bf16.mxu1 %v9328_v21  ;;  %v9343_v28 = vpack.c.bf16 %v617_v18, %v615_v5  ;;  %v619_v21 = vld [vmem:[#allocation2 + $0x300] sm:$0xff]  ;;  %v628_v5 = vld [vmem:[#allocation2 + $0x348] sm:$0xff]  ;;  %v630_v18 = vld [vmem:[#allocation2 + $0x358] sm:$0xff] }
 0x175   : > { %v9358_v53 = vpack.c.bf16 %v630_v18, %v628_v5 }
 0x176   : > { %12352 = vst [vmem:[#allocation46_spill] sm:$0xff] %v9343_v28 }
 0x177   : > { %6794 = vmatpush1.bf16.msra.mxu1 %v9331_v33  ;;  %v621_v33 = vld [vmem:[#allocation2 + $0x310] sm:$0xff]  ;;  %12357 = vst [vmem:[#allocation51_spill] sm:$0xff] %v9358_v53 }
 0x178   : > { %6796 = vmatprep.subr.bf16.mxu1 %v9334_v48  ;;  %v9349_v1 = vpack.c.bf16 %v621_v33, %v619_v21  ;;  %v623_v48 = vld [vmem:[#allocation2 + $0x320] sm:$0xff]  ;;  %v632_v21 = vld [vmem:[#allocation2 + $0x368] sm:$0xff]  ;;  %v634_v33 = vld [vmem:[#allocation2 + $0x378] sm:$0xff] }
 0x179   : > { %v9364_v59 = vpack.c.bf16 %v634_v33, %v632_v21 }
 0x17a   : > { %12354 = vst [vmem:[#allocation48_spill] sm:$0xff] %v9349_v1 }
 0x17b   : > { %6798 = vmatpush1.bf16.msra.mxu1 %v9337_v55  ;;  %v625_v55 = vld [vmem:[#allocation2 + $0x330] sm:$0xff]  ;;  %12359 = vst [vmem:[#allocation53_spill] sm:$0xff] %v9364_v59 }
 0x17c   : > { %6800 = vmatprep.subr.bf16.mxu1 %v9340_v62  ;;  %v9355_v49 = vpack.c.bf16 %v625_v55, %v623_v48  ;;  %v627_v62 = vld [vmem:[#allocation2 + $0x340] sm:$0xff]  ;;  %v636_v48 = vld [vmem:[#allocation2 + $0x388] sm:$0xff]  ;;  %v638_v55 = vld [vmem:[#allocation2 + $0x398] sm:$0xff] }
 0x17d   : > { %v9370_v18 = vpack.c.bf16 %v638_v55, %v636_v48 }
 0x17e   : > { %12356 = vst [vmem:[#allocation50_spill] sm:$0xff] %v9355_v49 }
 0x17f   : > { %6802 = vmatpush1.bf16.msra.mxu1 %v9343_v28  ;;  %v629_v28 = vld [vmem:[#allocation2 + $0x350] sm:$0xff]  ;;  %12361 = vst [vmem:[#allocation55_spill] sm:$0xff] %v9370_v18 }
 0x180   : > { %6804 = vmatprep.subr.bf16.mxu1 %v9346_v30  ;;  %v9361_v39 = vpack.c.bf16 %v629_v28, %v627_v62  ;;  %v631_v30 = vld [vmem:[#allocation2 + $0x360] sm:$0xff]  ;;  %v640_v62 = vld [vmem:[#allocation2 + $0x3a8] sm:$0xff]  ;;  %v642_v28 = vld [vmem:[#allocation2 + $0x3b8] sm:$0xff] }
 0x181   : > { %v9376_v33 = vpack.c.bf16 %v642_v28, %v640_v62 }
 0x182   : > { %12358 = vst [vmem:[#allocation52_spill] sm:$0xff] %v9361_v39 }
 0x183   : > { %6806 = vmatpush1.bf16.msra.mxu1 %v9349_v1  ;;  %v633_v1 = vld [vmem:[#allocation2 + $0x370] sm:$0xff]  ;;  %12363 = vst [vmem:[#allocation57_spill] sm:$0xff] %v9376_v33 }
 0x184   : > { %6808 = vmatprep.subr.bf16.mxu1 %v9352_v11  ;;  %v9367_v5 = vpack.c.bf16 %v633_v1, %v631_v30  ;;  %v635_v11 = vld [vmem:[#allocation2 + $0x380] sm:$0xff]  ;;  %v644_v30 = vld [vmem:[#allocation2 + $0x3c8] sm:$0xff]  ;;  %v646_v1 = vld [vmem:[#allocation2 + $0x3d8] sm:$0xff] }
 0x185   : > { %v9382_v55 = vpack.c.bf16 %v646_v1, %v644_v30  ;;  %v1286_v30 = vld [vmem:[#allocation2 + $0x818] sm:$0xff] }
 0x186   : > { %12360 = vst [vmem:[#allocation54_spill] sm:$0xff] %v9367_v5 }
 0x187   : > { %6810 = vmatpush1.bf16.msra.mxu1 %v9355_v49  ;;  %v637_v49 = vld [vmem:[#allocation2 + $0x390] sm:$0xff]  ;;  %12365 = vst [vmem:[#allocation59_spill] sm:$0xff] %v9382_v55 }
 0x188   : > { %6812 = vmatprep.subr.bf16.mxu1 %v9358_v53  ;;  %v9373_v21 = vpack.c.bf16 %v637_v49, %v635_v11  ;;  %v639_v53 = vld [vmem:[#allocation2 + $0x3a0] sm:$0xff]  ;;  %v648_v11 = vld [vmem:[#allocation2 + $0x3e8] sm:$0xff]  ;;  %v650_v49 = vld [vmem:[#allocation2 + $0x3f8] sm:$0xff] }
 0x189   : > { %v9388_v28 = vpack.c.bf16 %v650_v49, %v648_v11  ;;  %v1283_v11 = vld [vmem:[#allocation2 + $0x800] sm:$0xff]  ;;  %v1285_v49 = vld [vmem:[#allocation2 + $0x810] sm:$0xff] }
 0x18a   : > { %12362 = vst [vmem:[#allocation56_spill] sm:$0xff] %v9373_v21 }
 0x18b   : > { %6814 = vmatpush1.bf16.msra.mxu1 %v9361_v39  ;;  %v641_v39 = vld [vmem:[#allocation2 + $0x3b0] sm:$0xff]  ;;  %12367 = vst [vmem:[#allocation61_spill] sm:$0xff] %v9388_v28 }
 0x18c   : > { %6816 = vmatprep.subr.bf16.mxu1 %v9364_v59  ;;  %v9379_v48 = vpack.c.bf16 %v641_v39, %v639_v53  ;;  %v643_v59 = vld [vmem:[#allocation2 + $0x3c0] sm:$0xff] }
 0x18e   : > { %12364 = vst [vmem:[#allocation58_spill] sm:$0xff] %v9379_v48 }
 0x18f   : > { %6818 = vmatpush1.bf16.msra.mxu1 %v9367_v5  ;;  %v645_v5 = vld [vmem:[#allocation2 + $0x3d0] sm:$0xff] }
 0x190   : > { %6820 = vmatprep.subr.bf16.mxu1 %v9370_v18  ;;  %v9385_v62 = vpack.c.bf16 %v645_v5, %v643_v59  ;;  %v647_v18 = vld [vmem:[#allocation2 + $0x3e0] sm:$0xff]  ;;  %v1284_v5 = vld [vmem:[#allocation2 + $0x808] sm:$0xff] }
 0x191   : > { %v9401_v1 = vpack.c.bf16 %v1286_v30, %v1284_v5  ;;  %v1292_v5 = vld [vmem:[#allocation2 + $0x848] sm:$0xff]  ;;  %v1294_v30 = vld [vmem:[#allocation2 + $0x858] sm:$0xff] }
 0x192   : > { %12366 = vst [vmem:[#allocation60_spill] sm:$0xff] %v9385_v62 }
 0x193   : > { %6822 = vmatpush1.bf16.msra.mxu1 %v9373_v21  ;;  %v649_v21 = vld [vmem:[#allocation2 + $0x3f0] sm:$0xff]  ;;  %12369 = vst [vmem:[#allocation63_spill] sm:$0xff] %v9401_v1  ;;  %6964 = vmatprep.subr.bf16.mxu0 %v9401_v1 }
 0x194   : > { %6824 = vmatprep.subr.bf16.mxu1 %v9376_v33  ;;  %v9391_v53 = vpack.c.bf16 %v649_v21, %v647_v18  ;;  %v9403_v18 = vpack.c.bf16 %v1285_v49, %v1283_v11  ;;  %v1288_v21 = vld [vmem:[#allocation2 + $0x828] sm:$0xff]  ;;  %v9413_v11 = vpack.c.bf16 %v1294_v30, %v1292_v5  ;;  %v1291_v49 = vld [vmem:[#allocation2 + $0x840] sm:$0xff]  ;;  %v1293_v33 = vld [vmem:[#allocation2 + $0x850] sm:$0xff] }
 0x195   : > { %v9415_v1 = vpack.c.bf16 %v1293_v33, %v1291_v49  ;;  %v1300_v5 = vld [vmem:[#allocation2 + $0x888] sm:$0xff]  ;;  %v1302_v30 = vld [vmem:[#allocation2 + $0x898] sm:$0xff]  ;;  %v1299_v49 = vld [vmem:[#allocation2 + $0x880] sm:$0xff] }
 0x196   : > { %12368 = vst [vmem:[#allocation62_spill] sm:$0xff] %v9391_v53  ;;  %12370 = vst [vmem:[#allocation64_spill] sm:$0xff] %v9403_v18  ;;  %6966 = vmatpush1.bf16.msra.mxu0 %v9403_v18  ;;  %v9425_v33 = vpack.c.bf16 %v1302_v30, %v1300_v5  ;;  %v1308_v5 = vld [vmem:[#allocation2 + $0x8c8] sm:$0xff]  ;;  %v1310_v30 = vld [vmem:[#allocation2 + $0x8d8] sm:$0xff] }
 0x197   : > { %6826 = vmatpush1.bf16.msra.mxu1 %v9379_v48  ;;  %12373 = vst [vmem:[#allocation67_spill] sm:$0xff] %v9413_v11  ;;  %12374 = vst [vmem:[#allocation68_spill] sm:$0xff] %v9415_v1 }
 0x198   : > { %6828 = vmatprep.subr.bf16.mxu1 %v9382_v55  ;;  %v1289_v55 = vld [vmem:[#allocation2 + $0x830] sm:$0xff]  ;;  %12377 = vst [vmem:[#allocation71_spill] sm:$0xff] %v9425_v33 }
 0x19b   : > { %6830 = vmatpush1.bf16.msra.mxu1 %v9385_v62  ;;  %v1287_v62 = vld [vmem:[#allocation2 + $0x820] sm:$0xff] }
 0x19c   : > { %6832 = vmatprep.subr.bf16.mxu1 %v9388_v28  ;;  %v9409_v48 = vpack.c.bf16 %v1289_v55, %v1287_v62  ;;  %v1295_v62 = vld [vmem:[#allocation2 + $0x860] sm:$0xff] }
 0x19e   : > { %v9397_v39 = vpop.f32.mrb[2].mxu0  ;;  %12372 = vst [vmem:[#allocation66_spill] sm:$0xff] %v9409_v48 }
 0x19f   : > { %6834 = vmatpush1.bf16.msra.mxu1 %v9391_v53  ;;  %v9399_v59 = vpop.f32.mrb[3].mxu0  ;;  %v1290_v53 = vld [vmem:[#allocation2 + $0x838] sm:$0xff] }
 0x1a0   : > { %v9407_v28 = vpack.c.bf16 %v1290_v53, %v1288_v21  ;;  %v1296_v53 = vld [vmem:[#allocation2 + $0x868] sm:$0xff]  ;;  %v1298_v21 = vld [vmem:[#allocation2 + $0x878] sm:$0xff] }
 0x1a1   : > { %v9419_v55 = vpack.c.bf16 %v1298_v21, %v1296_v53  ;;  %v1304_v53 = vld [vmem:[#allocation2 + $0x8a8] sm:$0xff]  ;;  %v1306_v21 = vld [vmem:[#allocation2 + $0x8b8] sm:$0xff] }
 0x1a2   : > { %716 = vmatmul.mubr.f32.vlgmr.msra.gmra.mrb[4].mxu1 %v9120_v41  ;;  %12371 = vst [vmem:[#allocation65_spill] sm:$0xff] %v9407_v28  ;;  %6968 = vmatprep.subr.bf16.mxu0 %v9407_v28  ;;  %v1297_v28 = vld [vmem:[#allocation2 + $0x870] sm:$0xff] }
 0x1a3   : > { %801 = vmatprep.mubr.f32.mxu1 %v12340_v40  ;;  %6970 = vmatpush1.bf16.msra.mxu0 %v9409_v48  ;;  %12375 = vst [vmem:[#allocation69_spill] sm:$0xff] %v9419_v55  ;;  %v9421_v18 = vpack.c.bf16 %v1297_v28, %v1295_v62  ;;  %v9431_v28 = vpack.c.bf16 %v1306_v21, %v1304_v53  ;;  %v1303_v62 = vld [vmem:[#allocation2 + $0x8a0] sm:$0xff]  ;;  %v1312_v53 = vld [vmem:[#allocation2 + $0x8e8] sm:$0xff]  ;;  %v1314_v21 = vld [vmem:[#allocation2 + $0x8f8] sm:$0xff] }
 0x1a4   : > { %6972 = vmatprep.subr.bf16.mxu0 %v9413_v11  ;;  %v1301_v11 = vld [vmem:[#allocation2 + $0x890] sm:$0xff] }
 0x1a5   : > { %12376 = vst [vmem:[#allocation70_spill] sm:$0xff] %v9421_v18  ;;  %v9427_v48 = vpack.c.bf16 %v1301_v11, %v1299_v49  ;;  %12379 = vst [vmem:[#allocation73_spill] sm:$0xff] %v9431_v28  ;;  %v9437_v11 = vpack.c.bf16 %v1310_v30, %v1308_v5  ;;  %v1307_v49 = vld [vmem:[#allocation2 + $0x8c0] sm:$0xff]  ;;  %v1316_v5 = vld [vmem:[#allocation2 + $0x908] sm:$0xff] }
 0x1a6   : > { %v1318_v30 = vld [vmem:[#allocation2 + $0x918] sm:$0xff] }
 0x1a7   : > { %6974 = vmatpush1.bf16.msra.mxu0 %v9415_v1  ;;  %12378 = vst [vmem:[#allocation72_spill] sm:$0xff] %v9427_v48  ;;  %12381 = vst [vmem:[#allocation75_spill] sm:$0xff] %v9437_v11 }
 0x1a8   : > { %6976 = vmatprep.subr.bf16.mxu0 %v9419_v55  ;;  %v1305_v55 = vld [vmem:[#allocation2 + $0x8b0] sm:$0xff] }
 0x1a9   : > { %v9433_v1 = vpack.c.bf16 %v1305_v55, %v1303_v62  ;;  %v9443_v55 = vpack.c.bf16 %v1314_v21, %v1312_v53  ;;  %v1311_v62 = vld [vmem:[#allocation2 + $0x8e0] sm:$0xff]  ;;  %v1320_v53 = vld [vmem:[#allocation2 + $0x928] sm:$0xff]  ;;  %v1322_v21 = vld [vmem:[#allocation2 + $0x938] sm:$0xff] }
 0x1ab   : > { %6978 = vmatpush1.bf16.msra.mxu0 %v9421_v18  ;;  %12380 = vst [vmem:[#allocation74_spill] sm:$0xff] %v9433_v1  ;;  %12383 = vst [vmem:[#allocation77_spill] sm:$0xff] %v9443_v55 }
 0x1ac   : > { %6980 = vmatprep.subr.bf16.mxu0 %v9425_v33  ;;  %v1309_v33 = vld [vmem:[#allocation2 + $0x8d0] sm:$0xff] }
 0x1ad   : > { %v9439_v18 = vpack.c.bf16 %v1309_v33, %v1307_v49  ;;  %v9449_v33 = vpack.c.bf16 %v1318_v30, %v1316_v5  ;;  %v1315_v49 = vld [vmem:[#allocation2 + $0x900] sm:$0xff]  ;;  %v1324_v5 = vld [vmem:[#allocation2 + $0x948] sm:$0xff]  ;;  %v1326_v30 = vld [vmem:[#allocation2 + $0x958] sm:$0xff] }
 0x1af   : > { %6982 = vmatpush1.bf16.msra.mxu0 %v9427_v48  ;;  %12382 = vst [vmem:[#allocation76_spill] sm:$0xff] %v9439_v18  ;;  %12385 = vst [vmem:[#allocation79_spill] sm:$0xff] %v9449_v33 }
 0x1b0   : > { %6984 = vmatprep.subr.bf16.mxu0 %v9431_v28  ;;  %v1313_v28 = vld [vmem:[#allocation2 + $0x8f0] sm:$0xff] }
 0x1b1   : > { %v9445_v48 = vpack.c.bf16 %v1313_v28, %v1311_v62  ;;  %v9455_v28 = vpack.c.bf16 %v1322_v21, %v1320_v53  ;;  %v1319_v62 = vld [vmem:[#allocation2 + $0x920] sm:$0xff]  ;;  %v1328_v53 = vld [vmem:[#allocation2 + $0x968] sm:$0xff]  ;;  %v1330_v21 = vld [vmem:[#allocation2 + $0x978] sm:$0xff] }
 0x1b3   : > { %6986 = vmatpush1.bf16.msra.mxu0 %v9433_v1  ;;  %12384 = vst [vmem:[#allocation78_spill] sm:$0xff] %v9445_v48  ;;  %12387 = vst [vmem:[#allocation81_spill] sm:$0xff] %v9455_v28 }
 0x1b4   : > { %6988 = vmatprep.subr.bf16.mxu0 %v9437_v11  ;;  %v1317_v11 = vld [vmem:[#allocation2 + $0x910] sm:$0xff] }
 0x1b5   : > { %v9451_v1 = vpack.c.bf16 %v1317_v11, %v1315_v49  ;;  %v9461_v11 = vpack.c.bf16 %v1326_v30, %v1324_v5  ;;  %v1323_v49 = vld [vmem:[#allocation2 + $0x940] sm:$0xff]  ;;  %v1332_v5 = vld [vmem:[#allocation2 + $0x988] sm:$0xff]  ;;  %v1334_v30 = vld [vmem:[#allocation2 + $0x998] sm:$0xff] }
 0x1b7   : > { %6990 = vmatpush1.bf16.msra.mxu0 %v9439_v18  ;;  %12386 = vst [vmem:[#allocation80_spill] sm:$0xff] %v9451_v1  ;;  %12389 = vst [vmem:[#allocation83_spill] sm:$0xff] %v9461_v11 }
 0x1b8   : > { %6992 = vmatprep.subr.bf16.mxu0 %v9443_v55  ;;  %v1321_v55 = vld [vmem:[#allocation2 + $0x930] sm:$0xff] }
 0x1b9   : > { %v9457_v18 = vpack.c.bf16 %v1321_v55, %v1319_v62  ;;  %v9467_v55 = vpack.c.bf16 %v1330_v21, %v1328_v53  ;;  %v1327_v62 = vld [vmem:[#allocation2 + $0x960] sm:$0xff]  ;;  %v1336_v53 = vld [vmem:[#allocation2 + $0x9a8] sm:$0xff]  ;;  %v1338_v21 = vld [vmem:[#allocation2 + $0x9b8] sm:$0xff] }
 0x1bb   : > { %6994 = vmatpush1.bf16.msra.mxu0 %v9445_v48  ;;  %12388 = vst [vmem:[#allocation82_spill] sm:$0xff] %v9457_v18  ;;  %12391 = vst [vmem:[#allocation85_spill] sm:$0xff] %v9467_v55 }
 0x1bc   : > { %6996 = vmatprep.subr.bf16.mxu0 %v9449_v33  ;;  %v1325_v33 = vld [vmem:[#allocation2 + $0x950] sm:$0xff] }
 0x1bd   : > { %v9463_v48 = vpack.c.bf16 %v1325_v33, %v1323_v49  ;;  %v9473_v33 = vpack.c.bf16 %v1334_v30, %v1332_v5  ;;  %v1331_v49 = vld [vmem:[#allocation2 + $0x980] sm:$0xff]  ;;  %v1340_v5 = vld [vmem:[#allocation2 + $0x9c8] sm:$0xff]  ;;  %v1342_v30 = vld [vmem:[#allocation2 + $0x9d8] sm:$0xff] }
 0x1bf   : > { %6998 = vmatpush1.bf16.msra.mxu0 %v9451_v1  ;;  %12390 = vst [vmem:[#allocation84_spill] sm:$0xff] %v9463_v48  ;;  %12393 = vst [vmem:[#allocation87_spill] sm:$0xff] %v9473_v33 }
 0x1c0   : > { %7000 = vmatprep.subr.bf16.mxu0 %v9455_v28  ;;  %v1329_v28 = vld [vmem:[#allocation2 + $0x970] sm:$0xff] }
 0x1c1   : > { %v9469_v1 = vpack.c.bf16 %v1329_v28, %v1327_v62  ;;  %v9479_v28 = vpack.c.bf16 %v1338_v21, %v1336_v53  ;;  %v1335_v62 = vld [vmem:[#allocation2 + $0x9a0] sm:$0xff]  ;;  %v1344_v53 = vld [vmem:[#allocation2 + $0x9e8] sm:$0xff]  ;;  %v1346_v21 = vld [vmem:[#allocation2 + $0x9f8] sm:$0xff] }
 0x1c3   : > { %7002 = vmatpush1.bf16.msra.mxu0 %v9457_v18  ;;  %12392 = vst [vmem:[#allocation86_spill] sm:$0xff] %v9469_v1  ;;  %12395 = vst [vmem:[#allocation89_spill] sm:$0xff] %v9479_v28 }
 0x1c4   : > { %7004 = vmatprep.subr.bf16.mxu0 %v9461_v11  ;;  %v1333_v11 = vld [vmem:[#allocation2 + $0x990] sm:$0xff] }
 0x1c5   : > { %v9475_v18 = vpack.c.bf16 %v1333_v11, %v1331_v49  ;;  %v9485_v11 = vpack.c.bf16 %v1342_v30, %v1340_v5  ;;  %v1339_v49 = vld [vmem:[#allocation2 + $0x9c0] sm:$0xff]  ;;  %v1054_v5 = vld [vmem:[#allocation2 + $0x618] sm:$0xff] }
 0x1c7   : > { %7006 = vmatpush1.bf16.msra.mxu0 %v9463_v48  ;;  %12394 = vst [vmem:[#allocation88_spill] sm:$0xff] %v9475_v18  ;;  %12397 = vst [vmem:[#allocation91_spill] sm:$0xff] %v9485_v11 }
 0x1c8   : > { %7008 = vmatprep.subr.bf16.mxu0 %v9467_v55  ;;  %v1337_v55 = vld [vmem:[#allocation2 + $0x9b0] sm:$0xff] }
 0x1c9   : > { %v9481_v48 = vpack.c.bf16 %v1337_v55, %v1335_v62  ;;  %v9491_v55 = vpack.c.bf16 %v1346_v21, %v1344_v53  ;;  %v1343_v62 = vld [vmem:[#allocation2 + $0x9e0] sm:$0xff]  ;;  %v6508_v53 = vld [vmem:[%s11767_s2 + $0x10] sm:$0xff] }
 0x1ca   : > { %v1051_v21 = vld [vmem:[#allocation2 + $0x600] sm:$0xff] }
 0x1cb   : > { %7010 = vmatpush1.bf16.msra.mxu0 %v9469_v1  ;;  %12396 = vst [vmem:[#allocation90_spill] sm:$0xff] %v9481_v48  ;;  %12399 = vst [vmem:[#allocation93_spill] sm:$0xff] %v9491_v55 }
 0x1cc   : > { %7012 = vmatprep.subr.bf16.mxu0 %v9473_v33  ;;  %v1341_v33 = vld [vmem:[#allocation2 + $0x9d0] sm:$0xff] }
 0x1cd   : > { %v9487_v1 = vpack.c.bf16 %v1341_v33, %v1339_v49  ;;  %v1052_v33 = vld [vmem:[#allocation2 + $0x608] sm:$0xff] }
 0x1cf   : > { %7014 = vmatpush1.bf16.msra.mxu0 %v9475_v18  ;;  %12398 = vst [vmem:[#allocation92_spill] sm:$0xff] %v9487_v1 }
 0x1d0   : > { %7016 = vmatprep.subr.bf16.mxu0 %v9479_v28  ;;  %v1345_v28 = vld [vmem:[#allocation2 + $0x9f0] sm:$0xff] }
 0x1d1   : > { %v9493_v18 = vpack.c.bf16 %v1345_v28, %v1343_v62  ;;  %v9503_v28 = vpack.c.bf16 %v1054_v5, %v1052_v33  ;;  %v1053_v62 = vld [vmem:[#allocation2 + $0x610] sm:$0xff]  ;;  %v1056_v33 = vld [vmem:[#allocation2 + $0x628] sm:$0xff]  ;;  %v1058_v5 = vld [vmem:[#allocation2 + $0x638] sm:$0xff] }
 0x1d3   : > { %7018 = vmatpush1.bf16.msra.mxu0 %v9481_v48  ;;  %12400 = vst [vmem:[#allocation94_spill] sm:$0xff] %v9493_v18  ;;  %12401 = vst [vmem:[#allocation95_spill] sm:$0xff] %v9503_v28 }
 0x1d4   : > { %7020 = vmatprep.subr.bf16.mxu0 %v9485_v11  ;;  %v1074_v11 = vld [vmem:[#allocation2 + $0x6b8] sm:$0xff] }
 0x1d7   : > { %7022 = vmatpush1.bf16.msra.mxu0 %v9487_v1  ;;  %v1066_v1 = vld [vmem:[#allocation2 + $0x678] sm:$0xff] }
 0x1d8   : > { %7024 = vmatprep.subr.bf16.mxu0 %v9491_v55 }
 0x1db   : > { %7026 = vmatpush1.bf16.msra.mxu0 %v9493_v18  ;;  %v1060_v18 = vld [vmem:[#allocation2 + $0x648] sm:$0xff] }
 0x1de   : > { %1412 = vmatmul.mubr.f32.vlgmr.msra.gmra.mrb[4].mxu0 %v9120_v41  ;;  %v6509_v41 = vld [vmem:[%s11767_s2 + $0x18] sm:$0xff] }
 0x1df   : > { %1875 = vmatprep.mubr.f32.mxu0 %v9124_v44 }
 0x275   : > { %v717_v30 = vpop.f32.mrb[4].mxu1 }
 0x276   : > { %v719_v49 = vpop.f32.mrb[5].mxu1 }
 0x277   : > { %6510 = vmatprep.subr.msk.mxu1 %vm498_vm0, %v719_v49  ;;  %v1055_v49 = vld [vmem:[#allocation2 + $0x620] sm:$0xff] }
 0x278   : > { %6511 = vmatpush1.msk.msra.mxu1 %vm498_vm0, %v717_v30  ;;  %v9521_v30 = vpack.c.bf16 %v1053_v62, %v1051_v21  ;;  %v1059_v62 = vld [vmem:[#allocation2 + $0x640] sm:$0xff] }
 0x279   : > { %6512 = vmatmul.mubr.msk.f32.vlgmr.msra.gmra.mrb[0].mxu1 %vm491_vm1, %v6508_v53  ;;  %6516 = vmatprep.subr.msk.mxu1 %vm498_vm0, %v9399_v59  ;;  %v6514_v59 = vld [vmem:[%s11767_s2 + $0x20] sm:$0xff]  ;;  %v1057_v53 = vld [vmem:[#allocation2 + $0x630] sm:$0xff] }
 0x27a   : > { %807 = vmatprep.mubr.f32.mxu1 %v12340_v40  ;;  %6517 = vmatpush1.msk.msra.mxu1 %vm498_vm0, %v9397_v39  ;;  %12402 = vst [vmem:[#allocation96_spill] sm:$0xff] %v9521_v30  ;;  %v9523_v39 = vpack.c.bf16 %v1058_v5, %v1056_v33  ;;  %v9527_v55 = vpack.c.bf16 %v1057_v53, %v1055_v49  ;;  %v1061_v33 = vld [vmem:[#allocation2 + $0x650] sm:$0xff]  ;;  %v1064_v5 = vld [vmem:[#allocation2 + $0x668] sm:$0xff]  ;;  %v1063_v53 = vld [vmem:[#allocation2 + $0x660] sm:$0xff] }
 0x27b   : > { %6900 = vmatprep.subr.bf16.mxu1 %v9503_v28  ;;  %v1062_v28 = vld [vmem:[#allocation2 + $0x658] sm:$0xff]  ;;  %v9542_v49 = vpack.c.bf16 %v1066_v1, %v1064_v5 }
 0x27c   : > { %12403 = vst [vmem:[#allocation97_spill] sm:$0xff] %v9523_v39  ;;  %12404 = vst [vmem:[#allocation98_spill] sm:$0xff] %v9527_v55  ;;  %v9534_v21 = vpack.c.bf16 %v1062_v28, %v1060_v18  ;;  %v1068_v18 = vld [vmem:[#allocation2 + $0x688] sm:$0xff]  ;;  %v1070_v28 = vld [vmem:[#allocation2 + $0x698] sm:$0xff] }
 0x27d   : > { %6513 = vmatmul.mubr.msk.f32.gmra.mrb[2].mxu1 %vm491_vm1, %v6509_v41  ;;  %v6515_v41 = vld [vmem:[%s11767_s2 + $0x28] sm:$0xff]  ;;  %12407 = vst [vmem:[#allocation101_spill] sm:$0xff] %v9542_v49 }
 0x27e   : > { %1033 = vmatprep.mubr.f32.mxu1 %v12340_v40  ;;  %12405 = vst [vmem:[#allocation99_spill] sm:$0xff] %v9534_v21 }
 0x281   : > { %6518 = vmatmul.mubr.msk.f32.vlgmr.msra.gmra.mrb[0].mxu1 %vm491_vm1, %v6514_v59  ;;  %v9538_v59 = vpack.c.bf16 %v1061_v33, %v1059_v62  ;;  %v1067_v62 = vld [vmem:[#allocation2 + $0x680] sm:$0xff]  ;;  %v1069_v33 = vld [vmem:[#allocation2 + $0x690] sm:$0xff] }
 0x282   : > { %6902 = vmatpush1.bf16.msra.mxu1 %v9521_v30  ;;  %1039 = vmatprep.mubr.f32.mxu1 %v12340_v40  ;;  %v9551_v1 = vpack.c.bf16 %v1069_v33, %v1067_v62  ;;  %v1080_v62 = vld [vmem:[#allocation2 + $0x6e8] sm:$0xff]  ;;  %v1082_v33 = vld [vmem:[#allocation2 + $0x6f8] sm:$0xff] }
 0x283   : > { %6904 = vmatprep.subr.bf16.mxu1 %v9523_v39  ;;  %12406 = vst [vmem:[#allocation100_spill] sm:$0xff] %v9538_v59  ;;  %v1065_v39 = vld [vmem:[#allocation2 + $0x670] sm:$0xff] }
 0x284   : > { %v9545_v30 = vpack.c.bf16 %v1065_v39, %v1063_v53  ;;  %12410 = vst [vmem:[#allocation104_spill] sm:$0xff] %v9551_v1  ;;  %v1076_v39 = vld [vmem:[#allocation2 + $0x6c8] sm:$0xff]  ;;  %v1078_v53 = vld [vmem:[#allocation2 + $0x6d8] sm:$0xff] }
 0x285   : > { %6519 = vmatmul.mubr.msk.f32.gmra.mrb[2].mxu1 %vm491_vm1, %v6515_v41  ;;  %v9548_v41 = vpack.c.bf16 %v1070_v28, %v1068_v18  ;;  %v9560_v28 = vpack.c.bf16 %v1078_v53, %v1076_v39 }
 0x286   : > { %6906 = vmatpush1.bf16.msra.mxu1 %v9527_v55  ;;  %1179 = vmatprep.mubr.f32.mxu1 %v9124_v44  ;;  %12408 = vst [vmem:[#allocation102_spill] sm:$0xff] %v9545_v30  ;;  %v1072_v55 = vld [vmem:[#allocation2 + $0x6a8] sm:$0xff] }
 0x287   : > { %6908 = vmatprep.subr.bf16.mxu1 %v9534_v21  ;;  %12409 = vst [vmem:[#allocation103_spill] sm:$0xff] %v9548_v41  ;;  %v9554_v5 = vpack.c.bf16 %v1074_v11, %v1072_v55  ;;  %v1071_v21 = vld [vmem:[#allocation2 + $0x6a0] sm:$0xff]  ;;  %12413 = vst [vmem:[#allocation107_spill] sm:$0xff] %v9560_v28  ;;  %v9566_v55 = vpack.c.bf16 %v1082_v33, %v1080_v62 }
 0x289   : > { %12411 = vst [vmem:[#allocation105_spill] sm:$0xff] %v9554_v5  ;;  %12415 = vst [vmem:[#allocation109_spill] sm:$0xff] %v9566_v55 }
 0x28a   : > { %6910 = vmatpush1.bf16.msra.mxu1 %v9538_v59  ;;  %v1073_v59 = vld [vmem:[#allocation2 + $0x6b0] sm:$0xff] }
 0x28b   : > { %6912 = vmatprep.subr.bf16.mxu1 %v9542_v49  ;;  %v9557_v18 = vpack.c.bf16 %v1073_v59, %v1071_v21  ;;  %v1075_v49 = vld [vmem:[#allocation2 + $0x6c0] sm:$0xff]  ;;  %v1084_v21 = vld [vmem:[#allocation2 + $0x708] sm:$0xff]  ;;  %v1086_v59 = vld [vmem:[#allocation2 + $0x718] sm:$0xff] }
 0x28c   : > { %v9572_v53 = vpack.c.bf16 %v1086_v59, %v1084_v21 }
 0x28d   : > { %12412 = vst [vmem:[#allocation106_spill] sm:$0xff] %v9557_v18 }
 0x28e   : > { %6914 = vmatpush1.bf16.msra.mxu1 %v9545_v30  ;;  %v1077_v30 = vld [vmem:[#allocation2 + $0x6d0] sm:$0xff]  ;;  %12417 = vst [vmem:[#allocation111_spill] sm:$0xff] %v9572_v53 }
 0x28f   : > { %6916 = vmatprep.subr.bf16.mxu1 %v9548_v41  ;;  %v9563_v11 = vpack.c.bf16 %v1077_v30, %v1075_v49  ;;  %v1079_v41 = vld [vmem:[#allocation2 + $0x6e0] sm:$0xff]  ;;  %v1088_v30 = vld [vmem:[#allocation2 + $0x728] sm:$0xff]  ;;  %v1090_v49 = vld [vmem:[#allocation2 + $0x738] sm:$0xff] }
 0x290   : > { %v9578_v33 = vpack.c.bf16 %v1090_v49, %v1088_v30 }
 0x291   : > { %12414 = vst [vmem:[#allocation108_spill] sm:$0xff] %v9563_v11 }
 0x292   : > { %6918 = vmatpush1.bf16.msra.mxu1 %v9551_v1  ;;  %v1081_v1 = vld [vmem:[#allocation2 + $0x6f0] sm:$0xff]  ;;  %12419 = vst [vmem:[#allocation113_spill] sm:$0xff] %v9578_v33 }
 0x293   : > { %6920 = vmatprep.subr.bf16.mxu1 %v9554_v5  ;;  %v9569_v39 = vpack.c.bf16 %v1081_v1, %v1079_v41  ;;  %v1083_v5 = vld [vmem:[#allocation2 + $0x700] sm:$0xff]  ;;  %v1092_v41 = vld [vmem:[#allocation2 + $0x748] sm:$0xff]  ;;  %v1094_v1 = vld [vmem:[#allocation2 + $0x758] sm:$0xff] }
 0x294   : > { %v9584_v59 = vpack.c.bf16 %v1094_v1, %v1092_v41 }
 0x295   : > { %12416 = vst [vmem:[#allocation110_spill] sm:$0xff] %v9569_v39 }
 0x296   : > { %6922 = vmatpush1.bf16.msra.mxu1 %v9557_v18  ;;  %v1085_v18 = vld [vmem:[#allocation2 + $0x710] sm:$0xff]  ;;  %12421 = vst [vmem:[#allocation115_spill] sm:$0xff] %v9584_v59 }
 0x297   : > { %6924 = vmatprep.subr.bf16.mxu1 %v9560_v28  ;;  %v9575_v62 = vpack.c.bf16 %v1085_v18, %v1083_v5  ;;  %v1087_v28 = vld [vmem:[#allocation2 + $0x720] sm:$0xff]  ;;  %v1096_v5 = vld [vmem:[#allocation2 + $0x768] sm:$0xff]  ;;  %v1098_v18 = vld [vmem:[#allocation2 + $0x778] sm:$0xff] }
 0x298   : > { %v9590_v49 = vpack.c.bf16 %v1098_v18, %v1096_v5 }
 0x299   : > { %12418 = vst [vmem:[#allocation112_spill] sm:$0xff] %v9575_v62 }
 0x29a   : > { %6926 = vmatpush1.bf16.msra.mxu1 %v9563_v11  ;;  %v1089_v11 = vld [vmem:[#allocation2 + $0x730] sm:$0xff]  ;;  %12423 = vst [vmem:[#allocation117_spill] sm:$0xff] %v9590_v49 }
 0x29b   : > { %6928 = vmatprep.subr.bf16.mxu1 %v9566_v55  ;;  %v9581_v21 = vpack.c.bf16 %v1089_v11, %v1087_v28  ;;  %v1091_v55 = vld [vmem:[#allocation2 + $0x740] sm:$0xff]  ;;  %v1100_v28 = vld [vmem:[#allocation2 + $0x788] sm:$0xff]  ;;  %v1102_v11 = vld [vmem:[#allocation2 + $0x798] sm:$0xff] }
 0x29c   : > { %v9596_v1 = vpack.c.bf16 %v1102_v11, %v1100_v28 }
 0x29d   : > { %12420 = vst [vmem:[#allocation114_spill] sm:$0xff] %v9581_v21 }
 0x29e   : > { %6930 = vmatpush1.bf16.msra.mxu1 %v9569_v39  ;;  %v1093_v39 = vld [vmem:[#allocation2 + $0x750] sm:$0xff]  ;;  %12425 = vst [vmem:[#allocation119_spill] sm:$0xff] %v9596_v1 }
 0x29f   : > { %6932 = vmatprep.subr.bf16.mxu1 %v9572_v53  ;;  %v9587_v30 = vpack.c.bf16 %v1093_v39, %v1091_v55  ;;  %v1095_v53 = vld [vmem:[#allocation2 + $0x760] sm:$0xff]  ;;  %v1104_v55 = vld [vmem:[#allocation2 + $0x7a8] sm:$0xff]  ;;  %v1106_v39 = vld [vmem:[#allocation2 + $0x7b8] sm:$0xff] }
 0x2a0   : > { %v9602_v18 = vpack.c.bf16 %v1106_v39, %v1104_v55 }
 0x2a1   : > { %12422 = vst [vmem:[#allocation116_spill] sm:$0xff] %v9587_v30 }
 0x2a2   : > { %6934 = vmatpush1.bf16.msra.mxu1 %v9575_v62  ;;  %v1097_v62 = vld [vmem:[#allocation2 + $0x770] sm:$0xff]  ;;  %12427 = vst [vmem:[#allocation121_spill] sm:$0xff] %v9602_v18 }
 0x2a3   : > { %6936 = vmatprep.subr.bf16.mxu1 %v9578_v33  ;;  %v9593_v41 = vpack.c.bf16 %v1097_v62, %v1095_v53  ;;  %v1099_v33 = vld [vmem:[#allocation2 + $0x780] sm:$0xff]  ;;  %v1108_v53 = vld [vmem:[#allocation2 + $0x7c8] sm:$0xff]  ;;  %v1110_v62 = vld [vmem:[#allocation2 + $0x7d8] sm:$0xff] }
 0x2a4   : > { %v9608_v11 = vpack.c.bf16 %v1110_v62, %v1108_v53  ;;  %v9622_v53 = vld [vmem:[%s9111_s20] sm:$0xff]  ;;  %v1748_v62 = vld [vmem:[#allocation2 + $0xc08] sm:$0xff] }
 0x2a5   : > { %12424 = vst [vmem:[#allocation118_spill] sm:$0xff] %v9593_v41 }
 0x2a6   : > { %6938 = vmatpush1.bf16.msra.mxu1 %v9581_v21  ;;  %v1101_v21 = vld [vmem:[#allocation2 + $0x790] sm:$0xff]  ;;  %12429 = vst [vmem:[#allocation123_spill] sm:$0xff] %v9608_v11 }
 0x2a7   : > { %6940 = vmatprep.subr.bf16.mxu1 %v9584_v59  ;;  %v9599_v5 = vpack.c.bf16 %v1101_v21, %v1099_v33  ;;  %v1103_v59 = vld [vmem:[#allocation2 + $0x7a0] sm:$0xff]  ;;  %v1109_v33 = vld [vmem:[#allocation2 + $0x7d0] sm:$0xff]  ;;  %v1112_v21 = vld [vmem:[#allocation2 + $0x7e8] sm:$0xff] }
 0x2a9   : > { %12426 = vst [vmem:[#allocation120_spill] sm:$0xff] %v9599_v5 }
 0x2aa   : > { %6942 = vmatpush1.bf16.msra.mxu1 %v9587_v30  ;;  %v1105_v30 = vld [vmem:[#allocation2 + $0x7b0] sm:$0xff] }
 0x2ab   : > { %6944 = vmatprep.subr.bf16.mxu1 %v9590_v49  ;;  %v9605_v28 = vpack.c.bf16 %v1105_v30, %v1103_v59  ;;  %v1114_v49 = vld [vmem:[#allocation2 + $0x7f8] sm:$0xff]  ;;  %v1113_v59 = vld [vmem:[#allocation2 + $0x7f0] sm:$0xff] }
 0x2ac   : > { %v9614_v39 = vpack.c.bf16 %v1114_v49, %v1112_v21 }
 0x2ad   : > { %12428 = vst [vmem:[#allocation122_spill] sm:$0xff] %v9605_v28 }
 0x2ae   : > { %6946 = vmatpush1.bf16.msra.mxu1 %v9593_v41  ;;  %v1107_v41 = vld [vmem:[#allocation2 + $0x7c0] sm:$0xff]  ;;  %12431 = vst [vmem:[#allocation125_spill] sm:$0xff] %v9614_v39 }
 0x2af   : > { %6948 = vmatprep.subr.bf16.mxu1 %v9596_v1  ;;  %v9611_v55 = vpack.c.bf16 %v1109_v33, %v1107_v41  ;;  %v1750_v33 = vld [vmem:[#allocation2 + $0xc18] sm:$0xff] }
 0x2b0   : > { %v9630_v21 = vpack.c.bf16 %v1750_v33, %v1748_v62  ;;  %v1756_v62 = vld [vmem:[#allocation2 + $0xc48] sm:$0xff]  ;;  %v1758_v33 = vld [vmem:[#allocation2 + $0xc58] sm:$0xff] }
 0x2b1   : > { %12430 = vst [vmem:[#allocation124_spill] sm:$0xff] %v9611_v55  ;;  %v9626_v41 = vpop.f32.mrb[4].mxu0 }
 0x2b2   : > { %6950 = vmatpush1.bf16.msra.mxu1 %v9599_v5  ;;  %v1111_v5 = vld [vmem:[#allocation2 + $0x7e0] sm:$0xff]  ;;  %v9628_v49 = vpop.f32.mrb[5].mxu0  ;;  %12433 = vst [vmem:[#allocation127_spill] sm:$0xff] %v9630_v21  ;;  %7092 = vmatprep.subr.bf16.mxu0 %v9630_v21  ;;  %v1757_v21 = vld [vmem:[#allocation2 + $0xc50] sm:$0xff] }
 0x2b3   : > { %6952 = vmatprep.subr.bf16.mxu1 %v9602_v18  ;;  %v9617_v30 = vpack.c.bf16 %v1113_v59, %v1111_v5  ;;  %v1747_v5 = vld [vmem:[#allocation2 + $0xc00] sm:$0xff]  ;;  %v1749_v59 = vld [vmem:[#allocation2 + $0xc10] sm:$0xff] }
 0x2b4   : > { %v1753_v18 = vld [vmem:[#allocation2 + $0xc30] sm:$0xff] }
 0x2b5   : > { %12432 = vst [vmem:[#allocation126_spill] sm:$0xff] %v9617_v30 }
 0x2b6   : > { %6954 = vmatpush1.bf16.msra.mxu1 %v9605_v28  ;;  %v1751_v28 = vld [vmem:[#allocation2 + $0xc20] sm:$0xff] }
 0x2b7   : > { %6956 = vmatprep.subr.bf16.mxu1 %v9608_v11  ;;  %v9638_v1 = vpack.c.bf16 %v1753_v18, %v1751_v28  ;;  %v1759_v28 = vld [vmem:[#allocation2 + $0xc60] sm:$0xff] }
 0x2b9   : > { %12436 = vst [vmem:[#allocation130_spill] sm:$0xff] %v9638_v1 }
 0x2ba   : > { %6958 = vmatpush1.bf16.msra.mxu1 %v9611_v55  ;;  %v9632_v55 = vpack.c.bf16 %v1749_v59, %v1747_v5  ;;  %v9642_v5 = vpack.c.bf16 %v1758_v33, %v1756_v62  ;;  %v1755_v59 = vld [vmem:[#allocation2 + $0xc40] sm:$0xff]  ;;  %v1764_v62 = vld [vmem:[#allocation2 + $0xc88] sm:$0xff]  ;;  %v1766_v33 = vld [vmem:[#allocation2 + $0xc98] sm:$0xff] }
 0x2bb   : > { %6960 = vmatprep.subr.bf16.mxu1 %v9614_v39  ;;  %v1754_v39 = vld [vmem:[#allocation2 + $0xc38] sm:$0xff]  ;;  %v9644_v48 = vpack.c.bf16 %v1757_v21, %v1755_v59  ;;  %v9654_v21 = vpack.c.bf16 %v1766_v33, %v1764_v62  ;;  %v1763_v59 = vld [vmem:[#allocation2 + $0xc80] sm:$0xff]  ;;  %v1772_v62 = vld [vmem:[#allocation2 + $0xcc8] sm:$0xff] }
 0x2bc   : > { %12434 = vst [vmem:[#allocation128_spill] sm:$0xff] %v9632_v55  ;;  %7094 = vmatpush1.bf16.msra.mxu0 %v9632_v55  ;;  %12437 = vst [vmem:[#allocation131_spill] sm:$0xff] %v9642_v5  ;;  %v1774_v33 = vld [vmem:[#allocation2 + $0xcd8] sm:$0xff] }
 0x2bd   : > { %12438 = vst [vmem:[#allocation132_spill] sm:$0xff] %v9644_v48  ;;  %12441 = vst [vmem:[#allocation135_spill] sm:$0xff] %v9654_v21 }
 0x2be   : > { %6962 = vmatpush1.bf16.msra.mxu1 %v9617_v30  ;;  %v1752_v30 = vld [vmem:[#allocation2 + $0xc28] sm:$0xff] }
 0x2bf   : > { %v9636_v11 = vpack.c.bf16 %v1754_v39, %v1752_v30  ;;  %v1760_v39 = vld [vmem:[#allocation2 + $0xc68] sm:$0xff]  ;;  %v1762_v30 = vld [vmem:[#allocation2 + $0xc78] sm:$0xff] }
 0x2c0   : > { %v9648_v18 = vpack.c.bf16 %v1762_v30, %v1760_v39  ;;  %v1768_v39 = vld [vmem:[#allocation2 + $0xca8] sm:$0xff]  ;;  %v1770_v30 = vld [vmem:[#allocation2 + $0xcb8] sm:$0xff] }
 0x2c1   : > { %1180 = vmatmul.mubr.f32.vlgmr.msra.gmra.mrb[6].mxu1 %v9622_v53  ;;  %12435 = vst [vmem:[#allocation129_spill] sm:$0xff] %v9636_v11  ;;  %7096 = vmatprep.subr.bf16.mxu0 %v9636_v11  ;;  %v1761_v11 = vld [vmem:[#allocation2 + $0xc70] sm:$0xff] }
 0x2c2   : > { %1265 = vmatprep.mubr.f32.mxu1 %v12340_v40  ;;  %7098 = vmatpush1.bf16.msra.mxu0 %v9638_v1  ;;  %12439 = vst [vmem:[#allocation133_spill] sm:$0xff] %v9648_v18  ;;  %v9650_v55 = vpack.c.bf16 %v1761_v11, %v1759_v28  ;;  %v9660_v11 = vpack.c.bf16 %v1770_v30, %v1768_v39  ;;  %v1767_v28 = vld [vmem:[#allocation2 + $0xca0] sm:$0xff]  ;;  %v1776_v39 = vld [vmem:[#allocation2 + $0xce8] sm:$0xff]  ;;  %v1778_v30 = vld [vmem:[#allocation2 + $0xcf8] sm:$0xff] }
 0x2c3   : > { %7100 = vmatprep.subr.bf16.mxu0 %v9642_v5  ;;  %v1765_v5 = vld [vmem:[#allocation2 + $0xc90] sm:$0xff] }
 0x2c4   : > { %12440 = vst [vmem:[#allocation134_spill] sm:$0xff] %v9650_v55  ;;  %v9656_v1 = vpack.c.bf16 %v1765_v5, %v1763_v59  ;;  %12443 = vst [vmem:[#allocation137_spill] sm:$0xff] %v9660_v11  ;;  %v9666_v5 = vpack.c.bf16 %v1774_v33, %v1772_v62  ;;  %v1771_v59 = vld [vmem:[#allocation2 + $0xcc0] sm:$0xff]  ;;  %v1780_v62 = vld [vmem:[#allocation2 + $0xd08] sm:$0xff] }
 0x2c5   : > { %v1782_v33 = vld [vmem:[#allocation2 + $0xd18] sm:$0xff] }
 0x2c6   : > { %7102 = vmatpush1.bf16.msra.mxu0 %v9644_v48  ;;  %12442 = vst [vmem:[#allocation136_spill] sm:$0xff] %v9656_v1  ;;  %12445 = vst [vmem:[#allocation139_spill] sm:$0xff] %v9666_v5 }
 0x2c7   : > { %7104 = vmatprep.subr.bf16.mxu0 %v9648_v18  ;;  %v1769_v18 = vld [vmem:[#allocation2 + $0xcb0] sm:$0xff] }
 0x2c8   : > { %v9662_v48 = vpack.c.bf16 %v1769_v18, %v1767_v28  ;;  %v9672_v18 = vpack.c.bf16 %v1778_v30, %v1776_v39  ;;  %v1775_v28 = vld [vmem:[#allocation2 + $0xce0] sm:$0xff]  ;;  %v1784_v39 = vld [vmem:[#allocation2 + $0xd28] sm:$0xff]  ;;  %v1786_v30 = vld [vmem:[#allocation2 + $0xd38] sm:$0xff] }
 0x2ca   : > { %7106 = vmatpush1.bf16.msra.mxu0 %v9650_v55  ;;  %12444 = vst [vmem:[#allocation138_spill] sm:$0xff] %v9662_v48  ;;  %12447 = vst [vmem:[#allocation141_spill] sm:$0xff] %v9672_v18 }
 0x2cb   : > { %7108 = vmatprep.subr.bf16.mxu0 %v9654_v21  ;;  %v1773_v21 = vld [vmem:[#allocation2 + $0xcd0] sm:$0xff] }
 0x2cc   : > { %v9668_v55 = vpack.c.bf16 %v1773_v21, %v1771_v59  ;;  %v9678_v21 = vpack.c.bf16 %v1782_v33, %v1780_v62  ;;  %v1779_v59 = vld [vmem:[#allocation2 + $0xd00] sm:$0xff]  ;;  %v1788_v62 = vld [vmem:[#allocation2 + $0xd48] sm:$0xff]  ;;  %v1790_v33 = vld [vmem:[#allocation2 + $0xd58] sm:$0xff] }
 0x2ce   : > { %7110 = vmatpush1.bf16.msra.mxu0 %v9656_v1  ;;  %12446 = vst [vmem:[#allocation140_spill] sm:$0xff] %v9668_v55  ;;  %12449 = vst [vmem:[#allocation143_spill] sm:$0xff] %v9678_v21 }
 0x2cf   : > { %7112 = vmatprep.subr.bf16.mxu0 %v9660_v11  ;;  %v1777_v11 = vld [vmem:[#allocation2 + $0xcf0] sm:$0xff] }
 0x2d0   : > { %v9674_v1 = vpack.c.bf16 %v1777_v11, %v1775_v28  ;;  %v9684_v11 = vpack.c.bf16 %v1786_v30, %v1784_v39  ;;  %v1783_v28 = vld [vmem:[#allocation2 + $0xd20] sm:$0xff]  ;;  %v1792_v39 = vld [vmem:[#allocation2 + $0xd68] sm:$0xff]  ;;  %v1794_v30 = vld [vmem:[#allocation2 + $0xd78] sm:$0xff] }
 0x2d2   : > { %7114 = vmatpush1.bf16.msra.mxu0 %v9662_v48  ;;  %12448 = vst [vmem:[#allocation142_spill] sm:$0xff] %v9674_v1  ;;  %12451 = vst [vmem:[#allocation145_spill] sm:$0xff] %v9684_v11 }
 0x2d3   : > { %7116 = vmatprep.subr.bf16.mxu0 %v9666_v5  ;;  %v1781_v5 = vld [vmem:[#allocation2 + $0xd10] sm:$0xff] }
 0x2d4   : > { %v9680_v48 = vpack.c.bf16 %v1781_v5, %v1779_v59  ;;  %v9690_v5 = vpack.c.bf16 %v1790_v33, %v1788_v62  ;;  %v1787_v59 = vld [vmem:[#allocation2 + $0xd40] sm:$0xff]  ;;  %v1796_v62 = vld [vmem:[#allocation2 + $0xd88] sm:$0xff]  ;;  %v1798_v33 = vld [vmem:[#allocation2 + $0xd98] sm:$0xff] }
 0x2d6   : > { %7118 = vmatpush1.bf16.msra.mxu0 %v9668_v55  ;;  %12450 = vst [vmem:[#allocation144_spill] sm:$0xff] %v9680_v48  ;;  %12453 = vst [vmem:[#allocation147_spill] sm:$0xff] %v9690_v5 }
 0x2d7   : > { %7120 = vmatprep.subr.bf16.mxu0 %v9672_v18  ;;  %v1785_v18 = vld [vmem:[#allocation2 + $0xd30] sm:$0xff] }
 0x2d8   : > { %v9686_v55 = vpack.c.bf16 %v1785_v18, %v1783_v28  ;;  %v9696_v18 = vpack.c.bf16 %v1794_v30, %v1792_v39  ;;  %v1791_v28 = vld [vmem:[#allocation2 + $0xd60] sm:$0xff]  ;;  %v1800_v39 = vld [vmem:[#allocation2 + $0xda8] sm:$0xff]  ;;  %v1802_v30 = vld [vmem:[#allocation2 + $0xdb8] sm:$0xff] }
 0x2da   : > { %7122 = vmatpush1.bf16.msra.mxu0 %v9674_v1  ;;  %12452 = vst [vmem:[#allocation146_spill] sm:$0xff] %v9686_v55  ;;  %12455 = vst [vmem:[#allocation149_spill] sm:$0xff] %v9696_v18 }
 0x2db   : > { %7124 = vmatprep.subr.bf16.mxu0 %v9678_v21  ;;  %v1789_v21 = vld [vmem:[#allocation2 + $0xd50] sm:$0xff] }
 0x2dc   : > { %v9692_v1 = vpack.c.bf16 %v1789_v21, %v1787_v59  ;;  %v9702_v21 = vpack.c.bf16 %v1798_v33, %v1796_v62  ;;  %v1795_v59 = vld [vmem:[#allocation2 + $0xd80] sm:$0xff]  ;;  %v1804_v62 = vld [vmem:[#allocation2 + $0xdc8] sm:$0xff]  ;;  %v1806_v33 = vld [vmem:[#allocation2 + $0xdd8] sm:$0xff] }
 0x2de   : > { %7126 = vmatpush1.bf16.msra.mxu0 %v9680_v48  ;;  %12454 = vst [vmem:[#allocation148_spill] sm:$0xff] %v9692_v1  ;;  %12457 = vst [vmem:[#allocation151_spill] sm:$0xff] %v9702_v21 }
 0x2df   : > { %7128 = vmatprep.subr.bf16.mxu0 %v9684_v11  ;;  %v1793_v11 = vld [vmem:[#allocation2 + $0xd70] sm:$0xff] }
 0x2e0   : > { %v9698_v48 = vpack.c.bf16 %v1793_v11, %v1791_v28  ;;  %v9708_v11 = vpack.c.bf16 %v1802_v30, %v1800_v39  ;;  %v1799_v28 = vld [vmem:[#allocation2 + $0xda0] sm:$0xff]  ;;  %v1808_v39 = vld [vmem:[#allocation2 + $0xde8] sm:$0xff]  ;;  %v1810_v30 = vld [vmem:[#allocation2 + $0xdf8] sm:$0xff] }
 0x2e2   : > { %7130 = vmatpush1.bf16.msra.mxu0 %v9686_v55  ;;  %12456 = vst [vmem:[#allocation150_spill] sm:$0xff] %v9698_v48  ;;  %12459 = vst [vmem:[#allocation153_spill] sm:$0xff] %v9708_v11 }
 0x2e3   : > { %7132 = vmatprep.subr.bf16.mxu0 %v9690_v5  ;;  %v1797_v5 = vld [vmem:[#allocation2 + $0xd90] sm:$0xff] }
 0x2e4   : > { %v9704_v55 = vpack.c.bf16 %v1797_v5, %v1795_v59  ;;  %v9714_v5 = vpack.c.bf16 %v1806_v33, %v1804_v62  ;;  %v1803_v59 = vld [vmem:[#allocation2 + $0xdc0] sm:$0xff]  ;;  %v1518_v62 = vld [vmem:[#allocation2 + $0xa18] sm:$0xff] }
 0x2e6   : > { %7134 = vmatpush1.bf16.msra.mxu0 %v9692_v1  ;;  %12458 = vst [vmem:[#allocation152_spill] sm:$0xff] %v9704_v55  ;;  %12461 = vst [vmem:[#allocation155_spill] sm:$0xff] %v9714_v5 }
 0x2e7   : > { %7136 = vmatprep.subr.bf16.mxu0 %v9696_v18  ;;  %v1801_v18 = vld [vmem:[#allocation2 + $0xdb0] sm:$0xff] }
 0x2e8   : > { %v9710_v1 = vpack.c.bf16 %v1801_v18, %v1799_v28  ;;  %v9720_v18 = vpack.c.bf16 %v1810_v30, %v1808_v39  ;;  %v1807_v28 = vld [vmem:[#allocation2 + $0xde0] sm:$0xff]  ;;  %v6520_v39 = vld [vmem:[%s11767_s2 + $0x30] sm:$0xff]  ;;  %v6521_v30 = vld [vmem:[%s11767_s2 + $0x38] sm:$0xff] }
 0x2ea   : > { %7138 = vmatpush1.bf16.msra.mxu0 %v9698_v48  ;;  %12460 = vst [vmem:[#allocation154_spill] sm:$0xff] %v9710_v1  ;;  %12463 = vst [vmem:[#allocation157_spill] sm:$0xff] %v9720_v18 }
 0x2eb   : > { %7140 = vmatprep.subr.bf16.mxu0 %v9702_v21  ;;  %v1805_v21 = vld [vmem:[#allocation2 + $0xdd0] sm:$0xff] }
 0x2ec   : > { %v9716_v48 = vpack.c.bf16 %v1805_v21, %v1803_v59  ;;  %v1516_v21 = vld [vmem:[#allocation2 + $0xa08] sm:$0xff] }
 0x2ee   : > { %7142 = vmatpush1.bf16.msra.mxu0 %v9704_v55  ;;  %12462 = vst [vmem:[#allocation156_spill] sm:$0xff] %v9716_v48 }
 0x2ef   : > { %7144 = vmatprep.subr.bf16.mxu0 %v9708_v11  ;;  %v1809_v11 = vld [vmem:[#allocation2 + $0xdf0] sm:$0xff] }
 0x2f0   : > { %v9722_v55 = vpack.c.bf16 %v1809_v11, %v1807_v28  ;;  %v9732_v11 = vpack.c.bf16 %v1518_v62, %v1516_v21  ;;  %v1515_v28 = vld [vmem:[#allocation2 + $0xa00] sm:$0xff]  ;;  %v1517_v21 = vld [vmem:[#allocation2 + $0xa10] sm:$0xff]  ;;  %v1520_v62 = vld [vmem:[#allocation2 + $0xa28] sm:$0xff] }
 0x2f2   : > { %7146 = vmatpush1.bf16.msra.mxu0 %v9710_v1  ;;  %12464 = vst [vmem:[#allocation158_spill] sm:$0xff] %v9722_v55  ;;  %12465 = vst [vmem:[#allocation159_spill] sm:$0xff] %v9732_v11  ;;  %v1530_v1 = vld [vmem:[#allocation2 + $0xa78] sm:$0xff] }
 0x2f3   : > { %7148 = vmatprep.subr.bf16.mxu0 %v9714_v5 }
 0x2f6   : > { %7150 = vmatpush1.bf16.msra.mxu0 %v9716_v48  ;;  %v1526_v48 = vld [vmem:[#allocation2 + $0xa58] sm:$0xff] }
 0x2f7   : > { %7152 = vmatprep.subr.bf16.mxu0 %v9720_v18  ;;  %v1524_v18 = vld [vmem:[#allocation2 + $0xa48] sm:$0xff] }
 0x2fa   : > { %7154 = vmatpush1.bf16.msra.mxu0 %v9722_v55  ;;  %v1521_v55 = vld [vmem:[#allocation2 + $0xa30] sm:$0xff] }
 0x2fd   : > { %1876 = vmatmul.mubr.f32.vlgmr.msra.gmra.mrb[6].mxu0 %v9622_v53 }
 0x2fe   : > { %2339 = vmatprep.mubr.f32.mxu0 %v9124_v44 }
 0x394   : > { %v1181_v33 = vpop.f32.mrb[6].mxu1 }
 0x395   : > { %v1183_v59 = vpop.f32.mrb[7].mxu1 }
 0x396   : > { %6522 = vmatprep.subr.msk.mxu1 %vm498_vm0, %v1183_v59  ;;  %v9750_v59 = vpack.c.bf16 %v1517_v21, %v1515_v28  ;;  %v9763_v28 = vpack.c.bf16 %v1526_v48, %v1524_v18  ;;  %v1523_v21 = vld [vmem:[#allocation2 + $0xa40] sm:$0xff]  ;;  %v1532_v48 = vld [vmem:[#allocation2 + $0xa88] sm:$0xff]  ;;  %v1534_v18 = vld [vmem:[#allocation2 + $0xa98] sm:$0xff] }
 0x397   : > { %6523 = vmatpush1.msk.msra.mxu1 %vm498_vm0, %v1181_v33  ;;  %v1522_v33 = vld [vmem:[#allocation2 + $0xa38] sm:$0xff] }
 0x398   : > { %6524 = vmatmul.mubr.msk.f32.vlgmr.msra.gmra.mrb[0].mxu1 %vm491_vm1, %v6520_v39  ;;  %6528 = vmatprep.subr.msk.mxu1 %vm498_vm0, %v9628_v49  ;;  %v6526_v49 = vld [vmem:[%s11767_s2 + $0x40] sm:$0xff]  ;;  %12466 = vst [vmem:[#allocation160_spill] sm:$0xff] %v9750_v59  ;;  %12469 = vst [vmem:[#allocation163_spill] sm:$0xff] %v9763_v28 }
 0x399   : > { %1271 = vmatprep.mubr.f32.mxu1 %v12340_v40  ;;  %6529 = vmatpush1.msk.msra.mxu1 %vm498_vm0, %v9626_v41  ;;  %v9752_v41 = vpack.c.bf16 %v1522_v33, %v1520_v62  ;;  %v1519_v39 = vld [vmem:[#allocation2 + $0xa20] sm:$0xff]  ;;  %v1525_v62 = vld [vmem:[#allocation2 + $0xa50] sm:$0xff]  ;;  %v1528_v33 = vld [vmem:[#allocation2 + $0xa68] sm:$0xff] }
 0x39a   : > { %7028 = vmatprep.subr.bf16.mxu1 %v9732_v11  ;;  %v9756_v5 = vpack.c.bf16 %v1521_v55, %v1519_v39  ;;  %v9767_v55 = vpack.c.bf16 %v1525_v62, %v1523_v21  ;;  %v1527_v39 = vld [vmem:[#allocation2 + $0xa60] sm:$0xff]  ;;  %v1533_v62 = vld [vmem:[#allocation2 + $0xa90] sm:$0xff]  ;;  %v1538_v11 = vld [vmem:[#allocation2 + $0xab8] sm:$0xff] }
 0x39b   : > { %12467 = vst [vmem:[#allocation161_spill] sm:$0xff] %v9752_v41  ;;  %v1531_v21 = vld [vmem:[#allocation2 + $0xa80] sm:$0xff] }
 0x39c   : > { %6525 = vmatmul.mubr.msk.f32.gmra.mrb[2].mxu1 %vm491_vm1, %v6521_v30  ;;  %12468 = vst [vmem:[#allocation162_spill] sm:$0xff] %v9756_v5  ;;  %v6527_v30 = vld [vmem:[%s11767_s2 + $0x48] sm:$0xff]  ;;  %12470 = vst [vmem:[#allocation164_spill] sm:$0xff] %v9767_v55 }
 0x39d   : > { %1497 = vmatprep.mubr.f32.mxu1 %v12340_v40 }
 0x3a0   : > { %6530 = vmatmul.mubr.msk.f32.vlgmr.msra.gmra.mrb[0].mxu1 %vm491_vm1, %v6526_v49  ;;  %v9771_v49 = vpack.c.bf16 %v1530_v1, %v1528_v33  ;;  %v9780_v1 = vpack.c.bf16 %v1533_v62, %v1531_v21  ;;  %v1544_v21 = vld [vmem:[#allocation2 + $0xae8] sm:$0xff]  ;;  %v1546_v62 = vld [vmem:[#allocation2 + $0xaf8] sm:$0xff] }
 0x3a1   : > { %7030 = vmatpush1.bf16.msra.mxu1 %v9750_v59  ;;  %1503 = vmatprep.mubr.f32.mxu1 %v12340_v40 }
 0x3a2   : > { %7032 = vmatprep.subr.bf16.mxu1 %v9752_v41  ;;  %12471 = vst [vmem:[#allocation165_spill] sm:$0xff] %v9771_v49  ;;  %v1529_v41 = vld [vmem:[#allocation2 + $0xa70] sm:$0xff]  ;;  %12474 = vst [vmem:[#allocation168_spill] sm:$0xff] %v9780_v1 }
 0x3a3   : > { %v9774_v59 = vpack.c.bf16 %v1529_v41, %v1527_v39  ;;  %v1540_v41 = vld [vmem:[#allocation2 + $0xac8] sm:$0xff]  ;;  %v1542_v39 = vld [vmem:[#allocation2 + $0xad8] sm:$0xff] }
 0x3a4   : > { %6531 = vmatmul.mubr.msk.f32.gmra.mrb[2].mxu1 %vm491_vm1, %v6527_v30  ;;  %v9777_v30 = vpack.c.bf16 %v1534_v18, %v1532_v48  ;;  %v9789_v18 = vpack.c.bf16 %v1542_v39, %v1540_v41 }
 0x3a5   : > { %7034 = vmatpush1.bf16.msra.mxu1 %v9756_v5  ;;  %1643 = vmatprep.mubr.f32.mxu1 %v9124_v44  ;;  %12472 = vst [vmem:[#allocation166_spill] sm:$0xff] %v9774_v59  ;;  %v1536_v5 = vld [vmem:[#allocation2 + $0xaa8] sm:$0xff] }
 0x3a6   : > { %7036 = vmatprep.subr.bf16.mxu1 %v9763_v28  ;;  %12473 = vst [vmem:[#allocation167_spill] sm:$0xff] %v9777_v30  ;;  %v9783_v33 = vpack.c.bf16 %v1538_v11, %v1536_v5  ;;  %v1535_v28 = vld [vmem:[#allocation2 + $0xaa0] sm:$0xff]  ;;  %12477 = vst [vmem:[#allocation171_spill] sm:$0xff] %v9789_v18  ;;  %v9795_v11 = vpack.c.bf16 %v1546_v62, %v1544_v21 }
 0x3a8   : > { %12475 = vst [vmem:[#allocation169_spill] sm:$0xff] %v9783_v33  ;;  %12479 = vst [vmem:[#allocation173_spill] sm:$0xff] %v9795_v11 }
 0x3a9   : > { %7038 = vmatpush1.bf16.msra.mxu1 %v9767_v55  ;;  %v1537_v55 = vld [vmem:[#allocation2 + $0xab0] sm:$0xff] }
 0x3aa   : > { %7040 = vmatprep.subr.bf16.mxu1 %v9771_v49  ;;  %v9786_v48 = vpack.c.bf16 %v1537_v55, %v1535_v28  ;;  %v1539_v49 = vld [vmem:[#allocation2 + $0xac0] sm:$0xff]  ;;  %v1548_v28 = vld [vmem:[#allocation2 + $0xb08] sm:$0xff]  ;;  %v1550_v55 = vld [vmem:[#allocation2 + $0xb18] sm:$0xff] }
 0x3ab   : > { %v9801_v39 = vpack.c.bf16 %v1550_v55, %v1548_v28 }
 0x3ac   : > { %12476 = vst [vmem:[#allocation170_spill] sm:$0xff] %v9786_v48 }
 0x3ad   : > { %7042 = vmatpush1.bf16.msra.mxu1 %v9774_v59  ;;  %v1541_v59 = vld [vmem:[#allocation2 + $0xad0] sm:$0xff]  ;;  %12481 = vst [vmem:[#allocation175_spill] sm:$0xff] %v9801_v39 }
 0x3ae   : > { %7044 = vmatprep.subr.bf16.mxu1 %v9777_v30  ;;  %v9792_v5 = vpack.c.bf16 %v1541_v59, %v1539_v49  ;;  %v1543_v30 = vld [vmem:[#allocation2 + $0xae0] sm:$0xff]  ;;  %v1552_v59 = vld [vmem:[#allocation2 + $0xb28] sm:$0xff]  ;;  %v1554_v49 = vld [vmem:[#allocation2 + $0xb38] sm:$0xff] }
 0x3af   : > { %v9807_v62 = vpack.c.bf16 %v1554_v49, %v1552_v59 }
 0x3b0   : > { %12478 = vst [vmem:[#allocation172_spill] sm:$0xff] %v9792_v5 }
 0x3b1   : > { %7046 = vmatpush1.bf16.msra.mxu1 %v9780_v1  ;;  %v1545_v1 = vld [vmem:[#allocation2 + $0xaf0] sm:$0xff]  ;;  %12483 = vst [vmem:[#allocation177_spill] sm:$0xff] %v9807_v62 }
 0x3b2   : > { %7048 = vmatprep.subr.bf16.mxu1 %v9783_v33  ;;  %v9798_v41 = vpack.c.bf16 %v1545_v1, %v1543_v30  ;;  %v1547_v33 = vld [vmem:[#allocation2 + $0xb00] sm:$0xff]  ;;  %v1556_v30 = vld [vmem:[#allocation2 + $0xb48] sm:$0xff]  ;;  %v1558_v1 = vld [vmem:[#allocation2 + $0xb58] sm:$0xff] }
 0x3b3   : > { %v9813_v55 = vpack.c.bf16 %v1558_v1, %v1556_v30 }
 0x3b4   : > { %12480 = vst [vmem:[#allocation174_spill] sm:$0xff] %v9798_v41 }
 0x3b5   : > { %7050 = vmatpush1.bf16.msra.mxu1 %v9786_v48  ;;  %v1549_v48 = vld [vmem:[#allocation2 + $0xb10] sm:$0xff]  ;;  %12485 = vst [vmem:[#allocation179_spill] sm:$0xff] %v9813_v55 }
 0x3b6   : > { %7052 = vmatprep.subr.bf16.mxu1 %v9789_v18  ;;  %v9804_v21 = vpack.c.bf16 %v1549_v48, %v1547_v33  ;;  %v1551_v18 = vld [vmem:[#allocation2 + $0xb20] sm:$0xff]  ;;  %v1560_v33 = vld [vmem:[#allocation2 + $0xb68] sm:$0xff]  ;;  %v1562_v48 = vld [vmem:[#allocation2 + $0xb78] sm:$0xff] }
 0x3b7   : > { %v9819_v49 = vpack.c.bf16 %v1562_v48, %v1560_v33 }
 0x3b8   : > { %12482 = vst [vmem:[#allocation176_spill] sm:$0xff] %v9804_v21 }
 0x3b9   : > { %7054 = vmatpush1.bf16.msra.mxu1 %v9792_v5  ;;  %v1553_v5 = vld [vmem:[#allocation2 + $0xb30] sm:$0xff]  ;;  %12487 = vst [vmem:[#allocation181_spill] sm:$0xff] %v9819_v49 }
 0x3ba   : > { %7056 = vmatprep.subr.bf16.mxu1 %v9795_v11  ;;  %v9810_v28 = vpack.c.bf16 %v1553_v5, %v1551_v18  ;;  %v1555_v11 = vld [vmem:[#allocation2 + $0xb40] sm:$0xff]  ;;  %v1564_v18 = vld [vmem:[#allocation2 + $0xb88] sm:$0xff]  ;;  %v1566_v5 = vld [vmem:[#allocation2 + $0xb98] sm:$0xff] }
 0x3bb   : > { %v9825_v1 = vpack.c.bf16 %v1566_v5, %v1564_v18 }
 0x3bc   : > { %12484 = vst [vmem:[#allocation178_spill] sm:$0xff] %v9810_v28 }
 0x3bd   : > { %7058 = vmatpush1.bf16.msra.mxu1 %v9798_v41  ;;  %v1557_v41 = vld [vmem:[#allocation2 + $0xb50] sm:$0xff]  ;;  %12489 = vst [vmem:[#allocation183_spill] sm:$0xff] %v9825_v1 }
 0x3be   : > { %7060 = vmatprep.subr.bf16.mxu1 %v9801_v39  ;;  %v9816_v59 = vpack.c.bf16 %v1557_v41, %v1555_v11  ;;  %v1559_v39 = vld [vmem:[#allocation2 + $0xb60] sm:$0xff]  ;;  %v1568_v11 = vld [vmem:[#allocation2 + $0xba8] sm:$0xff]  ;;  %v1570_v41 = vld [vmem:[#allocation2 + $0xbb8] sm:$0xff] }
 0x3bf   : > { %v9831_v48 = vpack.c.bf16 %v1570_v41, %v1568_v11 }
 0x3c0   : > { %12486 = vst [vmem:[#allocation180_spill] sm:$0xff] %v9816_v59 }
 0x3c1   : > { %7062 = vmatpush1.bf16.msra.mxu1 %v9804_v21  ;;  %v1561_v21 = vld [vmem:[#allocation2 + $0xb70] sm:$0xff]  ;;  %12491 = vst [vmem:[#allocation185_spill] sm:$0xff] %v9831_v48 }
 0x3c2   : > { %7064 = vmatprep.subr.bf16.mxu1 %v9807_v62  ;;  %v9822_v30 = vpack.c.bf16 %v1561_v21, %v1559_v39  ;;  %v1563_v62 = vld [vmem:[#allocation2 + $0xb80] sm:$0xff]  ;;  %v1572_v39 = vld [vmem:[#allocation2 + $0xbc8] sm:$0xff]  ;;  %v1574_v21 = vld [vmem:[#allocation2 + $0xbd8] sm:$0xff] }
 0x3c3   : > { %v9837_v5 = vpack.c.bf16 %v1574_v21, %v1572_v39  ;;  %v2214_v39 = vld [vmem:[#allocation2 + $0x1018] sm:$0xff] }
 0x3c4   : > { %12488 = vst [vmem:[#allocation182_spill] sm:$0xff] %v9822_v30 }
 0x3c5   : > { %7066 = vmatpush1.bf16.msra.mxu1 %v9810_v28  ;;  %v1565_v28 = vld [vmem:[#allocation2 + $0xb90] sm:$0xff]  ;;  %12493 = vst [vmem:[#allocation187_spill] sm:$0xff] %v9837_v5 }
 0x3c6   : > { %7068 = vmatprep.subr.bf16.mxu1 %v9813_v55  ;;  %v9828_v33 = vpack.c.bf16 %v1565_v28, %v1563_v62  ;;  %v1567_v55 = vld [vmem:[#allocation2 + $0xba0] sm:$0xff]  ;;  %v1576_v62 = vld [vmem:[#allocation2 + $0xbe8] sm:$0xff]  ;;  %v1578_v28 = vld [vmem:[#allocation2 + $0xbf8] sm:$0xff] }
 0x3c7   : > { %v9843_v41 = vpack.c.bf16 %v1578_v28, %v1576_v62  ;;  %v2211_v62 = vld [vmem:[#allocation2 + $0x1000] sm:$0xff]  ;;  %v2213_v28 = vld [vmem:[#allocation2 + $0x1010] sm:$0xff] }
 0x3c8   : > { %12490 = vst [vmem:[#allocation184_spill] sm:$0xff] %v9828_v33 }
 0x3c9   : > { %7070 = vmatpush1.bf16.msra.mxu1 %v9816_v59  ;;  %v1569_v59 = vld [vmem:[#allocation2 + $0xbb0] sm:$0xff]  ;;  %12495 = vst [vmem:[#allocation189_spill] sm:$0xff] %v9843_v41 }
 0x3ca   : > { %7072 = vmatprep.subr.bf16.mxu1 %v9819_v49  ;;  %v9834_v18 = vpack.c.bf16 %v1569_v59, %v1567_v55  ;;  %v1571_v49 = vld [vmem:[#allocation2 + $0xbc0] sm:$0xff] }
 0x3cc   : > { %12492 = vst [vmem:[#allocation186_spill] sm:$0xff] %v9834_v18 }
 0x3cd   : > { %7074 = vmatpush1.bf16.msra.mxu1 %v9822_v30  ;;  %v1573_v30 = vld [vmem:[#allocation2 + $0xbd0] sm:$0xff] }
 0x3ce   : > { %7076 = vmatprep.subr.bf16.mxu1 %v9825_v1  ;;  %v9840_v11 = vpack.c.bf16 %v1573_v30, %v1571_v49  ;;  %v1575_v1 = vld [vmem:[#allocation2 + $0xbe0] sm:$0xff]  ;;  %v2212_v30 = vld [vmem:[#allocation2 + $0x1008] sm:$0xff] }
 0x3cf   : > { %v9856_v21 = vpack.c.bf16 %v2214_v39, %v2212_v30  ;;  %v2220_v30 = vld [vmem:[#allocation2 + $0x1048] sm:$0xff]  ;;  %v2222_v39 = vld [vmem:[#allocation2 + $0x1058] sm:$0xff] }
 0x3d0   : > { %12494 = vst [vmem:[#allocation188_spill] sm:$0xff] %v9840_v11  ;;  %v9852_v59 = vpop.f32.mrb[6].mxu0 }
 0x3d1   : > { %7078 = vmatpush1.bf16.msra.mxu1 %v9828_v33  ;;  %v1577_v33 = vld [vmem:[#allocation2 + $0xbf0] sm:$0xff]  ;;  %v9854_v49 = vpop.f32.mrb[7].mxu0  ;;  %12497 = vst [vmem:[#allocation191_spill] sm:$0xff] %v9856_v21  ;;  %7220 = vmatprep.subr.bf16.mxu0 %v9856_v21 }
 0x3d2   : > { %7080 = vmatprep.subr.bf16.mxu1 %v9831_v48  ;;  %v9846_v55 = vpack.c.bf16 %v1577_v33, %v1575_v1  ;;  %v9859_v1 = vpack.c.bf16 %v2213_v28, %v2211_v62  ;;  %v2216_v33 = vld [vmem:[#allocation2 + $0x1028] sm:$0xff]  ;;  %v9868_v48 = vpack.c.bf16 %v2222_v39, %v2220_v30  ;;  %v2219_v62 = vld [vmem:[#allocation2 + $0x1040] sm:$0xff]  ;;  %v2221_v28 = vld [vmem:[#allocation2 + $0x1050] sm:$0xff] }
 0x3d3   : > { %v9871_v21 = vpack.c.bf16 %v2221_v28, %v2219_v62  ;;  %v2228_v30 = vld [vmem:[#allocation2 + $0x1088] sm:$0xff]  ;;  %v2230_v39 = vld [vmem:[#allocation2 + $0x1098] sm:$0xff]  ;;  %v2227_v62 = vld [vmem:[#allocation2 + $0x1080] sm:$0xff] }
 0x3d4   : > { %12496 = vst [vmem:[#allocation190_spill] sm:$0xff] %v9846_v55  ;;  %12498 = vst [vmem:[#allocation192_spill] sm:$0xff] %v9859_v1  ;;  %7222 = vmatpush1.bf16.msra.mxu0 %v9859_v1  ;;  %v2229_v28 = vld [vmem:[#allocation2 + $0x1090] sm:$0xff] }
 0x3d5   : > { %7082 = vmatpush1.bf16.msra.mxu1 %v9834_v18  ;;  %12501 = vst [vmem:[#allocation195_spill] sm:$0xff] %v9868_v48  ;;  %12502 = vst [vmem:[#allocation196_spill] sm:$0xff] %v9871_v21 }
 0x3d6   : > { %7084 = vmatprep.subr.bf16.mxu1 %v9837_v5  ;;  %v2217_v5 = vld [vmem:[#allocation2 + $0x1030] sm:$0xff] }
 0x3d9   : > { %7086 = vmatpush1.bf16.msra.mxu1 %v9840_v11  ;;  %v2215_v11 = vld [vmem:[#allocation2 + $0x1020] sm:$0xff] }
 0x3da   : > { %7088 = vmatprep.subr.bf16.mxu1 %v9843_v41  ;;  %v9865_v18 = vpack.c.bf16 %v2217_v5, %v2215_v11  ;;  %v2223_v5 = vld [vmem:[#allocation2 + $0x1060] sm:$0xff]  ;;  %v2225_v11 = vld [vmem:[#allocation2 + $0x1070] sm:$0xff] }
 0x3dc   : > { %12500 = vst [vmem:[#allocation194_spill] sm:$0xff] %v9865_v18 }
 0x3dd   : > { %7090 = vmatpush1.bf16.msra.mxu1 %v9846_v55  ;;  %v2218_v55 = vld [vmem:[#allocation2 + $0x1038] sm:$0xff] }
 0x3de   : > { %v9862_v41 = vpack.c.bf16 %v2218_v55, %v2216_v33  ;;  %v2224_v55 = vld [vmem:[#allocation2 + $0x1068] sm:$0xff]  ;;  %v2226_v33 = vld [vmem:[#allocation2 + $0x1078] sm:$0xff] }
 0x3df   : > { %v9874_v1 = vpack.c.bf16 %v2226_v33, %v2224_v55  ;;  %v2232_v55 = vld [vmem:[#allocation2 + $0x10a8] sm:$0xff]  ;;  %v2234_v33 = vld [vmem:[#allocation2 + $0x10b8] sm:$0xff] }
 0x3e0   : > { %1644 = vmatmul.mubr.f32.vlgmr.msra.gmra.mrb[8].mxu1 %v9622_v53  ;;  %12499 = vst [vmem:[#allocation193_spill] sm:$0xff] %v9862_v41  ;;  %7224 = vmatprep.subr.bf16.mxu0 %v9862_v41  ;;  %v9877_v41 = vpack.c.bf16 %v2225_v11, %v2223_v5  ;;  %v2231_v5 = vld [vmem:[#allocation2 + $0x10a0] sm:$0xff]  ;;  %v2233_v11 = vld [vmem:[#allocation2 + $0x10b0] sm:$0xff] }
 0x3e1   : > { %1729 = vmatprep.mubr.f32.mxu1 %v12340_v40  ;;  %7226 = vmatpush1.bf16.msra.mxu0 %v9865_v18  ;;  %12503 = vst [vmem:[#allocation197_spill] sm:$0xff] %v9874_v1  ;;  %v9880_v18 = vpack.c.bf16 %v2230_v39, %v2228_v30  ;;  %v2236_v30 = vld [vmem:[#allocation2 + $0x10c8] sm:$0xff]  ;;  %v2238_v39 = vld [vmem:[#allocation2 + $0x10d8] sm:$0xff] }
 0x3e2   : > { %7228 = vmatprep.subr.bf16.mxu0 %v9868_v48  ;;  %12504 = vst [vmem:[#allocation198_spill] sm:$0xff] %v9877_v41  ;;  %v9883_v48 = vpack.c.bf16 %v2229_v28, %v2227_v62  ;;  %v2235_v62 = vld [vmem:[#allocation2 + $0x10c0] sm:$0xff]  ;;  %v2237_v28 = vld [vmem:[#allocation2 + $0x10d0] sm:$0xff] }
 0x3e3   : > { %12505 = vst [vmem:[#allocation199_spill] sm:$0xff] %v9880_v18 }
 0x3e4   : > { %12506 = vst [vmem:[#allocation200_spill] sm:$0xff] %v9883_v48 }
 0x3e5   : > { %7230 = vmatpush1.bf16.msra.mxu0 %v9871_v21  ;;  %v9886_v21 = vpack.c.bf16 %v2234_v33, %v2232_v55  ;;  %v2240_v55 = vld [vmem:[#allocation2 + $0x10e8] sm:$0xff]  ;;  %v2242_v33 = vld [vmem:[#allocation2 + $0x10f8] sm:$0xff] }
 0x3e6   : > { %7232 = vmatprep.subr.bf16.mxu0 %v9874_v1  ;;  %v9889_v1 = vpack.c.bf16 %v2233_v11, %v2231_v5  ;;  %v2239_v5 = vld [vmem:[#allocation2 + $0x10e0] sm:$0xff]  ;;  %v2241_v11 = vld [vmem:[#allocation2 + $0x10f0] sm:$0xff] }
 0x3e7   : > { %12507 = vst [vmem:[#allocation201_spill] sm:$0xff] %v9886_v21 }
 0x3e8   : > { %12508 = vst [vmem:[#allocation202_spill] sm:$0xff] %v9889_v1 }
 0x3e9   : > { %7234 = vmatpush1.bf16.msra.mxu0 %v9877_v41  ;;  %v9892_v41 = vpack.c.bf16 %v2238_v39, %v2236_v30  ;;  %v2244_v30 = vld [vmem:[#allocation2 + $0x1108] sm:$0xff]  ;;  %v2246_v39 = vld [vmem:[#allocation2 + $0x1118] sm:$0xff] }
 0x3ea   : > { %7236 = vmatprep.subr.bf16.mxu0 %v9880_v18  ;;  %v9895_v18 = vpack.c.bf16 %v2237_v28, %v2235_v62  ;;  %v2243_v62 = vld [vmem:[#allocation2 + $0x1100] sm:$0xff]  ;;  %v2245_v28 = vld [vmem:[#allocation2 + $0x1110] sm:$0xff] }
 0x3eb   : > { %12509 = vst [vmem:[#allocation203_spill] sm:$0xff] %v9892_v41 }
 0x3ec   : > { %12510 = vst [vmem:[#allocation204_spill] sm:$0xff] %v9895_v18 }
 0x3ed   : > { %7238 = vmatpush1.bf16.msra.mxu0 %v9883_v48  ;;  %v9898_v48 = vpack.c.bf16 %v2242_v33, %v2240_v55  ;;  %v2248_v55 = vld [vmem:[#allocation2 + $0x1128] sm:$0xff]  ;;  %v2250_v33 = vld [vmem:[#allocation2 + $0x1138] sm:$0xff] }
 0x3ee   : > { %7240 = vmatprep.subr.bf16.mxu0 %v9886_v21  ;;  %v9901_v21 = vpack.c.bf16 %v2241_v11, %v2239_v5  ;;  %v2247_v5 = vld [vmem:[#allocation2 + $0x1120] sm:$0xff]  ;;  %v2249_v11 = vld [vmem:[#allocation2 + $0x1130] sm:$0xff] }
 0x3ef   : > { %12511 = vst [vmem:[#allocation205_spill] sm:$0xff] %v9898_v48 }
 0x3f0   : > { %12512 = vst [vmem:[#allocation206_spill] sm:$0xff] %v9901_v21 }
 0x3f1   : > { %7242 = vmatpush1.bf16.msra.mxu0 %v9889_v1  ;;  %v9904_v1 = vpack.c.bf16 %v2246_v39, %v2244_v30  ;;  %v2252_v30 = vld [vmem:[#allocation2 + $0x1148] sm:$0xff]  ;;  %v2254_v39 = vld [vmem:[#allocation2 + $0x1158] sm:$0xff] }
 0x3f2   : > { %7244 = vmatprep.subr.bf16.mxu0 %v9892_v41  ;;  %v9907_v41 = vpack.c.bf16 %v2245_v28, %v2243_v62  ;;  %v2251_v62 = vld [vmem:[#allocation2 + $0x1140] sm:$0xff]  ;;  %v2253_v28 = vld [vmem:[#allocation2 + $0x1150] sm:$0xff] }
 0x3f3   : > { %12513 = vst [vmem:[#allocation207_spill] sm:$0xff] %v9904_v1 }
 0x3f4   : > { %12514 = vst [vmem:[#allocation208_spill] sm:$0xff] %v9907_v41 }
 0x3f5   : > { %7246 = vmatpush1.bf16.msra.mxu0 %v9895_v18  ;;  %v9910_v18 = vpack.c.bf16 %v2250_v33, %v2248_v55  ;;  %v2256_v55 = vld [vmem:[#allocation2 + $0x1168] sm:$0xff]  ;;  %v2258_v33 = vld [vmem:[#allocation2 + $0x1178] sm:$0xff] }
 0x3f6   : > { %7248 = vmatprep.subr.bf16.mxu0 %v9898_v48  ;;  %v9913_v48 = vpack.c.bf16 %v2249_v11, %v2247_v5  ;;  %v2255_v5 = vld [vmem:[#allocation2 + $0x1160] sm:$0xff]  ;;  %v2257_v11 = vld [vmem:[#allocation2 + $0x1170] sm:$0xff] }
 0x3f7   : > { %12515 = vst [vmem:[#allocation209_spill] sm:$0xff] %v9910_v18 }
 0x3f8   : > { %12516 = vst [vmem:[#allocation210_spill] sm:$0xff] %v9913_v48 }
 0x3f9   : > { %7250 = vmatpush1.bf16.msra.mxu0 %v9901_v21  ;;  %v9916_v21 = vpack.c.bf16 %v2254_v39, %v2252_v30  ;;  %v2260_v30 = vld [vmem:[#allocation2 + $0x1188] sm:$0xff]  ;;  %v2262_v39 = vld [vmem:[#allocation2 + $0x1198] sm:$0xff] }
 0x3fa   : > { %7252 = vmatprep.subr.bf16.mxu0 %v9904_v1  ;;  %v9919_v1 = vpack.c.bf16 %v2253_v28, %v2251_v62  ;;  %v2259_v62 = vld [vmem:[#allocation2 + $0x1180] sm:$0xff]  ;;  %v2261_v28 = vld [vmem:[#allocation2 + $0x1190] sm:$0xff] }
 0x3fb   : > { %12517 = vst [vmem:[#allocation211_spill] sm:$0xff] %v9916_v21 }
 0x3fc   : > { %12518 = vst [vmem:[#allocation212_spill] sm:$0xff] %v9919_v1 }
 0x3fd   : > { %7254 = vmatpush1.bf16.msra.mxu0 %v9907_v41  ;;  %v9922_v41 = vpack.c.bf16 %v2258_v33, %v2256_v55  ;;  %v2264_v55 = vld [vmem:[#allocation2 + $0x11a8] sm:$0xff]  ;;  %v2266_v33 = vld [vmem:[#allocation2 + $0x11b8] sm:$0xff] }
 0x3fe   : > { %7256 = vmatprep.subr.bf16.mxu0 %v9910_v18  ;;  %v9925_v18 = vpack.c.bf16 %v2257_v11, %v2255_v5  ;;  %v2263_v5 = vld [vmem:[#allocation2 + $0x11a0] sm:$0xff]  ;;  %v2265_v11 = vld [vmem:[#allocation2 + $0x11b0] sm:$0xff] }
 0x3ff   : > { %12519 = vst [vmem:[#allocation213_spill] sm:$0xff] %v9922_v41 }
 0x400   : > { %12520 = vst [vmem:[#allocation214_spill] sm:$0xff] %v9925_v18 }
 0x401   : > { %7258 = vmatpush1.bf16.msra.mxu0 %v9913_v48  ;;  %v9928_v48 = vpack.c.bf16 %v2262_v39, %v2260_v30  ;;  %v2268_v30 = vld [vmem:[#allocation2 + $0x11c8] sm:$0xff]  ;;  %v2270_v39 = vld [vmem:[#allocation2 + $0x11d8] sm:$0xff] }
 0x402   : > { %7260 = vmatprep.subr.bf16.mxu0 %v9916_v21  ;;  %v9931_v21 = vpack.c.bf16 %v2261_v28, %v2259_v62  ;;  %v2267_v62 = vld [vmem:[#allocation2 + $0x11c0] sm:$0xff]  ;;  %v2269_v28 = vld [vmem:[#allocation2 + $0x11d0] sm:$0xff] }
 0x403   : > { %12521 = vst [vmem:[#allocation215_spill] sm:$0xff] %v9928_v48 }
 0x404   : > { %12522 = vst [vmem:[#allocation216_spill] sm:$0xff] %v9931_v21 }
 0x405   : > { %7262 = vmatpush1.bf16.msra.mxu0 %v9919_v1  ;;  %v9934_v1 = vpack.c.bf16 %v2266_v33, %v2264_v55  ;;  %v2272_v55 = vld [vmem:[#allocation2 + $0x11e8] sm:$0xff]  ;;  %v2274_v33 = vld [vmem:[#allocation2 + $0x11f8] sm:$0xff] }
 0x406   : > { %7264 = vmatprep.subr.bf16.mxu0 %v9922_v41  ;;  %v9937_v41 = vpack.c.bf16 %v2265_v11, %v2263_v5  ;;  %v2271_v5 = vld [vmem:[#allocation2 + $0x11e0] sm:$0xff]  ;;  %v2273_v11 = vld [vmem:[#allocation2 + $0x11f0] sm:$0xff] }
 0x407   : > { %12523 = vst [vmem:[#allocation217_spill] sm:$0xff] %v9934_v1 }
 0x408   : > { %12524 = vst [vmem:[#allocation218_spill] sm:$0xff] %v9937_v41 }
 0x409   : > { %7266 = vmatpush1.bf16.msra.mxu0 %v9925_v18  ;;  %v9940_v18 = vpack.c.bf16 %v2270_v39, %v2268_v30  ;;  %v1980_v30 = vld [vmem:[#allocation2 + $0xe08] sm:$0xff]  ;;  %v1982_v39 = vld [vmem:[#allocation2 + $0xe18] sm:$0xff] }
 0x40a   : > { %7268 = vmatprep.subr.bf16.mxu0 %v9928_v48  ;;  %v9943_v48 = vpack.c.bf16 %v2269_v28, %v2267_v62 }
 0x40b   : > { %12525 = vst [vmem:[#allocation219_spill] sm:$0xff] %v9940_v18 }
 0x40c   : > { %12526 = vst [vmem:[#allocation220_spill] sm:$0xff] %v9943_v48 }
 0x40d   : > { %7270 = vmatpush1.bf16.msra.mxu0 %v9931_v21  ;;  %v9946_v21 = vpack.c.bf16 %v2274_v33, %v2272_v55  ;;  %v6532_v55 = vld [vmem:[%s11767_s2 + $0x50] sm:$0xff]  ;;  %v9958_v33 = vpack.c.bf16 %v1982_v39, %v1980_v30  ;;  %v1984_v30 = vld [vmem:[#allocation2 + $0xe28] sm:$0xff]  ;;  %v1986_v39 = vld [vmem:[#allocation2 + $0xe38] sm:$0xff] }
 0x40e   : > { %7272 = vmatprep.subr.bf16.mxu0 %v9934_v1  ;;  %v9948_v1 = vpack.c.bf16 %v2273_v11, %v2271_v5  ;;  %v1979_v5 = vld [vmem:[#allocation2 + $0xe00] sm:$0xff]  ;;  %v1981_v11 = vld [vmem:[#allocation2 + $0xe10] sm:$0xff] }
 0x40f   : > { %12527 = vst [vmem:[#allocation221_spill] sm:$0xff] %v9946_v21  ;;  %12529 = vst [vmem:[#allocation223_spill] sm:$0xff] %v9958_v33 }
 0x410   : > { %12528 = vst [vmem:[#allocation222_spill] sm:$0xff] %v9948_v1 }
 0x411   : > { %7274 = vmatpush1.bf16.msra.mxu0 %v9937_v41 }
 0x412   : > { %7276 = vmatprep.subr.bf16.mxu0 %v9940_v18 }
 0x415   : > { %7278 = vmatpush1.bf16.msra.mxu0 %v9943_v48  ;;  %v1994_v48 = vld [vmem:[#allocation2 + $0xe78] sm:$0xff] }
 0x416   : > { %7280 = vmatprep.subr.bf16.mxu0 %v9946_v21 }
 0x419   : > { %7282 = vmatpush1.bf16.msra.mxu0 %v9948_v1  ;;  %v1988_v1 = vld [vmem:[#allocation2 + $0xe48] sm:$0xff] }
 0x41c   : > { %2340 = vmatmul.mubr.f32.vlgmr.msra.gmra.mrb[8].mxu0 %v9622_v53  ;;  %v6533_v53 = vld [vmem:[%s11767_s2 + $0x58] sm:$0xff] }
 0x41d   : > { %2676 = vmatprep.mubr.f32.mxu0 %v12340_v40 }
 0x4b3   : > { %v1645_v62 = vpop.f32.mrb[8].mxu1 }
 0x4b4   : > { %v1647_v28 = vpop.f32.mrb[9].mxu1 }
 0x4b5   : > { %6534 = vmatprep.subr.msk.mxu1 %vm498_vm0, %v1647_v28  ;;  %v1983_v28 = vld [vmem:[#allocation2 + $0xe20] sm:$0xff] }
 0x4b6   : > { %6535 = vmatpush1.msk.msra.mxu1 %vm498_vm0, %v1645_v62  ;;  %v9976_v62 = vpack.c.bf16 %v1981_v11, %v1979_v5  ;;  %v1987_v11 = vld [vmem:[#allocation2 + $0xe40] sm:$0xff] }
 0x4b7   : > { %6536 = vmatmul.mubr.msk.f32.vlgmr.msra.gmra.mrb[0].mxu1 %vm491_vm1, %v6532_v55  ;;  %6540 = vmatprep.subr.msk.mxu1 %vm498_vm0, %v9854_v49  ;;  %v6538_v49 = vld [vmem:[%s11767_s2 + $0x60] sm:$0xff]  ;;  %v1985_v55 = vld [vmem:[#allocation2 + $0xe30] sm:$0xff] }
 0x4b8   : > { %1735 = vmatprep.mubr.f32.mxu1 %v12340_v40  ;;  %6541 = vmatpush1.msk.msra.mxu1 %vm498_vm0, %v9852_v59  ;;  %12530 = vst [vmem:[#allocation224_spill] sm:$0xff] %v9976_v62  ;;  %v9978_v59 = vpack.c.bf16 %v1986_v39, %v1984_v30  ;;  %v9982_v21 = vpack.c.bf16 %v1985_v55, %v1983_v28  ;;  %v1989_v30 = vld [vmem:[#allocation2 + $0xe50] sm:$0xff]  ;;  %v1992_v39 = vld [vmem:[#allocation2 + $0xe68] sm:$0xff]  ;;  %v1991_v55 = vld [vmem:[#allocation2 + $0xe60] sm:$0xff] }
 0x4b9   : > { %7156 = vmatprep.subr.bf16.mxu1 %v9958_v33  ;;  %v1990_v33 = vld [vmem:[#allocation2 + $0xe58] sm:$0xff]  ;;  %v9997_v28 = vpack.c.bf16 %v1994_v48, %v1992_v39 }
 0x4ba   : > { %12531 = vst [vmem:[#allocation225_spill] sm:$0xff] %v9978_v59  ;;  %12532 = vst [vmem:[#allocation226_spill] sm:$0xff] %v9982_v21  ;;  %v9989_v5 = vpack.c.bf16 %v1990_v33, %v1988_v1  ;;  %v1996_v1 = vld [vmem:[#allocation2 + $0xe88] sm:$0xff]  ;;  %v1998_v33 = vld [vmem:[#allocation2 + $0xe98] sm:$0xff] }
 0x4bb   : > { %6537 = vmatmul.mubr.msk.f32.gmra.mrb[2].mxu1 %vm491_vm1, %v6533_v53  ;;  %v6539_v53 = vld [vmem:[%s11767_s2 + $0x68] sm:$0xff]  ;;  %12535 = vst [vmem:[#allocation229_spill] sm:$0xff] %v9997_v28 }
 0x4bc   : > { %1961 = vmatprep.mubr.f32.mxu1 %v12340_v40  ;;  %12533 = vst [vmem:[#allocation227_spill] sm:$0xff] %v9989_v5 }
 0x4bf   : > { %6542 = vmatmul.mubr.msk.f32.vlgmr.msra.gmra.mrb[0].mxu1 %vm491_vm1, %v6538_v49  ;;  %v9993_v49 = vpack.c.bf16 %v1989_v30, %v1987_v11  ;;  %v1995_v11 = vld [vmem:[#allocation2 + $0xe80] sm:$0xff]  ;;  %v1997_v30 = vld [vmem:[#allocation2 + $0xe90] sm:$0xff] }
 0x4c0   : > { %7158 = vmatpush1.bf16.msra.mxu1 %v9976_v62  ;;  %1967 = vmatprep.mubr.f32.mxu1 %v12340_v40  ;;  %v10006_v48 = vpack.c.bf16 %v1997_v30, %v1995_v11  ;;  %v2008_v11 = vld [vmem:[#allocation2 + $0xee8] sm:$0xff]  ;;  %v2010_v30 = vld [vmem:[#allocation2 + $0xef8] sm:$0xff] }
 0x4c1   : > { %7160 = vmatprep.subr.bf16.mxu1 %v9978_v59  ;;  %12534 = vst [vmem:[#allocation228_spill] sm:$0xff] %v9993_v49  ;;  %v1993_v59 = vld [vmem:[#allocation2 + $0xe70] sm:$0xff] }
 0x4c2   : > { %v10000_v62 = vpack.c.bf16 %v1993_v59, %v1991_v55  ;;  %12538 = vst [vmem:[#allocation232_spill] sm:$0xff] %v10006_v48  ;;  %v2004_v59 = vld [vmem:[#allocation2 + $0xec8] sm:$0xff]  ;;  %v2006_v55 = vld [vmem:[#allocation2 + $0xed8] sm:$0xff] }
 0x4c3   : > { %6543 = vmatmul.mubr.msk.f32.gmra.mrb[2].mxu1 %vm491_vm1, %v6539_v53  ;;  %v10003_v53 = vpack.c.bf16 %v1998_v33, %v1996_v1  ;;  %v10015_v33 = vpack.c.bf16 %v2006_v55, %v2004_v59 }
 0x4c4   : > { %7162 = vmatpush1.bf16.msra.mxu1 %v9982_v21  ;;  %2107 = vmatprep.mubr.f32.mxu1 %v9124_v44  ;;  %12536 = vst [vmem:[#allocation230_spill] sm:$0xff] %v10000_v62  ;;  %v2000_v21 = vld [vmem:[#allocation2 + $0xea8] sm:$0xff]  ;;  %v2002_v44 = vld [vmem:[#allocation2 + $0xeb8] sm:$0xff] }
 0x4c5   : > { %7164 = vmatprep.subr.bf16.mxu1 %v9989_v5  ;;  %12537 = vst [vmem:[#allocation231_spill] sm:$0xff] %v10003_v53  ;;  %v10009_v39 = vpack.c.bf16 %v2002_v44, %v2000_v21  ;;  %v1999_v5 = vld [vmem:[#allocation2 + $0xea0] sm:$0xff]  ;;  %12541 = vst [vmem:[#allocation235_spill] sm:$0xff] %v10015_v33  ;;  %v10021_v44 = vpack.c.bf16 %v2010_v30, %v2008_v11 }
 0x4c7   : > { %12539 = vst [vmem:[#allocation233_spill] sm:$0xff] %v10009_v39  ;;  %12543 = vst [vmem:[#allocation237_spill] sm:$0xff] %v10021_v44 }
 0x4c8   : > { %7166 = vmatpush1.bf16.msra.mxu1 %v9993_v49  ;;  %v2001_v49 = vld [vmem:[#allocation2 + $0xeb0] sm:$0xff] }
 0x4c9   : > { %7168 = vmatprep.subr.bf16.mxu1 %v9997_v28  ;;  %v10012_v1 = vpack.c.bf16 %v2001_v49, %v1999_v5  ;;  %v2003_v28 = vld [vmem:[#allocation2 + $0xec0] sm:$0xff]  ;;  %v2012_v5 = vld [vmem:[#allocation2 + $0xf08] sm:$0xff]  ;;  %v2014_v49 = vld [vmem:[#allocation2 + $0xf18] sm:$0xff] }
 0x4ca   : > { %v10027_v55 = vpack.c.bf16 %v2014_v49, %v2012_v5 }
 0x4cb   : > { %12540 = vst [vmem:[#allocation234_spill] sm:$0xff] %v10012_v1 }
 0x4cc   : > { %7170 = vmatpush1.bf16.msra.mxu1 %v10000_v62  ;;  %v2005_v62 = vld [vmem:[#allocation2 + $0xed0] sm:$0xff]  ;;  %12545 = vst [vmem:[#allocation239_spill] sm:$0xff] %v10027_v55 }
 0x4cd   : > { %7172 = vmatprep.subr.bf16.mxu1 %v10003_v53  ;;  %v10018_v21 = vpack.c.bf16 %v2005_v62, %v2003_v28  ;;  %v2007_v53 = vld [vmem:[#allocation2 + $0xee0] sm:$0xff]  ;;  %v2016_v62 = vld [vmem:[#allocation2 + $0xf28] sm:$0xff]  ;;  %v2018_v28 = vld [vmem:[#allocation2 + $0xf38] sm:$0xff] }
 0x4ce   : > { %v10033_v30 = vpack.c.bf16 %v2018_v28, %v2016_v62 }
 0x4cf   : > { %12542 = vst [vmem:[#allocation236_spill] sm:$0xff] %v10018_v21 }
 0x4d0   : > { %7174 = vmatpush1.bf16.msra.mxu1 %v10006_v48  ;;  %v2009_v48 = vld [vmem:[#allocation2 + $0xef0] sm:$0xff]  ;;  %12547 = vst [vmem:[#allocation241_spill] sm:$0xff] %v10033_v30 }
 0x4d1   : > { %7176 = vmatprep.subr.bf16.mxu1 %v10009_v39  ;;  %v10024_v59 = vpack.c.bf16 %v2009_v48, %v2007_v53  ;;  %v2011_v39 = vld [vmem:[#allocation2 + $0xf00] sm:$0xff]  ;;  %v2020_v53 = vld [vmem:[#allocation2 + $0xf48] sm:$0xff]  ;;  %v2022_v48 = vld [vmem:[#allocation2 + $0xf58] sm:$0xff] }
 0x4d2   : > { %v10039_v49 = vpack.c.bf16 %v2022_v48, %v2020_v53 }
 0x4d3   : > { %12544 = vst [vmem:[#allocation238_spill] sm:$0xff] %v10024_v59 }
 0x4d4   : > { %7178 = vmatpush1.bf16.msra.mxu1 %v10012_v1  ;;  %v2013_v1 = vld [vmem:[#allocation2 + $0xf10] sm:$0xff]  ;;  %12549 = vst [vmem:[#allocation243_spill] sm:$0xff] %v10039_v49 }
 0x4d5   : > { %7180 = vmatprep.subr.bf16.mxu1 %v10015_v33  ;;  %v10030_v11 = vpack.c.bf16 %v2013_v1, %v2011_v39  ;;  %v2015_v33 = vld [vmem:[#allocation2 + $0xf20] sm:$0xff]  ;;  %v2024_v39 = vld [vmem:[#allocation2 + $0xf68] sm:$0xff]  ;;  %v2026_v1 = vld [vmem:[#allocation2 + $0xf78] sm:$0xff] }
 0x4d6   : > { %v10045_v28 = vpack.c.bf16 %v2026_v1, %v2024_v39 }
 0x4d7   : > { %12546 = vst [vmem:[#allocation240_spill] sm:$0xff] %v10030_v11 }
 0x4d8   : > { %7182 = vmatpush1.bf16.msra.mxu1 %v10018_v21  ;;  %v2017_v21 = vld [vmem:[#allocation2 + $0xf30] sm:$0xff]  ;;  %12551 = vst [vmem:[#allocation245_spill] sm:$0xff] %v10045_v28 }
 0x4d9   : > { %7184 = vmatprep.subr.bf16.mxu1 %v10021_v44  ;;  %v10036_v5 = vpack.c.bf16 %v2017_v21, %v2015_v33  ;;  %v2019_v44 = vld [vmem:[#allocation2 + $0xf40] sm:$0xff]  ;;  %v2028_v33 = vld [vmem:[#allocation2 + $0xf88] sm:$0xff]  ;;  %v2030_v21 = vld [vmem:[#allocation2 + $0xf98] sm:$0xff] }
 0x4da   : > { %v10051_v48 = vpack.c.bf16 %v2030_v21, %v2028_v33 }
 0x4db   : > { %12548 = vst [vmem:[#allocation242_spill] sm:$0xff] %v10036_v5 }
 0x4dc   : > { %7186 = vmatpush1.bf16.msra.mxu1 %v10024_v59  ;;  %v2021_v59 = vld [vmem:[#allocation2 + $0xf50] sm:$0xff]  ;;  %12553 = vst [vmem:[#allocation247_spill] sm:$0xff] %v10051_v48 }
 0x4dd   : > { %7188 = vmatprep.subr.bf16.mxu1 %v10027_v55  ;;  %v10042_v62 = vpack.c.bf16 %v2021_v59, %v2019_v44  ;;  %v2023_v55 = vld [vmem:[#allocation2 + $0xf60] sm:$0xff]  ;;  %v2032_v44 = vld [vmem:[#allocation2 + $0xfa8] sm:$0xff]  ;;  %v2034_v59 = vld [vmem:[#allocation2 + $0xfb8] sm:$0xff] }
 0x4de   : > { %v10057_v1 = vpack.c.bf16 %v2034_v59, %v2032_v44 }
 0x4df   : > { %12550 = vst [vmem:[#allocation244_spill] sm:$0xff] %v10042_v62 }
 0x4e0   : > { %7190 = vmatpush1.bf16.msra.mxu1 %v10030_v11  ;;  %v2025_v11 = vld [vmem:[#allocation2 + $0xf70] sm:$0xff]  ;;  %12555 = vst [vmem:[#allocation249_spill] sm:$0xff] %v10057_v1 }
 0x4e1   : > { %7192 = vmatprep.subr.bf16.mxu1 %v10033_v30  ;;  %v10048_v53 = vpack.c.bf16 %v2025_v11, %v2023_v55  ;;  %v2027_v30 = vld [vmem:[#allocation2 + $0xf80] sm:$0xff]  ;;  %v2036_v55 = vld [vmem:[#allocation2 + $0xfc8] sm:$0xff]  ;;  %v2038_v11 = vld [vmem:[#allocation2 + $0xfd8] sm:$0xff] }
 0x4e2   : > { %v10063_v21 = vpack.c.bf16 %v2038_v11, %v2036_v55  ;;  %v8862_v55 = vld [vmem:[%s9111_s20] sm:$0xff]  ;;  %s335_s20 = scalar_lea.vmem %s11773_s8, %s6705_s9 }
 0x4e3   : > { %12552 = vst [vmem:[#allocation246_spill] sm:$0xff] %v10048_v53 }
 0x4e4   : > { %7194 = vmatpush1.bf16.msra.mxu1 %v10036_v5  ;;  %v2029_v5 = vld [vmem:[#allocation2 + $0xf90] sm:$0xff]  ;;  %12557 = vst [vmem:[#allocation251_spill] sm:$0xff] %v10063_v21 }
 0x4e5   : > { %7196 = vmatprep.subr.bf16.mxu1 %v10039_v49  ;;  %v10054_v39 = vpack.c.bf16 %v2029_v5, %v2027_v30  ;;  %v2031_v49 = vld [vmem:[#allocation2 + $0xfa0] sm:$0xff]  ;;  %v2037_v30 = vld [vmem:[#allocation2 + $0xfd0] sm:$0xff]  ;;  %v2040_v5 = vld [vmem:[#allocation2 + $0xfe8] sm:$0xff] }
 0x4e7   : > { %12554 = vst [vmem:[#allocation248_spill] sm:$0xff] %v10054_v39 }
 0x4e8   : > { %7198 = vmatpush1.bf16.msra.mxu1 %v10042_v62  ;;  %v2033_v62 = vld [vmem:[#allocation2 + $0xfb0] sm:$0xff] }
 0x4e9   : > { %7200 = vmatprep.subr.bf16.mxu1 %v10045_v28  ;;  %v10060_v33 = vpack.c.bf16 %v2033_v62, %v2031_v49  ;;  %v2042_v28 = vld [vmem:[#allocation2 + $0xff8] sm:$0xff]  ;;  %v2041_v49 = vld [vmem:[#allocation2 + $0xff0] sm:$0xff] }
 0x4ea   : > { %v10069_v59 = vpack.c.bf16 %v2042_v28, %v2040_v5  ;;  %v337_v28 = vld [vmem:[%s11768_s3] sm:$0xff]  ;;  %v2448_v5 = vld [vmem:[%s11770_s5 + $0x10] sm:$0xff] }
 0x4eb   : > { %12556 = vst [vmem:[#allocation250_spill] sm:$0xff] %v10060_v33 }
 0x4ec   : > { %7202 = vmatpush1.bf16.msra.mxu1 %v10048_v53  ;;  %v2035_v53 = vld [vmem:[#allocation2 + $0xfc0] sm:$0xff]  ;;  %12559 = vst [vmem:[#allocation253_spill] sm:$0xff] %v10069_v59 }
 0x4ed   : > { %7204 = vmatprep.subr.bf16.mxu1 %v10051_v48  ;;  %v10066_v44 = vpack.c.bf16 %v2037_v30, %v2035_v53  ;;  %v8942_v30 = vmov 0  }
 0x4ee   : > { %8850 = vset.pattern.permute.xlu0 %v8942_v30  ;;  %8851 = vset.pattern.permute.xlu1 %v8942_v30 }
 0x4ef   : > { %12558 = vst [vmem:[#allocation252_spill] sm:$0xff] %v10066_v44  ;;  %v2341_v53 = vpop.f32.mrb[8].mxu0  ;;  %341 = vperm.xlu0 %8850, %v337_v28   ;;  %v4669_v28 = vld [vmem:[%s11772_s7] sm:$0xf] }
 0x4f0   : > { %7206 = vmatpush1.bf16.msra.mxu1 %v10054_v39  ;;  %v2039_v39 = vld [vmem:[#allocation2 + $0xfe0] sm:$0xff]  ;;  %v2343_v11 = vpop.f32.mrb[9].mxu0 }
 0x4f1   : > { %7208 = vmatprep.subr.bf16.mxu1 %v10057_v1  ;;  %v10072_v62 = vpack.c.bf16 %v2041_v49, %v2039_v39  ;;  %v338_v39 = vld [vmem:[%s11768_s3 + $0x8] sm:$0xff]  ;;  %v2450_v49 = vld [vmem:[%s11770_s5 + $0x20] sm:$0xff] }
 0x4f3   : > { %12560 = vst [vmem:[#allocation254_spill] sm:$0xff] %v10072_v62  ;;  %346 = vperm.xlu0 %8850, %v338_v39  }
 0x4f4   : > { %7210 = vmatpush1.bf16.msra.mxu1 %v10060_v33 }
 0x4f5   : > { %7212 = vmatprep.subr.bf16.mxu1 %v10063_v21 }
 0x4f7   : > { %2466 = vperm.xlu0 %8850, %v2448_v5   ;;  %v6544_v5 = vld [vmem:[%s11767_s2 + $0x70] sm:$0xff] }
 0x4f8   : > { %7214 = vmatpush1.bf16.msra.mxu1 %v10066_v44 }
 0x4f9   : > { %7216 = vmatprep.subr.bf16.mxu1 %v10069_v59 }
 0x4fb   : > { %2476 = vperm.xlu0 %8850, %v2450_v49   ;;  %v6545_v49 = vld [vmem:[%s11767_s2 + $0x78] sm:$0xff] }
 0x4fc   : > { %7218 = vmatpush1.bf16.msra.mxu1 %v10072_v62 }
 0x4ff   : > { %2108 = vmatmul.mubr.f32.vlgmr.msra.gmra.mrb[10].mxu1 %v8862_v55  ;;  %v2452_v55 = vld [vmem:[%s11770_s5 + $0x30] sm:$0xff] }
 0x500   : > { %2193 = vmatprep.mubr.f32.mxu1 %v12340_v40  ;;  %2486 = vperm.xlu0 %8850, %v2452_v55   ;;  %v6550_v55 = vld [vmem:[%s11767_s2 + $0x80] sm:$0xff] }
 0x504   : > { %4672 = vperm.xlu0 %8850, %v4669_v28  }
 0x5d2   : > { %v2109_v30 = vpop.f32.mrb[10].mxu1 }
 0x5d3   : > { %v2111_v39 = vpop.f32.mrb[11].mxu1 }
 0x5d4   : > { %6546 = vmatprep.subr.msk.mxu1 %vm498_vm0, %v2111_v39 }
 0x5d5   : > { %6547 = vmatpush1.msk.msra.mxu1 %vm498_vm0, %v2109_v30 }
 0x5d6   : > { %6548 = vmatmul.mubr.msk.f32.vlgmr.msra.gmra.mrb[0].mxu1 %vm491_vm1, %v6544_v5  ;;  %6552 = vmatprep.subr.msk.mxu1 %vm498_vm0, %v2343_v11  ;;  %v342_v11 = vpop.permute.xlu0 %341 }
 0x5d7   : > { %2199 = vmatprep.mubr.f32.mxu1 %v12340_v40  ;;  %6553 = vmatpush1.msk.msra.mxu1 %vm498_vm0, %v2341_v53  ;;  %v6551_v53 = vld [vmem:[%s11767_s2 + $0x88] sm:$0xff] }
 0x5d8   : > { %7284 = vmatprep.subr.bf16.mxu1 %v9070_v3 }
 0x5da   : > { %6549 = vmatmul.mubr.msk.f32.gmra.mrb[2].mxu1 %vm491_vm1, %v6545_v49  ;;  %v347_v49 = vpop.permute.xlu0 %346 }
 0x5db   : > { %2425 = vmatprep.mubr.f32.mxu1 %v12340_v40 }
 0x5de   : > { %6554 = vmatmul.mubr.msk.f32.vlgmr.msra.gmra.mrb[0].mxu1 %vm491_vm1, %v6550_v55 }
 0x5df   : > { %2431 = vmatprep.mubr.f32.mxu1 %v12340_v40  ;;  %7286 = vmatpush1.bf16.msra.mxu1 %v9072_v7 }
 0x5e0   : > { %7288 = vmatprep.subr.bf16.mxu1 %v9074_v8 }
 0x5e2   : > { %6555 = vmatmul.mubr.msk.f32.gmra.mrb[2].mxu1 %vm491_vm1, %v6551_v53 }
 0x5e3   : > { %7290 = vmatpush1.bf16.msra.mxu1 %v9078_v13 }
 0x5e4   : > { %7292 = vmatprep.subr.bf16.mxu1 %v9081_v14 }
 0x5e7   : > { %7294 = vmatpush1.bf16.msra.mxu1 %v9085_v19 }
 0x5e8   : > { %7296 = vmatprep.subr.bf16.mxu1 %v9088_v20 }
 0x5eb   : > { %7298 = vmatpush1.bf16.msra.mxu1 %v9094_v25 }
 0x5ec   : > { %7300 = vmatprep.subr.bf16.mxu1 %v9097_v26 }
 0x5ef   : > { %7302 = vmatpush1.bf16.msra.mxu1 %v9101_v31 }
 0x5f0   : > { %7304 = vmatprep.subr.bf16.mxu1 %v9104_v32 }
 0x5f3   : > { %7306 = vmatpush1.bf16.msra.mxu1 %v9114_v37 }
 0x5f4   : > { %7308 = vmatprep.subr.bf16.mxu1 %v9117_v38 }
 0x5f7   : > { %7310 = vmatpush1.bf16.msra.mxu1 %v9127_v45 }
 0x5f8   : > { %7312 = vmatprep.subr.bf16.mxu1 %v9131_v46 }
 0x5fb   : > { %7314 = vmatpush1.bf16.msra.mxu1 %v9134_v51 }
 0x5fc   : > { %7316 = vmatprep.subr.bf16.mxu1 %v9137_v52 }
 0x5ff   : > { %7318 = vmatpush1.bf16.msra.mxu1 %v9140_v57 }
 0x600   : > { %7320 = vmatprep.subr.bf16.mxu1 %v9143_v58 }
 0x603   : > { %7322 = vmatpush1.bf16.msra.mxu1 %v9146_v63 }
 0x604   : > { %7324 = vmatprep.subr.bf16.mxu1 %v9149_v0 }
 0x607   : > { %7326 = vmatpush1.bf16.msra.mxu1 %v9152_v6 }
 0x608   : > { %7328 = vmatprep.subr.bf16.mxu1 %v9155_v9 }
 0x60b   : > { %7330 = vmatpush1.bf16.msra.mxu1 %v9158_v16 }
 0x60c   : > { %7332 = vmatprep.subr.bf16.mxu1 %v9161_v17 }
 0x60f   : > { %7334 = vmatpush1.bf16.msra.mxu1 %v9164_v24 }
 0x610   : > { %7336 = vmatprep.subr.bf16.mxu1 %v9167_v27 }
 0x613   : > { %7338 = vmatpush1.bf16.msra.mxu1 %v9170_v34 }
 0x614   : > { %7340 = vmatprep.subr.bf16.mxu1 %v9173_v35 }
 0x617   : > { %7342 = vmatpush1.bf16.msra.mxu1 %v9176_v43 }
 0x618   : > { %7344 = vmatprep.subr.bf16.mxu1 %v9179_v47 }
 0x61b   : > { %7346 = vmatpush1.bf16.msra.mxu1 %v9182_v50 }
 0x61c   : > { %7420 = vmatprep.subr.bf16.mxu1 %v9189_v56 }
 0x6b1   : > { %v2427_v28 = vpop.f32.mrb[0].mxu1 }
 0x6b2   : > { %v8615_v30 = vadd.f32 %v2427_v28, %v342_v11  ;;  %v2429_v39 = vpop.f32.mrb[1].mxu1 }
 0x6b3   : > { %v8616_v5 = vadd.f32 %v2429_v39, %v342_v11  ;;  %v12564_v11 = vld [vmem:[#allocation16_spill] sm:$0xff]  ;;  %v12566_v39 = vld [vmem:[#allocation18_spill] sm:$0xff] }
 0x6b4   : > { %v10154_v62 = vmax.f32 %v8615_v30, 0.0  ;;  %v12565_v30 = vld [vmem:[#allocation17_spill] sm:$0xff] }
 0x6b5   : > { %v10152_v55 = vmax.f32 %v8616_v5, 0.0  ;;  %v2433_v53 = vpop.f32.mrb[2].mxu1  ;;  %v12567_v5 = vld [vmem:[#allocation19_spill] sm:$0xff] }
 0x6b6   : > { %v8617_v59 = vadd.f32 %v2433_v53, %v347_v49  ;;  %v2435_v44 = vpop.f32.mrb[3].mxu1  ;;  %v12569_v53 = vld [vmem:[#allocation21_spill] sm:$0xff] }
 0x6b7   : > { %v8618_v21 = vadd.f32 %v2435_v44, %v347_v49  ;;  %2566 = vmatprep.mubr.f32.mxu1 %v10152_v55  ;;  %v12562_v44 = vld [vmem:[#allocation14_spill] sm:$0xff]  ;;  %v12568_v49 = vld [vmem:[#allocation20_spill] sm:$0xff] }
 0x6b8   : > { %2567 = vmatmul.mubr.f32.vlgmr.msra.gmra.mrb[12].mxu1 %v10154_v62  ;;  %v10161_v28 = vmax.f32 %v8617_v59, 0.0  ;;  %v12563_v59 = vld [vmem:[#allocation15_spill] sm:$0xff] }
 0x6b9   : > { %v10158_v33 = vmax.f32 %v8618_v21, 0.0  ;;  %7422 = vmatpush1.bf16.msra.mxu1 %v9191_v61  ;;  %v12561_v21 = vld [vmem:[#allocation13_spill] sm:$0xff] }
 0x6ba   : > { %7424 = vmatprep.subr.bf16.mxu1 %v9195_v2 }
 0x6bb   : > { %2572 = vmatprep.mubr.f32.mxu1 %v10158_v33 }
 0x6bc   : > { %2573 = vmatmul.mubr.f32.gmra.mrb[14].mxu1 %v10161_v28 }
 0x6bd   : > { %7426 = vmatpush1.bf16.msra.mxu1 %v9197_v10  ;;  %3044 = vmatprep.mubr.f32.mxu1 %v10152_v55 }
 0x6be   : > { %7428 = vmatprep.subr.bf16.mxu1 %v9201_v15 }
 0x6c1   : > { %7430 = vmatpush1.bf16.msra.mxu1 %v9203_v22 }
 0x6c2   : > { %7432 = vmatprep.subr.bf16.mxu1 %v9207_v29 }
 0x6c5   : > { %7434 = vmatpush1.bf16.msra.mxu1 %v9209_v36 }
 0x6c6   : > { %7436 = vmatprep.subr.bf16.mxu1 %v9213_v42 }
 0x6c9   : > { %7438 = vmatpush1.bf16.msra.mxu1 %v9215_v54  ;;  %v12656_v54 = vld [vmem:[#allocation140_spill] sm:$0xff] }
 0x6ca   : > { %7440 = vmatprep.subr.bf16.mxu1 %v9219_v60 }
 0x6cd   : > { %7442 = vmatpush1.bf16.msra.mxu1 %v9221_v4 }
 0x6ce   : > { %7444 = vmatprep.subr.bf16.mxu1 %v9225_v12  ;;  %v12570_v12 = vld [vmem:[#allocation22_spill] sm:$0xff] }
 0x6d1   : > { %7446 = vmatpush1.bf16.msra.mxu1 %v9227_v23  ;;  %v12571_v23 = vld [vmem:[#allocation23_spill] sm:$0xff] }
 0x6d2   : > { %7448 = vmatprep.subr.bf16.mxu1 %v12561_v21  ;;  %v12572_v21 = vld [vmem:[#allocation24_spill] sm:$0xff] }
 0x6d5   : > { %7450 = vmatpush1.bf16.msra.mxu1 %v12562_v44  ;;  %v12573_v44 = vld [vmem:[#allocation25_spill] sm:$0xff] }
 0x6d6   : > { %7452 = vmatprep.subr.bf16.mxu1 %v12563_v59  ;;  %v12574_v59 = vld [vmem:[#allocation26_spill] sm:$0xff] }
 0x6d9   : > { %7454 = vmatpush1.bf16.msra.mxu1 %v12564_v11  ;;  %v12575_v11 = vld [vmem:[#allocation27_spill] sm:$0xff] }
 0x6da   : > { %7456 = vmatprep.subr.bf16.mxu1 %v12565_v30  ;;  %v12576_v30 = vld [vmem:[#allocation28_spill] sm:$0xff] }
 0x6dd   : > { %7458 = vmatpush1.bf16.msra.mxu1 %v12566_v39  ;;  %v12577_v39 = vld [vmem:[#allocation29_spill] sm:$0xff] }
 0x6de   : > { %7460 = vmatprep.subr.bf16.mxu1 %v12567_v5  ;;  %v12578_v5 = vld [vmem:[#allocation30_spill] sm:$0xff] }
 0x6e1   : > { %7462 = vmatpush1.bf16.msra.mxu1 %v12568_v49  ;;  %v12579_v49 = vld [vmem:[#allocation63_spill] sm:$0xff] }
 0x6e2   : > { %7464 = vmatprep.subr.bf16.mxu1 %v12569_v53  ;;  %v12593_v53 = vld [vmem:[#allocation77_spill] sm:$0xff] }
 0x6e5   : > { %7466 = vmatpush1.bf16.msra.mxu1 %v12570_v12  ;;  %v12591_v12 = vld [vmem:[#allocation75_spill] sm:$0xff] }
 0x6e6   : > { %7468 = vmatprep.subr.bf16.mxu1 %v12571_v23  ;;  %v12580_v23 = vld [vmem:[#allocation64_spill] sm:$0xff] }
 0x6e9   : > { %7470 = vmatpush1.bf16.msra.mxu1 %v12572_v21  ;;  %v12581_v21 = vld [vmem:[#allocation65_spill] sm:$0xff] }
 0x6ea   : > { %7472 = vmatprep.subr.bf16.mxu1 %v12573_v44  ;;  %v12588_v44 = vld [vmem:[#allocation72_spill] sm:$0xff] }
 0x6ed   : > { %7474 = vmatpush1.bf16.msra.mxu1 %v12574_v59  ;;  %v12582_v59 = vld [vmem:[#allocation66_spill] sm:$0xff] }
 0x6ee   : > { %7476 = vmatprep.subr.bf16.mxu1 %v12575_v11  ;;  %v12587_v11 = vld [vmem:[#allocation71_spill] sm:$0xff] }
 0x6f1   : > { %7478 = vmatpush1.bf16.msra.mxu1 %v12576_v30  ;;  %v12583_v30 = vld [vmem:[#allocation67_spill] sm:$0xff] }
 0x6f2   : > { %7480 = vmatprep.subr.bf16.mxu1 %v12577_v39  ;;  %v12584_v39 = vld [vmem:[#allocation68_spill] sm:$0xff] }
 0x6f5   : > { %7482 = vmatpush1.bf16.msra.mxu1 %v12578_v5  ;;  %v12585_v5 = vld [vmem:[#allocation69_spill] sm:$0xff] }
 0x6f6   : > { %7556 = vmatprep.subr.bf16.mxu1 %v12579_v49  ;;  %v12586_v49 = vld [vmem:[#allocation70_spill] sm:$0xff] }
 0x6f8   : > { %3045 = vmatmul.mubr.f32.vlgmr.msra.gmra.mrb[16].mxu1 %v10154_v62 }
 0x6f9   : > { %3050 = vmatprep.mubr.f32.mxu1 %v10158_v33  ;;  %7558 = vmatpush1.bf16.msra.mxu1 %v12580_v23  ;;  %v12589_v23 = vld [vmem:[#allocation73_spill] sm:$0xff] }
 0x6fa   : > { %7560 = vmatprep.subr.bf16.mxu1 %v12581_v21  ;;  %v12590_v21 = vld [vmem:[#allocation74_spill] sm:$0xff] }
 0x6fc   : > { %3051 = vmatmul.mubr.f32.gmra.mrb[18].mxu1 %v10161_v28 }
 0x6fd   : > { %7562 = vmatpush1.bf16.msra.mxu1 %v12582_v59  ;;  %3522 = vmatprep.mubr.f32.mxu1 %v10152_v55  ;;  %v12592_v59 = vld [vmem:[#allocation76_spill] sm:$0xff] }
 0x6fe   : > { %7564 = vmatprep.subr.bf16.mxu1 %v12583_v30  ;;  %v12594_v30 = vld [vmem:[#allocation78_spill] sm:$0xff] }
 0x701   : > { %7566 = vmatpush1.bf16.msra.mxu1 %v12584_v39  ;;  %v12595_v39 = vld [vmem:[#allocation79_spill] sm:$0xff] }
 0x702   : > { %7568 = vmatprep.subr.bf16.mxu1 %v12585_v5  ;;  %v12596_v5 = vld [vmem:[#allocation80_spill] sm:$0xff] }
 0x705   : > { %7570 = vmatpush1.bf16.msra.mxu1 %v12586_v49  ;;  %v12597_v49 = vld [vmem:[#allocation81_spill] sm:$0xff] }
 0x706   : > { %7572 = vmatprep.subr.bf16.mxu1 %v12587_v11  ;;  %v12598_v11 = vld [vmem:[#allocation82_spill] sm:$0xff] }
 0x709   : > { %7574 = vmatpush1.bf16.msra.mxu1 %v12588_v44  ;;  %v12599_v44 = vld [vmem:[#allocation83_spill] sm:$0xff] }
 0x70a   : > { %7576 = vmatprep.subr.bf16.mxu1 %v12589_v23  ;;  %v12600_v23 = vld [vmem:[#allocation84_spill] sm:$0xff] }
 0x70d   : > { %7578 = vmatpush1.bf16.msra.mxu1 %v12590_v21  ;;  %v12601_v21 = vld [vmem:[#allocation85_spill] sm:$0xff] }
 0x70e   : > { %7580 = vmatprep.subr.bf16.mxu1 %v12591_v12  ;;  %v12602_v12 = vld [vmem:[#allocation86_spill] sm:$0xff] }
 0x711   : > { %7582 = vmatpush1.bf16.msra.mxu1 %v12592_v59  ;;  %v12603_v59 = vld [vmem:[#allocation87_spill] sm:$0xff] }
 0x712   : > { %7584 = vmatprep.subr.bf16.mxu1 %v12593_v53  ;;  %v12604_v53 = vld [vmem:[#allocation88_spill] sm:$0xff] }
 0x715   : > { %7586 = vmatpush1.bf16.msra.mxu1 %v12594_v30  ;;  %v12605_v30 = vld [vmem:[#allocation89_spill] sm:$0xff] }
 0x716   : > { %7588 = vmatprep.subr.bf16.mxu1 %v12595_v39  ;;  %v12606_v39 = vld [vmem:[#allocation90_spill] sm:$0xff] }
 0x719   : > { %7590 = vmatpush1.bf16.msra.mxu1 %v12596_v5  ;;  %v12607_v5 = vld [vmem:[#allocation91_spill] sm:$0xff] }
 0x71a   : > { %7592 = vmatprep.subr.bf16.mxu1 %v12597_v49  ;;  %v12608_v49 = vld [vmem:[#allocation92_spill] sm:$0xff] }
 0x71d   : > { %7594 = vmatpush1.bf16.msra.mxu1 %v12598_v11  ;;  %v12609_v11 = vld [vmem:[#allocation93_spill] sm:$0xff] }
 0x71e   : > { %7596 = vmatprep.subr.bf16.mxu1 %v12599_v44  ;;  %v12610_v44 = vld [vmem:[#allocation94_spill] sm:$0xff] }
 0x721   : > { %7598 = vmatpush1.bf16.msra.mxu1 %v12600_v23  ;;  %v12611_v23 = vld [vmem:[#allocation159_spill] sm:$0xff] }
 0x722   : > { %7600 = vmatprep.subr.bf16.mxu1 %v12601_v21  ;;  %v12621_v21 = vld [vmem:[#allocation169_spill] sm:$0xff] }
 0x725   : > { %7602 = vmatpush1.bf16.msra.mxu1 %v12602_v12  ;;  %v12620_v12 = vld [vmem:[#allocation168_spill] sm:$0xff] }
 0x726   : > { %7604 = vmatprep.subr.bf16.mxu1 %v12603_v59  ;;  %v12612_v59 = vld [vmem:[#allocation160_spill] sm:$0xff] }
 0x729   : > { %7606 = vmatpush1.bf16.msra.mxu1 %v12604_v53  ;;  %v12613_v53 = vld [vmem:[#allocation161_spill] sm:$0xff] }
 0x72a   : > { %7608 = vmatprep.subr.bf16.mxu1 %v12605_v30  ;;  %v12619_v30 = vld [vmem:[#allocation167_spill] sm:$0xff] }
 0x72d   : > { %7610 = vmatpush1.bf16.msra.mxu1 %v12606_v39  ;;  %v12614_v39 = vld [vmem:[#allocation162_spill] sm:$0xff] }
 0x72e   : > { %7612 = vmatprep.subr.bf16.mxu1 %v12607_v5  ;;  %v12618_v5 = vld [vmem:[#allocation166_spill] sm:$0xff] }
 0x731   : > { %7614 = vmatpush1.bf16.msra.mxu1 %v12608_v49  ;;  %v12615_v49 = vld [vmem:[#allocation163_spill] sm:$0xff] }
 0x732   : > { %7616 = vmatprep.subr.bf16.mxu1 %v12609_v11  ;;  %v12616_v11 = vld [vmem:[#allocation164_spill] sm:$0xff] }
 0x735   : > { %7618 = vmatpush1.bf16.msra.mxu1 %v12610_v44  ;;  %v12617_v44 = vld [vmem:[#allocation165_spill] sm:$0xff] }
 0x736   : > { %7624 = vmatprep.subr.bf16.mxu1 %v12611_v23  ;;  %v12625_v23 = vld [vmem:[#allocation173_spill] sm:$0xff] }
 0x738   : > { %3523 = vmatmul.mubr.f32.vlgmr.msra.gmra.mrb[20].mxu1 %v10154_v62 }
 0x739   : > { %3528 = vmatprep.mubr.f32.mxu1 %v10158_v33  ;;  %7626 = vmatpush1.bf16.msra.mxu1 %v12612_v59  ;;  %v12623_v59 = vld [vmem:[#allocation171_spill] sm:$0xff] }
 0x73a   : > { %7628 = vmatprep.subr.bf16.mxu1 %v12613_v53  ;;  %v12622_v53 = vld [vmem:[#allocation170_spill] sm:$0xff] }
 0x73c   : > { %3529 = vmatmul.mubr.f32.gmra.mrb[22].mxu1 %v10161_v28 }
 0x73d   : > { %7630 = vmatpush1.bf16.msra.mxu1 %v12614_v39  ;;  %3761 = vmatprep.mubr.f32.mxu1 %v10152_v55  ;;  %v12624_v39 = vld [vmem:[#allocation172_spill] sm:$0xff] }
 0x73e   : > { %7632 = vmatprep.subr.bf16.mxu1 %v12615_v49  ;;  %v12626_v49 = vld [vmem:[#allocation174_spill] sm:$0xff] }
 0x741   : > { %7634 = vmatpush1.bf16.msra.mxu1 %v12616_v11  ;;  %v12627_v11 = vld [vmem:[#allocation175_spill] sm:$0xff] }
 0x742   : > { %7636 = vmatprep.subr.bf16.mxu1 %v12617_v44  ;;  %v12628_v44 = vld [vmem:[#allocation176_spill] sm:$0xff] }
 0x745   : > { %7638 = vmatpush1.bf16.msra.mxu1 %v12618_v5  ;;  %v12629_v5 = vld [vmem:[#allocation177_spill] sm:$0xff] }
 0x746   : > { %7640 = vmatprep.subr.bf16.mxu1 %v12619_v30  ;;  %v12630_v30 = vld [vmem:[#allocation178_spill] sm:$0xff] }
 0x749   : > { %7642 = vmatpush1.bf16.msra.mxu1 %v12620_v12  ;;  %v12631_v12 = vld [vmem:[#allocation179_spill] sm:$0xff] }
 0x74a   : > { %7644 = vmatprep.subr.bf16.mxu1 %v12621_v21  ;;  %v12632_v21 = vld [vmem:[#allocation180_spill] sm:$0xff] }
 0x74d   : > { %7646 = vmatpush1.bf16.msra.mxu1 %v12622_v53  ;;  %v12633_v53 = vld [vmem:[#allocation181_spill] sm:$0xff] }
 0x74e   : > { %7648 = vmatprep.subr.bf16.mxu1 %v12623_v59  ;;  %v12634_v59 = vld [vmem:[#allocation182_spill] sm:$0xff] }
 0x751   : > { %7650 = vmatpush1.bf16.msra.mxu1 %v12624_v39  ;;  %v12635_v39 = vld [vmem:[#allocation183_spill] sm:$0xff] }
 0x752   : > { %7652 = vmatprep.subr.bf16.mxu1 %v12625_v23  ;;  %v12636_v23 = vld [vmem:[#allocation184_spill] sm:$0xff] }
 0x755   : > { %7654 = vmatpush1.bf16.msra.mxu1 %v12626_v49  ;;  %v12637_v49 = vld [vmem:[#allocation185_spill] sm:$0xff] }
 0x756   : > { %7656 = vmatprep.subr.bf16.mxu1 %v12627_v11  ;;  %v12638_v11 = vld [vmem:[#allocation186_spill] sm:$0xff] }
 0x759   : > { %7658 = vmatpush1.bf16.msra.mxu1 %v12628_v44  ;;  %v12639_v44 = vld [vmem:[#allocation187_spill] sm:$0xff] }
 0x75a   : > { %7660 = vmatprep.subr.bf16.mxu1 %v12629_v5  ;;  %v12640_v5 = vld [vmem:[#allocation188_spill] sm:$0xff] }
 0x75d   : > { %7662 = vmatpush1.bf16.msra.mxu1 %v12630_v30  ;;  %v12641_v30 = vld [vmem:[#allocation189_spill] sm:$0xff] }
 0x75e   : > { %7664 = vmatprep.subr.bf16.mxu1 %v12631_v12  ;;  %v12642_v12 = vld [vmem:[#allocation190_spill] sm:$0xff] }
 0x761   : > { %7666 = vmatpush1.bf16.msra.mxu1 %v12632_v21  ;;  %v12643_v21 = vld [vmem:[#allocation127_spill] sm:$0xff] }
 0x762   : > { %7668 = vmatprep.subr.bf16.mxu1 %v12633_v53  ;;  %v12654_v53 = vld [vmem:[#allocation138_spill] sm:$0xff] }
 0x765   : > { %7670 = vmatpush1.bf16.msra.mxu1 %v12634_v59 }
 0x766   : > { %7672 = vmatprep.subr.bf16.mxu1 %v12635_v39  ;;  %v12644_v39 = vld [vmem:[#allocation128_spill] sm:$0xff] }
 0x769   : > { %7674 = vmatpush1.bf16.msra.mxu1 %v12636_v23  ;;  %v12645_v23 = vld [vmem:[#allocation129_spill] sm:$0xff] }
 0x76a   : > { %7676 = vmatprep.subr.bf16.mxu1 %v12637_v49  ;;  %v12652_v49 = vld [vmem:[#allocation136_spill] sm:$0xff] }
 0x76d   : > { %7678 = vmatpush1.bf16.msra.mxu1 %v12638_v11  ;;  %v12646_v11 = vld [vmem:[#allocation130_spill] sm:$0xff] }
 0x76e   : > { %7680 = vmatprep.subr.bf16.mxu1 %v12639_v44  ;;  %v12651_v44 = vld [vmem:[#allocation135_spill] sm:$0xff] }
 0x771   : > { %7682 = vmatpush1.bf16.msra.mxu1 %v12640_v5  ;;  %v12647_v5 = vld [vmem:[#allocation131_spill] sm:$0xff] }
 0x772   : > { %7684 = vmatprep.subr.bf16.mxu1 %v12641_v30  ;;  %v12648_v30 = vld [vmem:[#allocation132_spill] sm:$0xff] }
 0x775   : > { %7686 = vmatpush1.bf16.msra.mxu1 %v12642_v12  ;;  %v12649_v12 = vld [vmem:[#allocation133_spill] sm:$0xff] }
 0x776   : > { %7692 = vmatprep.subr.bf16.mxu1 %v12643_v21  ;;  %v12650_v21 = vld [vmem:[#allocation134_spill] sm:$0xff] }
 0x778   : > { %3762 = vmatmul.mubr.f32.vlgmr.msra.gmra.mrb[24].mxu1 %v10154_v62 }
 0x779   : > { %3767 = vmatprep.mubr.f32.mxu1 %v10158_v33  ;;  %7694 = vmatpush1.bf16.msra.mxu1 %v12644_v39  ;;  %v12653_v39 = vld [vmem:[#allocation137_spill] sm:$0xff] }
 0x77a   : > { %7696 = vmatprep.subr.bf16.mxu1 %v12645_v23 }
 0x77c   : > { %3768 = vmatmul.mubr.f32.gmra.mrb[26].mxu1 %v10161_v28 }
 0x77d   : > { %7698 = vmatpush1.bf16.msra.mxu1 %v12646_v11  ;;  %4000 = vmatprep.mubr.f32.mxu1 %v10152_v55  ;;  %v12655_v11 = vld [vmem:[#allocation139_spill] sm:$0xff] }
 0x77e   : > { %7700 = vmatprep.subr.bf16.mxu1 %v12647_v5 }
 0x781   : > { %7702 = vmatpush1.bf16.msra.mxu1 %v12648_v30 }
 0x782   : > { %7704 = vmatprep.subr.bf16.mxu1 %v12649_v12  ;;  %v12657_v12 = vld [vmem:[#allocation141_spill] sm:$0xff] }
 0x785   : > { %7706 = vmatpush1.bf16.msra.mxu1 %v12650_v21 }
 0x786   : > { %7708 = vmatprep.subr.bf16.mxu1 %v12651_v44  ;;  %v12723_v44 = vld [vmem:[#allocation207_spill] sm:$0xff] }
 0x789   : > { %7710 = vmatpush1.bf16.msra.mxu1 %v12652_v49  ;;  %v12658_v49 = vld [vmem:[#allocation142_spill] sm:$0xff] }
 0x78a   : > { %7712 = vmatprep.subr.bf16.mxu1 %v12653_v39  ;;  %v2579_v39 = vld [vmem:[%s11769_s4] sm:$0xff] }
 0x78b   : > { %v2568_v23 = vpop.f32.mrb[12].mxu1 }
 0x78c   : > { %v2570_v59 = vpop.f32.mrb[13].mxu1 }
 0x78d   : > { %7714 = vmatpush1.bf16.msra.mxu1 %v12654_v53  ;;  %v12659_v53 = vld [vmem:[#allocation31_spill] sm:$0xff] }
 0x78e   : > { %7716 = vmatprep.subr.bf16.mxu1 %v12655_v11  ;;  %v12660_v11 = vld [vmem:[#allocation143_spill] sm:$0xff] }
 0x78f   : > { %v2574_v4 = vpop.f32.mrb[14].mxu1 }
 0x790   : > { %v7349_v5 = vpack.c.bf16 %v2574_v4, %v2568_v23  ;;  %v2576_v60 = vpop.f32.mrb[15].mxu1  ;;  %v2580_v4 = vld [vmem:[%s11769_s4 + $0x8] sm:$0xff] }
 0x791   : > { %v7347_v30 = vpack.c.bf16 %v2576_v60, %v2570_v59  ;;  %7718 = vmatpush1.bf16.msra.mxu1 %v12656_v54  ;;  %v12661_v60 = vld [vmem:[#allocation32_spill] sm:$0xff]  ;;  %v12663_v59 = vld [vmem:[#allocation33_spill] sm:$0xff] }
 0x792   : > { %7720 = vmatprep.subr.bf16.mxu1 %v12657_v12  ;;  %v12662_v23 = vld [vmem:[#allocation144_spill] sm:$0xff] }
 0x793   : > { %7348 = vmatprep.subr.bf16.mxu0 %v7347_v30  ;;  %v12664_v30 = vld [vmem:[#allocation145_spill] sm:$0xff]  ;;  %v12709_v12 = vld [vmem:[#allocation56_spill] sm:$0xff] }
 0x794   : > { %7350 = vmatpush1.bf16.msra.mxu0 %v7349_v5  ;;  %v12665_v5 = vld [vmem:[#allocation34_spill] sm:$0xff]  ;;  %v12718_v54 = vld [vmem:[#allocation204_spill] sm:$0xff] }
 0x795   : > { %7722 = vmatpush1.bf16.msra.mxu1 %v12658_v49  ;;  %7352 = vmatprep.subr.bf16.mxu0 %v12659_v53  ;;  %v12667_v53 = vld [vmem:[#allocation35_spill] sm:$0xff]  ;;  %v12706_v49 = vld [vmem:[#allocation198_spill] sm:$0xff] }
 0x796   : > { %7724 = vmatprep.subr.bf16.mxu1 %v12660_v11  ;;  %v12668_v11 = vld [vmem:[#allocation147_spill] sm:$0xff] }
 0x797   : > { %6556 = vmatmul.mubr.msk.f32.vlgmr.msra.gmra.mrb[10].mxu0 %vm2587_vm2, %v2579_v39  ;;  %v2581_v39 = vld [vmem:[%s11769_s4 + $0x10] sm:$0xff] }
 0x798   : > { %7354 = vmatpush1.bf16.msra.mxu0 %v12661_v60  ;;  %2682 = vmatprep.mubr.f32.mxu0 %v12340_v40  ;;  %v12666_v60 = vld [vmem:[#allocation146_spill] sm:$0xff] }
 0x799   : > { %7726 = vmatpush1.bf16.msra.mxu1 %v12662_v23  ;;  %7356 = vmatprep.subr.bf16.mxu0 %v12663_v59  ;;  %v12669_v59 = vld [vmem:[#allocation36_spill] sm:$0xff]  ;;  %v12672_v23 = vld [vmem:[#allocation149_spill] sm:$0xff] }
 0x79a   : > { %7728 = vmatprep.subr.bf16.mxu1 %v12664_v30  ;;  %v12671_v30 = vld [vmem:[#allocation37_spill] sm:$0xff] }
 0x79b   : > { %6557 = vmatmul.mubr.msk.f32.gmra.mrb[12].mxu0 %vm2587_vm2, %v2580_v4  ;;  %v2582_v4 = vld [vmem:[%s11769_s4 + $0x18] sm:$0xff] }
 0x79c   : > { %7358 = vmatpush1.bf16.msra.mxu0 %v12665_v5  ;;  %2688 = vmatprep.mubr.f32.mxu0 %v12340_v40  ;;  %v12670_v5 = vld [vmem:[#allocation148_spill] sm:$0xff] }
 0x79d   : > { %7730 = vmatpush1.bf16.msra.mxu1 %v12666_v60  ;;  %7360 = vmatprep.subr.bf16.mxu0 %v12667_v53  ;;  %v12673_v53 = vld [vmem:[#allocation38_spill] sm:$0xff]  ;;  %v12676_v60 = vld [vmem:[#allocation151_spill] sm:$0xff] }
 0x79e   : > { %7732 = vmatprep.subr.bf16.mxu1 %v12668_v11  ;;  %v12675_v11 = vld [vmem:[#allocation39_spill] sm:$0xff] }
 0x79f   : > { %6558 = vmatmul.mubr.msk.f32.gmra.mrb[14].mxu0 %vm2587_vm2, %v2581_v39  ;;  %v2583_v39 = vld [vmem:[%s11769_s4 + $0x20] sm:$0xff] }
 0x7a0   : > { %7362 = vmatpush1.bf16.msra.mxu0 %v12669_v59  ;;  %2694 = vmatprep.mubr.f32.mxu0 %v12340_v40  ;;  %v12674_v59 = vld [vmem:[#allocation150_spill] sm:$0xff] }
 0x7a1   : > { %7734 = vmatpush1.bf16.msra.mxu1 %v12670_v5  ;;  %7364 = vmatprep.subr.bf16.mxu0 %v12671_v30  ;;  %v12677_v30 = vld [vmem:[#allocation40_spill] sm:$0xff]  ;;  %v12680_v5 = vld [vmem:[#allocation153_spill] sm:$0xff] }
 0x7a2   : > { %7736 = vmatprep.subr.bf16.mxu1 %v12672_v23  ;;  %v12679_v23 = vld [vmem:[#allocation41_spill] sm:$0xff] }
 0x7a3   : > { %6559 = vmatmul.mubr.msk.f32.gmra.mrb[16].mxu0 %vm2587_vm2, %v2582_v4  ;;  %v2584_v4 = vld [vmem:[%s11769_s4 + $0x28] sm:$0xff] }
 0x7a4   : > { %7366 = vmatpush1.bf16.msra.mxu0 %v12673_v53  ;;  %2700 = vmatprep.mubr.f32.mxu0 %v12340_v40  ;;  %v12678_v53 = vld [vmem:[#allocation152_spill] sm:$0xff] }
 0x7a5   : > { %7738 = vmatpush1.bf16.msra.mxu1 %v12674_v59  ;;  %7368 = vmatprep.subr.bf16.mxu0 %v12675_v11  ;;  %v12681_v11 = vld [vmem:[#allocation42_spill] sm:$0xff]  ;;  %v12684_v59 = vld [vmem:[#allocation155_spill] sm:$0xff] }
 0x7a6   : > { %7740 = vmatprep.subr.bf16.mxu1 %v12676_v60  ;;  %v12683_v60 = vld [vmem:[#allocation43_spill] sm:$0xff] }
 0x7a7   : > { %6560 = vmatmul.mubr.msk.f32.gmra.mrb[18].mxu0 %vm2587_vm2, %v2583_v39  ;;  %v2585_v39 = vld [vmem:[%s11769_s4 + $0x30] sm:$0xff] }
 0x7a8   : > { %7370 = vmatpush1.bf16.msra.mxu0 %v12677_v30  ;;  %2706 = vmatprep.mubr.f32.mxu0 %v12340_v40  ;;  %v12682_v30 = vld [vmem:[#allocation154_spill] sm:$0xff] }
 0x7a9   : > { %7742 = vmatpush1.bf16.msra.mxu1 %v12678_v53  ;;  %7372 = vmatprep.subr.bf16.mxu0 %v12679_v23  ;;  %v12685_v23 = vld [vmem:[#allocation44_spill] sm:$0xff]  ;;  %v12688_v53 = vld [vmem:[#allocation157_spill] sm:$0xff] }
 0x7aa   : > { %7744 = vmatprep.subr.bf16.mxu1 %v12680_v5  ;;  %v12687_v5 = vld [vmem:[#allocation45_spill] sm:$0xff] }
 0x7ab   : > { %6561 = vmatmul.mubr.msk.f32.gmra.mrb[20].mxu0 %vm2587_vm2, %v2584_v4  ;;  %v2586_v4 = vld [vmem:[%s11769_s4 + $0x38] sm:$0xff] }
 0x7ac   : > { %7374 = vmatpush1.bf16.msra.mxu0 %v12681_v11  ;;  %2712 = vmatprep.mubr.f32.mxu0 %v12340_v40  ;;  %v12686_v11 = vld [vmem:[#allocation156_spill] sm:$0xff] }
 0x7ad   : > { %7746 = vmatpush1.bf16.msra.mxu1 %v12682_v30  ;;  %7376 = vmatprep.subr.bf16.mxu0 %v12683_v60  ;;  %v12689_v60 = vld [vmem:[#allocation46_spill] sm:$0xff]  ;;  %v12693_v30 = vld [vmem:[#allocation48_spill] sm:$0xff] }
 0x7ae   : > { %7748 = vmatprep.subr.bf16.mxu1 %v12684_v59  ;;  %v12692_v59 = vld [vmem:[#allocation191_spill] sm:$0xff] }
 0x7af   : > { %6562 = vmatmul.mubr.msk.f32.gmra.mrb[22].mxu0 %vm2587_vm2, %v2585_v39  ;;  %v12690_v39 = vld [vmem:[#allocation158_spill] sm:$0xff] }
 0x7b0   : > { %7378 = vmatpush1.bf16.msra.mxu0 %v12685_v23  ;;  %2718 = vmatprep.mubr.f32.mxu0 %v12340_v40  ;;  %v12691_v23 = vld [vmem:[#allocation47_spill] sm:$0xff] }
 0x7b1   : > { %7750 = vmatpush1.bf16.msra.mxu1 %v12686_v11  ;;  %7380 = vmatprep.subr.bf16.mxu0 %v12687_v5  ;;  %v12694_v5 = vld [vmem:[#allocation192_spill] sm:$0xff] }
 0x7b2   : > { %7752 = vmatprep.subr.bf16.mxu1 %v12688_v53  ;;  %v12695_v53 = vld [vmem:[#allocation49_spill] sm:$0xff]  ;;  %v12702_v11 = vld [vmem:[#allocation196_spill] sm:$0xff] }
 0x7b3   : > { %6563 = vmatmul.mubr.msk.f32.gmra.mrb[24].mxu0 %vm2587_vm2, %v2586_v4  ;;  %v12696_v4 = vld [vmem:[#allocation193_spill] sm:$0xff] }
 0x7b4   : > { %7382 = vmatpush1.bf16.msra.mxu0 %v12689_v60  ;;  %2805 = vmatprep.mubr.f32.mxu0 %v10152_v55  ;;  %v12697_v60 = vld [vmem:[#allocation50_spill] sm:$0xff] }
 0x7b5   : > { %7754 = vmatpush1.bf16.msra.mxu1 %v12690_v39  ;;  %7384 = vmatprep.subr.bf16.mxu0 %v12691_v23  ;;  %v12698_v39 = vld [vmem:[#allocation194_spill] sm:$0xff]  ;;  %v12699_v23 = vld [vmem:[#allocation51_spill] sm:$0xff] }
 0x7b6   : > { %7828 = vmatprep.subr.bf16.mxu1 %v12692_v59  ;;  %v12700_v59 = vld [vmem:[#allocation195_spill] sm:$0xff] }
 0x7b8   : > { %4001 = vmatmul.mubr.f32.vlgmr.msra.gmra.mrb[28].mxu1 %v10154_v62  ;;  %7386 = vmatpush1.bf16.msra.mxu0 %v12693_v30  ;;  %v12701_v30 = vld [vmem:[#allocation52_spill] sm:$0xff] }
 0x7b9   : > { %4006 = vmatprep.mubr.f32.mxu1 %v10158_v33  ;;  %7830 = vmatpush1.bf16.msra.mxu1 %v12694_v5  ;;  %v12703_v5 = vld [vmem:[#allocation53_spill] sm:$0xff] }
 0x7ba   : > { %7388 = vmatprep.subr.bf16.mxu0 %v12695_v53  ;;  %7832 = vmatprep.subr.bf16.mxu1 %v12696_v4  ;;  %v12704_v53 = vld [vmem:[#allocation197_spill] sm:$0xff]  ;;  %v12705_v4 = vld [vmem:[#allocation54_spill] sm:$0xff] }
 0x7bc   : > { %4007 = vmatmul.mubr.f32.gmra.mrb[30].mxu1 %v10161_v28  ;;  %7390 = vmatpush1.bf16.msra.mxu0 %v12697_v60  ;;  %v12707_v60 = vld [vmem:[#allocation55_spill] sm:$0xff] }
 0x7bd   : > { %7834 = vmatpush1.bf16.msra.mxu1 %v12698_v39  ;;  %4478 = vmatprep.mubr.f32.mxu1 %v10152_v55  ;;  %v12708_v39 = vld [vmem:[#allocation199_spill] sm:$0xff] }
 0x7be   : > { %7392 = vmatprep.subr.bf16.mxu0 %v12699_v23  ;;  %7836 = vmatprep.subr.bf16.mxu1 %v12700_v59  ;;  %v12710_v23 = vld [vmem:[#allocation200_spill] sm:$0xff]  ;;  %v12711_v59 = vld [vmem:[#allocation57_spill] sm:$0xff] }
 0x7c0   : > { %7394 = vmatpush1.bf16.msra.mxu0 %v12701_v30  ;;  %v12712_v30 = vld [vmem:[#allocation201_spill] sm:$0xff] }
 0x7c1   : > { %7838 = vmatpush1.bf16.msra.mxu1 %v12702_v11  ;;  %7396 = vmatprep.subr.bf16.mxu0 %v12703_v5 }
 0x7c2   : > { %7840 = vmatprep.subr.bf16.mxu1 %v12704_v53  ;;  %v12713_v53 = vld [vmem:[#allocation58_spill] sm:$0xff] }
 0x7c4   : > { %7398 = vmatpush1.bf16.msra.mxu0 %v12705_v4  ;;  %v12714_v4 = vld [vmem:[#allocation202_spill] sm:$0xff] }
 0x7c5   : > { %7842 = vmatpush1.bf16.msra.mxu1 %v12706_v49  ;;  %7400 = vmatprep.subr.bf16.mxu0 %v12707_v60  ;;  %v12715_v49 = vld [vmem:[#allocation59_spill] sm:$0xff] }
 0x7c6   : > { %7844 = vmatprep.subr.bf16.mxu1 %v12708_v39  ;;  %v12716_v60 = vld [vmem:[#allocation203_spill] sm:$0xff] }
 0x7c8   : > { %7402 = vmatpush1.bf16.msra.mxu0 %v12709_v12  ;;  %v12724_v12 = vld [vmem:[#allocation208_spill] sm:$0xff] }
 0x7c9   : > { %7846 = vmatpush1.bf16.msra.mxu1 %v12710_v23  ;;  %7404 = vmatprep.subr.bf16.mxu0 %v12711_v59  ;;  %v12726_v23 = vld [vmem:[#allocation210_spill] sm:$0xff] }
 0x7ca   : > { %7848 = vmatprep.subr.bf16.mxu1 %v12712_v30  ;;  %v12717_v30 = vld [vmem:[#allocation60_spill] sm:$0xff] }
 0x7cb   : > { %v10386_v11 = vpop.f32.mrb[16].mxu1 }
 0x7cc   : > { %v10388_v5 = vpop.f32.mrb[17].mxu1  ;;  %7406 = vmatpush1.bf16.msra.mxu0 %v12713_v53  ;;  %v12719_v53 = vld [vmem:[#allocation61_spill] sm:$0xff] }
 0x7cd   : > { %7850 = vmatpush1.bf16.msra.mxu1 %v12714_v4  ;;  %7408 = vmatprep.subr.bf16.mxu0 %v12715_v49  ;;  %v12720_v4 = vld [vmem:[#allocation205_spill] sm:$0xff]  ;;  %v12721_v49 = vld [vmem:[#allocation62_spill] sm:$0xff] }
 0x7ce   : > { %7852 = vmatprep.subr.bf16.mxu1 %v12716_v60  ;;  %v12722_v60 = vld [vmem:[#allocation206_spill] sm:$0xff] }
 0x7cf   : > { %v10394_v39 = vpop.f32.mrb[18].mxu1 }
 0x7d0   : > { %v10398_v59 = vpop.f32.mrb[19].mxu1  ;;  %7410 = vmatpush1.bf16.msra.mxu0 %v12717_v30  ;;  %v12725_v30 = vld [vmem:[#allocation209_spill] sm:$0xff] }
 0x7d1   : > { %7854 = vmatpush1.bf16.msra.mxu1 %v12718_v54  ;;  %7412 = vmatprep.subr.bf16.mxu0 %v12719_v53  ;;  %v12727_v53 = vld [vmem:[#allocation211_spill] sm:$0xff]  ;;  %v12732_v54 = vld [vmem:[#allocation216_spill] sm:$0xff] }
 0x7d2   : > { %7856 = vmatprep.subr.bf16.mxu1 %v12720_v4  ;;  %v12731_v4 = vld [vmem:[#allocation215_spill] sm:$0xff] }
 0x7d4   : > { %7414 = vmatpush1.bf16.msra.mxu0 %v12721_v49  ;;  %v12728_v49 = vld [vmem:[#allocation212_spill] sm:$0xff] }
 0x7d5   : > { %7858 = vmatpush1.bf16.msra.mxu1 %v12722_v60  ;;  %v12729_v60 = vld [vmem:[#allocation213_spill] sm:$0xff] }
 0x7d6   : > { %7860 = vmatprep.subr.bf16.mxu1 %v12723_v44  ;;  %v12730_v44 = vld [vmem:[#allocation214_spill] sm:$0xff] }
 0x7d7   : > { %2806 = vmatmul.mubr.f32.vlgmr.msra.gmra.mrb[26].mxu0 %v10154_v62 }
 0x7d8   : > { %2811 = vmatprep.mubr.f32.mxu0 %v10158_v33 }
 0x7d9   : > { %7862 = vmatpush1.bf16.msra.mxu1 %v12724_v12  ;;  %v12733_v12 = vld [vmem:[#allocation217_spill] sm:$0xff] }
 0x7da   : > { %7864 = vmatprep.subr.bf16.mxu1 %v12725_v30  ;;  %v12734_v30 = vld [vmem:[#allocation220_spill] sm:$0xff] }
 0x7db   : > { %2812 = vmatmul.mubr.f32.gmra.mrb[28].mxu0 %v10161_v28 }
 0x7dc   : > { %2915 = vmatprep.mubr.f32.mxu0 %v12340_v40 }
 0x7dd   : > { %7866 = vmatpush1.bf16.msra.mxu1 %v12726_v23  ;;  %v12735_v23 = vld [vmem:[#allocation221_spill] sm:$0xff] }
 0x7de   : > { %7868 = vmatprep.subr.bf16.mxu1 %v12727_v53  ;;  %v12736_v53 = vld [vmem:[#allocation222_spill] sm:$0xff] }
 0x7e1   : > { %7870 = vmatpush1.bf16.msra.mxu1 %v12728_v49  ;;  %v12770_v49 = vld [vmem:[#allocation126_spill] sm:$0xff] }
 0x7e2   : > { %7872 = vmatprep.subr.bf16.mxu1 %v12729_v60  ;;  %v12769_v60 = vld [vmem:[#allocation125_spill] sm:$0xff] }
 0x7e5   : > { %7874 = vmatpush1.bf16.msra.mxu1 %v12730_v44  ;;  %v12768_v44 = vld [vmem:[#allocation124_spill] sm:$0xff] }
 0x7e6   : > { %7876 = vmatprep.subr.bf16.mxu1 %v12731_v4  ;;  %v12767_v4 = vld [vmem:[#allocation123_spill] sm:$0xff] }
 0x7e9   : > { %7878 = vmatpush1.bf16.msra.mxu1 %v12732_v54  ;;  %v12766_v54 = vld [vmem:[#allocation122_spill] sm:$0xff] }
 0x7ea   : > { %7880 = vmatprep.subr.bf16.mxu1 %v12733_v12  ;;  %v12765_v12 = vld [vmem:[#allocation121_spill] sm:$0xff] }
 0x7ed   : > { %7882 = vmatpush1.bf16.msra.mxu1 %v9937_v41  ;;  %v12764_v41 = vld [vmem:[#allocation120_spill] sm:$0xff] }
 0x7ee   : > { %7884 = vmatprep.subr.bf16.mxu1 %v9940_v18  ;;  %v12762_v18 = vld [vmem:[#allocation118_spill] sm:$0xff] }
 0x7f1   : > { %7886 = vmatpush1.bf16.msra.mxu1 %v12734_v30  ;;  %v12761_v30 = vld [vmem:[#allocation117_spill] sm:$0xff] }
 0x7f2   : > { %7888 = vmatprep.subr.bf16.mxu1 %v12735_v23  ;;  %v12760_v23 = vld [vmem:[#allocation116_spill] sm:$0xff] }
 0x7f5   : > { %7890 = vmatpush1.bf16.msra.mxu1 %v12736_v53  ;;  %v12759_v53 = vld [vmem:[#allocation115_spill] sm:$0xff] }
 0x7f6   : > { %7896 = vmatprep.subr.bf16.mxu1 %v9070_v3 }
 0x7f8   : > { %4479 = vmatmul.mubr.f32.vlgmr.msra.gmra.mrb[32].mxu1 %v10154_v62 }
 0x7f9   : > { %4484 = vmatprep.mubr.f32.mxu1 %v10158_v33  ;;  %7898 = vmatpush1.bf16.msra.mxu1 %v9072_v7 }
 0x7fa   : > { %7900 = vmatprep.subr.bf16.mxu1 %v9074_v8 }
 0x7fc   : > { %4485 = vmatmul.mubr.f32.gmra.mrb[34].mxu1 %v10161_v28 }
 0x7fd   : > { %7902 = vmatpush1.bf16.msra.mxu1 %v9078_v13  ;;  %v12756_v13 = vld [vmem:[#allocation112_spill] sm:$0xff] }
 0x7fe   : > { %7904 = vmatprep.subr.bf16.mxu1 %v9081_v14 }
 0x801   : > { %7906 = vmatpush1.bf16.msra.mxu1 %v9085_v19  ;;  %v12758_v19 = vld [vmem:[#allocation114_spill] sm:$0xff] }
 0x802   : > { %7908 = vmatprep.subr.bf16.mxu1 %v9088_v20 }
 0x805   : > { %7910 = vmatpush1.bf16.msra.mxu1 %v9094_v25 }
 0x806   : > { %7912 = vmatprep.subr.bf16.mxu1 %v9097_v26 }
 0x809   : > { %7914 = vmatpush1.bf16.msra.mxu1 %v9101_v31  ;;  %v12754_v31 = vld [vmem:[#allocation110_spill] sm:$0xff] }
 0x80a   : > { %7916 = vmatprep.subr.bf16.mxu1 %v9104_v32 }
 0x80b   : > { %v10442_v3 = vpop.f32.mrb[20].mxu1 }
 0x80c   : > { %v10444_v7 = vpop.f32.mrb[21].mxu1 }
 0x80d   : > { %7918 = vmatpush1.bf16.msra.mxu1 %v9114_v37  ;;  %v12755_v37 = vld [vmem:[#allocation111_spill] sm:$0xff] }
 0x80e   : > { %7920 = vmatprep.subr.bf16.mxu1 %v9117_v38 }
 0x80f   : > { %v10448_v8 = vpop.f32.mrb[22].mxu1 }
 0x810   : > { %v10452_v14 = vpop.f32.mrb[23].mxu1 }
 0x811   : > { %7922 = vmatpush1.bf16.msra.mxu1 %v9127_v45 }
 0x812   : > { %7924 = vmatprep.subr.bf16.mxu1 %v9131_v46 }
 0x815   : > { %7926 = vmatpush1.bf16.msra.mxu1 %v9134_v51  ;;  %v12752_v51 = vld [vmem:[#allocation108_spill] sm:$0xff] }
 0x816   : > { %7928 = vmatprep.subr.bf16.mxu1 %v9137_v52 }
 0x819   : > { %7930 = vmatpush1.bf16.msra.mxu1 %v9140_v57  ;;  %v12753_v57 = vld [vmem:[#allocation109_spill] sm:$0xff] }
 0x81a   : > { %7932 = vmatprep.subr.bf16.mxu1 %v9143_v58 }
 0x81d   : > { %7934 = vmatpush1.bf16.msra.mxu1 %v9146_v63 }
 0x81e   : > { %7936 = vmatprep.subr.bf16.mxu1 %v9149_v0 }
 0x821   : > { %7938 = vmatpush1.bf16.msra.mxu1 %v9152_v6 }
 0x822   : > { %7940 = vmatprep.subr.bf16.mxu1 %v9155_v9 }
 0x825   : > { %7942 = vmatpush1.bf16.msra.mxu1 %v9158_v16 }
 0x826   : > { %7944 = vmatprep.subr.bf16.mxu1 %v9161_v17  ;;  %v6564_v17 = vld [vmem:[%s11769_s4 + $0x40] sm:$0xff] }
 0x829   : > { %7946 = vmatpush1.bf16.msra.mxu1 %v9164_v24  ;;  %v12737_v24 = vpack.c.bf16 %v10398_v59, %v10388_v5  ;;  %v6570_v59 = vld [vmem:[%s11769_s4 + $0x70] sm:$0xff] }
 0x82a   : > { %7948 = vmatprep.subr.bf16.mxu1 %v9167_v27  ;;  %v12738_v27 = vpack.c.bf16 %v10394_v39, %v10386_v11 }
 0x82d   : > { %7950 = vmatpush1.bf16.msra.mxu1 %v9170_v34  ;;  %v6565_v34 = vld [vmem:[%s11769_s4 + $0x48] sm:$0xff] }
 0x82e   : > { %7952 = vmatprep.subr.bf16.mxu1 %v9173_v35  ;;  %v12739_v35 = vld [vmem:[#allocation95_spill] sm:$0xff] }
 0x831   : > { %7954 = vmatpush1.bf16.msra.mxu1 %v9176_v43  ;;  %v6566_v43 = vld [vmem:[%s11769_s4 + $0x50] sm:$0xff] }
 0x832   : > { %7956 = vmatprep.subr.bf16.mxu1 %v9179_v47  ;;  %v6567_v47 = vld [vmem:[%s11769_s4 + $0x58] sm:$0xff] }
 0x835   : > { %7958 = vmatpush1.bf16.msra.mxu1 %v9182_v50  ;;  %v6568_v50 = vld [vmem:[%s11769_s4 + $0x60] sm:$0xff] }
 0x836   : > { %8056 = vmatprep.subr.bf16.mxu1 %v9189_v56  ;;  %v6569_v56 = vld [vmem:[%s11769_s4 + $0x68] sm:$0xff] }
 0x84b   : > { %v10476_v20 = vpop.f32.mrb[24].mxu1 }
 0x84c   : > { %v10478_v25 = vpop.f32.mrb[25].mxu1 }
 0x84f   : > { %v10480_v26 = vpop.f32.mrb[26].mxu1 }
 0x850   : > { %v10484_v32 = vpop.f32.mrb[27].mxu1 }
 0x88b   : > { %v10488_v38 = vpop.f32.mrb[28].mxu1 }
 0x88c   : > { %v10490_v45 = vpop.f32.mrb[29].mxu1 }
 0x88f   : > { %v10492_v46 = vpop.f32.mrb[30].mxu1 }
 0x890   : > { %v10496_v52 = vpop.f32.mrb[31].mxu1 }
 0x8aa   : > { %v2807_v58 = vpop.f32.mrb[26].mxu0 }
 0x8ab   : > { %v2809_v63 = vpop.f32.mrb[27].mxu0 }
 0x8ae   : > { %v2813_v0 = vpop.f32.mrb[28].mxu0 }
 0x8af   : > { %v7417_v6 = vpack.c.bf16 %v2813_v0, %v2807_v58  ;;  %v2815_v9 = vpop.f32.mrb[29].mxu0  ;;  %v6571_v58 = vld [vmem:[%s11769_s4 + $0x78] sm:$0xff] }
 0x8b0   : > { %v7415_v16 = vpack.c.bf16 %v2815_v9, %v2809_v63  ;;  %v6580_v9 = vld [vmem:[%s11769_s4 + $0x80] sm:$0xff]  ;;  %v12750_v63 = vld [vmem:[#allocation106_spill] sm:$0xff] }
 0x8b2   : > { %7416 = vmatprep.subr.bf16.mxu0 %v7415_v16  ;;  %v12740_v16 = vld [vmem:[#allocation96_spill] sm:$0xff] }
 0x8b3   : > { %7418 = vmatpush1.bf16.msra.mxu0 %v7417_v6  ;;  %v12751_v6 = vld [vmem:[#allocation107_spill] sm:$0xff] }
 0x8b4   : > { %7484 = vmatprep.subr.bf16.mxu0 %v12737_v24  ;;  %v12741_v24 = vld [vmem:[#allocation97_spill] sm:$0xff] }
 0x8b6   : > { %6572 = vmatmul.mubr.msk.f32.vlgmr.msra.gmra.mrb[10].mxu0 %vm2587_vm2, %v6564_v17  ;;  %v6581_v17 = vld [vmem:[%s11769_s4 + $0x88] sm:$0xff] }
 0x8b7   : > { %7486 = vmatpush1.bf16.msra.mxu0 %v12738_v27  ;;  %2921 = vmatprep.mubr.f32.mxu0 %v12340_v40  ;;  %v12742_v27 = vld [vmem:[#allocation98_spill] sm:$0xff] }
 0x8b8   : > { %7488 = vmatprep.subr.bf16.mxu0 %v12739_v35 }
 0x8ba   : > { %6573 = vmatmul.mubr.msk.f32.gmra.mrb[12].mxu0 %vm2587_vm2, %v6565_v34  ;;  %v6582_v34 = vld [vmem:[%s11769_s4 + $0x90] sm:$0xff] }
 0x8bb   : > { %2927 = vmatprep.mubr.f32.mxu0 %v12340_v40 }
 0x8be   : > { %6574 = vmatmul.mubr.msk.f32.gmra.mrb[14].mxu0 %vm2587_vm2, %v6566_v43  ;;  %v12743_v43 = vld [vmem:[#allocation99_spill] sm:$0xff] }
 0x8bf   : > { %2933 = vmatprep.mubr.f32.mxu0 %v12340_v40 }
 0x8c2   : > { %6575 = vmatmul.mubr.msk.f32.gmra.mrb[16].mxu0 %vm2587_vm2, %v6567_v47  ;;  %v12744_v47 = vld [vmem:[#allocation100_spill] sm:$0xff] }
 0x8c3   : > { %2939 = vmatprep.mubr.f32.mxu0 %v12340_v40 }
 0x8c6   : > { %6576 = vmatmul.mubr.msk.f32.gmra.mrb[18].mxu0 %vm2587_vm2, %v6568_v50  ;;  %v6583_v50 = vld [vmem:[%s11769_s4 + $0x98] sm:$0xff] }
 0x8c7   : > { %2945 = vmatprep.mubr.f32.mxu0 %v12340_v40 }
 0x8ca   : > { %6577 = vmatmul.mubr.msk.f32.gmra.mrb[20].mxu0 %vm2587_vm2, %v6569_v56  ;;  %v12745_v56 = vld [vmem:[#allocation101_spill] sm:$0xff] }
 0x8cb   : > { %v10536_v11 = vpop.f32.mrb[32].mxu1  ;;  %2951 = vmatprep.mubr.f32.mxu0 %v12340_v40 }
 0x8cc   : > { %v10542_v5 = vpop.f32.mrb[33].mxu1 }
 0x8ce   : > { %6578 = vmatmul.mubr.msk.f32.gmra.mrb[22].mxu0 %vm2587_vm2, %v6570_v59  ;;  %v12746_v59 = vld [vmem:[#allocation102_spill] sm:$0xff] }
 0x8cf   : > { %v10545_v39 = vpop.f32.mrb[34].mxu1  ;;  %2957 = vmatprep.mubr.f32.mxu0 %v12340_v40 }
 0x8d0   : > { %v10553_v0 = vpop.f32.mrb[35].mxu1 }
 0x8d2   : > { %6579 = vmatmul.mubr.msk.f32.gmra.mrb[24].mxu0 %vm2587_vm2, %v6571_v58  ;;  %v6584_v58 = vld [vmem:[%s11769_s4 + $0xa0] sm:$0xff] }
 0x8d3   : > { %3154 = vmatprep.mubr.f32.mxu0 %v12340_v40 }
 0x8d6   : > { %6588 = vmatmul.mubr.msk.f32.vlgmr.msra.gmra.mrb[10].mxu0 %vm2587_vm2, %v6580_v9  ;;  %v12747_v9 = vld [vmem:[#allocation103_spill] sm:$0xff] }
 0x8d7   : > { %7490 = vmatpush1.bf16.msra.mxu0 %v12740_v16  ;;  %3160 = vmatprep.mubr.f32.mxu0 %v12340_v40 }
 0x8d8   : > { %7492 = vmatprep.subr.bf16.mxu0 %v12741_v24 }
 0x8da   : > { %6589 = vmatmul.mubr.msk.f32.gmra.mrb[12].mxu0 %vm2587_vm2, %v6581_v17  ;;  %v12748_v17 = vld [vmem:[#allocation104_spill] sm:$0xff] }
 0x8db   : > { %7494 = vmatpush1.bf16.msra.mxu0 %v12742_v27  ;;  %3166 = vmatprep.mubr.f32.mxu0 %v12340_v40 }
 0x8dc   : > { %7496 = vmatprep.subr.bf16.mxu0 %v12743_v43 }
 0x8de   : > { %6590 = vmatmul.mubr.msk.f32.gmra.mrb[14].mxu0 %vm2587_vm2, %v6582_v34  ;;  %v6585_v34 = vld [vmem:[%s11769_s4 + $0xa8] sm:$0xff] }
 0x8df   : > { %7498 = vmatpush1.bf16.msra.mxu0 %v12744_v47  ;;  %3172 = vmatprep.mubr.f32.mxu0 %v12340_v40 }
 0x8e0   : > { %7500 = vmatprep.subr.bf16.mxu0 %v12745_v56 }
 0x8e2   : > { %6591 = vmatmul.mubr.msk.f32.gmra.mrb[16].mxu0 %vm2587_vm2, %v6583_v50  ;;  %v12749_v50 = vld [vmem:[#allocation105_spill] sm:$0xff] }
 0x8e3   : > { %7502 = vmatpush1.bf16.msra.mxu0 %v12746_v59  ;;  %3178 = vmatprep.mubr.f32.mxu0 %v12340_v40 }
 0x8e4   : > { %7504 = vmatprep.subr.bf16.mxu0 %v12747_v9 }
 0x8e6   : > { %6592 = vmatmul.mubr.msk.f32.gmra.mrb[18].mxu0 %vm2587_vm2, %v6584_v58  ;;  %v6586_v58 = vld [vmem:[%s11769_s4 + $0xb0] sm:$0xff] }
 0x8e7   : > { %7506 = vmatpush1.bf16.msra.mxu0 %v12748_v17  ;;  %3184 = vmatprep.mubr.f32.mxu0 %v12340_v40 }
 0x8e8   : > { %7508 = vmatprep.subr.bf16.mxu0 %v12749_v50 }
 0x8ea   : > { %6593 = vmatmul.mubr.msk.f32.gmra.mrb[20].mxu0 %vm2587_vm2, %v6585_v34  ;;  %v6587_v34 = vld [vmem:[%s11769_s4 + $0xb8] sm:$0xff] }
 0x8eb   : > { %7510 = vmatpush1.bf16.msra.mxu0 %v12750_v63  ;;  %3190 = vmatprep.mubr.f32.mxu0 %v12340_v40 }
 0x8ec   : > { %7512 = vmatprep.subr.bf16.mxu0 %v12751_v6 }
 0x8ee   : > { %6594 = vmatmul.mubr.msk.f32.gmra.mrb[22].mxu0 %vm2587_vm2, %v6586_v58  ;;  %v12757_v58 = vld [vmem:[#allocation113_spill] sm:$0xff] }
 0x8ef   : > { %7514 = vmatpush1.bf16.msra.mxu0 %v12752_v51  ;;  %3196 = vmatprep.mubr.f32.mxu0 %v12340_v40 }
 0x8f0   : > { %7516 = vmatprep.subr.bf16.mxu0 %v12753_v57 }
 0x8f2   : > { %6595 = vmatmul.mubr.msk.f32.gmra.mrb[24].mxu0 %vm2587_vm2, %v6587_v34  ;;  %v12763_v34 = vld [vmem:[#allocation119_spill] sm:$0xff] }
 0x8f3   : > { %7518 = vmatpush1.bf16.msra.mxu0 %v12754_v31  ;;  %3283 = vmatprep.mubr.f32.mxu0 %v10152_v55 }
 0x8f4   : > { %7520 = vmatprep.subr.bf16.mxu0 %v12755_v37 }
 0x8f7   : > { %7522 = vmatpush1.bf16.msra.mxu0 %v12756_v13 }
 0x8f8   : > { %7524 = vmatprep.subr.bf16.mxu0 %v12757_v58 }
 0x8fb   : > { %7526 = vmatpush1.bf16.msra.mxu0 %v12758_v19 }
 0x8fc   : > { %7528 = vmatprep.subr.bf16.mxu0 %v12759_v53 }
 0x8ff   : > { %7530 = vmatpush1.bf16.msra.mxu0 %v12760_v23 }
 0x900   : > { %7532 = vmatprep.subr.bf16.mxu0 %v12761_v30 }
 0x903   : > { %7534 = vmatpush1.bf16.msra.mxu0 %v12762_v18 }
 0x904   : > { %7536 = vmatprep.subr.bf16.mxu0 %v12763_v34 }
 0x907   : > { %7538 = vmatpush1.bf16.msra.mxu0 %v12764_v41 }
 0x908   : > { %7540 = vmatprep.subr.bf16.mxu0 %v12765_v12 }
 0x90b   : > { %7542 = vmatpush1.bf16.msra.mxu0 %v12766_v54 }
 0x90c   : > { %7544 = vmatprep.subr.bf16.mxu0 %v12767_v4 }
 0x90f   : > { %7546 = vmatpush1.bf16.msra.mxu0 %v12768_v44  ;;  %v12772_v44 = vpack.c.bf16 %v10448_v8, %v10442_v3  ;;  %v6612_v3 = vld [vmem:[%s11769_s4 + $0x100] sm:$0xff]  ;;  %v6613_v8 = vld [vmem:[%s11769_s4 + $0x108] sm:$0xff] }
 0x910   : > { %7548 = vmatprep.subr.bf16.mxu0 %v12769_v60  ;;  %v12771_v60 = vpack.c.bf16 %v10452_v14, %v10444_v7  ;;  %v12774_v7 = vpack.c.bf16 %v10480_v26, %v10476_v20  ;;  %v12775_v14 = vpack.c.bf16 %v10496_v52, %v10490_v45  ;;  %v6615_v20 = vld [vmem:[%s11769_s4 + $0x118] sm:$0xff]  ;;  %v6616_v26 = vld [vmem:[%s11769_s4 + $0x120] sm:$0xff]  ;;  %v6618_v45 = vld [vmem:[%s11769_s4 + $0x130] sm:$0xff] }
 0x911   : > { %v6619_v52 = vld [vmem:[%s11769_s4 + $0x138] sm:$0xff] }
 0x913   : > { %7550 = vmatpush1.bf16.msra.mxu0 %v12770_v49  ;;  %v6596_v49 = vld [vmem:[%s11769_s4 + $0xc0] sm:$0xff] }
 0x916   : > { %3284 = vmatmul.mubr.f32.vlgmr.msra.gmra.mrb[30].mxu0 %v10154_v62 }
 0x917   : > { %3289 = vmatprep.mubr.f32.mxu0 %v10158_v33 }
 0x91a   : > { %3290 = vmatmul.mubr.f32.gmra.mrb[32].mxu0 %v10161_v28 }
 0x91b   : > { %3393 = vmatprep.mubr.f32.mxu0 %v12340_v40 }
 0x9e9   : > { %v3285_v21 = vpop.f32.mrb[30].mxu0 }
 0x9ea   : > { %v3287_v12 = vpop.f32.mrb[31].mxu0 }
 0x9ed   : > { %v3291_v41 = vpop.f32.mrb[32].mxu0 }
 0x9ee   : > { %v7553_v54 = vpack.c.bf16 %v3291_v41, %v3285_v21  ;;  %v3293_v34 = vpop.f32.mrb[33].mxu0  ;;  %v6598_v41 = vld [vmem:[%s11769_s4 + $0xd0] sm:$0xff]  ;;  %v6599_v21 = vld [vmem:[%s11769_s4 + $0xd8] sm:$0xff] }
 0x9ef   : > { %v7551_v4 = vpack.c.bf16 %v3293_v34, %v3287_v12  ;;  %v12773_v12 = vpack.c.bf16 %v10484_v32, %v10478_v25  ;;  %v6614_v25 = vld [vmem:[%s11769_s4 + $0x110] sm:$0xff]  ;;  %v6617_v32 = vld [vmem:[%s11769_s4 + $0x128] sm:$0xff]  ;;  %v6628_v34 = vld [vmem:[%s11769_s4 + $0x140] sm:$0xff] }
 0x9f1   : > { %7552 = vmatprep.subr.bf16.mxu0 %v7551_v4  ;;  %v6603_v4 = vld [vmem:[%s11769_s4 + $0xf8] sm:$0xff] }
 0x9f2   : > { %7554 = vmatpush1.bf16.msra.mxu0 %v7553_v54  ;;  %v6597_v54 = vld [vmem:[%s11769_s4 + $0xc8] sm:$0xff] }
 0x9f3   : > { %7620 = vmatprep.subr.bf16.mxu0 %v12771_v60  ;;  %v6602_v60 = vld [vmem:[%s11769_s4 + $0xf0] sm:$0xff] }
 0x9f5   : > { %6604 = vmatmul.mubr.msk.f32.vlgmr.msra.gmra.mrb[10].mxu0 %vm2587_vm2, %v6596_v49  ;;  %v6601_v49 = vld [vmem:[%s11769_s4 + $0xe8] sm:$0xff] }
 0x9f6   : > { %7622 = vmatpush1.bf16.msra.mxu0 %v12772_v44  ;;  %3399 = vmatprep.mubr.f32.mxu0 %v12340_v40  ;;  %v6600_v44 = vld [vmem:[%s11769_s4 + $0xe0] sm:$0xff] }
 0x9f7   : > { %7688 = vmatprep.subr.bf16.mxu0 %v12773_v12  ;;  %v6629_v12 = vld [vmem:[%s11769_s4 + $0x148] sm:$0xff] }
 0x9f9   : > { %6605 = vmatmul.mubr.msk.f32.gmra.mrb[12].mxu0 %vm2587_vm2, %v6597_v54  ;;  %v12776_v54 = vpack.c.bf16 %v10492_v46, %v10488_v38  ;;  %v6631_v38 = vld [vmem:[%s11769_s4 + $0x158] sm:$0xff]  ;;  %v6632_v46 = vld [vmem:[%s11769_s4 + $0x160] sm:$0xff] }
 0x9fa   : > { %3405 = vmatprep.mubr.f32.mxu0 %v12340_v40 }
 0x9fd   : > { %6606 = vmatmul.mubr.msk.f32.gmra.mrb[14].mxu0 %vm2587_vm2, %v6598_v41  ;;  %v12777_v41 = vld [vmem:[#allocation223_spill] sm:$0xff] }
 0x9fe   : > { %3411 = vmatprep.mubr.f32.mxu0 %v12340_v40 }
 0xa01   : > { %6607 = vmatmul.mubr.msk.f32.gmra.mrb[16].mxu0 %vm2587_vm2, %v6599_v21  ;;  %v6630_v21 = vld [vmem:[%s11769_s4 + $0x150] sm:$0xff] }
 0xa02   : > { %3417 = vmatprep.mubr.f32.mxu0 %v12340_v40 }
 0xa05   : > { %6608 = vmatmul.mubr.msk.f32.gmra.mrb[18].mxu0 %vm2587_vm2, %v6600_v44  ;;  %v6633_v44 = vld [vmem:[%s11769_s4 + $0x168] sm:$0xff] }
 0xa06   : > { %3423 = vmatprep.mubr.f32.mxu0 %v12340_v40 }
 0xa09   : > { %6609 = vmatmul.mubr.msk.f32.gmra.mrb[20].mxu0 %vm2587_vm2, %v6601_v49  ;;  %v6634_v49 = vld [vmem:[%s11769_s4 + $0x170] sm:$0xff] }
 0xa0a   : > { %3429 = vmatprep.mubr.f32.mxu0 %v12340_v40 }
 0xa0d   : > { %6610 = vmatmul.mubr.msk.f32.gmra.mrb[22].mxu0 %vm2587_vm2, %v6602_v60  ;;  %v6635_v60 = vld [vmem:[%s11769_s4 + $0x178] sm:$0xff] }
 0xa0e   : > { %3435 = vmatprep.mubr.f32.mxu0 %v12340_v40 }
 0xa11   : > { %6611 = vmatmul.mubr.msk.f32.gmra.mrb[24].mxu0 %vm2587_vm2, %v6603_v4  ;;  %v6644_v4 = vld [vmem:[%s11769_s4 + $0x180] sm:$0xff] }
 0xa12   : > { %3632 = vmatprep.mubr.f32.mxu0 %v12340_v40 }
 0xa15   : > { %6620 = vmatmul.mubr.msk.f32.vlgmr.msra.gmra.mrb[10].mxu0 %vm2587_vm2, %v6612_v3  ;;  %v12778_v3 = vld [vmem:[#allocation224_spill] sm:$0xff] }
 0xa16   : > { %7690 = vmatpush1.bf16.msra.mxu0 %v12774_v7  ;;  %3638 = vmatprep.mubr.f32.mxu0 %v12340_v40  ;;  %v6645_v7 = vld [vmem:[%s11769_s4 + $0x188] sm:$0xff] }
 0xa17   : > { %7756 = vmatprep.subr.bf16.mxu0 %v12775_v14  ;;  %v12780_v14 = vld [vmem:[#allocation226_spill] sm:$0xff] }
 0xa19   : > { %6621 = vmatmul.mubr.msk.f32.gmra.mrb[12].mxu0 %vm2587_vm2, %v6613_v8  ;;  %v12779_v8 = vld [vmem:[#allocation225_spill] sm:$0xff] }
 0xa1a   : > { %3644 = vmatprep.mubr.f32.mxu0 %v12340_v40 }
 0xa1d   : > { %6622 = vmatmul.mubr.msk.f32.gmra.mrb[14].mxu0 %vm2587_vm2, %v6614_v25  ;;  %v6646_v25 = vld [vmem:[%s11769_s4 + $0x190] sm:$0xff] }
 0xa1e   : > { %3650 = vmatprep.mubr.f32.mxu0 %v12340_v40 }
 0xa21   : > { %6623 = vmatmul.mubr.msk.f32.gmra.mrb[16].mxu0 %vm2587_vm2, %v6615_v20  ;;  %v12781_v20 = vld [vmem:[#allocation227_spill] sm:$0xff] }
 0xa22   : > { %3656 = vmatprep.mubr.f32.mxu0 %v12340_v40 }
 0xa25   : > { %6624 = vmatmul.mubr.msk.f32.gmra.mrb[18].mxu0 %vm2587_vm2, %v6616_v26  ;;  %v12782_v26 = vld [vmem:[#allocation228_spill] sm:$0xff] }
 0xa26   : > { %3662 = vmatprep.mubr.f32.mxu0 %v12340_v40 }
 0xa29   : > { %6625 = vmatmul.mubr.msk.f32.gmra.mrb[20].mxu0 %vm2587_vm2, %v6617_v32  ;;  %v6647_v32 = vld [vmem:[%s11769_s4 + $0x198] sm:$0xff] }
 0xa2a   : > { %3668 = vmatprep.mubr.f32.mxu0 %v12340_v40 }
 0xa2d   : > { %6626 = vmatmul.mubr.msk.f32.gmra.mrb[22].mxu0 %vm2587_vm2, %v6618_v45  ;;  %v12783_v45 = vld [vmem:[#allocation229_spill] sm:$0xff] }
 0xa2e   : > { %3674 = vmatprep.mubr.f32.mxu0 %v12340_v40 }
 0xa31   : > { %6627 = vmatmul.mubr.msk.f32.gmra.mrb[24].mxu0 %vm2587_vm2, %v6619_v52  ;;  %v12784_v52 = vld [vmem:[#allocation230_spill] sm:$0xff] }
 0xa32   : > { %3871 = vmatprep.mubr.f32.mxu0 %v12340_v40 }
 0xa35   : > { %6636 = vmatmul.mubr.msk.f32.vlgmr.msra.gmra.mrb[10].mxu0 %vm2587_vm2, %v6628_v34  ;;  %v6648_v34 = vld [vmem:[%s11769_s4 + $0x1a0] sm:$0xff] }
 0xa36   : > { %7758 = vmatpush1.bf16.msra.mxu0 %v12776_v54  ;;  %3877 = vmatprep.mubr.f32.mxu0 %v12340_v40  ;;  %v12785_v54 = vld [vmem:[#allocation231_spill] sm:$0xff] }
 0xa37   : > { %7760 = vmatprep.subr.bf16.mxu0 %v12777_v41 }
 0xa39   : > { %6637 = vmatmul.mubr.msk.f32.gmra.mrb[12].mxu0 %vm2587_vm2, %v6629_v12  ;;  %v12786_v12 = vld [vmem:[#allocation232_spill] sm:$0xff] }
 0xa3a   : > { %3883 = vmatprep.mubr.f32.mxu0 %v12340_v40 }
 0xa3d   : > { %6638 = vmatmul.mubr.msk.f32.gmra.mrb[14].mxu0 %vm2587_vm2, %v6630_v21  ;;  %v6649_v21 = vld [vmem:[%s11769_s4 + $0x1a8] sm:$0xff] }
 0xa3e   : > { %3889 = vmatprep.mubr.f32.mxu0 %v12340_v40 }
 0xa41   : > { %6639 = vmatmul.mubr.msk.f32.gmra.mrb[16].mxu0 %vm2587_vm2, %v6631_v38  ;;  %v12787_v38 = vld [vmem:[#allocation233_spill] sm:$0xff] }
 0xa42   : > { %3895 = vmatprep.mubr.f32.mxu0 %v12340_v40 }
 0xa45   : > { %6640 = vmatmul.mubr.msk.f32.gmra.mrb[18].mxu0 %vm2587_vm2, %v6632_v46  ;;  %v12788_v46 = vld [vmem:[#allocation234_spill] sm:$0xff] }
 0xa46   : > { %3901 = vmatprep.mubr.f32.mxu0 %v12340_v40 }
 0xa49   : > { %6641 = vmatmul.mubr.msk.f32.gmra.mrb[20].mxu0 %vm2587_vm2, %v6633_v44  ;;  %v6650_v44 = vld [vmem:[%s11769_s4 + $0x1b0] sm:$0xff] }
 0xa4a   : > { %3907 = vmatprep.mubr.f32.mxu0 %v12340_v40 }
 0xa4d   : > { %6642 = vmatmul.mubr.msk.f32.gmra.mrb[22].mxu0 %vm2587_vm2, %v6634_v49  ;;  %v12789_v49 = vld [vmem:[#allocation235_spill] sm:$0xff] }
 0xa4e   : > { %3913 = vmatprep.mubr.f32.mxu0 %v12340_v40 }
 0xa51   : > { %6643 = vmatmul.mubr.msk.f32.gmra.mrb[24].mxu0 %vm2587_vm2, %v6635_v60  ;;  %v12790_v60 = vld [vmem:[#allocation236_spill] sm:$0xff] }
 0xa52   : > { %4110 = vmatprep.mubr.f32.mxu0 %v12340_v40 }
 0xa55   : > { %6652 = vmatmul.mubr.msk.f32.vlgmr.msra.gmra.mrb[10].mxu0 %vm2587_vm2, %v6644_v4  ;;  %v6651_v4 = vld [vmem:[%s11769_s4 + $0x1b8] sm:$0xff] }
 0xa56   : > { %7762 = vmatpush1.bf16.msra.mxu0 %v12778_v3  ;;  %4116 = vmatprep.mubr.f32.mxu0 %v12340_v40 }
 0xa57   : > { %7764 = vmatprep.subr.bf16.mxu0 %v12779_v8 }
 0xa59   : > { %6653 = vmatmul.mubr.msk.f32.gmra.mrb[12].mxu0 %vm2587_vm2, %v6645_v7  ;;  %v12791_v7 = vld [vmem:[#allocation237_spill] sm:$0xff] }
 0xa5a   : > { %7766 = vmatpush1.bf16.msra.mxu0 %v12780_v14  ;;  %4122 = vmatprep.mubr.f32.mxu0 %v12340_v40 }
 0xa5b   : > { %7768 = vmatprep.subr.bf16.mxu0 %v12781_v20 }
 0xa5d   : > { %6654 = vmatmul.mubr.msk.f32.gmra.mrb[14].mxu0 %vm2587_vm2, %v6646_v25  ;;  %v12792_v25 = vld [vmem:[#allocation238_spill] sm:$0xff] }
 0xa5e   : > { %7770 = vmatpush1.bf16.msra.mxu0 %v12782_v26  ;;  %4128 = vmatprep.mubr.f32.mxu0 %v12340_v40 }
 0xa5f   : > { %7772 = vmatprep.subr.bf16.mxu0 %v12783_v45 }
 0xa61   : > { %6655 = vmatmul.mubr.msk.f32.gmra.mrb[16].mxu0 %vm2587_vm2, %v6647_v32  ;;  %v12793_v32 = vld [vmem:[#allocation239_spill] sm:$0xff] }
 0xa62   : > { %7774 = vmatpush1.bf16.msra.mxu0 %v12784_v52  ;;  %4134 = vmatprep.mubr.f32.mxu0 %v12340_v40 }
 0xa63   : > { %7776 = vmatprep.subr.bf16.mxu0 %v12785_v54 }
 0xa65   : > { %6656 = vmatmul.mubr.msk.f32.gmra.mrb[18].mxu0 %vm2587_vm2, %v6648_v34  ;;  %v12794_v34 = vld [vmem:[#allocation240_spill] sm:$0xff] }
 0xa66   : > { %7778 = vmatpush1.bf16.msra.mxu0 %v12786_v12  ;;  %4140 = vmatprep.mubr.f32.mxu0 %v12340_v40 }
 0xa67   : > { %7780 = vmatprep.subr.bf16.mxu0 %v12787_v38 }
 0xa69   : > { %6657 = vmatmul.mubr.msk.f32.gmra.mrb[20].mxu0 %vm2587_vm2, %v6649_v21  ;;  %v12795_v21 = vld [vmem:[#allocation241_spill] sm:$0xff] }
 0xa6a   : > { %7782 = vmatpush1.bf16.msra.mxu0 %v12788_v46  ;;  %4146 = vmatprep.mubr.f32.mxu0 %v12340_v40  ;;  %v12799_v46 = vld [vmem:[#allocation245_spill] sm:$0xff] }
 0xa6b   : > { %7784 = vmatprep.subr.bf16.mxu0 %v12789_v49  ;;  %v12798_v49 = vld [vmem:[#allocation244_spill] sm:$0xff] }
 0xa6d   : > { %6658 = vmatmul.mubr.msk.f32.gmra.mrb[22].mxu0 %vm2587_vm2, %v6650_v44  ;;  %v12796_v44 = vld [vmem:[#allocation242_spill] sm:$0xff] }
 0xa6e   : > { %7786 = vmatpush1.bf16.msra.mxu0 %v12790_v60  ;;  %4152 = vmatprep.mubr.f32.mxu0 %v12340_v40  ;;  %v12797_v60 = vld [vmem:[#allocation243_spill] sm:$0xff] }
 0xa6f   : > { %7788 = vmatprep.subr.bf16.mxu0 %v12791_v7  ;;  %v12800_v7 = vld [vmem:[#allocation246_spill] sm:$0xff] }
 0xa71   : > { %6659 = vmatmul.mubr.msk.f32.gmra.mrb[24].mxu0 %vm2587_vm2, %v6651_v4  ;;  %v12801_v4 = vld [vmem:[#allocation248_spill] sm:$0xff] }
 0xa72   : > { %7790 = vmatpush1.bf16.msra.mxu0 %v12792_v25  ;;  %4239 = vmatprep.mubr.f32.mxu0 %v10152_v55  ;;  %v12802_v55 = vld [vmem:[#allocation250_spill] sm:$0xff] }
 0xa73   : > { %7792 = vmatprep.subr.bf16.mxu0 %v12793_v32  ;;  %v12829_v32 = vld [vmem:[#allocation25_spill] sm:$0xff] }
 0xa76   : > { %7794 = vmatpush1.bf16.msra.mxu0 %v12794_v34  ;;  %v12803_v34 = vld [vmem:[#allocation251_spill] sm:$0xff] }
 0xa77   : > { %7796 = vmatprep.subr.bf16.mxu0 %v12795_v21  ;;  %v12804_v21 = vld [vmem:[#allocation252_spill] sm:$0xff] }
 0xa7a   : > { %7798 = vmatpush1.bf16.msra.mxu0 %v12796_v44  ;;  %v12805_v44 = vld [vmem:[#allocation253_spill] sm:$0xff] }
 0xa7b   : > { %7800 = vmatprep.subr.bf16.mxu0 %v12797_v60  ;;  %v12806_v60 = vld [vmem:[#allocation254_spill] sm:$0xff] }
 0xa7e   : > { %7802 = vmatpush1.bf16.msra.mxu0 %v12798_v49  ;;  %v12813_v49 = vld [vmem:[#allocation11_spill] sm:$0xff] }
 0xa7f   : > { %7804 = vmatprep.subr.bf16.mxu0 %v12799_v46 }
 0xa82   : > { %7806 = vmatpush1.bf16.msra.mxu0 %v12800_v7  ;;  %v12810_v7 = vld [vmem:[#allocation9_spill] sm:$0xff] }
 0xa83   : > { %7808 = vmatprep.subr.bf16.mxu0 %v10051_v48 }
 0xa86   : > { %7810 = vmatpush1.bf16.msra.mxu0 %v12801_v4 }
 0xa87   : > { %7812 = vmatprep.subr.bf16.mxu0 %v10057_v1 }
 0xa8a   : > { %7814 = vmatpush1.bf16.msra.mxu0 %v12802_v55  ;;  %v2446_v55 = vld [vmem:[%s11770_s5] sm:$0xff] }
 0xa8b   : > { %7816 = vmatprep.subr.bf16.mxu0 %v12803_v34  ;;  %2456 = vperm.xlu1 %8851, %v2446_v55  }
 0xa8e   : > { %7818 = vmatpush1.bf16.msra.mxu0 %v12804_v21  ;;  %v2447_v21 = vld [vmem:[%s11770_s5 + $0x8] sm:$0xff] }
 0xa8f   : > { %7820 = vmatprep.subr.bf16.mxu0 %v12805_v44  ;;  %2461 = vperm.xlu1 %8851, %v2447_v21  }
 0xa92   : > { %7822 = vmatpush1.bf16.msra.mxu0 %v12806_v60 }
 0xa95   : > { %4240 = vmatmul.mubr.f32.vlgmr.msra.gmra.mrb[34].mxu0 %v10154_v62  ;;  %v2449_v62 = vld [vmem:[%s11770_s5 + $0x18] sm:$0xff] }
 0xa96   : > { %4245 = vmatprep.mubr.f32.mxu0 %v10158_v33  ;;  %2471 = vperm.xlu1 %8851, %v2449_v62   ;;  %v2451_v33 = vld [vmem:[%s11770_s5 + $0x28] sm:$0xff]  ;;  %v6660_v62 = vld [vmem:[%s11769_s4 + $0x1c0] sm:$0xff] }
 0xa99   : > { %4246 = vmatmul.mubr.f32.gmra.mrb[36].mxu0 %v10161_v28  ;;  %v2453_v28 = vld [vmem:[%s11770_s5 + $0x38] sm:$0xff] }
 0xa9a   : > { %4349 = vmatprep.mubr.f32.mxu0 %v12340_v40  ;;  %2481 = vperm.xlu1 %8851, %v2451_v33   ;;  %v12807_v33 = vpack.c.bf16 %v10553_v0, %v10542_v5  ;;  %v6662_v5 = vld [vmem:[%s11769_s4 + $0x1d0] sm:$0xff]  ;;  %v6665_v0 = vld [vmem:[%s11769_s4 + $0x1e8] sm:$0xff] }
 0xa9e   : > { %2491 = vperm.xlu1 %8851, %v2453_v28   ;;  %v12808_v28 = vpack.c.bf16 %v10545_v39, %v10536_v11  ;;  %v6663_v11 = vld [vmem:[%s11769_s4 + $0x1d8] sm:$0xff]  ;;  %v6664_v39 = vld [vmem:[%s11769_s4 + $0x1e0] sm:$0xff] }
 0xb68   : > { %v4241_v55 = vpop.f32.mrb[34].mxu0 }
 0xb69   : > { %v4243_v60 = vpop.f32.mrb[35].mxu0 }
 0xb6c   : > { %v4247_v44 = vpop.f32.mrb[36].mxu0 }
 0xb6d   : > { %v7825_v34 = vpack.c.bf16 %v4247_v44, %v4241_v55  ;;  %v4249_v21 = vpop.f32.mrb[37].mxu0  ;;  %v6676_v44 = vld [vmem:[%s11769_s4 + $0x200] sm:$0xff]  ;;  %v6677_v55 = vld [vmem:[%s11769_s4 + $0x208] sm:$0xff] }
 0xb6e   : > { %v7823_v1 = vpack.c.bf16 %v4249_v21, %v4243_v60  ;;  %v6666_v60 = vld [vmem:[%s11769_s4 + $0x1f0] sm:$0xff] }
 0xb6f   : > { %v6678_v21 = vld [vmem:[%s11769_s4 + $0x210] sm:$0xff] }
 0xb70   : > { %7824 = vmatprep.subr.bf16.mxu0 %v7823_v1  ;;  %v6661_v1 = vld [vmem:[%s11769_s4 + $0x1c8] sm:$0xff] }
 0xb71   : > { %7826 = vmatpush1.bf16.msra.mxu0 %v7825_v34  ;;  %v6667_v34 = vld [vmem:[%s11769_s4 + $0x1f8] sm:$0xff] }
 0xb72   : > { %7892 = vmatprep.subr.bf16.mxu0 %v12807_v33  ;;  %v6680_v33 = vld [vmem:[%s11769_s4 + $0x220] sm:$0xff] }
 0xb74   : > { %6668 = vmatmul.mubr.msk.f32.vlgmr.msra.gmra.mrb[10].mxu0 %vm2587_vm2, %v6660_v62  ;;  %v6679_v62 = vld [vmem:[%s11769_s4 + $0x218] sm:$0xff] }
 0xb75   : > { %7894 = vmatpush1.bf16.msra.mxu0 %v12808_v28  ;;  %4355 = vmatprep.mubr.f32.mxu0 %v12340_v40  ;;  %v6681_v28 = vld [vmem:[%s11769_s4 + $0x228] sm:$0xff] }
 0xb78   : > { %6669 = vmatmul.mubr.msk.f32.gmra.mrb[12].mxu0 %vm2587_vm2, %v6661_v1  ;;  %v6682_v1 = vld [vmem:[%s11769_s4 + $0x230] sm:$0xff] }
 0xb79   : > { %4361 = vmatprep.mubr.f32.mxu0 %v12340_v40 }
 0xb7c   : > { %6670 = vmatmul.mubr.msk.f32.gmra.mrb[14].mxu0 %vm2587_vm2, %v6662_v5  ;;  %v6683_v5 = vld [vmem:[%s11769_s4 + $0x238] sm:$0xff] }
 0xb7d   : > { %4367 = vmatprep.mubr.f32.mxu0 %v12340_v40 }
 0xb80   : > { %6671 = vmatmul.mubr.msk.f32.gmra.mrb[16].mxu0 %vm2587_vm2, %v6663_v11  ;;  %v2457_v11 = vpop.permute.xlu1 %2456 }
 0xb81   : > { %4373 = vmatprep.mubr.f32.mxu0 %v12340_v40 }
 0xb84   : > { %6672 = vmatmul.mubr.msk.f32.gmra.mrb[18].mxu0 %vm2587_vm2, %v6664_v39 }
 0xb85   : > { %4379 = vmatprep.mubr.f32.mxu0 %v12340_v40 }
 0xb88   : > { %6673 = vmatmul.mubr.msk.f32.gmra.mrb[20].mxu0 %vm2587_vm2, %v6665_v0 }
 0xb89   : > { %4385 = vmatprep.mubr.f32.mxu0 %v12340_v40 }
 0xb8c   : > { %6674 = vmatmul.mubr.msk.f32.gmra.mrb[22].mxu0 %vm2587_vm2, %v6666_v60 }
 0xb8d   : > { %4391 = vmatprep.mubr.f32.mxu0 %v12340_v40 }
 0xb90   : > { %6675 = vmatmul.mubr.msk.f32.gmra.mrb[24].mxu0 %vm2587_vm2, %v6667_v34 }
 0xb91   : > { %4588 = vmatprep.mubr.f32.mxu0 %v12340_v40 }
 0xb94   : > { %6684 = vmatmul.mubr.msk.f32.vlgmr.msra.gmra.mrb[10].mxu0 %vm2587_vm2, %v6676_v44  ;;  %v2462_v44 = vpop.permute.xlu1 %2461 }
 0xb95   : > { %4594 = vmatprep.mubr.f32.mxu0 %v12340_v40 }
 0xb98   : > { %6685 = vmatmul.mubr.msk.f32.gmra.mrb[12].mxu0 %vm2587_vm2, %v6677_v55 }
 0xb99   : > { %4600 = vmatprep.mubr.f32.mxu0 %v12340_v40 }
 0xb9c   : > { %6686 = vmatmul.mubr.msk.f32.gmra.mrb[14].mxu0 %vm2587_vm2, %v6678_v21 }
 0xb9d   : > { %4606 = vmatprep.mubr.f32.mxu0 %v12340_v40 }
 0xba0   : > { %6687 = vmatmul.mubr.msk.f32.gmra.mrb[16].mxu0 %vm2587_vm2, %v6679_v62 }
 0xba1   : > { %4612 = vmatprep.mubr.f32.mxu0 %v12340_v40 }
 0xba4   : > { %6688 = vmatmul.mubr.msk.f32.gmra.mrb[18].mxu0 %vm2587_vm2, %v6680_v33 }
 0xba5   : > { %4618 = vmatprep.mubr.f32.mxu0 %v12340_v40 }
 0xba8   : > { %6689 = vmatmul.mubr.msk.f32.gmra.mrb[20].mxu0 %vm2587_vm2, %v6681_v28 }
 0xba9   : > { %4624 = vmatprep.mubr.f32.mxu0 %v12340_v40 }
 0xbac   : > { %6690 = vmatmul.mubr.msk.f32.gmra.mrb[22].mxu0 %vm2587_vm2, %v6682_v1 }
 0xbad   : > { %4630 = vmatprep.mubr.f32.mxu0 %v12340_v40 }
 0xbb0   : > { %6691 = vmatmul.mubr.msk.f32.gmra.mrb[24].mxu0 %vm2587_vm2, %v6683_v5  ;;  %v2467_v5 = vpop.permute.xlu0 %2466 }
 0xbb1   : > { %4858 = vmatprep.mubr.f32.mxu0 %v12340_v40 }
 0xc67   : > { %v4590_v39 = vpop.f32.mrb[10].mxu0 }
 0xc68   : > { %v8619_v0 = vadd.f32 %v4590_v39, %v2457_v11  ;;  %v4592_v60 = vpop.f32.mrb[11].mxu0 }
 0xc69   : > { %v8620_v34 = vadd.f32 %v4592_v60, %v2457_v11 }
 0xc6a   : > { %v10951_v62 = vmax.f32 %v8619_v0, 0.0 }
 0xc6b   : > { %v10949_v55 = vmax.f32 %v8620_v34, 0.0  ;;  %v4596_v21 = vpop.f32.mrb[12].mxu0 }
 0xc6c   : > { %v8621_v33 = vadd.f32 %v4596_v21, %v2462_v44  ;;  %v4598_v28 = vpop.f32.mrb[13].mxu0 }
 0xc6d   : > { %v8622_v1 = vadd.f32 %v4598_v28, %v2462_v44  ;;  %4740 = vmatprep.mubr.f32.mxu1 %v10949_v55  ;;  %v2472_v44 = vpop.permute.xlu1 %2471 }
 0xc6e   : > { %4741 = vmatmul.mubr.f32.vlgmr.msra.gmra.mrb[36].mxu1 %v10951_v62  ;;  %v10958_v11 = vmax.f32 %v8621_v33, 0.0 }
 0xc6f   : > { %v10955_v4 = vmax.f32 %v8622_v1, 0.0  ;;  %8058 = vmatpush1.bf16.msra.mxu1 %v9191_v61  ;;  %v4602_v39 = vpop.f32.mrb[14].mxu0 }
 0xc70   : > { %v8623_v60 = vadd.f32 %v4602_v39, %v2467_v5  ;;  %v4604_v34 = vpop.f32.mrb[15].mxu0  ;;  %8060 = vmatprep.subr.bf16.mxu1 %v9195_v2  ;;  %v2477_v2 = vpop.permute.xlu0 %2476 }
 0xc71   : > { %v8624_v0 = vadd.f32 %v4604_v34, %v2467_v5  ;;  %4746 = vmatprep.mubr.f32.mxu1 %v10955_v4 }
 0xc72   : > { %4747 = vmatmul.mubr.f32.gmra.mrb[38].mxu1 %v10958_v11  ;;  %v10966_v1 = vmax.f32 %v8623_v60, 0.0 }
 0xc73   : > { %v10963_v21 = vmax.f32 %v8624_v0, 0.0  ;;  %8062 = vmatpush1.bf16.msra.mxu1 %v9197_v10  ;;  %v4608_v28 = vpop.f32.mrb[16].mxu0 }
 0xc74   : > { %v8625_v61 = vadd.f32 %v4608_v28, %v2472_v44  ;;  %v4610_v33 = vpop.f32.mrb[17].mxu0  ;;  %8064 = vmatprep.subr.bf16.mxu1 %v9201_v15  ;;  %v2482_v15 = vpop.permute.xlu1 %2481 }
 0xc75   : > { %v8626_v39 = vadd.f32 %v4610_v33, %v2472_v44  ;;  %4752 = vmatprep.mubr.f32.mxu1 %v10963_v21 }
 0xc76   : > { %4753 = vmatmul.mubr.f32.gmra.mrb[40].mxu1 %v10966_v1  ;;  %v10974_v0 = vmax.f32 %v8625_v61, 0.0 }
 0xc77   : > { %v10971_v5 = vmax.f32 %v8626_v39, 0.0  ;;  %8066 = vmatpush1.bf16.msra.mxu1 %v9203_v22  ;;  %v4614_v34 = vpop.f32.mrb[18].mxu0 }
 0xc78   : > { %v8627_v10 = vadd.f32 %v4614_v34, %v2477_v2  ;;  %v4616_v60 = vpop.f32.mrb[19].mxu0  ;;  %8068 = vmatprep.subr.bf16.mxu1 %v9207_v29  ;;  %v2487_v29 = vpop.permute.xlu0 %2486 }
 0xc79   : > { %v8628_v28 = vadd.f32 %v4616_v60, %v2477_v2  ;;  %4758 = vmatprep.mubr.f32.mxu1 %v10971_v5  ;;  %v12809_v60 = vld [vmem:[#allocation8_spill] sm:$0xff] }
 0xc7a   : > { %4759 = vmatmul.mubr.f32.gmra.mrb[42].mxu1 %v10974_v0  ;;  %v10982_v39 = vmax.f32 %v8627_v10, 0.0 }
 0xc7b   : > { %v10979_v44 = vmax.f32 %v8628_v28, 0.0  ;;  %8070 = vmatpush1.bf16.msra.mxu1 %v9209_v36  ;;  %v4620_v33 = vpop.f32.mrb[20].mxu0 }
 0xc7c   : > { %v8629_v22 = vadd.f32 %v4620_v33, %v2482_v15  ;;  %v4622_v61 = vpop.f32.mrb[21].mxu0  ;;  %8072 = vmatprep.subr.bf16.mxu1 %v9213_v42  ;;  %v2492_v42 = vpop.permute.xlu1 %2491 }
 0xc7d   : > { %v8630_v34 = vadd.f32 %v4622_v61, %v2482_v15  ;;  %4764 = vmatprep.mubr.f32.mxu1 %v10979_v44  ;;  %v12811_v61 = vld [vmem:[#allocation10_spill] sm:$0xff] }
 0xc7e   : > { %4765 = vmatmul.mubr.f32.gmra.mrb[44].mxu1 %v10982_v39  ;;  %v10990_v48 = vmax.f32 %v8629_v22, 0.0 }
 0xc7f   : > { %v10987_v2 = vmax.f32 %v8630_v34, 0.0  ;;  %8074 = vmatpush1.bf16.msra.mxu1 %v12809_v60  ;;  %v4626_v28 = vpop.f32.mrb[22].mxu0 }
 0xc80   : > { %v8631_v36 = vadd.f32 %v4626_v28, %v2487_v29  ;;  %v4628_v10 = vpop.f32.mrb[23].mxu0  ;;  %8076 = vmatprep.subr.bf16.mxu1 %v12810_v7 }
 0xc81   : > { %v8632_v33 = vadd.f32 %v4628_v10, %v2487_v29  ;;  %4770 = vmatprep.mubr.f32.mxu1 %v10987_v2  ;;  %v12815_v29 = vld [vmem:[#allocation12_spill] sm:$0xff] }
 0xc82   : > { %4771 = vmatmul.mubr.f32.gmra.mrb[46].mxu1 %v10990_v48  ;;  %v10998_v46 = vmax.f32 %v8631_v36, 0.0  ;;  %v12818_v36 = vld [vmem:[#allocation14_spill] sm:$0xff] }
 0xc83   : > { %v10995_v15 = vmax.f32 %v8632_v33, 0.0  ;;  %8078 = vmatpush1.bf16.msra.mxu1 %v12811_v61  ;;  %v4632_v34 = vpop.f32.mrb[24].mxu0  ;;  %v12817_v33 = vld [vmem:[#allocation13_spill] sm:$0xff] }
 0xc84   : > { %12812 = vst [vmem:[#allocation95_spill] sm:$0xff] %v10998_v46  ;;  %v8633_v60 = vadd.f32 %v4632_v34, %v2492_v42  ;;  %v4634_v22 = vpop.f32.mrb[25].mxu0  ;;  %8080 = vmatprep.subr.bf16.mxu1 %v12813_v49  ;;  %v12819_v49 = vld [vmem:[#allocation15_spill] sm:$0xff]  ;;  %v12821_v61 = vld [vmem:[#allocation17_spill] sm:$0xff]  ;;  %v12822_v34 = vld [vmem:[#allocation18_spill] sm:$0xff] }
 0xc85   : > { %v8634_v28 = vadd.f32 %v4634_v22, %v2492_v42  ;;  %4776 = vmatprep.mubr.f32.mxu1 %v10995_v15  ;;  %v12820_v42 = vld [vmem:[#allocation16_spill] sm:$0xff] }
 0xc86   : > { %4777 = vmatmul.mubr.f32.gmra.mrb[48].mxu1 %v10998_v46  ;;  %v11006_v10 = vmax.f32 %v8633_v60, 0.0  ;;  %v12823_v60 = vld [vmem:[#allocation19_spill] sm:$0xff]  ;;  %v12824_v22 = vld [vmem:[#allocation20_spill] sm:$0xff] }
 0xc87   : > { %v11003_v7 = vmax.f32 %v8634_v28, 0.0  ;;  %8082 = vmatpush1.bf16.msra.mxu1 %v12815_v29  ;;  %v12825_v28 = vld [vmem:[#allocation21_spill] sm:$0xff]  ;;  %v12826_v29 = vld [vmem:[#allocation22_spill] sm:$0xff] }
 0xc88   : > { %12816 = vst [vmem:[#allocation97_spill] sm:$0xff] %v11006_v10  ;;  %8084 = vmatprep.subr.bf16.mxu1 %v12817_v33  ;;  %v12827_v33 = vld [vmem:[#allocation23_spill] sm:$0xff] }
 0xc89   : > { %12814 = vst [vmem:[#allocation96_spill] sm:$0xff] %v11003_v7  ;;  %4782 = vmatprep.mubr.f32.mxu1 %v11003_v7 }
 0xc8a   : > { %4783 = vmatmul.mubr.f32.gmra.mrb[50].mxu1 %v11006_v10 }
 0xc8b   : > { %8086 = vmatpush1.bf16.msra.mxu1 %v12818_v36  ;;  %5122 = vmatprep.mubr.f32.mxu1 %v10949_v55  ;;  %v12828_v36 = vld [vmem:[#allocation24_spill] sm:$0xff] }
 0xc8c   : > { %8088 = vmatprep.subr.bf16.mxu1 %v12819_v49  ;;  %v12830_v49 = vld [vmem:[#allocation26_spill] sm:$0xff] }
 0xc8f   : > { %8090 = vmatpush1.bf16.msra.mxu1 %v12820_v42  ;;  %v12831_v42 = vld [vmem:[#allocation27_spill] sm:$0xff] }
 0xc90   : > { %8092 = vmatprep.subr.bf16.mxu1 %v12821_v61  ;;  %v12832_v61 = vld [vmem:[#allocation28_spill] sm:$0xff] }
 0xc93   : > { %8094 = vmatpush1.bf16.msra.mxu1 %v12822_v34  ;;  %v12833_v34 = vld [vmem:[#allocation29_spill] sm:$0xff] }
 0xc94   : > { %8096 = vmatprep.subr.bf16.mxu1 %v12823_v60  ;;  %v12834_v60 = vld [vmem:[#allocation30_spill] sm:$0xff] }
 0xc97   : > { %8098 = vmatpush1.bf16.msra.mxu1 %v12824_v22  ;;  %v12860_v22 = vld [vmem:[#allocation176_spill] sm:$0xff] }
 0xc98   : > { %8100 = vmatprep.subr.bf16.mxu1 %v12825_v28  ;;  %v12861_v28 = vld [vmem:[#allocation177_spill] sm:$0xff] }
 0xc9b   : > { %8102 = vmatpush1.bf16.msra.mxu1 %v12826_v29  ;;  %v12862_v29 = vld [vmem:[#allocation178_spill] sm:$0xff] }
 0xc9c   : > { %8104 = vmatprep.subr.bf16.mxu1 %v12827_v33  ;;  %v12863_v33 = vld [vmem:[#allocation179_spill] sm:$0xff] }
 0xc9f   : > { %8106 = vmatpush1.bf16.msra.mxu1 %v12828_v36  ;;  %v12864_v36 = vld [vmem:[#allocation180_spill] sm:$0xff] }
 0xca0   : > { %8108 = vmatprep.subr.bf16.mxu1 %v12829_v32  ;;  %v12859_v32 = vld [vmem:[#allocation175_spill] sm:$0xff] }
 0xca3   : > { %8110 = vmatpush1.bf16.msra.mxu1 %v12830_v49  ;;  %v12865_v49 = vld [vmem:[#allocation181_spill] sm:$0xff] }
 0xca4   : > { %8112 = vmatprep.subr.bf16.mxu1 %v12831_v42  ;;  %v12866_v42 = vld [vmem:[#allocation182_spill] sm:$0xff] }
 0xca7   : > { %8114 = vmatpush1.bf16.msra.mxu1 %v12832_v61  ;;  %v12867_v61 = vld [vmem:[#allocation183_spill] sm:$0xff] }
 0xca8   : > { %8116 = vmatprep.subr.bf16.mxu1 %v12833_v34  ;;  %v12868_v34 = vld [vmem:[#allocation184_spill] sm:$0xff] }
 0xcab   : > { %8118 = vmatpush1.bf16.msra.mxu1 %v12834_v60  ;;  %v12869_v60 = vld [vmem:[#allocation185_spill] sm:$0xff] }
 0xcac   : > { %8136 = vmatprep.subr.bf16.mxu1 %v12739_v35  ;;  %v12840_v35 = vld [vmem:[#allocation124_spill] sm:$0xff] }
 0xcae   : > { %5123 = vmatmul.mubr.f32.vlgmr.msra.gmra.mrb[52].mxu1 %v10951_v62 }
 0xcaf   : > { %5128 = vmatprep.mubr.f32.mxu1 %v10955_v4  ;;  %8138 = vmatpush1.bf16.msra.mxu1 %v12740_v16  ;;  %v12848_v16 = vld [vmem:[#allocation164_spill] sm:$0xff] }
 0xcb0   : > { %8140 = vmatprep.subr.bf16.mxu1 %v12741_v24  ;;  %v12849_v24 = vld [vmem:[#allocation165_spill] sm:$0xff] }
 0xcb2   : > { %5129 = vmatmul.mubr.f32.gmra.mrb[54].mxu1 %v10958_v11 }
 0xcb3   : > { %5134 = vmatprep.mubr.f32.mxu1 %v10963_v21  ;;  %8142 = vmatpush1.bf16.msra.mxu1 %v12742_v27  ;;  %v12850_v27 = vld [vmem:[#allocation166_spill] sm:$0xff] }
 0xcb4   : > { %8144 = vmatprep.subr.bf16.mxu1 %v12743_v43  ;;  %v12851_v43 = vld [vmem:[#allocation167_spill] sm:$0xff] }
 0xcb6   : > { %5135 = vmatmul.mubr.f32.gmra.mrb[56].mxu1 %v10966_v1 }
 0xcb7   : > { %5140 = vmatprep.mubr.f32.mxu1 %v10971_v5  ;;  %8146 = vmatpush1.bf16.msra.mxu1 %v12744_v47  ;;  %v12852_v47 = vld [vmem:[#allocation168_spill] sm:$0xff] }
 0xcb8   : > { %8148 = vmatprep.subr.bf16.mxu1 %v12745_v56  ;;  %v12853_v56 = vld [vmem:[#allocation169_spill] sm:$0xff] }
 0xcba   : > { %5141 = vmatmul.mubr.f32.gmra.mrb[58].mxu1 %v10974_v0 }
 0xcbb   : > { %5146 = vmatprep.mubr.f32.mxu1 %v10979_v44  ;;  %8150 = vmatpush1.bf16.msra.mxu1 %v12746_v59  ;;  %v12854_v59 = vld [vmem:[#allocation170_spill] sm:$0xff] }
 0xcbc   : > { %8152 = vmatprep.subr.bf16.mxu1 %v12747_v9  ;;  %v12855_v9 = vld [vmem:[#allocation171_spill] sm:$0xff] }
 0xcbe   : > { %5147 = vmatmul.mubr.f32.gmra.mrb[60].mxu1 %v10982_v39 }
 0xcbf   : > { %5152 = vmatprep.mubr.f32.mxu1 %v10987_v2  ;;  %8154 = vmatpush1.bf16.msra.mxu1 %v12748_v17  ;;  %v12856_v17 = vld [vmem:[#allocation172_spill] sm:$0xff] }
 0xcc0   : > { %8156 = vmatprep.subr.bf16.mxu1 %v12749_v50  ;;  %v12857_v50 = vld [vmem:[#allocation173_spill] sm:$0xff] }
 0xcc2   : > { %5153 = vmatmul.mubr.f32.gmra.mrb[62].mxu1 %v10990_v48 }
 0xcc3   : > { %5158 = vmatprep.mubr.f32.mxu1 %v10995_v15  ;;  %8158 = vmatpush1.bf16.msra.mxu1 %v12750_v63  ;;  %v12846_v63 = vld [vmem:[#allocation162_spill] sm:$0xff] }
 0xcc4   : > { %8160 = vmatprep.subr.bf16.mxu1 %v12751_v6  ;;  %v12847_v6 = vld [vmem:[#allocation163_spill] sm:$0xff] }
 0xcc6   : > { %5159 = vmatmul.mubr.f32.gmra.mrb[64].mxu1 %v10998_v46 }
 0xcc7   : > { %5164 = vmatprep.mubr.f32.mxu1 %v11003_v7  ;;  %8162 = vmatpush1.bf16.msra.mxu1 %v12752_v51  ;;  %v12835_v51 = vld [vmem:[#allocation119_spill] sm:$0xff] }
 0xcc8   : > { %8164 = vmatprep.subr.bf16.mxu1 %v12753_v57  ;;  %v12837_v57 = vld [vmem:[#allocation121_spill] sm:$0xff] }
 0xcca   : > { %5165 = vmatmul.mubr.f32.gmra.mrb[66].mxu1 %v11006_v10 }
 0xccb   : > { %8166 = vmatpush1.bf16.msra.mxu1 %v12754_v31  ;;  %5313 = vmatprep.mubr.f32.mxu1 %v10949_v55  ;;  %v12836_v31 = vld [vmem:[#allocation120_spill] sm:$0xff] }
 0xccc   : > { %8168 = vmatprep.subr.bf16.mxu1 %v12755_v37  ;;  %v12838_v37 = vld [vmem:[#allocation122_spill] sm:$0xff] }
 0xccf   : > { %8170 = vmatpush1.bf16.msra.mxu1 %v12756_v13  ;;  %v12839_v13 = vld [vmem:[#allocation123_spill] sm:$0xff] }
 0xcd0   : > { %8172 = vmatprep.subr.bf16.mxu1 %v12757_v58  ;;  %v12858_v58 = vld [vmem:[#allocation174_spill] sm:$0xff] }
 0xcd3   : > { %8174 = vmatpush1.bf16.msra.mxu1 %v12758_v19  ;;  %v12841_v19 = vld [vmem:[#allocation125_spill] sm:$0xff] }
 0xcd4   : > { %8176 = vmatprep.subr.bf16.mxu1 %v12759_v53  ;;  %v12842_v53 = vld [vmem:[#allocation126_spill] sm:$0xff] }
 0xcd7   : > { %8178 = vmatpush1.bf16.msra.mxu1 %v12760_v23  ;;  %v12843_v23 = vld [vmem:[#allocation159_spill] sm:$0xff] }
 0xcd8   : > { %8180 = vmatprep.subr.bf16.mxu1 %v12761_v30  ;;  %v12845_v30 = vld [vmem:[#allocation161_spill] sm:$0xff] }
 0xcdb   : > { %8182 = vmatpush1.bf16.msra.mxu1 %v12762_v18  ;;  %v12844_v18 = vld [vmem:[#allocation160_spill] sm:$0xff] }
 0xcdc   : > { %8184 = vmatprep.subr.bf16.mxu1 %v12835_v51  ;;  %v12870_v51 = vld [vmem:[#allocation186_spill] sm:$0xff] }
 0xcdf   : > { %8186 = vmatpush1.bf16.msra.mxu1 %v12836_v31  ;;  %v12871_v31 = vld [vmem:[#allocation187_spill] sm:$0xff] }
 0xce0   : > { %8188 = vmatprep.subr.bf16.mxu1 %v12837_v57  ;;  %v12872_v57 = vld [vmem:[#allocation188_spill] sm:$0xff] }
 0xce3   : > { %8190 = vmatpush1.bf16.msra.mxu1 %v12838_v37  ;;  %v12873_v37 = vld [vmem:[#allocation189_spill] sm:$0xff] }
 0xce4   : > { %8192 = vmatprep.subr.bf16.mxu1 %v12839_v13  ;;  %v12874_v13 = vld [vmem:[#allocation190_spill] sm:$0xff] }
 0xce7   : > { %8194 = vmatpush1.bf16.msra.mxu1 %v12840_v35  ;;  %v12875_v35 = vld [vmem:[#allocation127_spill] sm:$0xff] }
 0xce8   : > { %8196 = vmatprep.subr.bf16.mxu1 %v12841_v19  ;;  %v12876_v19 = vld [vmem:[#allocation128_spill] sm:$0xff] }
 0xceb   : > { %8198 = vmatpush1.bf16.msra.mxu1 %v12842_v53  ;;  %v12877_v53 = vld [vmem:[#allocation129_spill] sm:$0xff] }
 0xcec   : > { %8296 = vmatprep.subr.bf16.mxu1 %v12843_v23  ;;  %v12878_v23 = vld [vmem:[#allocation130_spill] sm:$0xff] }
 0xcee   : > { %5314 = vmatmul.mubr.f32.vlgmr.msra.gmra.mrb[68].mxu1 %v10951_v62 }
 0xcef   : > { %5319 = vmatprep.mubr.f32.mxu1 %v10955_v4  ;;  %8298 = vmatpush1.bf16.msra.mxu1 %v12844_v18  ;;  %v12879_v18 = vld [vmem:[#allocation131_spill] sm:$0xff] }
 0xcf0   : > { %8300 = vmatprep.subr.bf16.mxu1 %v12845_v30  ;;  %v12880_v30 = vld [vmem:[#allocation132_spill] sm:$0xff] }
 0xcf2   : > { %5320 = vmatmul.mubr.f32.gmra.mrb[70].mxu1 %v10958_v11 }
 0xcf3   : > { %5325 = vmatprep.mubr.f32.mxu1 %v10963_v21  ;;  %8302 = vmatpush1.bf16.msra.mxu1 %v12846_v63  ;;  %v12881_v63 = vld [vmem:[#allocation133_spill] sm:$0xff] }
 0xcf4   : > { %8304 = vmatprep.subr.bf16.mxu1 %v12847_v6  ;;  %v12882_v6 = vld [vmem:[#allocation134_spill] sm:$0xff] }
 0xcf6   : > { %5326 = vmatmul.mubr.f32.gmra.mrb[72].mxu1 %v10966_v1 }
 0xcf7   : > { %5331 = vmatprep.mubr.f32.mxu1 %v10971_v5  ;;  %8306 = vmatpush1.bf16.msra.mxu1 %v12848_v16  ;;  %v12883_v16 = vld [vmem:[#allocation135_spill] sm:$0xff] }
 0xcf8   : > { %8308 = vmatprep.subr.bf16.mxu1 %v12849_v24  ;;  %v12884_v24 = vld [vmem:[#allocation136_spill] sm:$0xff] }
 0xcfa   : > { %5332 = vmatmul.mubr.f32.gmra.mrb[74].mxu1 %v10974_v0 }
 0xcfb   : > { %5337 = vmatprep.mubr.f32.mxu1 %v10979_v44  ;;  %8310 = vmatpush1.bf16.msra.mxu1 %v12850_v27  ;;  %v12885_v27 = vld [vmem:[#allocation137_spill] sm:$0xff] }
 0xcfc   : > { %8312 = vmatprep.subr.bf16.mxu1 %v12851_v43 }
 0xcfe   : > { %5338 = vmatmul.mubr.f32.gmra.mrb[76].mxu1 %v10982_v39 }
 0xcff   : > { %5343 = vmatprep.mubr.f32.mxu1 %v10987_v2  ;;  %8314 = vmatpush1.bf16.msra.mxu1 %v12852_v47 }
 0xd00   : > { %8316 = vmatprep.subr.bf16.mxu1 %v12853_v56  ;;  %v12886_v56 = vld [vmem:[#allocation138_spill] sm:$0xff] }
 0xd02   : > { %5344 = vmatmul.mubr.f32.gmra.mrb[78].mxu1 %v10990_v48 }
 0xd03   : > { %5349 = vmatprep.mubr.f32.mxu1 %v10995_v15  ;;  %8318 = vmatpush1.bf16.msra.mxu1 %v12854_v59  ;;  %v12887_v59 = vld [vmem:[#allocation139_spill] sm:$0xff] }
 0xd04   : > { %8320 = vmatprep.subr.bf16.mxu1 %v12855_v9 }
 0xd06   : > { %5350 = vmatmul.mubr.f32.gmra.mrb[80].mxu1 %v10998_v46 }
 0xd07   : > { %5355 = vmatprep.mubr.f32.mxu1 %v11003_v7  ;;  %8322 = vmatpush1.bf16.msra.mxu1 %v12856_v17 }
 0xd08   : > { %8324 = vmatprep.subr.bf16.mxu1 %v12857_v50 }
 0xd0a   : > { %5356 = vmatmul.mubr.f32.gmra.mrb[82].mxu1 %v11006_v10 }
 0xd0b   : > { %8326 = vmatpush1.bf16.msra.mxu1 %v12858_v58  ;;  %5695 = vmatprep.mubr.f32.mxu1 %v10949_v55 }
 0xd0c   : > { %8328 = vmatprep.subr.bf16.mxu1 %v12859_v32  ;;  %v12888_v32 = vld [vmem:[#allocation140_spill] sm:$0xff] }
 0xd0f   : > { %8330 = vmatpush1.bf16.msra.mxu1 %v12860_v22  ;;  %v12889_v22 = vld [vmem:[#allocation141_spill] sm:$0xff] }
 0xd10   : > { %8332 = vmatprep.subr.bf16.mxu1 %v12861_v28 }
 0xd13   : > { %8334 = vmatpush1.bf16.msra.mxu1 %v12862_v29 }
 0xd14   : > { %8336 = vmatprep.subr.bf16.mxu1 %v12863_v33  ;;  %v12890_v33 = vld [vmem:[#allocation142_spill] sm:$0xff] }
 0xd17   : > { %8338 = vmatpush1.bf16.msra.mxu1 %v12864_v36  ;;  %v12891_v36 = vld [vmem:[#allocation143_spill] sm:$0xff] }
 0xd18   : > { %8340 = vmatprep.subr.bf16.mxu1 %v12865_v49 }
 0xd1b   : > { %8342 = vmatpush1.bf16.msra.mxu1 %v12866_v42 }
 0xd1c   : > { %8344 = vmatprep.subr.bf16.mxu1 %v12867_v61 }
 0xd1f   : > { %8346 = vmatpush1.bf16.msra.mxu1 %v12868_v34 }
 0xd20   : > { %8348 = vmatprep.subr.bf16.mxu1 %v12869_v60  ;;  %v12892_v60 = vld [vmem:[#allocation144_spill] sm:$0xff] }
 0xd23   : > { %8350 = vmatpush1.bf16.msra.mxu1 %v12870_v51  ;;  %v12893_v51 = vld [vmem:[#allocation145_spill] sm:$0xff] }
 0xd24   : > { %8352 = vmatprep.subr.bf16.mxu1 %v12871_v31 }
 0xd27   : > { %8354 = vmatpush1.bf16.msra.mxu1 %v12872_v57 }
 0xd28   : > { %8356 = vmatprep.subr.bf16.mxu1 %v12873_v37  ;;  %v12894_v37 = vld [vmem:[#allocation146_spill] sm:$0xff] }
 0xd2b   : > { %8358 = vmatpush1.bf16.msra.mxu1 %v12874_v13  ;;  %v12895_v13 = vld [vmem:[#allocation147_spill] sm:$0xff] }
 0xd2c   : > { %8376 = vmatprep.subr.bf16.mxu1 %v12875_v35 }
 0xd2e   : > { %5696 = vmatmul.mubr.f32.vlgmr.msra.gmra.mrb[84].mxu1 %v10951_v62 }
 0xd2f   : > { %5701 = vmatprep.mubr.f32.mxu1 %v10955_v4  ;;  %8378 = vmatpush1.bf16.msra.mxu1 %v12876_v19 }
 0xd30   : > { %8380 = vmatprep.subr.bf16.mxu1 %v12877_v53 }
 0xd32   : > { %5702 = vmatmul.mubr.f32.gmra.mrb[86].mxu1 %v10958_v11 }
 0xd33   : > { %5707 = vmatprep.mubr.f32.mxu1 %v10963_v21  ;;  %8382 = vmatpush1.bf16.msra.mxu1 %v12878_v23 }
 0xd34   : > { %8384 = vmatprep.subr.bf16.mxu1 %v12879_v18  ;;  %v12896_v18 = vld [vmem:[#allocation148_spill] sm:$0xff] }
 0xd36   : > { %5708 = vmatmul.mubr.f32.gmra.mrb[88].mxu1 %v10966_v1 }
 0xd37   : > { %5713 = vmatprep.mubr.f32.mxu1 %v10971_v5  ;;  %8386 = vmatpush1.bf16.msra.mxu1 %v12880_v30  ;;  %v12897_v30 = vld [vmem:[#allocation149_spill] sm:$0xff] }
 0xd38   : > { %8388 = vmatprep.subr.bf16.mxu1 %v12881_v63 }
 0xd3a   : > { %5714 = vmatmul.mubr.f32.gmra.mrb[90].mxu1 %v10974_v0 }
 0xd3b   : > { %5719 = vmatprep.mubr.f32.mxu1 %v10979_v44  ;;  %8390 = vmatpush1.bf16.msra.mxu1 %v12882_v6 }
 0xd3c   : > { %8392 = vmatprep.subr.bf16.mxu1 %v12883_v16  ;;  %v12898_v16 = vld [vmem:[#allocation150_spill] sm:$0xff] }
 0xd3e   : > { %5720 = vmatmul.mubr.f32.gmra.mrb[92].mxu1 %v10982_v39 }
 0xd3f   : > { %5725 = vmatprep.mubr.f32.mxu1 %v10987_v2  ;;  %8394 = vmatpush1.bf16.msra.mxu1 %v12884_v24  ;;  %v12899_v24 = vld [vmem:[#allocation151_spill] sm:$0xff] }
 0xd40   : > { %8396 = vmatprep.subr.bf16.mxu1 %v12885_v27 }
 0xd41   : > { %v4742_v43 = vpop.f32.mrb[36].mxu1 }
 0xd42   : > { %5726 = vmatmul.mubr.f32.gmra.mrb[94].mxu1 %v10990_v48  ;;  %v4744_v47 = vpop.f32.mrb[37].mxu1 }
 0xd43   : > { %5731 = vmatprep.mubr.f32.mxu1 %v10995_v15  ;;  %8398 = vmatpush1.bf16.msra.mxu1 %v12886_v56 }
 0xd44   : > { %8400 = vmatprep.subr.bf16.mxu1 %v12887_v59  ;;  %v12900_v59 = vld [vmem:[#allocation152_spill] sm:$0xff] }
 0xd45   : > { %v4748_v9 = vpop.f32.mrb[38].mxu1 }
 0xd46   : > { %v7961_v17 = vpack.c.bf16 %v4748_v9, %v4742_v43  ;;  %5732 = vmatmul.mubr.f32.gmra.mrb[96].mxu1 %v10998_v46  ;;  %v4750_v50 = vpop.f32.mrb[39].mxu1  ;;  %v12901_v9 = vld [vmem:[#allocation153_spill] sm:$0xff] }
 0xd47   : > { %v7959_v58 = vpack.c.bf16 %v4750_v50, %v4744_v47  ;;  %5737 = vmatprep.mubr.f32.mxu1 %v11003_v7  ;;  %8402 = vmatpush1.bf16.msra.mxu1 %v12888_v32  ;;  %v12902_v50 = vld [vmem:[#allocation154_spill] sm:$0xff]  ;;  %v12904_v32 = vld [vmem:[#allocation155_spill] sm:$0xff] }
 0xd48   : > { %8404 = vmatprep.subr.bf16.mxu1 %v12889_v22  ;;  %v12905_v22 = vld [vmem:[#allocation32_spill] sm:$0xff] }
 0xd49   : > { %v4754_v28 = vpop.f32.mrb[40].mxu1  ;;  %7960 = vmatprep.subr.bf16.mxu0 %v7959_v58  ;;  %v12903_v58 = vld [vmem:[#allocation31_spill] sm:$0xff] }
 0xd4a   : > { %5738 = vmatmul.mubr.f32.gmra.mrb[98].mxu1 %v11006_v10  ;;  %v4756_v29 = vpop.f32.mrb[41].mxu1  ;;  %7962 = vmatpush1.bf16.msra.mxu0 %v7961_v17  ;;  %v4789_v17 = vld [vmem:[#allocation4] sm:$0xf] }
 0xd4b   : > { %8406 = vmatpush1.bf16.msra.mxu1 %v12890_v33  ;;  %5886 = vmatprep.mubr.f32.mxu1 %v10949_v55  ;;  %v12908_v33 = vld [vmem:[#allocation157_spill] sm:$0xff] }
 0xd4c   : > { %8408 = vmatprep.subr.bf16.mxu1 %v12891_v36  ;;  %v12909_v36 = vld [vmem:[#allocation34_spill] sm:$0xff] }
 0xd4d   : > { %v4760_v49 = vpop.f32.mrb[42].mxu1 }
 0xd4e   : > { %v7965_v42 = vpack.c.bf16 %v4760_v49, %v4754_v28  ;;  %v4762_v61 = vpop.f32.mrb[43].mxu1  ;;  %v12906_v28 = vld [vmem:[#allocation156_spill] sm:$0xff]  ;;  %v12910_v49 = vld [vmem:[#allocation158_spill] sm:$0xff] }
 0xd4f   : > { %v7963_v34 = vpack.c.bf16 %v4762_v61, %v4756_v29  ;;  %8410 = vmatpush1.bf16.msra.mxu1 %v12892_v60  ;;  %v12907_v29 = vld [vmem:[#allocation33_spill] sm:$0xff]  ;;  %v12912_v61 = vld [vmem:[#allocation191_spill] sm:$0xff]  ;;  %v12914_v60 = vld [vmem:[#allocation192_spill] sm:$0xff] }
 0xd50   : > { %8412 = vmatprep.subr.bf16.mxu1 %v12893_v51  ;;  %v12915_v51 = vld [vmem:[#allocation37_spill] sm:$0xff] }
 0xd51   : > { %v4766_v31 = vpop.f32.mrb[44].mxu1  ;;  %7964 = vmatprep.subr.bf16.mxu0 %v7963_v34  ;;  %v12913_v34 = vld [vmem:[#allocation36_spill] sm:$0xff] }
 0xd52   : > { %v4768_v57 = vpop.f32.mrb[45].mxu1  ;;  %7966 = vmatpush1.bf16.msra.mxu0 %v7965_v42  ;;  %v12911_v42 = vld [vmem:[#allocation35_spill] sm:$0xff] }
 0xd53   : > { %8414 = vmatpush1.bf16.msra.mxu1 %v12894_v37  ;;  %v12918_v37 = vld [vmem:[#allocation194_spill] sm:$0xff] }
 0xd54   : > { %8416 = vmatprep.subr.bf16.mxu1 %v12895_v13  ;;  %v12919_v13 = vld [vmem:[#allocation39_spill] sm:$0xff] }
 0xd55   : > { %v4772_v35 = vpop.f32.mrb[46].mxu1 }
 0xd56   : > { %v7969_v19 = vpack.c.bf16 %v4772_v35, %v4766_v31  ;;  %v4774_v53 = vpop.f32.mrb[47].mxu1  ;;  %v12916_v31 = vld [vmem:[#allocation193_spill] sm:$0xff]  ;;  %v12920_v35 = vld [vmem:[#allocation195_spill] sm:$0xff] }
 0xd57   : > { %v7967_v23 = vpack.c.bf16 %v4774_v53, %v4768_v57  ;;  %8418 = vmatpush1.bf16.msra.mxu1 %v12896_v18  ;;  %v12917_v57 = vld [vmem:[#allocation38_spill] sm:$0xff]  ;;  %v12922_v53 = vld [vmem:[#allocation196_spill] sm:$0xff]  ;;  %v12924_v18 = vld [vmem:[#allocation197_spill] sm:$0xff] }
 0xd58   : > { %8420 = vmatprep.subr.bf16.mxu1 %v12897_v30  ;;  %v12925_v30 = vld [vmem:[#allocation42_spill] sm:$0xff] }
 0xd59   : > { %v4778_v63 = vpop.f32.mrb[48].mxu1  ;;  %7968 = vmatprep.subr.bf16.mxu0 %v7967_v23  ;;  %v12923_v23 = vld [vmem:[#allocation41_spill] sm:$0xff] }
 0xd5a   : > { %v4780_v6 = vpop.f32.mrb[49].mxu1  ;;  %7970 = vmatpush1.bf16.msra.mxu0 %v7969_v19  ;;  %v12921_v19 = vld [vmem:[#allocation40_spill] sm:$0xff] }
 0xd5b   : > { %8422 = vmatpush1.bf16.msra.mxu1 %v12898_v16  ;;  %v12928_v16 = vld [vmem:[#allocation199_spill] sm:$0xff] }
 0xd5c   : > { %8424 = vmatprep.subr.bf16.mxu1 %v12899_v24  ;;  %v12929_v24 = vld [vmem:[#allocation44_spill] sm:$0xff] }
 0xd5d   : > { %v4784_v27 = vpop.f32.mrb[50].mxu1 }
 0xd5e   : > { %v7973_v43 = vpack.c.bf16 %v4784_v27, %v4778_v63  ;;  %v4786_v47 = vpop.f32.mrb[51].mxu1  ;;  %v12926_v63 = vld [vmem:[#allocation198_spill] sm:$0xff]  ;;  %v12930_v27 = vld [vmem:[#allocation200_spill] sm:$0xff] }
 0xd5f   : > { %v7971_v56 = vpack.c.bf16 %v4786_v47, %v4780_v6  ;;  %8426 = vmatpush1.bf16.msra.mxu1 %v12900_v59  ;;  %v12927_v6 = vld [vmem:[#allocation43_spill] sm:$0xff]  ;;  %v12932_v47 = vld [vmem:[#allocation201_spill] sm:$0xff] }
 0xd60   : > { %8428 = vmatprep.subr.bf16.mxu1 %v12901_v9  ;;  %v12933_v9 = vld [vmem:[#allocation46_spill] sm:$0xff] }
 0xd61   : > { %7972 = vmatprep.subr.bf16.mxu0 %v7971_v56 }
 0xd62   : > { %7974 = vmatpush1.bf16.msra.mxu0 %v7973_v43  ;;  %v12931_v43 = vld [vmem:[#allocation45_spill] sm:$0xff] }
 0xd63   : > { %8430 = vmatpush1.bf16.msra.mxu1 %v12902_v50  ;;  %7976 = vmatprep.subr.bf16.mxu0 %v12903_v58  ;;  %v12935_v50 = vld [vmem:[#allocation47_spill] sm:$0xff] }
 0xd64   : > { %8432 = vmatprep.subr.bf16.mxu1 %v12904_v32  ;;  %v12936_v58 = vld [vmem:[#allocation203_spill] sm:$0xff] }
 0xd65   : > { %6692 = vmatmul.mubr.msk.f32.vlgmr.msra.gmra.mrb[38].mxu0 %vm4790_vm3, %v4789_v17  ;;  %v12934_v17 = vld [vmem:[#allocation202_spill] sm:$0xff] }
 0xd66   : > { %7978 = vmatpush1.bf16.msra.mxu0 %v12905_v22  ;;  %4931 = vmatprep.mubr.f32.mxu0 %v10949_v55 }
 0xd67   : > { %8434 = vmatpush1.bf16.msra.mxu1 %v12906_v28  ;;  %7980 = vmatprep.subr.bf16.mxu0 %v12907_v29  ;;  %v12937_v29 = vld [vmem:[#allocation48_spill] sm:$0xff] }
 0xd68   : > { %8436 = vmatprep.subr.bf16.mxu1 %v12908_v33 }
 0xd6a   : > { %7982 = vmatpush1.bf16.msra.mxu0 %v12909_v36  ;;  %v12938_v36 = vld [vmem:[#allocation204_spill] sm:$0xff] }
 0xd6b   : > { %8438 = vmatpush1.bf16.msra.mxu1 %v12910_v49  ;;  %7984 = vmatprep.subr.bf16.mxu0 %v12911_v42  ;;  %v12939_v49 = vld [vmem:[#allocation49_spill] sm:$0xff] }
 0xd6c   : > { %8536 = vmatprep.subr.bf16.mxu1 %v12912_v61  ;;  %v12940_v42 = vld [vmem:[#allocation205_spill] sm:$0xff] }
 0xd6e   : > { %5887 = vmatmul.mubr.f32.vlgmr.msra.gmra.mrb[100].mxu1 %v10951_v62  ;;  %7986 = vmatpush1.bf16.msra.mxu0 %v12913_v34 }
 0xd6f   : > { %5892 = vmatprep.mubr.f32.mxu1 %v10955_v4  ;;  %8538 = vmatpush1.bf16.msra.mxu1 %v12914_v60  ;;  %v12941_v60 = vld [vmem:[#allocation50_spill] sm:$0xff] }
 0xd70   : > { %7988 = vmatprep.subr.bf16.mxu0 %v12915_v51  ;;  %8540 = vmatprep.subr.bf16.mxu1 %v12916_v31  ;;  %v12942_v51 = vld [vmem:[#allocation206_spill] sm:$0xff]  ;;  %v12943_v31 = vld [vmem:[#allocation51_spill] sm:$0xff] }
 0xd72   : > { %5893 = vmatmul.mubr.f32.gmra.mrb[102].mxu1 %v10958_v11  ;;  %7990 = vmatpush1.bf16.msra.mxu0 %v12917_v57  ;;  %v12944_v57 = vld [vmem:[#allocation207_spill] sm:$0xff] }
 0xd73   : > { %5898 = vmatprep.mubr.f32.mxu1 %v10963_v21  ;;  %8542 = vmatpush1.bf16.msra.mxu1 %v12918_v37 }
 0xd74   : > { %7992 = vmatprep.subr.bf16.mxu0 %v12919_v13  ;;  %8544 = vmatprep.subr.bf16.mxu1 %v12920_v35 }
 0xd76   : > { %5899 = vmatmul.mubr.f32.gmra.mrb[104].mxu1 %v10966_v1  ;;  %7994 = vmatpush1.bf16.msra.mxu0 %v12921_v19  ;;  %v12945_v19 = vld [vmem:[#allocation52_spill] sm:$0xff] }
 0xd77   : > { %5904 = vmatprep.mubr.f32.mxu1 %v10971_v5  ;;  %8546 = vmatpush1.bf16.msra.mxu1 %v12922_v53 }
 0xd78   : > { %7996 = vmatprep.subr.bf16.mxu0 %v12923_v23  ;;  %8548 = vmatprep.subr.bf16.mxu1 %v12924_v18  ;;  %v12946_v23 = vld [vmem:[#allocation208_spill] sm:$0xff]  ;;  %v12947_v18 = vld [vmem:[#allocation53_spill] sm:$0xff] }
 0xd7a   : > { %5905 = vmatmul.mubr.f32.gmra.mrb[106].mxu1 %v10974_v0  ;;  %7998 = vmatpush1.bf16.msra.mxu0 %v12925_v30  ;;  %v12948_v30 = vld [vmem:[#allocation209_spill] sm:$0xff] }
 0xd7b   : > { %5910 = vmatprep.mubr.f32.mxu1 %v10979_v44  ;;  %8550 = vmatpush1.bf16.msra.mxu1 %v12926_v63 }
 0xd7c   : > { %8000 = vmatprep.subr.bf16.mxu0 %v12927_v6  ;;  %8552 = vmatprep.subr.bf16.mxu1 %v12928_v16  ;;  %v12949_v16 = vld [vmem:[#allocation54_spill] sm:$0xff] }
 0xd7e   : > { %5911 = vmatmul.mubr.f32.gmra.mrb[108].mxu1 %v10982_v39  ;;  %8002 = vmatpush1.bf16.msra.mxu0 %v12929_v24  ;;  %v12950_v24 = vld [vmem:[#allocation210_spill] sm:$0xff] }
 0xd7f   : > { %5916 = vmatprep.mubr.f32.mxu1 %v10987_v2  ;;  %8554 = vmatpush1.bf16.msra.mxu1 %v12930_v27  ;;  %v12951_v27 = vld [vmem:[#allocation55_spill] sm:$0xff] }
 0xd80   : > { %8004 = vmatprep.subr.bf16.mxu0 %v12931_v43  ;;  %8556 = vmatprep.subr.bf16.mxu1 %v12932_v47  ;;  %v12952_v43 = vld [vmem:[#allocation211_spill] sm:$0xff] }
 0xd81   : > { %v11211_v56 = vpop.f32.mrb[52].mxu1 }
 0xd82   : > { %v11213_v59 = vpop.f32.mrb[53].mxu1  ;;  %5917 = vmatmul.mubr.f32.gmra.mrb[110].mxu1 %v10990_v48  ;;  %8006 = vmatpush1.bf16.msra.mxu0 %v12933_v9 }
 0xd83   : > { %5922 = vmatprep.mubr.f32.mxu1 %v10995_v15  ;;  %8558 = vmatpush1.bf16.msra.mxu1 %v12934_v17 }
 0xd84   : > { %8008 = vmatprep.subr.bf16.mxu0 %v12935_v50  ;;  %8560 = vmatprep.subr.bf16.mxu1 %v12936_v58  ;;  %v12953_v50 = vld [vmem:[#allocation56_spill] sm:$0xff] }
 0xd85   : > { %v11221_v32 = vpop.f32.mrb[54].mxu1 }
 0xd86   : > { %v11225_v28 = vpop.f32.mrb[55].mxu1  ;;  %5923 = vmatmul.mubr.f32.gmra.mrb[112].mxu1 %v10998_v46  ;;  %8010 = vmatpush1.bf16.msra.mxu0 %v12937_v29  ;;  %v12954_v29 = vld [vmem:[#allocation212_spill] sm:$0xff] }
 0xd87   : > { %5928 = vmatprep.mubr.f32.mxu1 %v11003_v7  ;;  %8562 = vmatpush1.bf16.msra.mxu1 %v12938_v36  ;;  %v12955_v36 = vld [vmem:[#allocation57_spill] sm:$0xff] }
 0xd88   : > { %8012 = vmatprep.subr.bf16.mxu0 %v12939_v49  ;;  %8564 = vmatprep.subr.bf16.mxu1 %v12940_v42  ;;  %v12956_v49 = vld [vmem:[#allocation213_spill] sm:$0xff] }
 0xd89   : > { %v11235_v61 = vpop.f32.mrb[56].mxu1 }
 0xd8a   : > { %v11237_v34 = vpop.f32.mrb[57].mxu1  ;;  %5929 = vmatmul.mubr.f32.gmra.mrb[114].mxu1 %v11006_v10  ;;  %8014 = vmatpush1.bf16.msra.mxu0 %v12941_v60 }
 0xd8b   : > { %8566 = vmatpush1.bf16.msra.mxu1 %v12942_v51  ;;  %6268 = vmatprep.mubr.f32.mxu1 %v10949_v55  ;;  %v12957_v51 = vld [vmem:[#allocation58_spill] sm:$0xff] }
 0xd8c   : > { %8016 = vmatprep.subr.bf16.mxu0 %v12943_v31  ;;  %8568 = vmatprep.subr.bf16.mxu1 %v12944_v57  ;;  %v12958_v31 = vld [vmem:[#allocation214_spill] sm:$0xff]  ;;  %v12959_v57 = vld [vmem:[#allocation59_spill] sm:$0xff] }
 0xd8d   : > { %v11245_v37 = vpop.f32.mrb[58].mxu1 }
 0xd8e   : > { %v11249_v35 = vpop.f32.mrb[59].mxu1  ;;  %8018 = vmatpush1.bf16.msra.mxu0 %v12945_v19  ;;  %v12960_v19 = vld [vmem:[#allocation215_spill] sm:$0xff] }
 0xd8f   : > { %8570 = vmatpush1.bf16.msra.mxu1 %v12946_v23  ;;  %8020 = vmatprep.subr.bf16.mxu0 %v12947_v18 }
 0xd90   : > { %8572 = vmatprep.subr.bf16.mxu1 %v12948_v30 }
 0xd91   : > { %v11257_v63 = vpop.f32.mrb[60].mxu1 }
 0xd92   : > { %v11259_v6 = vpop.f32.mrb[61].mxu1  ;;  %8022 = vmatpush1.bf16.msra.mxu0 %v12949_v16  ;;  %v12961_v16 = vld [vmem:[#allocation60_spill] sm:$0xff] }
 0xd93   : > { %8574 = vmatpush1.bf16.msra.mxu1 %v12950_v24  ;;  %8024 = vmatprep.subr.bf16.mxu0 %v12951_v27  ;;  %v12962_v27 = vld [vmem:[#allocation216_spill] sm:$0xff] }
 0xd94   : > { %8576 = vmatprep.subr.bf16.mxu1 %v12952_v43  ;;  %v12963_v43 = vld [vmem:[#allocation61_spill] sm:$0xff] }
 0xd95   : > { %v11265_v47 = vpop.f32.mrb[62].mxu1 }
 0xd96   : > { %v11269_v17 = vpop.f32.mrb[63].mxu1  ;;  %8026 = vmatpush1.bf16.msra.mxu0 %v12953_v50  ;;  %v12964_v50 = vld [vmem:[#allocation217_spill] sm:$0xff] }
 0xd97   : > { %8578 = vmatpush1.bf16.msra.mxu1 %v12954_v29  ;;  %8028 = vmatprep.subr.bf16.mxu0 %v12955_v36  ;;  %v12965_v29 = vld [vmem:[#allocation62_spill] sm:$0xff] }
 0xd98   : > { %8580 = vmatprep.subr.bf16.mxu1 %v12956_v49  ;;  %v12966_v36 = vld [vmem:[#allocation218_spill] sm:$0xff]  ;;  %v12967_v49 = vld [vmem:[#allocation219_spill] sm:$0xff] }
 0xd99   : > { %v11277_v42 = vpop.f32.mrb[64].mxu1 }
 0xd9a   : > { %v11279_v60 = vpop.f32.mrb[65].mxu1  ;;  %8030 = vmatpush1.bf16.msra.mxu0 %v12957_v51  ;;  %v12968_v51 = vld [vmem:[#allocation220_spill] sm:$0xff] }
 0xd9b   : > { %8582 = vmatpush1.bf16.msra.mxu1 %v12958_v31  ;;  %8032 = vmatprep.subr.bf16.mxu0 %v12959_v57  ;;  %v12969_v31 = vld [vmem:[#allocation221_spill] sm:$0xff]  ;;  %v12970_v57 = vld [vmem:[#allocation222_spill] sm:$0xff] }
 0xd9c   : > { %8584 = vmatprep.subr.bf16.mxu1 %v12960_v19 }
 0xd9d   : > { %v11285_v23 = vpop.f32.mrb[66].mxu1 }
 0xd9e   : > { %v11289_v30 = vpop.f32.mrb[67].mxu1  ;;  %8034 = vmatpush1.bf16.msra.mxu0 %v12961_v16 }
 0xd9f   : > { %8586 = vmatpush1.bf16.msra.mxu1 %v12962_v27  ;;  %8036 = vmatprep.subr.bf16.mxu0 %v12963_v43 }
 0xda0   : > { %8588 = vmatprep.subr.bf16.mxu1 %v12964_v50 }
 0xda2   : > { %8038 = vmatpush1.bf16.msra.mxu0 %v12965_v29 }
 0xda3   : > { %8590 = vmatpush1.bf16.msra.mxu1 %v12966_v36 }
 0xda4   : > { %8592 = vmatprep.subr.bf16.mxu1 %v12967_v49 }
 0xda5   : > { %4932 = vmatmul.mubr.f32.vlgmr.msra.gmra.mrb[40].mxu0 %v10951_v62 }
 0xda6   : > { %4937 = vmatprep.mubr.f32.mxu0 %v10955_v4 }
 0xda7   : > { %8594 = vmatpush1.bf16.msra.mxu1 %v12968_v51 }
 0xda8   : > { %8596 = vmatprep.subr.bf16.mxu1 %v12969_v31 }
 0xda9   : > { %4938 = vmatmul.mubr.f32.gmra.mrb[42].mxu0 %v10958_v11 }
 0xdaa   : > { %4943 = vmatprep.mubr.f32.mxu0 %v10963_v21 }
 0xdab   : > { %8598 = vmatpush1.bf16.msra.mxu1 %v12970_v57 }
 0xdad   : > { %4944 = vmatmul.mubr.f32.gmra.mrb[44].mxu0 %v10966_v1 }
 0xdae   : > { %6269 = vmatmul.mubr.f32.vlgmr.msra.gmra.mrb[116].mxu1 %v10951_v62  ;;  %4949 = vmatprep.mubr.f32.mxu0 %v10971_v5 }
 0xdaf   : > { %6274 = vmatprep.mubr.f32.mxu1 %v10955_v4 }
 0xdb1   : > { %4950 = vmatmul.mubr.f32.gmra.mrb[46].mxu0 %v10974_v0 }
 0xdb2   : > { %6275 = vmatmul.mubr.f32.gmra.mrb[118].mxu1 %v10958_v11  ;;  %4955 = vmatprep.mubr.f32.mxu0 %v10979_v44 }
 0xdb3   : > { %6280 = vmatprep.mubr.f32.mxu1 %v10963_v21 }
 0xdb5   : > { %4956 = vmatmul.mubr.f32.gmra.mrb[48].mxu0 %v10982_v39 }
 0xdb6   : > { %6281 = vmatmul.mubr.f32.gmra.mrb[120].mxu1 %v10966_v1  ;;  %4961 = vmatprep.mubr.f32.mxu0 %v10987_v2 }
 0xdb7   : > { %6286 = vmatprep.mubr.f32.mxu1 %v10971_v5 }
 0xdb9   : > { %4962 = vmatmul.mubr.f32.gmra.mrb[50].mxu0 %v10990_v48 }
 0xdba   : > { %6287 = vmatmul.mubr.f32.gmra.mrb[122].mxu1 %v10974_v0  ;;  %4967 = vmatprep.mubr.f32.mxu0 %v10995_v15 }
 0xdbb   : > { %6292 = vmatprep.mubr.f32.mxu1 %v10979_v44 }
 0xdbd   : > { %4968 = vmatmul.mubr.f32.gmra.mrb[52].mxu0 %v10998_v46 }
 0xdbe   : > { %6293 = vmatmul.mubr.f32.gmra.mrb[124].mxu1 %v10982_v39  ;;  %4973 = vmatprep.mubr.f32.mxu0 %v11003_v7 }
 0xdbf   : > { %6298 = vmatprep.mubr.f32.mxu1 %v10987_v2 }
 0xdc1   : > { %v11327_v19 = vpop.f32.mrb[68].mxu1  ;;  %4974 = vmatmul.mubr.f32.gmra.mrb[54].mxu0 %v11006_v10 }
 0xdc2   : > { %v11330_v16 = vpop.f32.mrb[69].mxu1  ;;  %6299 = vmatmul.mubr.f32.gmra.mrb[126].mxu1 %v10990_v48  ;;  %5049 = vmatprep.mubr.f32.mxu0 %v12340_v40 }
 0xdc3   : > { %6304 = vmatprep.mubr.f32.mxu1 %v10995_v15 }
 0xdc5   : > { %v11335_v27 = vpop.f32.mrb[70].mxu1 }
 0xdc6   : > { %v11339_v50 = vpop.f32.mrb[71].mxu1  ;;  %6305 = vmatmul.mubr.f32.gmra.mrb[128].mxu1 %v10998_v46 }
 0xdc7   : > { %6310 = vmatprep.mubr.f32.mxu1 %v11003_v7 }
 0xdc9   : > { %v11345_v36 = vpop.f32.mrb[72].mxu1 }
 0xdca   : > { %v11347_v49 = vpop.f32.mrb[73].mxu1  ;;  %6311 = vmatmul.mubr.f32.gmra.mrb[130].mxu1 %v11006_v10 }
 0xdcd   : > { %v11350_v51 = vpop.f32.mrb[74].mxu1 }
 0xdce   : > { %v11354_v57 = vpop.f32.mrb[75].mxu1 }
 0xdd1   : > { %v11358_v18 = vpop.f32.mrb[76].mxu1 }
 0xdd2   : > { %v11360_v29 = vpop.f32.mrb[77].mxu1 }
 0xdd5   : > { %v11362_v24 = vpop.f32.mrb[78].mxu1 }
 0xdd6   : > { %v11366_v58 = vpop.f32.mrb[79].mxu1 }
 0xdd9   : > { %v11370_v31 = vpop.f32.mrb[80].mxu1 }
 0xdda   : > { %v11372_v53 = vpop.f32.mrb[81].mxu1 }
 0xddd   : > { %v11374_v22 = vpop.f32.mrb[82].mxu1 }
 0xdde   : > { %v11378_v33 = vpop.f32.mrb[83].mxu1 }
 0xe01   : > { %v11382_v9 = vpop.f32.mrb[84].mxu1 }
 0xe02   : > { %12971 = vst [vmem:[#allocation98_spill] sm:$0xff] %v11382_v9  ;;  %v11384_v38 = vpop.f32.mrb[85].mxu1 }
 0xe03   : > { %12972 = vst [vmem:[#allocation99_spill] sm:$0xff] %v11384_v38 }
 0xe05   : > { %v11386_v12 = vpop.f32.mrb[86].mxu1 }
 0xe06   : > { %12973 = vst [vmem:[#allocation100_spill] sm:$0xff] %v11386_v12  ;;  %v11390_v54 = vpop.f32.mrb[87].mxu1 }
 0xe07   : > { %12974 = vst [vmem:[#allocation101_spill] sm:$0xff] %v11390_v54 }
 0xe09   : > { %v11394_v43 = vpop.f32.mrb[88].mxu1 }
 0xe0a   : > { %12975 = vst [vmem:[#allocation102_spill] sm:$0xff] %v11394_v43  ;;  %v11396_v45 = vpop.f32.mrb[89].mxu1 }
 0xe0b   : > { %12976 = vst [vmem:[#allocation103_spill] sm:$0xff] %v11396_v45 }
 0xe0d   : > { %v11398_v26 = vpop.f32.mrb[90].mxu1 }
 0xe0e   : > { %12977 = vst [vmem:[#allocation104_spill] sm:$0xff] %v11398_v26  ;;  %v11402_v20 = vpop.f32.mrb[91].mxu1 }
 0xe0f   : > { %12978 = vst [vmem:[#allocation105_spill] sm:$0xff] %v11402_v20 }
 0xe11   : > { %v11406_v13 = vpop.f32.mrb[92].mxu1 }
 0xe12   : > { %12979 = vst [vmem:[#allocation106_spill] sm:$0xff] %v11406_v13  ;;  %v11408_v8 = vpop.f32.mrb[93].mxu1 }
 0xe13   : > { %12980 = vst [vmem:[#allocation107_spill] sm:$0xff] %v11408_v8 }
 0xe15   : > { %v11410_v3 = vpop.f32.mrb[94].mxu1 }
 0xe16   : > { %12981 = vst [vmem:[#allocation108_spill] sm:$0xff] %v11410_v3  ;;  %v11414_v41 = vpop.f32.mrb[95].mxu1 }
 0xe17   : > { %12982 = vst [vmem:[#allocation109_spill] sm:$0xff] %v11414_v41 }
 0xe19   : > { %v11418_v25 = vpop.f32.mrb[96].mxu1 }
 0xe1a   : > { %12983 = vst [vmem:[#allocation110_spill] sm:$0xff] %v11418_v25  ;;  %v11420_v43 = vpop.f32.mrb[97].mxu1 }
 0xe1b   : > { %12984 = vst [vmem:[#allocation111_spill] sm:$0xff] %v11420_v43 }
 0xe1d   : > { %v11422_v26 = vpop.f32.mrb[98].mxu1 }
 0xe1e   : > { %12985 = vst [vmem:[#allocation112_spill] sm:$0xff] %v11422_v26  ;;  %v11426_v45 = vpop.f32.mrb[99].mxu1 }
 0xe1f   : > { %12986 = vst [vmem:[#allocation113_spill] sm:$0xff] %v11426_v45 }
 0xe41   : > { %v11430_v52 = vpop.f32.mrb[100].mxu1 }
 0xe42   : > { %12987 = vst [vmem:[#allocation114_spill] sm:$0xff] %v11430_v52  ;;  %v11432_v13 = vpop.f32.mrb[101].mxu1 }
 0xe43   : > { %12988 = vst [vmem:[#allocation115_spill] sm:$0xff] %v11432_v13 }
 0xe45   : > { %v11434_v3 = vpop.f32.mrb[102].mxu1 }
 0xe46   : > { %12989 = vst [vmem:[#allocation116_spill] sm:$0xff] %v11434_v3  ;;  %v11438_v8 = vpop.f32.mrb[103].mxu1 }
 0xe47   : > { %12990 = vst [vmem:[#allocation117_spill] sm:$0xff] %v11438_v8 }
 0xe49   : > { %v11442_v14 = vpop.f32.mrb[104].mxu1 }
 0xe4a   : > { %12991 = vst [vmem:[#allocation118_spill] sm:$0xff] %v11442_v14  ;;  %v11444_v25 = vpop.f32.mrb[105].mxu1 }
 0xe4b   : > { %12992 = vst [vmem:[#allocation8_spill] sm:$0xff] %v11444_v25 }
 0xe4d   : > { %v11446_v26 = vpop.f32.mrb[106].mxu1 }
 0xe4e   : > { %12993 = vst [vmem:[#allocation9_spill] sm:$0xff] %v11446_v26  ;;  %v11450_v43 = vpop.f32.mrb[107].mxu1 }
 0xe4f   : > { %12994 = vst [vmem:[#allocation10_spill] sm:$0xff] %v11450_v43 }
 0xe51   : > { %v11454_v9 = vpop.f32.mrb[108].mxu1 }
 0xe52   : > { %12995 = vst [vmem:[#allocation11_spill] sm:$0xff] %v11454_v9  ;;  %v11456_v52 = vpop.f32.mrb[109].mxu1 }
 0xe53   : > { %12996 = vst [vmem:[#allocation12_spill] sm:$0xff] %v11456_v52 }
 0xe55   : > { %v11458_v3 = vpop.f32.mrb[110].mxu1 }
 0xe56   : > { %12997 = vst [vmem:[#allocation13_spill] sm:$0xff] %v11458_v3  ;;  %v11462_v13 = vpop.f32.mrb[111].mxu1 }
 0xe57   : > { %12998 = vst [vmem:[#allocation14_spill] sm:$0xff] %v11462_v13 }
 0xe59   : > { %v11466_v20 = vpop.f32.mrb[112].mxu1 }
 0xe5a   : > { %12999 = vst [vmem:[#allocation15_spill] sm:$0xff] %v11466_v20  ;;  %v11468_v14 = vpop.f32.mrb[113].mxu1 }
 0xe5b   : > { %13000 = vst [vmem:[#allocation16_spill] sm:$0xff] %v11468_v14 }
 0xe5d   : > { %v11470_v26 = vpop.f32.mrb[114].mxu1 }
 0xe5e   : > { %13001 = vst [vmem:[#allocation17_spill] sm:$0xff] %v11470_v26  ;;  %v11474_v25 = vpop.f32.mrb[115].mxu1 }
 0xe5f   : > { %13002 = vst [vmem:[#allocation18_spill] sm:$0xff] %v11474_v25 }
 0xe78   : > { %v4933_v41 = vpop.f32.mrb[40].mxu0 }
 0xe79   : > { %v4935_v9 = vpop.f32.mrb[41].mxu0 }
 0xe7c   : > { %v4939_v3 = vpop.f32.mrb[42].mxu0 }
 0xe7d   : > { %v8041_v12 = vpack.c.bf16 %v4939_v3, %v4933_v41  ;;  %v4941_v38 = vpop.f32.mrb[43].mxu0 }
 0xe7e   : > { %v8039_v8 = vpack.c.bf16 %v4941_v38, %v4935_v9 }
 0xe80   : > { %v4945_v52 = vpop.f32.mrb[44].mxu0  ;;  %8040 = vmatprep.subr.bf16.mxu0 %v8039_v8 }
 0xe81   : > { %v11478_v13 = vpop.f32.mrb[116].mxu1  ;;  %v4947_v54 = vpop.f32.mrb[45].mxu0  ;;  %8042 = vmatpush1.bf16.msra.mxu0 %v8041_v12 }
 0xe82   : > { %13003 = vst [vmem:[#allocation19_spill] sm:$0xff] %v11478_v13  ;;  %v11480_v10 = vpop.f32.mrb[117].mxu1 }
 0xe83   : > { %13004 = vst [vmem:[#allocation20_spill] sm:$0xff] %v11480_v10 }
 0xe84   : > { %v4951_v45 = vpop.f32.mrb[46].mxu0 }
 0xe85   : > { %v8045_v20 = vpack.c.bf16 %v4951_v45, %v4945_v52  ;;  %v11482_v26 = vpop.f32.mrb[118].mxu1  ;;  %v4953_v7 = vpop.f32.mrb[47].mxu0 }
 0xe86   : > { %13005 = vst [vmem:[#allocation21_spill] sm:$0xff] %v11482_v26  ;;  %v8043_v14 = vpack.c.bf16 %v4953_v7, %v4947_v54  ;;  %v11486_v41 = vpop.f32.mrb[119].mxu1 }
 0xe87   : > { %13006 = vst [vmem:[#allocation22_spill] sm:$0xff] %v11486_v41 }
 0xe88   : > { %v4957_v8 = vpop.f32.mrb[48].mxu0  ;;  %8044 = vmatprep.subr.bf16.mxu0 %v8043_v14 }
 0xe89   : > { %v11490_v38 = vpop.f32.mrb[120].mxu1  ;;  %v4959_v12 = vpop.f32.mrb[49].mxu0  ;;  %8046 = vmatpush1.bf16.msra.mxu0 %v8045_v20 }
 0xe8a   : > { %13007 = vst [vmem:[#allocation23_spill] sm:$0xff] %v11490_v38  ;;  %v11492_v9 = vpop.f32.mrb[121].mxu1 }
 0xe8c   : > { %v4963_v45 = vpop.f32.mrb[50].mxu0 }
 0xe8d   : > { %v8049_v52 = vpack.c.bf16 %v4963_v45, %v4957_v8  ;;  %v11494_v25 = vpop.f32.mrb[122].mxu1  ;;  %v4965_v46 = vpop.f32.mrb[51].mxu0 }
 0xe8e   : > { %v8047_v7 = vpack.c.bf16 %v4965_v46, %v4959_v12  ;;  %v11498_v43 = vpop.f32.mrb[123].mxu1 }
 0xe90   : > { %v4969_v3 = vpop.f32.mrb[52].mxu0  ;;  %8048 = vmatprep.subr.bf16.mxu0 %v8047_v7 }
 0xe91   : > { %v11502_v13 = vpop.f32.mrb[124].mxu1  ;;  %v4971_v20 = vpop.f32.mrb[53].mxu0  ;;  %8050 = vmatpush1.bf16.msra.mxu0 %v8049_v52  ;;  %v4981_v52 = vld [vmem:[#allocation4 + $0x4] sm:$0xf] }
 0xe92   : > { %v11504_v26 = vpop.f32.mrb[125].mxu1 }
 0xe94   : > { %v4975_v8 = vpop.f32.mrb[54].mxu0 }
 0xe95   : > { %v8053_v45 = vpack.c.bf16 %v4975_v8, %v4969_v3  ;;  %v11506_v10 = vpop.f32.mrb[126].mxu1  ;;  %v4977_v41 = vpop.f32.mrb[55].mxu0  ;;  %v13008_v3 = vpack.c.bf16 %v11225_v28, %v11213_v59  ;;  %v13011_v28 = vpack.c.bf16 %v11245_v37, %v11235_v61  ;;  %v13016_v61 = vpack.c.bf16 %v11339_v50, %v11330_v16  ;;  %v13032_v16 = vld [vmem:[#allocation71_spill] sm:$0xff]  ;;  %v13034_v50 = vld [vmem:[#allocation73_spill] sm:$0xff] }
 0xe96   : > { %v8609_v46 = vpack.c.bf16 %v11506_v10, %v11502_v13  ;;  %v8051_v12 = vpack.c.bf16 %v4977_v41, %v4971_v20  ;;  %v11510_v54 = vpop.f32.mrb[127].mxu1  ;;  %v13009_v41 = vpack.c.bf16 %v11221_v32, %v11211_v56  ;;  %v13012_v56 = vpack.c.bf16 %v11269_v17, %v11259_v6 }
 0xe97   : > { %v8607_v7 = vpack.c.bf16 %v11510_v54, %v11504_v26  ;;  %v13013_v32 = vpack.c.bf16 %v11265_v47, %v11257_v63  ;;  %v13017_v37 = vpack.c.bf16 %v11335_v27, %v11327_v19  ;;  %v13018_v63 = vpack.c.bf16 %v11354_v57, %v11347_v49  ;;  %v13025_v19 = vld [vmem:[#allocation64_spill] sm:$0xff]  ;;  %v13040_v57 = vld [vmem:[#allocation79_spill] sm:$0xff] }
 0xe98   : > { %8052 = vmatprep.subr.bf16.mxu0 %v8051_v12  ;;  %v13010_v12 = vpack.c.bf16 %v11249_v35, %v11237_v34  ;;  %v13015_v34 = vpack.c.bf16 %v11285_v23, %v11277_v42  ;;  %v5172_v35 = vld [vmem:[#allocation4 + $0x8] sm:$0xf]  ;;  %v13019_v6 = vpack.c.bf16 %v11350_v51, %v11345_v36  ;;  %v13020_v47 = vpack.c.bf16 %v11366_v58, %v11360_v29  ;;  %v5363_v23 = vld [vmem:[#allocation4 + $0xc] sm:$0xf]  ;;  %v13035_v29 = vld [vmem:[#allocation74_spill] sm:$0xff] }
 0xe99   : > { %v11514_v14 = vpop.f32.mrb[128].mxu1  ;;  %8054 = vmatpush1.bf16.msra.mxu0 %v8053_v45  ;;  %v13021_v17 = vpack.c.bf16 %v11362_v24, %v11358_v18  ;;  %v13022_v42 = vpack.c.bf16 %v11378_v33, %v11372_v53  ;;  %v13026_v58 = vld [vmem:[#allocation65_spill] sm:$0xff]  ;;  %v13027_v18 = vld [vmem:[#allocation66_spill] sm:$0xff]  ;;  %v13028_v24 = vld [vmem:[#allocation67_spill] sm:$0xff] }
 0xe9a   : > { %v11516_v38 = vpop.f32.mrb[129].mxu1  ;;  %8120 = vmatprep.subr.bf16.mxu0 %v13008_v3  ;;  %v13029_v33 = vld [vmem:[#allocation68_spill] sm:$0xff]  ;;  %v13030_v53 = vld [vmem:[#allocation69_spill] sm:$0xff]  ;;  %v13036_v36 = vld [vmem:[#allocation75_spill] sm:$0xff] }
 0xe9b   : > { %v13033_v27 = vld [vmem:[#allocation72_spill] sm:$0xff]  ;;  %v13038_v51 = vld [vmem:[#allocation77_spill] sm:$0xff] }
 0xe9c   : > { %6693 = vmatmul.mubr.msk.f32.vlgmr.msra.gmra.mrb[38].mxu0 %vm4790_vm3, %v4981_v52  ;;  %v13014_v52 = vpack.c.bf16 %v11289_v30, %v11279_v60  ;;  %v13023_v60 = vpack.c.bf16 %v11374_v22, %v11370_v31  ;;  %v13024_v30 = vld [vmem:[#allocation63_spill] sm:$0xff]  ;;  %v13031_v22 = vld [vmem:[#allocation70_spill] sm:$0xff]  ;;  %v13037_v49 = vld [vmem:[#allocation76_spill] sm:$0xff] }
 0xe9d   : > { %v11522_v8 = vpop.f32.mrb[130].mxu1  ;;  %8122 = vmatpush1.bf16.msra.mxu0 %v13009_v41  ;;  %5240 = vmatprep.mubr.f32.mxu0 %v12340_v40  ;;  %v13039_v31 = vld [vmem:[#allocation78_spill] sm:$0xff]  ;;  %v13041_v3 = vld [vmem:[#allocation80_spill] sm:$0xff]  ;;  %v13042_v41 = vld [vmem:[#allocation81_spill] sm:$0xff] }
 0xe9e   : > { %v8613_v20 = vpack.c.bf16 %v11522_v8, %v11514_v14  ;;  %v11530_v45 = vpop.f32.mrb[131].mxu1  ;;  %8124 = vmatprep.subr.bf16.mxu0 %v13010_v12  ;;  %v13043_v12 = vld [vmem:[#allocation82_spill] sm:$0xff] }
 0xe9f   : > { %v8611_v59 = vpack.c.bf16 %v11530_v45, %v11516_v38 }
 0xea1   : > { %8126 = vmatpush1.bf16.msra.mxu0 %v13011_v28  ;;  %v13044_v28 = vld [vmem:[#allocation83_spill] sm:$0xff] }
 0xea2   : > { %8128 = vmatprep.subr.bf16.mxu0 %v13012_v56  ;;  %v13045_v56 = vld [vmem:[#allocation84_spill] sm:$0xff] }
 0xea5   : > { %8130 = vmatpush1.bf16.msra.mxu0 %v13013_v32  ;;  %v13046_v32 = vld [vmem:[#allocation85_spill] sm:$0xff] }
 0xea6   : > { %8132 = vmatprep.subr.bf16.mxu0 %v13014_v52  ;;  %v13047_v52 = vld [vmem:[#allocation86_spill] sm:$0xff] }
 0xea9   : > { %8134 = vmatpush1.bf16.msra.mxu0 %v13015_v34  ;;  %v13048_v34 = vld [vmem:[#allocation87_spill] sm:$0xff] }
 0xeaa   : > { %8200 = vmatprep.subr.bf16.mxu0 %v13016_v61  ;;  %v13050_v61 = vld [vmem:[#allocation89_spill] sm:$0xff] }
 0xeac   : > { %6694 = vmatmul.mubr.msk.f32.vlgmr.msra.gmra.mrb[38].mxu0 %vm4790_vm3, %v5172_v35  ;;  %v13049_v35 = vld [vmem:[#allocation88_spill] sm:$0xff] }
 0xead   : > { %8202 = vmatpush1.bf16.msra.mxu0 %v13017_v37  ;;  %5431 = vmatprep.mubr.f32.mxu0 %v12340_v40  ;;  %v13051_v37 = vld [vmem:[#allocation90_spill] sm:$0xff] }
 0xeae   : > { %8204 = vmatprep.subr.bf16.mxu0 %v13018_v63  ;;  %v13052_v63 = vld [vmem:[#allocation91_spill] sm:$0xff] }
 0xeb1   : > { %8206 = vmatpush1.bf16.msra.mxu0 %v13019_v6  ;;  %v13053_v6 = vld [vmem:[#allocation92_spill] sm:$0xff] }
 0xeb2   : > { %8208 = vmatprep.subr.bf16.mxu0 %v13020_v47  ;;  %v13054_v47 = vld [vmem:[#allocation93_spill] sm:$0xff] }
 0xeb5   : > { %8210 = vmatpush1.bf16.msra.mxu0 %v13021_v17  ;;  %v13055_v17 = vld [vmem:[#allocation94_spill] sm:$0xff] }
 0xeb6   : > { %8212 = vmatprep.subr.bf16.mxu0 %v13022_v42  ;;  %v13056_v42 = vld [vmem:[#allocation95_spill] sm:$0xff] }
 0xeb9   : > { %8214 = vmatpush1.bf16.msra.mxu0 %v13023_v60  ;;  %v13057_v60 = vld [vmem:[#allocation96_spill] sm:$0xff] }
 0xeba   : > { %8216 = vmatprep.subr.bf16.mxu0 %v13024_v30 }
 0xebc   : > { %6695 = vmatmul.mubr.msk.f32.vlgmr.msra.gmra.mrb[38].mxu0 %vm4790_vm3, %v5363_v23  ;;  %v13058_v23 = vld [vmem:[#allocation97_spill] sm:$0xff] }
 0xebd   : > { %8218 = vmatpush1.bf16.msra.mxu0 %v13025_v19  ;;  %5504 = vmatprep.mubr.f32.mxu0 %v10949_v55 }
 0xebe   : > { %8220 = vmatprep.subr.bf16.mxu0 %v13026_v58 }
 0xec1   : > { %8222 = vmatpush1.bf16.msra.mxu0 %v13027_v18 }
 0xec2   : > { %8224 = vmatprep.subr.bf16.mxu0 %v13028_v24 }
 0xec5   : > { %8226 = vmatpush1.bf16.msra.mxu0 %v13029_v33 }
 0xec6   : > { %8228 = vmatprep.subr.bf16.mxu0 %v13030_v53 }
 0xec9   : > { %8230 = vmatpush1.bf16.msra.mxu0 %v13031_v22 }
 0xeca   : > { %8232 = vmatprep.subr.bf16.mxu0 %v13032_v16 }
 0xecd   : > { %8234 = vmatpush1.bf16.msra.mxu0 %v13033_v27 }
 0xece   : > { %8236 = vmatprep.subr.bf16.mxu0 %v13034_v50 }
 0xed1   : > { %8238 = vmatpush1.bf16.msra.mxu0 %v13035_v29 }
 0xed2   : > { %8240 = vmatprep.subr.bf16.mxu0 %v13036_v36 }
 0xed5   : > { %8242 = vmatpush1.bf16.msra.mxu0 %v13037_v49 }
 0xed6   : > { %8244 = vmatprep.subr.bf16.mxu0 %v13038_v51 }
 0xed9   : > { %8246 = vmatpush1.bf16.msra.mxu0 %v13039_v31 }
 0xeda   : > { %8248 = vmatprep.subr.bf16.mxu0 %v13040_v57 }
 0xedd   : > { %8250 = vmatpush1.bf16.msra.mxu0 %v13041_v3 }
 0xede   : > { %8252 = vmatprep.subr.bf16.mxu0 %v13042_v41 }
 0xee1   : > { %8254 = vmatpush1.bf16.msra.mxu0 %v13043_v12 }
 0xee2   : > { %8256 = vmatprep.subr.bf16.mxu0 %v13044_v28 }
 0xee5   : > { %8258 = vmatpush1.bf16.msra.mxu0 %v13045_v56 }
 0xee6   : > { %8260 = vmatprep.subr.bf16.mxu0 %v13046_v32 }
 0xee9   : > { %8262 = vmatpush1.bf16.msra.mxu0 %v13047_v52 }
 0xeea   : > { %8264 = vmatprep.subr.bf16.mxu0 %v13048_v34  ;;  %v5554_v34 = vld [vmem:[#allocation4 + $0x10] sm:$0xf] }
 0xeed   : > { %8266 = vmatpush1.bf16.msra.mxu0 %v13049_v35  ;;  %v13059_v35 = vld [vmem:[#allocation101_spill] sm:$0xff] }
 0xeee   : > { %8268 = vmatprep.subr.bf16.mxu0 %v13050_v61  ;;  %v13060_v61 = vld [vmem:[#allocation99_spill] sm:$0xff] }
 0xef1   : > { %8270 = vmatpush1.bf16.msra.mxu0 %v13051_v37  ;;  %v13061_v37 = vpack.c.bf16 %v13059_v35, %v13060_v61  ;;  %v13090_v35 = vld [vmem:[#allocation8_spill] sm:$0xff] }
 0xef2   : > { %8272 = vmatprep.subr.bf16.mxu0 %v13052_v63  ;;  %v13062_v63 = vld [vmem:[#allocation100_spill] sm:$0xff] }
 0xef5   : > { %8274 = vmatpush1.bf16.msra.mxu0 %v13053_v6  ;;  %v13063_v6 = vld [vmem:[#allocation98_spill] sm:$0xff] }
 0xef6   : > { %8276 = vmatprep.subr.bf16.mxu0 %v13054_v47  ;;  %v13064_v47 = vpack.c.bf16 %v13062_v63, %v13063_v6  ;;  %v13093_v63 = vld [vmem:[#allocation118_spill] sm:$0xff] }
 0xef9   : > { %8278 = vmatpush1.bf16.msra.mxu0 %v13055_v17  ;;  %v13065_v17 = vld [vmem:[#allocation105_spill] sm:$0xff] }
 0xefc   : > { %5505 = vmatmul.mubr.f32.vlgmr.msra.gmra.mrb[56].mxu0 %v10951_v62 }
 0xefd   : > { %5510 = vmatprep.mubr.f32.mxu0 %v10955_v4 }
 0xf00   : > { %5511 = vmatmul.mubr.f32.gmra.mrb[58].mxu0 %v10958_v11 }
 0xf01   : > { %5516 = vmatprep.mubr.f32.mxu0 %v10963_v21 }
 0xf04   : > { %5517 = vmatmul.mubr.f32.gmra.mrb[60].mxu0 %v10966_v1 }
 0xf05   : > { %5522 = vmatprep.mubr.f32.mxu0 %v10971_v5 }
 0xf08   : > { %5523 = vmatmul.mubr.f32.gmra.mrb[62].mxu0 %v10974_v0 }
 0xf09   : > { %5528 = vmatprep.mubr.f32.mxu0 %v10979_v44 }
 0xf0c   : > { %5529 = vmatmul.mubr.f32.gmra.mrb[64].mxu0 %v10982_v39 }
 0xf0d   : > { %5534 = vmatprep.mubr.f32.mxu0 %v10987_v2 }
 0xf10   : > { %5535 = vmatmul.mubr.f32.gmra.mrb[66].mxu0 %v10990_v48 }
 0xf11   : > { %5540 = vmatprep.mubr.f32.mxu0 %v10995_v15 }
 0xf14   : > { %5541 = vmatmul.mubr.f32.gmra.mrb[68].mxu0 %v13056_v42 }
 0xf15   : > { %5546 = vmatprep.mubr.f32.mxu0 %v13057_v60 }
 0xf18   : > { %5547 = vmatmul.mubr.f32.gmra.mrb[70].mxu0 %v13058_v23 }
 0xf19   : > { %5622 = vmatprep.mubr.f32.mxu0 %v12340_v40 }
 0xfcf   : > { %v5506_v30 = vpop.f32.mrb[56].mxu0 }
 0xfd0   : > { %v5508_v19 = vpop.f32.mrb[57].mxu0 }
 0xfd3   : > { %v5512_v58 = vpop.f32.mrb[58].mxu0 }
 0xfd4   : > { %v8281_v18 = vpack.c.bf16 %v5512_v58, %v5506_v30  ;;  %v5514_v24 = vpop.f32.mrb[59].mxu0  ;;  %v13066_v30 = vld [vmem:[#allocation103_spill] sm:$0xff]  ;;  %v13068_v58 = vld [vmem:[#allocation104_spill] sm:$0xff] }
 0xfd5   : > { %v8279_v33 = vpack.c.bf16 %v5514_v24, %v5508_v19  ;;  %v13067_v19 = vpack.c.bf16 %v13065_v17, %v13066_v30  ;;  %v13096_v17 = vld [vmem:[#allocation12_spill] sm:$0xff] }
 0xfd7   : > { %v5518_v53 = vpop.f32.mrb[60].mxu0  ;;  %8280 = vmatprep.subr.bf16.mxu0 %v8279_v33  ;;  %v13071_v33 = vld [vmem:[#allocation109_spill] sm:$0xff] }
 0xfd8   : > { %v5520_v22 = vpop.f32.mrb[61].mxu0  ;;  %8282 = vmatpush1.bf16.msra.mxu0 %v8281_v18  ;;  %v13069_v18 = vld [vmem:[#allocation102_spill] sm:$0xff] }
 0xfd9   : > { %v13070_v24 = vpack.c.bf16 %v13068_v58, %v13069_v18  ;;  %v13099_v58 = vld [vmem:[#allocation11_spill] sm:$0xff] }
 0xfdb   : > { %v5524_v16 = vpop.f32.mrb[62].mxu0 }
 0xfdc   : > { %v8285_v27 = vpack.c.bf16 %v5524_v16, %v5518_v53  ;;  %v5526_v50 = vpop.f32.mrb[63].mxu0  ;;  %v13072_v53 = vld [vmem:[#allocation107_spill] sm:$0xff]  ;;  %v13074_v16 = vld [vmem:[#allocation108_spill] sm:$0xff] }
 0xfdd   : > { %v8283_v29 = vpack.c.bf16 %v5526_v50, %v5520_v22  ;;  %v13073_v22 = vpack.c.bf16 %v13071_v33, %v13072_v53  ;;  %v13102_v33 = vld [vmem:[#allocation16_spill] sm:$0xff] }
 0xfdf   : > { %v5530_v36 = vpop.f32.mrb[64].mxu0  ;;  %8284 = vmatprep.subr.bf16.mxu0 %v8283_v29  ;;  %v13077_v29 = vld [vmem:[#allocation113_spill] sm:$0xff] }
 0xfe0   : > { %v5532_v49 = vpop.f32.mrb[65].mxu0  ;;  %8286 = vmatpush1.bf16.msra.mxu0 %v8285_v27  ;;  %v13075_v27 = vld [vmem:[#allocation106_spill] sm:$0xff] }
 0xfe1   : > { %v13076_v50 = vpack.c.bf16 %v13074_v16, %v13075_v27  ;;  %v13105_v16 = vld [vmem:[#allocation15_spill] sm:$0xff] }
 0xfe3   : > { %v5536_v51 = vpop.f32.mrb[66].mxu0 }
 0xfe4   : > { %v8289_v31 = vpack.c.bf16 %v5536_v51, %v5530_v36  ;;  %v5538_v57 = vpop.f32.mrb[67].mxu0  ;;  %v13078_v36 = vld [vmem:[#allocation111_spill] sm:$0xff]  ;;  %v13080_v51 = vld [vmem:[#allocation112_spill] sm:$0xff] }
 0xfe5   : > { %v8287_v3 = vpack.c.bf16 %v5538_v57, %v5532_v49  ;;  %v13079_v49 = vpack.c.bf16 %v13077_v29, %v13078_v36  ;;  %v13107_v29 = vld [vmem:[#allocation223_spill] sm:$0xff]  ;;  %v13108_v36 = vld [vmem:[#allocation224_spill] sm:$0xff] }
 0xfe7   : > { %v5542_v41 = vpop.f32.mrb[68].mxu0  ;;  %8288 = vmatprep.subr.bf16.mxu0 %v8287_v3  ;;  %v5745_v3 = vld [vmem:[#allocation4 + $0x14] sm:$0xf] }
 0xfe8   : > { %v5544_v12 = vpop.f32.mrb[69].mxu0  ;;  %8290 = vmatpush1.bf16.msra.mxu0 %v8289_v31  ;;  %v13081_v31 = vld [vmem:[#allocation110_spill] sm:$0xff] }
 0xfe9   : > { %v13082_v57 = vpack.c.bf16 %v13080_v51, %v13081_v31  ;;  %v13110_v51 = vld [vmem:[#allocation226_spill] sm:$0xff]  ;;  %v13111_v31 = vld [vmem:[#allocation227_spill] sm:$0xff] }
 0xfeb   : > { %v5548_v28 = vpop.f32.mrb[70].mxu0 }
 0xfec   : > { %v8293_v56 = vpack.c.bf16 %v5548_v28, %v5542_v41  ;;  %v5550_v32 = vpop.f32.mrb[71].mxu0  ;;  %v13083_v41 = vld [vmem:[#allocation117_spill] sm:$0xff] }
 0xfed   : > { %v8291_v52 = vpack.c.bf16 %v5550_v32, %v5544_v12  ;;  %v13084_v12 = vld [vmem:[#allocation115_spill] sm:$0xff]  ;;  %v13087_v32 = vld [vmem:[#allocation114_spill] sm:$0xff] }
 0xfee   : > { %v13085_v28 = vpack.c.bf16 %v13083_v41, %v13084_v12  ;;  %v13114_v41 = vld [vmem:[#allocation230_spill] sm:$0xff]  ;;  %v13115_v12 = vld [vmem:[#allocation231_spill] sm:$0xff] }
 0xfef   : > { %8292 = vmatprep.subr.bf16.mxu0 %v8291_v52 }
 0xff0   : > { %8294 = vmatpush1.bf16.msra.mxu0 %v8293_v56  ;;  %v13086_v56 = vld [vmem:[#allocation116_spill] sm:$0xff] }
 0xff1   : > { %8360 = vmatprep.subr.bf16.mxu0 %v13061_v37  ;;  %v13088_v52 = vpack.c.bf16 %v13086_v56, %v13087_v32  ;;  %v13092_v37 = vld [vmem:[#allocation9_spill] sm:$0xff]  ;;  %v13118_v32 = vld [vmem:[#allocation234_spill] sm:$0xff] }
 0xff2   : > { %v13094_v6 = vpack.c.bf16 %v13092_v37, %v13093_v63  ;;  %v13117_v56 = vld [vmem:[#allocation233_spill] sm:$0xff]  ;;  %v13124_v37 = vld [vmem:[#allocation240_spill] sm:$0xff] }
 0xff3   : > { %6696 = vmatmul.mubr.msk.f32.vlgmr.msra.gmra.mrb[38].mxu0 %vm4790_vm3, %v5554_v34  ;;  %v13089_v34 = vld [vmem:[#allocation10_spill] sm:$0xff]  ;;  %v13125_v63 = vld [vmem:[#allocation241_spill] sm:$0xff] }
 0xff4   : > { %8362 = vmatpush1.bf16.msra.mxu0 %v13064_v47  ;;  %5813 = vmatprep.mubr.f32.mxu0 %v12340_v40  ;;  %v13091_v61 = vpack.c.bf16 %v13089_v34, %v13090_v35  ;;  %v13095_v47 = vld [vmem:[#allocation14_spill] sm:$0xff]  ;;  %v13121_v34 = vld [vmem:[#allocation237_spill] sm:$0xff] }
 0xff5   : > { %8364 = vmatprep.subr.bf16.mxu0 %v13067_v19  ;;  %v13097_v30 = vpack.c.bf16 %v13095_v47, %v13096_v17  ;;  %v13098_v19 = vld [vmem:[#allocation13_spill] sm:$0xff]  ;;  %v13122_v35 = vld [vmem:[#allocation238_spill] sm:$0xff]  ;;  %v13127_v47 = vld [vmem:[#allocation243_spill] sm:$0xff] }
 0xff6   : > { %v13100_v18 = vpack.c.bf16 %v13098_v19, %v13099_v58  ;;  %v13128_v17 = vld [vmem:[#allocation244_spill] sm:$0xff]  ;;  %v13130_v19 = vld [vmem:[#allocation246_spill] sm:$0xff]  ;;  %v13131_v58 = vld [vmem:[#allocation247_spill] sm:$0xff] }
 0xff8   : > { %8366 = vmatpush1.bf16.msra.mxu0 %v13070_v24  ;;  %v13101_v24 = vld [vmem:[#allocation18_spill] sm:$0xff] }
 0xff9   : > { %8368 = vmatprep.subr.bf16.mxu0 %v13073_v22  ;;  %v13103_v53 = vpack.c.bf16 %v13101_v24, %v13102_v33  ;;  %v13104_v22 = vld [vmem:[#allocation17_spill] sm:$0xff]  ;;  %v13134_v33 = vld [vmem:[#allocation250_spill] sm:$0xff] }
 0xffa   : > { %v13106_v27 = vpack.c.bf16 %v13104_v22, %v13105_v16  ;;  %v13133_v24 = vld [vmem:[#allocation249_spill] sm:$0xff]  ;;  %v13136_v22 = vld [vmem:[#allocation252_spill] sm:$0xff] }
 0xffb   : > { %v13137_v16 = vld [vmem:[#allocation253_spill] sm:$0xff] }
 0xffc   : > { %8370 = vmatpush1.bf16.msra.mxu0 %v13076_v50  ;;  %v5936_v50 = vld [vmem:[#allocation4 + $0x18] sm:$0xf] }
 0xffd   : > { %8372 = vmatprep.subr.bf16.mxu0 %v13079_v49  ;;  %v13109_v49 = vld [vmem:[#allocation225_spill] sm:$0xff] }
0x1000   : > { %8374 = vmatpush1.bf16.msra.mxu0 %v13082_v57  ;;  %v13112_v57 = vld [vmem:[#allocation228_spill] sm:$0xff] }
0x1001   : > { %8440 = vmatprep.subr.bf16.mxu0 %v13085_v28  ;;  %v13116_v28 = vld [vmem:[#allocation232_spill] sm:$0xff] }
0x1003   : > { %6697 = vmatmul.mubr.msk.f32.vlgmr.msra.gmra.mrb[38].mxu0 %vm4790_vm3, %v5745_v3  ;;  %v13113_v3 = vld [vmem:[#allocation229_spill] sm:$0xff] }
0x1004   : > { %8442 = vmatpush1.bf16.msra.mxu0 %v13088_v52  ;;  %6004 = vmatprep.mubr.f32.mxu0 %v12340_v40  ;;  %v13120_v52 = vld [vmem:[#allocation236_spill] sm:$0xff] }
0x1005   : > { %8444 = vmatprep.subr.bf16.mxu0 %v13091_v61  ;;  %v13123_v61 = vld [vmem:[#allocation239_spill] sm:$0xff] }
0x1008   : > { %8446 = vmatpush1.bf16.msra.mxu0 %v13094_v6  ;;  %v13126_v6 = vld [vmem:[#allocation242_spill] sm:$0xff] }
0x1009   : > { %8448 = vmatprep.subr.bf16.mxu0 %v13097_v30  ;;  %v13129_v30 = vld [vmem:[#allocation245_spill] sm:$0xff] }
0x100c   : > { %8450 = vmatpush1.bf16.msra.mxu0 %v13100_v18  ;;  %v13132_v18 = vld [vmem:[#allocation248_spill] sm:$0xff] }
0x100d   : > { %8452 = vmatprep.subr.bf16.mxu0 %v13103_v53  ;;  %v13135_v53 = vld [vmem:[#allocation251_spill] sm:$0xff] }
0x1010   : > { %8454 = vmatpush1.bf16.msra.mxu0 %v13106_v27  ;;  %v13138_v27 = vld [vmem:[#allocation254_spill] sm:$0xff] }
0x1011   : > { %8456 = vmatprep.subr.bf16.mxu0 %v13107_v29 }
0x1013   : > { %6698 = vmatmul.mubr.msk.f32.vlgmr.msra.gmra.mrb[38].mxu0 %vm4790_vm3, %v5936_v50 }
0x1014   : > { %8458 = vmatpush1.bf16.msra.mxu0 %v13108_v36  ;;  %6077 = vmatprep.mubr.f32.mxu0 %v10949_v55  ;;  %v13119_v55 = vld [vmem:[#allocation235_spill] sm:$0xff] }
0x1015   : > { %8460 = vmatprep.subr.bf16.mxu0 %v13109_v49 }
0x1018   : > { %8462 = vmatpush1.bf16.msra.mxu0 %v13110_v51 }
0x1019   : > { %8464 = vmatprep.subr.bf16.mxu0 %v13111_v31 }
0x101c   : > { %8466 = vmatpush1.bf16.msra.mxu0 %v13112_v57 }
0x101d   : > { %8468 = vmatprep.subr.bf16.mxu0 %v13113_v3 }
0x1020   : > { %8470 = vmatpush1.bf16.msra.mxu0 %v13114_v41 }
0x1021   : > { %8472 = vmatprep.subr.bf16.mxu0 %v13115_v12  ;;  %v6127_v12 = vld [vmem:[#allocation4 + $0x1c] sm:$0xf] }
0x1024   : > { %8474 = vmatpush1.bf16.msra.mxu0 %v13116_v28  ;;  %v13139_v28 = vld [vmem:[#allocation22_spill] sm:$0xff] }
0x1025   : > { %8476 = vmatprep.subr.bf16.mxu0 %v13117_v56  ;;  %v13140_v56 = vld [vmem:[#allocation20_spill] sm:$0xff] }
0x1028   : > { %8478 = vmatpush1.bf16.msra.mxu0 %v13118_v32  ;;  %v13141_v32 = vpack.c.bf16 %v13139_v28, %v13140_v56 }
0x1029   : > { %8480 = vmatprep.subr.bf16.mxu0 %v13119_v55  ;;  %v13142_v55 = vld [vmem:[#allocation21_spill] sm:$0xff] }
0x102c   : > { %8482 = vmatpush1.bf16.msra.mxu0 %v13120_v52  ;;  %v13143_v52 = vld [vmem:[#allocation19_spill] sm:$0xff] }
0x102d   : > { %8484 = vmatprep.subr.bf16.mxu0 %v13121_v34  ;;  %v13144_v34 = vpack.c.bf16 %v13142_v55, %v13143_v52 }
0x1030   : > { %8486 = vmatpush1.bf16.msra.mxu0 %v13122_v35  ;;  %v13145_v35 = vpack.c.bf16 %v11498_v43, %v11492_v9 }
0x1031   : > { %8488 = vmatprep.subr.bf16.mxu0 %v13123_v61  ;;  %v13146_v61 = vld [vmem:[#allocation23_spill] sm:$0xff] }
0x1034   : > { %8490 = vmatpush1.bf16.msra.mxu0 %v13124_v37  ;;  %v13147_v37 = vpack.c.bf16 %v11494_v25, %v13146_v61  ;;  %v4673_v25 = vpop.permute.xlu0 %4672 }
0x1035   : > { %8492 = vmatprep.subr.bf16.mxu0 %v13125_v63 }
0x1038   : > { %8494 = vmatpush1.bf16.msra.mxu0 %v13126_v6 }
0x1039   : > { %8496 = vmatprep.subr.bf16.mxu0 %v13127_v47 }
0x103c   : > { %8498 = vmatpush1.bf16.msra.mxu0 %v13128_v17 }
0x103d   : > { %8500 = vmatprep.subr.bf16.mxu0 %v13129_v30 }
0x1040   : > { %8502 = vmatpush1.bf16.msra.mxu0 %v13130_v19 }
0x1041   : > { %8504 = vmatprep.subr.bf16.mxu0 %v13131_v58 }
0x1044   : > { %8506 = vmatpush1.bf16.msra.mxu0 %v13132_v18 }
0x1045   : > { %8508 = vmatprep.subr.bf16.mxu0 %v13133_v24 }
0x1048   : > { %8510 = vmatpush1.bf16.msra.mxu0 %v13134_v33 }
0x1049   : > { %8512 = vmatprep.subr.bf16.mxu0 %v13135_v53 }
0x104c   : > { %8514 = vmatpush1.bf16.msra.mxu0 %v13136_v22 }
0x104d   : > { %8516 = vmatprep.subr.bf16.mxu0 %v13137_v16 }
0x1050   : > { %8518 = vmatpush1.bf16.msra.mxu0 %v13138_v27 }
0x1053   : > { %6078 = vmatmul.mubr.f32.vlgmr.msra.gmra.mrb[72].mxu0 %v10951_v62 }
0x1054   : > { %6083 = vmatprep.mubr.f32.mxu0 %v10955_v4 }
0x1057   : > { %6084 = vmatmul.mubr.f32.gmra.mrb[74].mxu0 %v10958_v11 }
0x1058   : > { %6089 = vmatprep.mubr.f32.mxu0 %v10963_v21 }
0x105b   : > { %6090 = vmatmul.mubr.f32.gmra.mrb[76].mxu0 %v10966_v1 }
0x105c   : > { %6095 = vmatprep.mubr.f32.mxu0 %v10971_v5 }
0x105f   : > { %6096 = vmatmul.mubr.f32.gmra.mrb[78].mxu0 %v10974_v0 }
0x1060   : > { %6101 = vmatprep.mubr.f32.mxu0 %v10979_v44 }
0x1063   : > { %6102 = vmatmul.mubr.f32.gmra.mrb[80].mxu0 %v10982_v39 }
0x1064   : > { %6107 = vmatprep.mubr.f32.mxu0 %v10987_v2 }
0x1067   : > { %6108 = vmatmul.mubr.f32.gmra.mrb[82].mxu0 %v10990_v48 }
0x1068   : > { %6113 = vmatprep.mubr.f32.mxu0 %v10995_v15 }
0x106b   : > { %6114 = vmatmul.mubr.f32.gmra.mrb[84].mxu0 %v13056_v42 }
0x106c   : > { %6119 = vmatprep.mubr.f32.mxu0 %v13057_v60 }
0x106f   : > { %6120 = vmatmul.mubr.f32.gmra.mrb[86].mxu0 %v13058_v23 }
0x1070   : > { %6195 = vmatprep.mubr.f32.mxu0 %v12340_v40 }
0x1126   : > { %v6079_v4 = vpop.f32.mrb[72].mxu0 }
0x1127   : > { %v6081_v62 = vpop.f32.mrb[73].mxu0 }
0x112a   : > { %v6085_v11 = vpop.f32.mrb[74].mxu0 }
0x112b   : > { %v8521_v21 = vpack.c.bf16 %v6085_v11, %v6079_v4  ;;  %v6087_v1 = vpop.f32.mrb[75].mxu0 }
0x112c   : > { %v8519_v5 = vpack.c.bf16 %v6087_v1, %v6081_v62 }
0x112e   : > { %v6091_v0 = vpop.f32.mrb[76].mxu0  ;;  %8520 = vmatprep.subr.bf16.mxu0 %v8519_v5 }
0x112f   : > { %v6093_v44 = vpop.f32.mrb[77].mxu0  ;;  %8522 = vmatpush1.bf16.msra.mxu0 %v8521_v21 }
0x1132   : > { %v6097_v48 = vpop.f32.mrb[78].mxu0 }
0x1133   : > { %v8525_v39 = vpack.c.bf16 %v6097_v48, %v6091_v0  ;;  %v6099_v2 = vpop.f32.mrb[79].mxu0 }
0x1134   : > { %v8523_v15 = vpack.c.bf16 %v6099_v2, %v6093_v44 }
0x1136   : > { %v6103_v42 = vpop.f32.mrb[80].mxu0  ;;  %8524 = vmatprep.subr.bf16.mxu0 %v8523_v15 }
0x1137   : > { %v6105_v60 = vpop.f32.mrb[81].mxu0  ;;  %8526 = vmatpush1.bf16.msra.mxu0 %v8525_v39 }
0x113a   : > { %v6109_v23 = vpop.f32.mrb[82].mxu0 }
0x113b   : > { %v8529_v50 = vpack.c.bf16 %v6109_v23, %v6103_v42  ;;  %v6111_v29 = vpop.f32.mrb[83].mxu0 }
0x113c   : > { %v8527_v36 = vpack.c.bf16 %v6111_v29, %v6105_v60 }
0x113e   : > { %v6115_v49 = vpop.f32.mrb[84].mxu0  ;;  %8528 = vmatprep.subr.bf16.mxu0 %v8527_v36 }
0x113f   : > { %v6117_v51 = vpop.f32.mrb[85].mxu0  ;;  %8530 = vmatpush1.bf16.msra.mxu0 %v8529_v50 }
0x1142   : > { %v6121_v31 = vpop.f32.mrb[86].mxu0 }
0x1143   : > { %v8533_v57 = vpack.c.bf16 %v6121_v31, %v6115_v49  ;;  %v6123_v3 = vpop.f32.mrb[87].mxu0 }
0x1144   : > { %v8531_v41 = vpack.c.bf16 %v6123_v3, %v6117_v51 }
0x1146   : > { %8532 = vmatprep.subr.bf16.mxu0 %v8531_v41 }
0x1147   : > { %8534 = vmatpush1.bf16.msra.mxu0 %v8533_v57 }
0x1148   : > { %8600 = vmatprep.subr.bf16.mxu0 %v13141_v32 }
0x114a   : > { %6699 = vmatmul.mubr.msk.f32.vlgmr.msra.gmra.mrb[38].mxu0 %vm4790_vm3, %v6127_v12 }
0x114b   : > { %8602 = vmatpush1.bf16.msra.mxu0 %v13144_v34  ;;  %6386 = vmatprep.mubr.f32.mxu0 %v12340_v40  ;;  %v6318_v40 = vld [vmem:[#allocation4 + $0x20] sm:$0xf] }
0x114c   : > { %8604 = vmatprep.subr.bf16.mxu0 %v13145_v35 }
0x114f   : > { %8606 = vmatpush1.bf16.msra.mxu0 %v13147_v37 }
0x1150   : > { %8608 = vmatprep.subr.bf16.mxu0 %v8607_v7 }
0x1153   : > { %8610 = vmatpush1.bf16.msra.mxu0 %v8609_v46 }
0x1154   : > { %8612 = vmatprep.subr.bf16.mxu0 %v8611_v59 }
0x1157   : > { %8614 = vmatpush1.bf16.msra.mxu0 %v8613_v20 }
0x115a   : > { %6700 = vmatmul.mubr.msk.f32.vlgmr.msra.gmra.mrb[38].mxu0 %vm4790_vm3, %v6318_v40 }
0x122d   : > { %v6388_v43 = vpop.f32.mrb[38].mxu0 }
0x122e   : > { %v8635_v9 = vadd.f32 %v6388_v43, %v4673_v25  ;;  %v6390_v26 = vpop.f32.mrb[39].mxu0 }
0x122f   : > { %v8636_v54 = vadd.f32 %v6390_v26, %v4673_v25 }
0x1230   : > { %v6701_v7 = vmul.f32 -1.442695, %v8635_v9 }
0x1231   : > { %v6702_v10 = vmul.f32 -1.442695, %v8636_v54 }
0x1232   : > { %8853 = vpow2.f32 %v6701_v7 }
0x1233   : > { %8855 = vpow2.f32 %v6702_v10 }
0x123c   : > { %v8854_v13 = vpop.eup %8853 }
0x123d   : > { %v8856_v38 = vpop.eup %8855  ;;  %v6401_v46 = vadd.f32 1.0, %v8854_v13 }
0x123e   : > { %v6402_v45 = vadd.f32 1.0, %v8856_v38 }
0x123f   : > { %8857 = vrcp.f32 %v6401_v46 }
0x1240   : > { %8859 = vrcp.f32 %v6402_v45 }
0x1249   : > { %v8858_v14 = vpop.eup %8857 }
0x124a   : > { %v8860_v8 = vpop.eup %8859  ;;  %v8813_v20 = vround.rtne.f32 %v8858_v14 }
0x124b   : > { %v8814_v59 = vround.rtne.f32 %v8860_v8 }
0x124d   : > { %v6411_v63 = vcombine.low %v8813_v20, %v8814_v59 }
0x124f   : > { %6413 = vst [vmem:[%s335_s20] sm:$0xff] %v6411_v63 }
0x1250 PF: > { %s20_s27 = sadd.s32 1, %s8933_s27  }
0x1251   : > { %p17_p9 = scmp.ge.s32.totalorder %s20_s27, 4  }
0x1253   :  { %19 = sbr.rel (!%p17_p9) target bundleno = 2 (0x2), region = 123 }
0x125a   :  { %6435 = vsyncpa [#allocation3], 1 }
0x125b   :  { %6437 = vsyncpa [#allocation3 + $0x1], 1 }
0x125c   :  { %6438 = vsyncpa [#allocation5], 1 }

</bundles_post_ra>
